<compile_context>
chip_gen: v7x
topology: tpu7x:2x2x1
jax: 0.10.0
libtpu: 0.0.40
codegen_flags: <defaults>
</compile_context>

<pallas_src>
import functools
import math

import jax
import jax.numpy as jnp
from jax.experimental import pallas as pl
from jax.experimental.pallas import tpu as pltpu


NUM_CLASSES = 5
IN_CH_LIST = [32, 48, 96, 232]
FPN_CH = 256
EMBED = 192
NUM_HEADS = 4
LOGIT_PAD = 128                       # lane-dense padding for the 5-wide heads

_VMEM_LIMIT = 32 * 1024 * 1024        # sized for v7x's 64 MiB physical VMEM


def _cparams(*sem):
    return pltpu.CompilerParams(dimension_semantics=sem,
                                vmem_limit_bytes=_VMEM_LIMIT)


def _full_spec(a):
    """BlockSpec covering the whole array (grid-invariant)."""
    return pl.BlockSpec(a.shape, lambda i, _z=(0,) * a.ndim: _z)


# --------------------------------------------------------------------------
# The single fused kernel: deepest-FPN feature (folded 1x1 + 1x1 + 3x3),
# heatmap 1x1, reducer 1x1, 2x transformer encoder layers, head.
# --------------------------------------------------------------------------

def _fused_tail_kernel(imcol_ref, valid_ref, wbig_ref, bmat_ref, bfpn_ref,
                       wred_ref, bred_ref, whm_ref, bhm_ref,
                       wqkv_ref, bqkv_ref, wout_ref, bout_ref,
                       ln1g_ref, ln1b_ref, wff1_ref, bff1_ref,
                       wff2_ref, bff2_ref, ln2g_ref, ln2b_ref,
                       wtout_ref, btout_ref,
                       meta_ref, wm1_ref, bm1_ref, wm2_ref, bm2_ref,
                       wc1a_ref, wc1b_ref, bc1_ref, wc2_ref, bc2_ref,
                       heat_ref, logits_ref,
                       *, B, P, num_heads, num_layers, has_metadata):
    bf16 = jnp.bfloat16
    f32 = jnp.float32
    E = wred_ref.shape[1]
    hd = E // num_heads
    scale = 1.0 / math.sqrt(hd)

    # ---- deepest FPN output: folded (backbone 1x1 ∘ lateral 1x1 ∘ 3x3) ----
    # imcol holds the 9 shifted taps of the zero-padded pooled image; `valid`
    # restores the folded lateral bias only where the 3x3 tap is in-bounds
    # (zero padding of the lateral map), so the fold is exact.
    feat = (jnp.dot(imcol_ref[...], wbig_ref[...], preferred_element_type=f32)
            + jnp.dot(valid_ref[...], bmat_ref[...], preferred_element_type=f32)
            + bfpn_ref[...])                                   # (P*B, 256) f32
    fb = feat.astype(bf16)

    # heatmap 1x1 (lane-padded to 128 cols; sliced/reordered in the wrapper)
    heat_ref[...] = (jnp.dot(fb, whm_ref[...], preferred_element_type=f32)
                     + bhm_ref[...])

    # conv_reducer 1x1 -> transformer tokens, patch-major rows (p*B + b)
    x = (jnp.dot(fb, wred_ref[...], preferred_element_type=f32)
         + bred_ref[...])                                      # (P*B, E) f32

    # ---- transformer encoder layers (post-LN, batch_first=False, eval) ----
    # The reference feeds (B, P, E) to a batch_first=False encoder, so
    # attention runs over the image batch, batched over patches -> per-patch
    # (B, B) scores via batched einsum; no additive mask.
    for l in range(num_layers):
        xb = x.astype(bf16)
        qkv = (jnp.dot(xb, wqkv_ref[l], preferred_element_type=f32)
               + bqkv_ref[l])                                  # (P*B, 3E) f32
        heads = []
        for h in range(num_heads):
            qh = qkv[:, h * hd:(h + 1) * hd].astype(bf16).reshape(P, B, hd)
            kh = qkv[:, E + h * hd:E + (h + 1) * hd].astype(bf16).reshape(P, B, hd)
            vh = qkv[:, 2 * E + h * hd:2 * E + (h + 1) * hd].astype(bf16).reshape(P, B, hd)
            s = jnp.einsum("pbd,pcd->pbc", qh, kh,
                           preferred_element_type=f32) * scale  # (P, B, B) f32
            s = s - jnp.max(s, axis=-1, keepdims=True)
            e = jnp.exp(s)
            pa = e * pl.reciprocal(jnp.sum(e, axis=-1, keepdims=True), approx=True)
            oh = jnp.einsum("pbc,pcd->pbd", pa.astype(bf16), vh,
                            preferred_element_type=f32)         # (P, B, hd)
            heads.append(oh.reshape(P * B, hd))
        attn = jnp.concatenate(heads, axis=-1)                  # (P*B, E) f32
        attn = (jnp.dot(attn.astype(bf16), wout_ref[l],
                        preferred_element_type=f32) + bout_ref[l])

        # residual + LayerNorm 1 (f32 epilogue)
        h1 = x + attn
        mu = jnp.mean(h1, axis=-1, keepdims=True)
        var = jnp.mean(jnp.square(h1 - mu), axis=-1, keepdims=True)
        h1 = (h1 - mu) * jax.lax.rsqrt(var + 1e-5) * ln1g_ref[l] + ln1b_ref[l]

        # feed-forward (GELU) + residual + LayerNorm 2
        # TODO(synk): PyTorch's default F.gelu is the exact erf form; the
        # tanh approximation is used for guaranteed Mosaic lowering.
        ff = (jnp.dot(h1.astype(bf16), wff1_ref[l],
                      preferred_element_type=f32) + bff1_ref[l])
        ff = jax.nn.gelu(ff, approximate=True)
        ff = (jnp.dot(ff.astype(bf16), wff2_ref[l],
                      preferred_element_type=f32) + bff2_ref[l])
        h2 = h1 + ff
        mu = jnp.mean(h2, axis=-1, keepdims=True)
        var = jnp.mean(jnp.square(h2 - mu), axis=-1, keepdims=True)
        x = (h2 - mu) * jax.lax.rsqrt(var + 1e-5) * ln2g_ref[l] + ln2b_ref[l]

    # ---- head: mean over patches (rows p*B+b), output Linear ----
    pooled = x[0:B, :]
    for pi in range(1, P):
        pooled = pooled + x[pi * B:(pi + 1) * B, :]
    pooled = pooled * (1.0 / P)
    featv = (jnp.dot(pooled.astype(bf16), wtout_ref[...],
                     preferred_element_type=f32) + btout_ref[...])   # (B, E)

    # metadata MLP (or the torch.cat-with-zeros path)
    if has_metadata:
        m = (jnp.dot(meta_ref[...].astype(bf16), wm1_ref[...],
                     preferred_element_type=f32) + bm1_ref[...])
        m = jnp.maximum(m, 0.0)
        m = (jnp.dot(m.astype(bf16), wm2_ref[...],
                     preferred_element_type=f32) + bm2_ref[...])
        m = jnp.maximum(m, 0.0)
    else:
        m = jnp.zeros((B, wm2_ref.shape[1]), f32)

    # classifier Linear(E+128, 512): weight rows are pre-split in the wrapper
    # so no in-kernel lane concat of (featv, m) is needed.
    hcl = (jnp.dot(featv.astype(bf16), wc1a_ref[...], preferred_element_type=f32)
           + jnp.dot(m.astype(bf16), wc1b_ref[...], preferred_element_type=f32)
           + bc1_ref[...])
    hcl = jnp.maximum(hcl, 0.0)                        # Dropout = identity (eval)
    logits_ref[...] = (jnp.dot(hcl.astype(bf16), wc2_ref[...],
                               preferred_element_type=f32) + bc2_ref[...])


def fused_tail(imcol, valid, metadata, pk, *, B, H, W):
    M = imcol.shape[0]                                 # = H*W*B, patch-major rows
    P = H * W
    has_metadata = metadata is not None
    if metadata is None:
        metadata = jnp.zeros((B, 3), jnp.float32)

    args = (imcol, valid,
            pk["wbig"], pk["bmat"], pk["bfpn"],
            pk["wred"], pk["bred"], pk["whm"], pk["bhm"],
            pk["wqkv"], pk["bqkv"], pk["wout"], pk["bout"],
            pk["ln1g"], pk["ln1b"], pk["wff1"], pk["bff1"],
            pk["wff2"], pk["bff2"], pk["ln2g"], pk["ln2b"],
            pk["wtout"], pk["btout"],
            metadata, pk["wm1"], pk["bm1"], pk["wm2"], pk["bm2"],
            pk["wc1a"], pk["wc1b"], pk["bc1"], pk["wc2"], pk["bc2"])

    heat, logits = pl.pallas_call(
        functools.partial(_fused_tail_kernel, B=B, P=P, num_heads=NUM_HEADS,
                          num_layers=pk["wqkv"].shape[0],
                          has_metadata=has_metadata),
        out_shape=(jax.ShapeDtypeStruct((M, LOGIT_PAD), jnp.float32),
                   jax.ShapeDtypeStruct((B, LOGIT_PAD), jnp.float32)),
        grid=(1,),
        in_specs=[_full_spec(a) for a in args],
        out_specs=(pl.BlockSpec((M, LOGIT_PAD), lambda i: (0, 0)),
                   pl.BlockSpec((B, LOGIT_PAD), lambda i: (0, 0))),
        compiler_params=_cparams("arbitrary"),
    )(*args)
    return heat, logits


# --------------------------------------------------------------------------
# Plain-JAX glue (avg-pool backbone stand-in, im2col, output un-permute)
# --------------------------------------------------------------------------

def avgpool(x_nhwc, s):
    B, H, W, C = x_nhwc.shape
    return x_nhwc.reshape(B, H // s, s, W // s, s, C).mean(axis=(2, 4))


def deepest_level_inputs(pooled_nhwc):
    """Tap-major im2col of the zero-padded pooled image, rows in (h, w, b)
    patch-major order, plus the per-(row, tap) in-bounds mask that restores
    the folded lateral bias only where the 3x3 tap is inside the image."""
    B, H, W, C = pooled_nhwc.shape
    xp = jnp.pad(pooled_nhwc, ((0, 0), (1, 1), (1, 1), (0, 0)))
    taps = [xp[:, dh:dh + H, dw:dw + W, :] for dh in range(3) for dw in range(3)]
    imcol = jnp.stack(taps, axis=3)                               # (B,H,W,9,C)
    imcol = jnp.transpose(imcol, (1, 2, 0, 3, 4)).reshape(H * W * B, 9 * C)

    hh = jnp.arange(H)[:, None]
    ww = jnp.arange(W)[None, :]
    vals = [((hh + dh - 1 >= 0) & (hh + dh - 1 < H) &
             (ww + dw - 1 >= 0) & (ww + dw - 1 < W))
            for dh in range(3) for dw in range(3)]
    valid = jnp.stack(vals, axis=-1).astype(jnp.float32)          # (H, W, 9)
    valid = jnp.broadcast_to(valid[:, :, None, :],
                             (H, W, B, 9)).reshape(H * W * B, 9)
    return imcol.astype(jnp.bfloat16), valid.astype(jnp.bfloat16)


# --------------------------------------------------------------------------
# Parameters (deterministic synthetic init) + one-time packing/folding
# --------------------------------------------------------------------------

def init_params(key):
    keys = iter(jax.random.split(key, 64))

    def dense(shape, scale=0.02):
        return jax.random.normal(next(keys), shape, jnp.float32) * scale

    p = {}
    # TODO(synk): EfficientNet-B3 pretrained backbone is not reproduced; the
    # stand-in (stride avg-pool + 1x1 projection) only matches channel counts.
    p["backbone"] = [{"w": dense((3, c)), "b": dense((c,))} for c in IN_CH_LIST]
    p["lateral"] = [{"w": dense((c, FPN_CH)), "b": dense((FPN_CH,))} for c in IN_CH_LIST]
    p["fpn"] = [{"w": dense((3, 3, FPN_CH, FPN_CH)), "b": dense((FPN_CH,))}
                for _ in IN_CH_LIST]
    p["reducer"] = {"w": dense((FPN_CH, EMBED)), "b": dense((EMBED,))}
    p["heatmap"] = {"w": dense((FPN_CH, NUM_CLASSES)), "b": dense((NUM_CLASSES,))}

    layers = []
    for _ in range(2):
        layers.append({
            "in_proj_w": dense((EMBED, 3 * EMBED)), "in_proj_b": dense((3 * EMBED,)),
            "out_proj_w": dense((EMBED, EMBED)), "out_proj_b": dense((EMBED,)),
            "ln1_g": jnp.ones((EMBED,), jnp.float32), "ln1_b": jnp.zeros((EMBED,), jnp.float32),
            "ln2_g": jnp.ones((EMBED,), jnp.float32), "ln2_b": jnp.zeros((EMBED,), jnp.float32),
            "ff1_w": dense((EMBED, 4 * EMBED)), "ff1_b": dense((4 * EMBED,)),
            "ff2_w": dense((4 * EMBED, EMBED)), "ff2_b": dense((EMBED,)),
        })
    p["tlayers"] = layers
    p["tout"] = {"w": dense((EMBED, EMBED)), "b": dense((EMBED,))}
    p["meta1"] = {"w": dense((3, 64)), "b": dense((64,))}
    p["meta2"] = {"w": dense((64, 128)), "b": dense((128,))}
    p["cls1"] = {"w": dense((EMBED + 128, 512)), "b": dense((512,))}
    p["cls2"] = {"w": dense((512, NUM_CLASSES)), "b": dense((NUM_CLASSES,))}
    return p


def pack_params(p):
    """One-time weight folding / bf16 packing (hoisted out of the forward).

    Only the deepest FPN level feeds the model outputs (the PyTorch forward
    consumes fpn_outs[-1] == fpn_convs[-1](lateral_convs[-1](features[-1])) ),
    so only that level's weights are folded/packed.
    """
    bf16 = jnp.bfloat16
    pad = LOGIT_PAD - NUM_CLASSES

    # Fold backbone-standin 1x1 -> lateral 1x1 -> deepest FPN 3x3 (in f32).
    w_bb, b_bb = p["backbone"][-1]["w"], p["backbone"][-1]["b"]
    w_lat, b_lat = p["lateral"][-1]["w"], p["lateral"][-1]["b"]
    w_bl = w_bb @ w_lat                                   # (3, 256)
    b_bl = b_bb @ w_lat + b_lat                           # (256,)
    w_fpn = p["fpn"][-1]["w"].reshape(9, FPN_CH, FPN_CH)  # tap-major (3*dh+dw)
    wbig = jnp.einsum("ci,tio->tco", w_bl, w_fpn).reshape(27, FPN_CH)
    bmat = jnp.einsum("i,tio->to", b_bl, w_fpn)           # (9, 256)

    packed = {
        "wbig": wbig.astype(bf16),
        "bmat": bmat.astype(bf16),
        "bfpn": p["fpn"][-1]["b"].reshape(1, FPN_CH),
        "wred": p["reducer"]["w"].astype(bf16),
        "bred": p["reducer"]["b"].reshape(1, -1),
        "whm": jnp.pad(p["heatmap"]["w"], ((0, 0), (0, pad))).astype(bf16),
        "bhm": jnp.pad(p["heatmap"]["b"], (0, pad)).reshape(1, -1),
        "wtout": p["tout"]["w"].astype(bf16),
        "btout": p["tout"]["b"].reshape(1, -1),
        "wm1": p["meta1"]["w"].astype(bf16), "bm1": p["meta1"]["b"].reshape(1, -1),
        "wm2": p["meta2"]["w"].astype(bf16), "bm2": p["meta2"]["b"].reshape(1, -1),
        "wc1a": p["cls1"]["w"][:EMBED].astype(bf16),
        "wc1b": p["cls1"]["w"][EMBED:].astype(bf16),
        "bc1": p["cls1"]["b"].reshape(1, -1),
        "wc2": jnp.pad(p["cls2"]["w"], ((0, 0), (0, pad))).astype(bf16),
        "bc2": jnp.pad(p["cls2"]["b"], (0, pad)).reshape(1, -1),
    }

    # Stack per-layer transformer params on a leading layer axis so the fused
    # kernel indexes them with a static leading index.
    L = len(p["tlayers"])
    stk = lambda k: jnp.stack([lp[k] for lp in p["tlayers"]])
    packed["wqkv"] = stk("in_proj_w").astype(bf16)                    # (L,E,3E)
    packed["bqkv"] = stk("in_proj_b").reshape(L, 1, 3 * EMBED)
    packed["wout"] = stk("out_proj_w").astype(bf16)
    packed["bout"] = stk("out_proj_b").reshape(L, 1, EMBED)
    packed["ln1g"] = stk("ln1_g").reshape(L, 1, EMBED)
    packed["ln1b"] = stk("ln1_b").reshape(L, 1, EMBED)
    packed["wff1"] = stk("ff1_w").astype(bf16)
    packed["bff1"] = stk("ff1_b").reshape(L, 1, 4 * EMBED)
    packed["wff2"] = stk("ff2_w").astype(bf16)
    packed["bff2"] = stk("ff2_b").reshape(L, 1, EMBED)
    packed["ln2g"] = stk("ln2_g").reshape(L, 1, EMBED)
    packed["ln2b"] = stk("ln2_b").reshape(L, 1, EMBED)
    return packed


# --------------------------------------------------------------------------
# Full forward pass: XLA glue (pool / im2col / un-permute) + ONE pallas_call
# --------------------------------------------------------------------------

@jax.jit
def chest_xray_forward(packed, x_nchw, metadata):
    B = x_nchw.shape[0]
    x = jnp.transpose(x_nchw, (0, 2, 3, 1))                 # NCHW -> NHWC
    pooled = avgpool(x, 32)                                 # deepest stand-in level
    _, H, W, _ = pooled.shape

    imcol, valid = deepest_level_inputs(pooled)
    heat, logits = fused_tail(imcol, valid, metadata, packed, B=B, H=H, W=W)

    heatmap = jnp.transpose(
        heat[:, :NUM_CLASSES].reshape(H, W, B, NUM_CLASSES), (2, 3, 0, 1))
    return logits[:, :NUM_CLASSES], heatmap


# --------------------------------------------------------------------------
# Main
# --------------------------------------------------------------------------

if __name__ == "__main__":
    key = jax.random.PRNGKey(0)
    pkey, xkey, mkey = jax.random.split(key, 3)

    params = init_params(pkey)
    packed = pack_params(params)        # one-time folding / packing (outside jit)

    # Small shapes: 64x64 NCHW image -> deepest backbone feature 2x2.
    x = jax.random.normal(xkey, (2, 3, 64, 64), jnp.float32)
    metadata = jax.random.normal(mkey, (2, 3), jnp.float32)

    logits, heatmap = chest_xray_forward(packed, x, metadata)
    jax.block_until_ready((logits, heatmap))

    assert logits.shape == (2, NUM_CLASSES), logits.shape
    assert heatmap.shape == (2, NUM_CLASSES, 2, 2), heatmap.shape
    print("KERNEL_OK")
</pallas_src>

<mosaic_0001>
module attributes {stable_mosaic.version = 11 : i64} {
  func.func @_fused_tail_kernel(%arg0: i32, %arg1: memref<8x27xbf16, #tpu.memory_space<vmem>>, %arg2: memref<8x9xbf16, #tpu.memory_space<vmem>>, %arg3: memref<27x256xbf16, #tpu.memory_space<vmem>>, %arg4: memref<9x256xbf16, #tpu.memory_space<vmem>>, %arg5: memref<1x256xf32, #tpu.memory_space<vmem>>, %arg6: memref<256x192xbf16, #tpu.memory_space<vmem>>, %arg7: memref<1x192xf32, #tpu.memory_space<vmem>>, %arg8: memref<256x128xbf16, #tpu.memory_space<vmem>>, %arg9: memref<1x128xf32, #tpu.memory_space<vmem>>, %arg10: memref<2x192x576xbf16, #tpu.memory_space<vmem>>, %arg11: memref<2x1x576xf32, #tpu.memory_space<vmem>>, %arg12: memref<2x192x192xbf16, #tpu.memory_space<vmem>>, %arg13: memref<2x1x192xf32, #tpu.memory_space<vmem>>, %arg14: memref<2x1x192xf32, #tpu.memory_space<vmem>>, %arg15: memref<2x1x192xf32, #tpu.memory_space<vmem>>, %arg16: memref<2x192x768xbf16, #tpu.memory_space<vmem>>, %arg17: memref<2x1x768xf32, #tpu.memory_space<vmem>>, %arg18: memref<2x768x192xbf16, #tpu.memory_space<vmem>>, %arg19: memref<2x1x192xf32, #tpu.memory_space<vmem>>, %arg20: memref<2x1x192xf32, #tpu.memory_space<vmem>>, %arg21: memref<2x1x192xf32, #tpu.memory_space<vmem>>, %arg22: memref<192x192xbf16, #tpu.memory_space<vmem>>, %arg23: memref<1x192xf32, #tpu.memory_space<vmem>>, %arg24: memref<2x3xf32, #tpu.memory_space<vmem>>, %arg25: memref<3x64xbf16, #tpu.memory_space<vmem>>, %arg26: memref<1x64xf32, #tpu.memory_space<vmem>>, %arg27: memref<64x128xbf16, #tpu.memory_space<vmem>>, %arg28: memref<1x128xf32, #tpu.memory_space<vmem>>, %arg29: memref<192x512xbf16, #tpu.memory_space<vmem>>, %arg30: memref<128x512xbf16, #tpu.memory_space<vmem>>, %arg31: memref<1x512xf32, #tpu.memory_space<vmem>>, %arg32: memref<512x128xbf16, #tpu.memory_space<vmem>>, %arg33: memref<1x128xf32, #tpu.memory_space<vmem>>, %arg34: memref<8x128xf32, #tpu.memory_space<vmem>>, %arg35: memref<2x128xf32, #tpu.memory_space<vmem>>) attributes {dimension_semantics = [#tpu.dimension_semantics<arbitrary>], iteration_bounds = array<i64: 1>, scalar_prefetch = 0 : i64, scratch_operands = 0 : i64, tpu.core_type = #tpu.core_type<tc>, window_params = [{pipeline_mode = #tpu.pipeline_mode<synchronous>, transform_indices = @transform_0, window_bounds = array<i64: 8, 27>}, {pipeline_mode = #tpu.pipeline_mode<synchronous>, transform_indices = @transform_1, window_bounds = array<i64: 8, 9>}, {pipeline_mode = #tpu.pipeline_mode<synchronous>, transform_indices = @transform_2, window_bounds = array<i64: 27, 256>}, {pipeline_mode = #tpu.pipeline_mode<synchronous>, transform_indices = @transform_3, window_bounds = array<i64: 9, 256>}, {pipeline_mode = #tpu.pipeline_mode<synchronous>, transform_indices = @transform_4, window_bounds = array<i64: 1, 256>}, {pipeline_mode = #tpu.pipeline_mode<synchronous>, transform_indices = @transform_5, window_bounds = array<i64: 256, 192>}, {pipeline_mode = #tpu.pipeline_mode<synchronous>, transform_indices = @transform_6, window_bounds = array<i64: 1, 192>}, {pipeline_mode = #tpu.pipeline_mode<synchronous>, transform_indices = @transform_7, window_bounds = array<i64: 256, 128>}, {pipeline_mode = #tpu.pipeline_mode<synchronous>, transform_indices = @transform_8, window_bounds = array<i64: 1, 128>}, {pipeline_mode = #tpu.pipeline_mode<synchronous>, transform_indices = @transform_9, window_bounds = array<i64: 2, 192, 576>}, {pipeline_mode = #tpu.pipeline_mode<synchronous>, transform_indices = @transform_10, window_bounds = array<i64: 2, 1, 576>}, {pipeline_mode = #tpu.pipeline_mode<synchronous>, transform_indices = @transform_11, window_bounds = array<i64: 2, 192, 192>}, {pipeline_mode = #tpu.pipeline_mode<synchronous>, transform_indices = @transform_12, window_bounds = array<i64: 2, 1, 192>}, {pipeline_mode = #tpu.pipeline_mode<synchronous>, transform_indices = @transform_13, window_bounds = array<i64: 2, 1, 192>}, {pipeline_mode = #tpu.pipeline_mode<synchronous>, transform_indices = @transform_14, window_bounds = array<i64: 2, 1, 192>}, {pipeline_mode = #tpu.pipeline_mode<synchronous>, transform_indices = @transform_15, window_bounds = array<i64: 2, 192, 768>}, {pipeline_mode = #tpu.pipeline_mode<synchronous>, transform_indices = @transform_16, window_bounds = array<i64: 2, 1, 768>}, {pipeline_mode = #tpu.pipeline_mode<synchronous>, transform_indices = @transform_17, window_bounds = array<i64: 2, 768, 192>}, {pipeline_mode = #tpu.pipeline_mode<synchronous>, transform_indices = @transform_18, window_bounds = array<i64: 2, 1, 192>}, {pipeline_mode = #tpu.pipeline_mode<synchronous>, transform_indices = @transform_19, window_bounds = array<i64: 2, 1, 192>}, {pipeline_mode = #tpu.pipeline_mode<synchronous>, transform_indices = @transform_20, window_bounds = array<i64: 2, 1, 192>}, {pipeline_mode = #tpu.pipeline_mode<synchronous>, transform_indices = @transform_21, window_bounds = array<i64: 192, 192>}, {pipeline_mode = #tpu.pipeline_mode<synchronous>, transform_indices = @transform_22, window_bounds = array<i64: 1, 192>}, {pipeline_mode = #tpu.pipeline_mode<synchronous>, transform_indices = @transform_23, window_bounds = array<i64: 2, 3>}, {pipeline_mode = #tpu.pipeline_mode<synchronous>, transform_indices = @transform_24, window_bounds = array<i64: 3, 64>}, {pipeline_mode = #tpu.pipeline_mode<synchronous>, transform_indices = @transform_25, window_bounds = array<i64: 1, 64>}, {pipeline_mode = #tpu.pipeline_mode<synchronous>, transform_indices = @transform_26, window_bounds = array<i64: 64, 128>}, {pipeline_mode = #tpu.pipeline_mode<synchronous>, transform_indices = @transform_27, window_bounds = array<i64: 1, 128>}, {pipeline_mode = #tpu.pipeline_mode<synchronous>, transform_indices = @transform_28, window_bounds = array<i64: 192, 512>}, {pipeline_mode = #tpu.pipeline_mode<synchronous>, transform_indices = @transform_29, window_bounds = array<i64: 128, 512>}, {pipeline_mode = #tpu.pipeline_mode<synchronous>, transform_indices = @transform_30, window_bounds = array<i64: 1, 512>}, {pipeline_mode = #tpu.pipeline_mode<synchronous>, transform_indices = @transform_31, window_bounds = array<i64: 512, 128>}, {pipeline_mode = #tpu.pipeline_mode<synchronous>, transform_indices = @transform_32, window_bounds = array<i64: 1, 128>}, {pipeline_mode = #tpu.pipeline_mode<synchronous>, transform_indices = @transform_33, window_bounds = array<i64: 8, 128>}, {pipeline_mode = #tpu.pipeline_mode<synchronous>, transform_indices = @transform_34, window_bounds = array<i64: 2, 128>}]} {
    %c0 = arith.constant 0 : index
    %c0_0 = arith.constant 0 : index
    %0 = vector.load %arg1[%c0, %c0_0] : memref<8x27xbf16, #tpu.memory_space<vmem>>, vector<8x27xbf16>
    %c0_1 = arith.constant 0 : index
    %c0_2 = arith.constant 0 : index
    %1 = vector.load %arg3[%c0_1, %c0_2] : memref<27x256xbf16, #tpu.memory_space<vmem>>, vector<27x256xbf16>
    %cst = arith.constant dense<0.000000e+00> : vector<8x256xf32>
    %2 = tpu.matmul %0, %1, %cst {dimension_numbers = #tpu.dot_dimension_numbers<[1], [0], [0], [1], [0, 0, 1, 1], [], []>} : vector<8x27xbf16>, vector<27x256xbf16>, vector<8x256xf32> -> vector<8x256xf32>
    %c0_3 = arith.constant 0 : index
    %c0_4 = arith.constant 0 : index
    %3 = vector.load %arg2[%c0_3, %c0_4] : memref<8x9xbf16, #tpu.memory_space<vmem>>, vector<8x9xbf16>
    %c0_5 = arith.constant 0 : index
    %c0_6 = arith.constant 0 : index
    %4 = vector.load %arg4[%c0_5, %c0_6] : memref<9x256xbf16, #tpu.memory_space<vmem>>, vector<9x256xbf16>
    %cst_7 = arith.constant dense<0.000000e+00> : vector<8x256xf32>
    %5 = tpu.matmul %3, %4, %cst_7 {dimension_numbers = #tpu.dot_dimension_numbers<[1], [0], [0], [1], [0, 0, 1, 1], [], []>} : vector<8x9xbf16>, vector<9x256xbf16>, vector<8x256xf32> -> vector<8x256xf32>
    %6 = arith.addf %2, %5 : vector<8x256xf32>
    %c0_8 = arith.constant 0 : index
    %c0_9 = arith.constant 0 : index
    %7 = vector.load %arg5[%c0_8, %c0_9] : memref<1x256xf32, #tpu.memory_space<vmem>>, vector<1x256xf32>
    %8 = vector.broadcast %7 : vector<1x256xf32> to vector<8x256xf32>
    %9 = arith.addf %6, %8 : vector<8x256xf32>
    %10 = arith.truncf %9 : vector<8x256xf32> to vector<8x256xbf16>
    %c0_10 = arith.constant 0 : index
    %c0_11 = arith.constant 0 : index
    %11 = vector.load %arg8[%c0_10, %c0_11] : memref<256x128xbf16, #tpu.memory_space<vmem>>, vector<256x128xbf16>
    %cst_12 = arith.constant dense<0.000000e+00> : vector<8x128xf32>
    %12 = tpu.matmul %10, %11, %cst_12 {dimension_numbers = #tpu.dot_dimension_numbers<[1], [0], [0], [1], [0, 0, 1, 1], [], []>} : vector<8x256xbf16>, vector<256x128xbf16>, vector<8x128xf32> -> vector<8x128xf32>
    %c0_13 = arith.constant 0 : index
    %c0_14 = arith.constant 0 : index
    %13 = vector.load %arg9[%c0_13, %c0_14] : memref<1x128xf32, #tpu.memory_space<vmem>>, vector<1x128xf32>
    %14 = vector.broadcast %13 : vector<1x128xf32> to vector<8x128xf32>
    %15 = arith.addf %12, %14 : vector<8x128xf32>
    %c0_15 = arith.constant 0 : index
    %c0_16 = arith.constant 0 : index
    %16 = vector.load %arg34[%c0_15, %c0_16] : memref<8x128xf32, #tpu.memory_space<vmem>>, vector<8x128xf32>
    tpu.vector_store %arg34[%c0_15, %c0_16], %15 {strides = array<i32>} : memref<8x128xf32, #tpu.memory_space<vmem>>, vector<8x128xf32>,
    %c0_17 = arith.constant 0 : index
    %c0_18 = arith.constant 0 : index
    %17 = vector.load %arg6[%c0_17, %c0_18] : memref<256x192xbf16, #tpu.memory_space<vmem>>, vector<256x192xbf16>
    %cst_19 = arith.constant dense<0.000000e+00> : vector<8x192xf32>
    %18 = tpu.matmul %10, %17, %cst_19 {dimension_numbers = #tpu.dot_dimension_numbers<[1], [0], [0], [1], [0, 0, 1, 1], [], []>} : vector<8x256xbf16>, vector<256x192xbf16>, vector<8x192xf32> -> vector<8x192xf32>
    %c0_20 = arith.constant 0 : index
    %c0_21 = arith.constant 0 : index
    %19 = vector.load %arg7[%c0_20, %c0_21] : memref<1x192xf32, #tpu.memory_space<vmem>>, vector<1x192xf32>
    %20 = vector.broadcast %19 : vector<1x192xf32> to vector<8x192xf32>
    %21 = arith.addf %18, %20 : vector<8x192xf32>
    %22 = arith.truncf %21 : vector<8x192xf32> to vector<8x192xbf16>
    %c0_22 = arith.constant 0 : index
    %c0_23 = arith.constant 0 : index
    %c0_24 = arith.constant 0 : index
    %23 = vector.load %arg10[%c0_22, %c0_23, %c0_24] : memref<2x192x576xbf16, #tpu.memory_space<vmem>>, vector<1x192x576xbf16>
    %24 = vector.shape_cast %23 : vector<1x192x576xbf16> to vector<192x576xbf16>
    %cst_25 = arith.constant dense<0.000000e+00> : vector<8x576xf32>
    %25 = tpu.matmul %22, %24, %cst_25 {dimension_numbers = #tpu.dot_dimension_numbers<[1], [0], [0], [1], [0, 0, 1, 1], [], []>} : vector<8x192xbf16>, vector<192x576xbf16>, vector<8x576xf32> -> vector<8x576xf32>
    %c0_26 = arith.constant 0 : index
    %c0_27 = arith.constant 0 : index
    %c0_28 = arith.constant 0 : index
    %26 = vector.load %arg11[%c0_26, %c0_27, %c0_28] : memref<2x1x576xf32, #tpu.memory_space<vmem>>, vector<1x1x576xf32>
    %27 = vector.shape_cast %26 : vector<1x1x576xf32> to vector<1x576xf32>
    %28 = vector.broadcast %27 : vector<1x576xf32> to vector<8x576xf32>
    %29 = arith.addf %25, %28 : vector<8x576xf32>
    %30 = vector.extract_strided_slice %29 {offsets = [0, 0], sizes = [8, 48], strides = [1, 1]} : vector<8x576xf32> to vector<8x48xf32>
    %31 = arith.truncf %30 : vector<8x48xf32> to vector<8x48xbf16>
    %32 = vector.shape_cast %31 : vector<8x48xbf16> to vector<4x2x48xbf16>
    %33 = vector.extract_strided_slice %29 {offsets = [0, 192], sizes = [8, 48], strides = [1, 1]} : vector<8x576xf32> to vector<8x48xf32>
    %34 = arith.truncf %33 : vector<8x48xf32> to vector<8x48xbf16>
    %35 = vector.shape_cast %34 : vector<8x48xbf16> to vector<4x2x48xbf16>
    %36 = vector.extract_strided_slice %29 {offsets = [0, 384], sizes = [8, 48], strides = [1, 1]} : vector<8x576xf32> to vector<8x48xf32>
    %37 = arith.truncf %36 : vector<8x48xf32> to vector<8x48xbf16>
    %38 = vector.shape_cast %37 : vector<8x48xbf16> to vector<4x2x48xbf16>
    "tpu.trace_start"() <{level = 10 : i32, message = "pbd,pcd->pbc"}> : () -> ()
    %cst_29 = arith.constant dense<0.000000e+00> : vector<4x2x2xf32>
    %39 = tpu.matmul %32, %35, %cst_29 {dimension_numbers = #tpu.dot_dimension_numbers<[2], [2], [1], [1], [0, 0, 0, 1, 1, 1], [0], [0]>} : vector<4x2x48xbf16>, vector<4x2x48xbf16>, vector<4x2x2xf32> -> vector<4x2x2xf32>
    "tpu.trace_stop"() : () -> ()
    %cst_30 = arith.constant 0.144337565 : f32
    %40 = vector.broadcast %cst_30 : f32 to vector<4x2x2xf32>
    %41 = arith.mulf %39, %40 : vector<4x2x2xf32>
    %cst_31 = arith.constant dense<0xFF800000> : vector<4x2xf32>
    %42 = vector.multi_reduction <maximumf>, %41, %cst_31 [2] : vector<4x2x2xf32> to vector<4x2xf32>
    %43 = vector.shape_cast %42 : vector<4x2xf32> to vector<4x2x1xf32>
    %44 = vector.broadcast %43 : vector<4x2x1xf32> to vector<4x2x2xf32>
    %45 = arith.subf %41, %44 : vector<4x2x2xf32>
    %46 = math.exp %45 : vector<4x2x2xf32>
    %cst_32 = arith.constant dense<0.000000e+00> : vector<4x2xf32>
    %47 = vector.multi_reduction <add>, %46, %cst_32 [2] : vector<4x2x2xf32> to vector<4x2xf32>
    %48 = vector.shape_cast %47 : vector<4x2xf32> to vector<4x2x1xf32>
    %49 = tpu.reciprocal %48 {approx = true} : vector<4x2x1xf32> -> vector<4x2x1xf32>
    %50 = vector.broadcast %49 : vector<4x2x1xf32> to vector<4x2x2xf32>
    %51 = arith.mulf %46, %50 : vector<4x2x2xf32>
    %52 = arith.truncf %51 : vector<4x2x2xf32> to vector<4x2x2xbf16>
    "tpu.trace_start"() <{level = 10 : i32, message = "pbc,pcd->pbd"}> : () -> ()
    %cst_33 = arith.constant dense<0.000000e+00> : vector<4x2x48xf32>
    %53 = tpu.matmul %52, %38, %cst_33 {dimension_numbers = #tpu.dot_dimension_numbers<[2], [1], [1], [2], [0, 0, 0, 1, 1, 2], [0], [0]>} : vector<4x2x2xbf16>, vector<4x2x48xbf16>, vector<4x2x48xf32> -> vector<4x2x48xf32>
    "tpu.trace_stop"() : () -> ()
    %54 = vector.shape_cast %53 : vector<4x2x48xf32> to vector<8x48xf32>
    %55 = vector.extract_strided_slice %29 {offsets = [0, 48], sizes = [8, 48], strides = [1, 1]} : vector<8x576xf32> to vector<8x48xf32>
    %56 = arith.truncf %55 : vector<8x48xf32> to vector<8x48xbf16>
    %57 = vector.shape_cast %56 : vector<8x48xbf16> to vector<4x2x48xbf16>
    %58 = vector.extract_strided_slice %29 {offsets = [0, 240], sizes = [8, 48], strides = [1, 1]} : vector<8x576xf32> to vector<8x48xf32>
    %59 = arith.truncf %58 : vector<8x48xf32> to vector<8x48xbf16>
    %60 = vector.shape_cast %59 : vector<8x48xbf16> to vector<4x2x48xbf16>
    %61 = vector.extract_strided_slice %29 {offsets = [0, 432], sizes = [8, 48], strides = [1, 1]} : vector<8x576xf32> to vector<8x48xf32>
    %62 = arith.truncf %61 : vector<8x48xf32> to vector<8x48xbf16>
    %63 = vector.shape_cast %62 : vector<8x48xbf16> to vector<4x2x48xbf16>
    "tpu.trace_start"() <{level = 10 : i32, message = "pbd,pcd->pbc"}> : () -> ()
    %cst_34 = arith.constant dense<0.000000e+00> : vector<4x2x2xf32>
    %64 = tpu.matmul %57, %60, %cst_34 {dimension_numbers = #tpu.dot_dimension_numbers<[2], [2], [1], [1], [0, 0, 0, 1, 1, 1], [0], [0]>} : vector<4x2x48xbf16>, vector<4x2x48xbf16>, vector<4x2x2xf32> -> vector<4x2x2xf32>
    "tpu.trace_stop"() : () -> ()
    %cst_35 = arith.constant 0.144337565 : f32
    %65 = vector.broadcast %cst_35 : f32 to vector<4x2x2xf32>
    %66 = arith.mulf %64, %65 : vector<4x2x2xf32>
    %cst_36 = arith.constant dense<0xFF800000> : vector<4x2xf32>
    %67 = vector.multi_reduction <maximumf>, %66, %cst_36 [2] : vector<4x2x2xf32> to vector<4x2xf32>
    %68 = vector.shape_cast %67 : vector<4x2xf32> to vector<4x2x1xf32>
    %69 = vector.broadcast %68 : vector<4x2x1xf32> to vector<4x2x2xf32>
    %70 = arith.subf %66, %69 : vector<4x2x2xf32>
    %71 = math.exp %70 : vector<4x2x2xf32>
    %cst_37 = arith.constant dense<0.000000e+00> : vector<4x2xf32>
    %72 = vector.multi_reduction <add>, %71, %cst_37 [2] : vector<4x2x2xf32> to vector<4x2xf32>
    %73 = vector.shape_cast %72 : vector<4x2xf32> to vector<4x2x1xf32>
    %74 = tpu.reciprocal %73 {approx = true} : vector<4x2x1xf32> -> vector<4x2x1xf32>
    %75 = vector.broadcast %74 : vector<4x2x1xf32> to vector<4x2x2xf32>
    %76 = arith.mulf %71, %75 : vector<4x2x2xf32>
    %77 = arith.truncf %76 : vector<4x2x2xf32> to vector<4x2x2xbf16>
    "tpu.trace_start"() <{level = 10 : i32, message = "pbc,pcd->pbd"}> : () -> ()
    %cst_38 = arith.constant dense<0.000000e+00> : vector<4x2x48xf32>
    %78 = tpu.matmul %77, %63, %cst_38 {dimension_numbers = #tpu.dot_dimension_numbers<[2], [1], [1], [2], [0, 0, 0, 1, 1, 2], [0], [0]>} : vector<4x2x2xbf16>, vector<4x2x48xbf16>, vector<4x2x48xf32> -> vector<4x2x48xf32>
    "tpu.trace_stop"() : () -> ()
    %79 = vector.shape_cast %78 : vector<4x2x48xf32> to vector<8x48xf32>
    %80 = vector.extract_strided_slice %29 {offsets = [0, 96], sizes = [8, 48], strides = [1, 1]} : vector<8x576xf32> to vector<8x48xf32>
    %81 = arith.truncf %80 : vector<8x48xf32> to vector<8x48xbf16>
    %82 = vector.shape_cast %81 : vector<8x48xbf16> to vector<4x2x48xbf16>
    %83 = vector.extract_strided_slice %29 {offsets = [0, 288], sizes = [8, 48], strides = [1, 1]} : vector<8x576xf32> to vector<8x48xf32>
    %84 = arith.truncf %83 : vector<8x48xf32> to vector<8x48xbf16>
    %85 = vector.shape_cast %84 : vector<8x48xbf16> to vector<4x2x48xbf16>
    %86 = vector.extract_strided_slice %29 {offsets = [0, 480], sizes = [8, 48], strides = [1, 1]} : vector<8x576xf32> to vector<8x48xf32>
    %87 = arith.truncf %86 : vector<8x48xf32> to vector<8x48xbf16>
    %88 = vector.shape_cast %87 : vector<8x48xbf16> to vector<4x2x48xbf16>
    "tpu.trace_start"() <{level = 10 : i32, message = "pbd,pcd->pbc"}> : () -> ()
    %cst_39 = arith.constant dense<0.000000e+00> : vector<4x2x2xf32>
    %89 = tpu.matmul %82, %85, %cst_39 {dimension_numbers = #tpu.dot_dimension_numbers<[2], [2], [1], [1], [0, 0, 0, 1, 1, 1], [0], [0]>} : vector<4x2x48xbf16>, vector<4x2x48xbf16>, vector<4x2x2xf32> -> vector<4x2x2xf32>
    "tpu.trace_stop"() : () -> ()
    %cst_40 = arith.constant 0.144337565 : f32
    %90 = vector.broadcast %cst_40 : f32 to vector<4x2x2xf32>
    %91 = arith.mulf %89, %90 : vector<4x2x2xf32>
    %cst_41 = arith.constant dense<0xFF800000> : vector<4x2xf32>
    %92 = vector.multi_reduction <maximumf>, %91, %cst_41 [2] : vector<4x2x2xf32> to vector<4x2xf32>
    %93 = vector.shape_cast %92 : vector<4x2xf32> to vector<4x2x1xf32>
    %94 = vector.broadcast %93 : vector<4x2x1xf32> to vector<4x2x2xf32>
    %95 = arith.subf %91, %94 : vector<4x2x2xf32>
    %96 = math.exp %95 : vector<4x2x2xf32>
    %cst_42 = arith.constant dense<0.000000e+00> : vector<4x2xf32>
    %97 = vector.multi_reduction <add>, %96, %cst_42 [2] : vector<4x2x2xf32> to vector<4x2xf32>
    %98 = vector.shape_cast %97 : vector<4x2xf32> to vector<4x2x1xf32>
    %99 = tpu.reciprocal %98 {approx = true} : vector<4x2x1xf32> -> vector<4x2x1xf32>
    %100 = vector.broadcast %99 : vector<4x2x1xf32> to vector<4x2x2xf32>
    %101 = arith.mulf %96, %100 : vector<4x2x2xf32>
    %102 = arith.truncf %101 : vector<4x2x2xf32> to vector<4x2x2xbf16>
    "tpu.trace_start"() <{level = 10 : i32, message = "pbc,pcd->pbd"}> : () -> ()
    %cst_43 = arith.constant dense<0.000000e+00> : vector<4x2x48xf32>
    %103 = tpu.matmul %102, %88, %cst_43 {dimension_numbers = #tpu.dot_dimension_numbers<[2], [1], [1], [2], [0, 0, 0, 1, 1, 2], [0], [0]>} : vector<4x2x2xbf16>, vector<4x2x48xbf16>, vector<4x2x48xf32> -> vector<4x2x48xf32>
    "tpu.trace_stop"() : () -> ()
    %104 = vector.shape_cast %103 : vector<4x2x48xf32> to vector<8x48xf32>
    %105 = vector.extract_strided_slice %29 {offsets = [0, 144], sizes = [8, 48], strides = [1, 1]} : vector<8x576xf32> to vector<8x48xf32>
    %106 = arith.truncf %105 : vector<8x48xf32> to vector<8x48xbf16>
    %107 = vector.shape_cast %106 : vector<8x48xbf16> to vector<4x2x48xbf16>
    %108 = vector.extract_strided_slice %29 {offsets = [0, 336], sizes = [8, 48], strides = [1, 1]} : vector<8x576xf32> to vector<8x48xf32>
    %109 = arith.truncf %108 : vector<8x48xf32> to vector<8x48xbf16>
    %110 = vector.shape_cast %109 : vector<8x48xbf16> to vector<4x2x48xbf16>
    %111 = vector.extract_strided_slice %29 {offsets = [0, 528], sizes = [8, 48], strides = [1, 1]} : vector<8x576xf32> to vector<8x48xf32>
    %112 = arith.truncf %111 : vector<8x48xf32> to vector<8x48xbf16>
    %113 = vector.shape_cast %112 : vector<8x48xbf16> to vector<4x2x48xbf16>
    "tpu.trace_start"() <{level = 10 : i32, message = "pbd,pcd->pbc"}> : () -> ()
    %cst_44 = arith.constant dense<0.000000e+00> : vector<4x2x2xf32>
    %114 = tpu.matmul %107, %110, %cst_44 {dimension_numbers = #tpu.dot_dimension_numbers<[2], [2], [1], [1], [0, 0, 0, 1, 1, 1], [0], [0]>} : vector<4x2x48xbf16>, vector<4x2x48xbf16>, vector<4x2x2xf32> -> vector<4x2x2xf32>
    "tpu.trace_stop"() : () -> ()
    %cst_45 = arith.constant 0.144337565 : f32
    %115 = vector.broadcast %cst_45 : f32 to vector<4x2x2xf32>
    %116 = arith.mulf %114, %115 : vector<4x2x2xf32>
    %cst_46 = arith.constant dense<0xFF800000> : vector<4x2xf32>
    %117 = vector.multi_reduction <maximumf>, %116, %cst_46 [2] : vector<4x2x2xf32> to vector<4x2xf32>
    %118 = vector.shape_cast %117 : vector<4x2xf32> to vector<4x2x1xf32>
    %119 = vector.broadcast %118 : vector<4x2x1xf32> to vector<4x2x2xf32>
    %120 = arith.subf %116, %119 : vector<4x2x2xf32>
    %121 = math.exp %120 : vector<4x2x2xf32>
    %cst_47 = arith.constant dense<0.000000e+00> : vector<4x2xf32>
    %122 = vector.multi_reduction <add>, %121, %cst_47 [2] : vector<4x2x2xf32> to vector<4x2xf32>
    %123 = vector.shape_cast %122 : vector<4x2xf32> to vector<4x2x1xf32>
    %124 = tpu.reciprocal %123 {approx = true} : vector<4x2x1xf32> -> vector<4x2x1xf32>
    %125 = vector.broadcast %124 : vector<4x2x1xf32> to vector<4x2x2xf32>
    %126 = arith.mulf %121, %125 : vector<4x2x2xf32>
    %127 = arith.truncf %126 : vector<4x2x2xf32> to vector<4x2x2xbf16>
    "tpu.trace_start"() <{level = 10 : i32, message = "pbc,pcd->pbd"}> : () -> ()
    %cst_48 = arith.constant dense<0.000000e+00> : vector<4x2x48xf32>
    %128 = tpu.matmul %127, %113, %cst_48 {dimension_numbers = #tpu.dot_dimension_numbers<[2], [1], [1], [2], [0, 0, 0, 1, 1, 2], [0], [0]>} : vector<4x2x2xbf16>, vector<4x2x48xbf16>, vector<4x2x48xf32> -> vector<4x2x48xf32>
    "tpu.trace_stop"() : () -> ()
    %129 = vector.shape_cast %128 : vector<4x2x48xf32> to vector<8x48xf32>
    %130 = tpu.concatenate %54, %79, %104, %129 in 1 : vector<8x48xf32>, vector<8x48xf32>, vector<8x48xf32>, vector<8x48xf32> -> vector<8x192xf32>
    %131 = arith.truncf %130 : vector<8x192xf32> to vector<8x192xbf16>
    %c0_49 = arith.constant 0 : index
    %c0_50 = arith.constant 0 : index
    %c0_51 = arith.constant 0 : index
    %132 = vector.load %arg12[%c0_49, %c0_50, %c0_51] : memref<2x192x192xbf16, #tpu.memory_space<vmem>>, vector<1x192x192xbf16>
    %133 = vector.shape_cast %132 : vector<1x192x192xbf16> to vector<192x192xbf16>
    %cst_52 = arith.constant dense<0.000000e+00> : vector<8x192xf32>
    %134 = tpu.matmul %131, %133, %cst_52 {dimension_numbers = #tpu.dot_dimension_numbers<[1], [0], [0], [1], [0, 0, 1, 1], [], []>} : vector<8x192xbf16>, vector<192x192xbf16>, vector<8x192xf32> -> vector<8x192xf32>
    %c0_53 = arith.constant 0 : index
    %c0_54 = arith.constant 0 : index
    %c0_55 = arith.constant 0 : index
    %135 = vector.load %arg13[%c0_53, %c0_54, %c0_55] : memref<2x1x192xf32, #tpu.memory_space<vmem>>, vector<1x1x192xf32>
    %136 = vector.shape_cast %135 : vector<1x1x192xf32> to vector<1x192xf32>
    %137 = vector.broadcast %136 : vector<1x192xf32> to vector<8x192xf32>
    %138 = arith.addf %134, %137 : vector<8x192xf32>
    %139 = arith.addf %21, %138 : vector<8x192xf32>
    %cst_56 = arith.constant dense<0.000000e+00> : vector<8xf32>
    %140 = vector.multi_reduction <add>, %139, %cst_56 [1] : vector<8x192xf32> to vector<8xf32>
    %141 = vector.shape_cast %140 : vector<8xf32> to vector<8x1xf32>
    %cst_57 = arith.constant 1.920000e+02 : f32
    %142 = vector.broadcast %cst_57 : f32 to vector<8x1xf32>
    %143 = arith.divf %141, %142 : vector<8x1xf32>
    %144 = vector.broadcast %143 : vector<8x1xf32> to vector<8x192xf32>
    %145 = arith.subf %139, %144 : vector<8x192xf32>
    %146 = arith.mulf %145, %145 : vector<8x192xf32>
    %cst_58 = arith.constant dense<0.000000e+00> : vector<8xf32>
    %147 = vector.multi_reduction <add>, %146, %cst_58 [1] : vector<8x192xf32> to vector<8xf32>
    %148 = vector.shape_cast %147 : vector<8xf32> to vector<8x1xf32>
    %cst_59 = arith.constant 1.920000e+02 : f32
    %149 = vector.broadcast %cst_59 : f32 to vector<8x1xf32>
    %150 = arith.divf %148, %149 : vector<8x1xf32>
    %151 = vector.broadcast %143 : vector<8x1xf32> to vector<8x192xf32>
    %152 = arith.subf %139, %151 : vector<8x192xf32>
    %cst_60 = arith.constant 9.99999974E-6 : f32
    %153 = vector.broadcast %cst_60 : f32 to vector<8x1xf32>
    %154 = arith.addf %150, %153 : vector<8x1xf32>
    %155 = math.rsqrt %154 : vector<8x1xf32>
    %156 = vector.broadcast %155 : vector<8x1xf32> to vector<8x192xf32>
    %157 = arith.mulf %152, %156 : vector<8x192xf32>
    %c0_61 = arith.constant 0 : index
    %c0_62 = arith.constant 0 : index
    %c0_63 = arith.constant 0 : index
    %158 = vector.load %arg14[%c0_61, %c0_62, %c0_63] : memref<2x1x192xf32, #tpu.memory_space<vmem>>, vector<1x1x192xf32>
    %159 = vector.shape_cast %158 : vector<1x1x192xf32> to vector<1x192xf32>
    %160 = vector.broadcast %159 : vector<1x192xf32> to vector<8x192xf32>
    %161 = arith.mulf %157, %160 : vector<8x192xf32>
    %c0_64 = arith.constant 0 : index
    %c0_65 = arith.constant 0 : index
    %c0_66 = arith.constant 0 : index
    %162 = vector.load %arg15[%c0_64, %c0_65, %c0_66] : memref<2x1x192xf32, #tpu.memory_space<vmem>>, vector<1x1x192xf32>
    %163 = vector.shape_cast %162 : vector<1x1x192xf32> to vector<1x192xf32>
    %164 = vector.broadcast %163 : vector<1x192xf32> to vector<8x192xf32>
    %165 = arith.addf %161, %164 : vector<8x192xf32>
    %166 = arith.truncf %165 : vector<8x192xf32> to vector<8x192xbf16>
    %c0_67 = arith.constant 0 : index
    %c0_68 = arith.constant 0 : index
    %c0_69 = arith.constant 0 : index
    %167 = vector.load %arg16[%c0_67, %c0_68, %c0_69] : memref<2x192x768xbf16, #tpu.memory_space<vmem>>, vector<1x192x768xbf16>
    %168 = vector.shape_cast %167 : vector<1x192x768xbf16> to vector<192x768xbf16>
    %cst_70 = arith.constant dense<0.000000e+00> : vector<8x768xf32>
    %169 = tpu.matmul %166, %168, %cst_70 {dimension_numbers = #tpu.dot_dimension_numbers<[1], [0], [0], [1], [0, 0, 1, 1], [], []>} : vector<8x192xbf16>, vector<192x768xbf16>, vector<8x768xf32> -> vector<8x768xf32>
    %c0_71 = arith.constant 0 : index
    %c0_72 = arith.constant 0 : index
    %c0_73 = arith.constant 0 : index
    %170 = vector.load %arg17[%c0_71, %c0_72, %c0_73] : memref<2x1x768xf32, #tpu.memory_space<vmem>>, vector<1x1x768xf32>
    %171 = vector.shape_cast %170 : vector<1x1x768xf32> to vector<1x768xf32>
    %172 = vector.broadcast %171 : vector<1x768xf32> to vector<8x768xf32>
    %173 = arith.addf %169, %172 : vector<8x768xf32>
    %174 = arith.mulf %173, %173 : vector<8x768xf32>
    %175 = arith.mulf %173, %174 : vector<8x768xf32>
    %cst_74 = arith.constant 4.471500e-02 : f32
    %176 = vector.broadcast %cst_74 : f32 to vector<8x768xf32>
    %177 = arith.mulf %176, %175 : vector<8x768xf32>
    %178 = arith.addf %173, %177 : vector<8x768xf32>
    %cst_75 = arith.constant 0.797884583 : f32
    %179 = vector.broadcast %cst_75 : f32 to vector<8x768xf32>
    %180 = arith.mulf %179, %178 : vector<8x768xf32>
    %181 = math.tanh %180 : vector<8x768xf32>
    %cst_76 = arith.constant 1.000000e+00 : f32
    %182 = vector.broadcast %cst_76 : f32 to vector<8x768xf32>
    %183 = arith.addf %182, %181 : vector<8x768xf32>
    %cst_77 = arith.constant 5.000000e-01 : f32
    %184 = vector.broadcast %cst_77 : f32 to vector<8x768xf32>
    %185 = arith.mulf %184, %183 : vector<8x768xf32>
    %186 = arith.mulf %173, %185 : vector<8x768xf32>
    %187 = arith.truncf %186 : vector<8x768xf32> to vector<8x768xbf16>
    %c0_78 = arith.constant 0 : index
    %c0_79 = arith.constant 0 : index
    %c0_80 = arith.constant 0 : index
    %188 = vector.load %arg18[%c0_78, %c0_79, %c0_80] : memref<2x768x192xbf16, #tpu.memory_space<vmem>>, vector<1x768x192xbf16>
    %189 = vector.shape_cast %188 : vector<1x768x192xbf16> to vector<768x192xbf16>
    %cst_81 = arith.constant dense<0.000000e+00> : vector<8x192xf32>
    %190 = tpu.matmul %187, %189, %cst_81 {dimension_numbers = #tpu.dot_dimension_numbers<[1], [0], [0], [1], [0, 0, 1, 1], [], []>} : vector<8x768xbf16>, vector<768x192xbf16>, vector<8x192xf32> -> vector<8x192xf32>
    %c0_82 = arith.constant 0 : index
    %c0_83 = arith.constant 0 : index
    %c0_84 = arith.constant 0 : index
    %191 = vector.load %arg19[%c0_82, %c0_83, %c0_84] : memref<2x1x192xf32, #tpu.memory_space<vmem>>, vector<1x1x192xf32>
    %192 = vector.shape_cast %191 : vector<1x1x192xf32> to vector<1x192xf32>
    %193 = vector.broadcast %192 : vector<1x192xf32> to vector<8x192xf32>
    %194 = arith.addf %190, %193 : vector<8x192xf32>
    %195 = arith.addf %165, %194 : vector<8x192xf32>
    %cst_85 = arith.constant dense<0.000000e+00> : vector<8xf32>
    %196 = vector.multi_reduction <add>, %195, %cst_85 [1] : vector<8x192xf32> to vector<8xf32>
    %197 = vector.shape_cast %196 : vector<8xf32> to vector<8x1xf32>
    %cst_86 = arith.constant 1.920000e+02 : f32
    %198 = vector.broadcast %cst_86 : f32 to vector<8x1xf32>
    %199 = arith.divf %197, %198 : vector<8x1xf32>
    %200 = vector.broadcast %199 : vector<8x1xf32> to vector<8x192xf32>
    %201 = arith.subf %195, %200 : vector<8x192xf32>
    %202 = arith.mulf %201, %201 : vector<8x192xf32>
    %cst_87 = arith.constant dense<0.000000e+00> : vector<8xf32>
    %203 = vector.multi_reduction <add>, %202, %cst_87 [1] : vector<8x192xf32> to vector<8xf32>
    %204 = vector.shape_cast %203 : vector<8xf32> to vector<8x1xf32>
    %cst_88 = arith.constant 1.920000e+02 : f32
    %205 = vector.broadcast %cst_88 : f32 to vector<8x1xf32>
    %206 = arith.divf %204, %205 : vector<8x1xf32>
    %207 = vector.broadcast %199 : vector<8x1xf32> to vector<8x192xf32>
    %208 = arith.subf %195, %207 : vector<8x192xf32>
    %cst_89 = arith.constant 9.99999974E-6 : f32
    %209 = vector.broadcast %cst_89 : f32 to vector<8x1xf32>
    %210 = arith.addf %206, %209 : vector<8x1xf32>
    %211 = math.rsqrt %210 : vector<8x1xf32>
    %212 = vector.broadcast %211 : vector<8x1xf32> to vector<8x192xf32>
    %213 = arith.mulf %208, %212 : vector<8x192xf32>
    %c0_90 = arith.constant 0 : index
    %c0_91 = arith.constant 0 : index
    %c0_92 = arith.constant 0 : index
    %214 = vector.load %arg20[%c0_90, %c0_91, %c0_92] : memref<2x1x192xf32, #tpu.memory_space<vmem>>, vector<1x1x192xf32>
    %215 = vector.shape_cast %214 : vector<1x1x192xf32> to vector<1x192xf32>
    %216 = vector.broadcast %215 : vector<1x192xf32> to vector<8x192xf32>
    %217 = arith.mulf %213, %216 : vector<8x192xf32>
    %c0_93 = arith.constant 0 : index
    %c0_94 = arith.constant 0 : index
    %c0_95 = arith.constant 0 : index
    %218 = vector.load %arg21[%c0_93, %c0_94, %c0_95] : memref<2x1x192xf32, #tpu.memory_space<vmem>>, vector<1x1x192xf32>
    %219 = vector.shape_cast %218 : vector<1x1x192xf32> to vector<1x192xf32>
    %220 = vector.broadcast %219 : vector<1x192xf32> to vector<8x192xf32>
    %221 = arith.addf %217, %220 : vector<8x192xf32>
    %222 = arith.truncf %221 : vector<8x192xf32> to vector<8x192xbf16>
    %c1 = arith.constant 1 : index
    %c0_96 = arith.constant 0 : index
    %c0_97 = arith.constant 0 : index
    %223 = vector.load %arg10[%c1, %c0_96, %c0_97] : memref<2x192x576xbf16, #tpu.memory_space<vmem>>, vector<1x192x576xbf16>
    %224 = vector.shape_cast %223 : vector<1x192x576xbf16> to vector<192x576xbf16>
    %cst_98 = arith.constant dense<0.000000e+00> : vector<8x576xf32>
    %225 = tpu.matmul %222, %224, %cst_98 {dimension_numbers = #tpu.dot_dimension_numbers<[1], [0], [0], [1], [0, 0, 1, 1], [], []>} : vector<8x192xbf16>, vector<192x576xbf16>, vector<8x576xf32> -> vector<8x576xf32>
    %c1_99 = arith.constant 1 : index
    %c0_100 = arith.constant 0 : index
    %c0_101 = arith.constant 0 : index
    %226 = vector.load %arg11[%c1_99, %c0_100, %c0_101] : memref<2x1x576xf32, #tpu.memory_space<vmem>>, vector<1x1x576xf32>
    %227 = vector.shape_cast %226 : vector<1x1x576xf32> to vector<1x576xf32>
    %228 = vector.broadcast %227 : vector<1x576xf32> to vector<8x576xf32>
    %229 = arith.addf %225, %228 : vector<8x576xf32>
    %230 = vector.extract_strided_slice %229 {offsets = [0, 0], sizes = [8, 48], strides = [1, 1]} : vector<8x576xf32> to vector<8x48xf32>
    %231 = arith.truncf %230 : vector<8x48xf32> to vector<8x48xbf16>
    %232 = vector.shape_cast %231 : vector<8x48xbf16> to vector<4x2x48xbf16>
    %233 = vector.extract_strided_slice %229 {offsets = [0, 192], sizes = [8, 48], strides = [1, 1]} : vector<8x576xf32> to vector<8x48xf32>
    %234 = arith.truncf %233 : vector<8x48xf32> to vector<8x48xbf16>
    %235 = vector.shape_cast %234 : vector<8x48xbf16> to vector<4x2x48xbf16>
    %236 = vector.extract_strided_slice %229 {offsets = [0, 384], sizes = [8, 48], strides = [1, 1]} : vector<8x576xf32> to vector<8x48xf32>
    %237 = arith.truncf %236 : vector<8x48xf32> to vector<8x48xbf16>
    %238 = vector.shape_cast %237 : vector<8x48xbf16> to vector<4x2x48xbf16>
    "tpu.trace_start"() <{level = 10 : i32, message = "pbd,pcd->pbc"}> : () -> ()
    %cst_102 = arith.constant dense<0.000000e+00> : vector<4x2x2xf32>
    %239 = tpu.matmul %232, %235, %cst_102 {dimension_numbers = #tpu.dot_dimension_numbers<[2], [2], [1], [1], [0, 0, 0, 1, 1, 1], [0], [0]>} : vector<4x2x48xbf16>, vector<4x2x48xbf16>, vector<4x2x2xf32> -> vector<4x2x2xf32>
    "tpu.trace_stop"() : () -> ()
    %cst_103 = arith.constant 0.144337565 : f32
    %240 = vector.broadcast %cst_103 : f32 to vector<4x2x2xf32>
    %241 = arith.mulf %239, %240 : vector<4x2x2xf32>
    %cst_104 = arith.constant dense<0xFF800000> : vector<4x2xf32>
    %242 = vector.multi_reduction <maximumf>, %241, %cst_104 [2] : vector<4x2x2xf32> to vector<4x2xf32>
    %243 = vector.shape_cast %242 : vector<4x2xf32> to vector<4x2x1xf32>
    %244 = vector.broadcast %243 : vector<4x2x1xf32> to vector<4x2x2xf32>
    %245 = arith.subf %241, %244 : vector<4x2x2xf32>
    %246 = math.exp %245 : vector<4x2x2xf32>
    %cst_105 = arith.constant dense<0.000000e+00> : vector<4x2xf32>
    %247 = vector.multi_reduction <add>, %246, %cst_105 [2] : vector<4x2x2xf32> to vector<4x2xf32>
    %248 = vector.shape_cast %247 : vector<4x2xf32> to vector<4x2x1xf32>
    %249 = tpu.reciprocal %248 {approx = true} : vector<4x2x1xf32> -> vector<4x2x1xf32>
    %250 = vector.broadcast %249 : vector<4x2x1xf32> to vector<4x2x2xf32>
    %251 = arith.mulf %246, %250 : vector<4x2x2xf32>
    %252 = arith.truncf %251 : vector<4x2x2xf32> to vector<4x2x2xbf16>
    "tpu.trace_start"() <{level = 10 : i32, message = "pbc,pcd->pbd"}> : () -> ()
    %cst_106 = arith.constant dense<0.000000e+00> : vector<4x2x48xf32>
    %253 = tpu.matmul %252, %238, %cst_106 {dimension_numbers = #tpu.dot_dimension_numbers<[2], [1], [1], [2], [0, 0, 0, 1, 1, 2], [0], [0]>} : vector<4x2x2xbf16>, vector<4x2x48xbf16>, vector<4x2x48xf32> -> vector<4x2x48xf32>
    "tpu.trace_stop"() : () -> ()
    %254 = vector.shape_cast %253 : vector<4x2x48xf32> to vector<8x48xf32>
    %255 = vector.extract_strided_slice %229 {offsets = [0, 48], sizes = [8, 48], strides = [1, 1]} : vector<8x576xf32> to vector<8x48xf32>
    %256 = arith.truncf %255 : vector<8x48xf32> to vector<8x48xbf16>
    %257 = vector.shape_cast %256 : vector<8x48xbf16> to vector<4x2x48xbf16>
    %258 = vector.extract_strided_slice %229 {offsets = [0, 240], sizes = [8, 48], strides = [1, 1]} : vector<8x576xf32> to vector<8x48xf32>
    %259 = arith.truncf %258 : vector<8x48xf32> to vector<8x48xbf16>
    %260 = vector.shape_cast %259 : vector<8x48xbf16> to vector<4x2x48xbf16>
    %261 = vector.extract_strided_slice %229 {offsets = [0, 432], sizes = [8, 48], strides = [1, 1]} : vector<8x576xf32> to vector<8x48xf32>
    %262 = arith.truncf %261 : vector<8x48xf32> to vector<8x48xbf16>
    %263 = vector.shape_cast %262 : vector<8x48xbf16> to vector<4x2x48xbf16>
    "tpu.trace_start"() <{level = 10 : i32, message = "pbd,pcd->pbc"}> : () -> ()
    %cst_107 = arith.constant dense<0.000000e+00> : vector<4x2x2xf32>
    %264 = tpu.matmul %257, %260, %cst_107 {dimension_numbers = #tpu.dot_dimension_numbers<[2], [2], [1], [1], [0, 0, 0, 1, 1, 1], [0], [0]>} : vector<4x2x48xbf16>, vector<4x2x48xbf16>, vector<4x2x2xf32> -> vector<4x2x2xf32>
    "tpu.trace_stop"() : () -> ()
    %cst_108 = arith.constant 0.144337565 : f32
    %265 = vector.broadcast %cst_108 : f32 to vector<4x2x2xf32>
    %266 = arith.mulf %264, %265 : vector<4x2x2xf32>
    %cst_109 = arith.constant dense<0xFF800000> : vector<4x2xf32>
    %267 = vector.multi_reduction <maximumf>, %266, %cst_109 [2] : vector<4x2x2xf32> to vector<4x2xf32>
    %268 = vector.shape_cast %267 : vector<4x2xf32> to vector<4x2x1xf32>
    %269 = vector.broadcast %268 : vector<4x2x1xf32> to vector<4x2x2xf32>
    %270 = arith.subf %266, %269 : vector<4x2x2xf32>
    %271 = math.exp %270 : vector<4x2x2xf32>
    %cst_110 = arith.constant dense<0.000000e+00> : vector<4x2xf32>
    %272 = vector.multi_reduction <add>, %271, %cst_110 [2] : vector<4x2x2xf32> to vector<4x2xf32>
    %273 = vector.shape_cast %272 : vector<4x2xf32> to vector<4x2x1xf32>
    %274 = tpu.reciprocal %273 {approx = true} : vector<4x2x1xf32> -> vector<4x2x1xf32>
    %275 = vector.broadcast %274 : vector<4x2x1xf32> to vector<4x2x2xf32>
    %276 = arith.mulf %271, %275 : vector<4x2x2xf32>
    %277 = arith.truncf %276 : vector<4x2x2xf32> to vector<4x2x2xbf16>
    "tpu.trace_start"() <{level = 10 : i32, message = "pbc,pcd->pbd"}> : () -> ()
    %cst_111 = arith.constant dense<0.000000e+00> : vector<4x2x48xf32>
    %278 = tpu.matmul %277, %263, %cst_111 {dimension_numbers = #tpu.dot_dimension_numbers<[2], [1], [1], [2], [0, 0, 0, 1, 1, 2], [0], [0]>} : vector<4x2x2xbf16>, vector<4x2x48xbf16>, vector<4x2x48xf32> -> vector<4x2x48xf32>
    "tpu.trace_stop"() : () -> ()
    %279 = vector.shape_cast %278 : vector<4x2x48xf32> to vector<8x48xf32>
    %280 = vector.extract_strided_slice %229 {offsets = [0, 96], sizes = [8, 48], strides = [1, 1]} : vector<8x576xf32> to vector<8x48xf32>
    %281 = arith.truncf %280 : vector<8x48xf32> to vector<8x48xbf16>
    %282 = vector.shape_cast %281 : vector<8x48xbf16> to vector<4x2x48xbf16>
    %283 = vector.extract_strided_slice %229 {offsets = [0, 288], sizes = [8, 48], strides = [1, 1]} : vector<8x576xf32> to vector<8x48xf32>
    %284 = arith.truncf %283 : vector<8x48xf32> to vector<8x48xbf16>
    %285 = vector.shape_cast %284 : vector<8x48xbf16> to vector<4x2x48xbf16>
    %286 = vector.extract_strided_slice %229 {offsets = [0, 480], sizes = [8, 48], strides = [1, 1]} : vector<8x576xf32> to vector<8x48xf32>
    %287 = arith.truncf %286 : vector<8x48xf32> to vector<8x48xbf16>
    %288 = vector.shape_cast %287 : vector<8x48xbf16> to vector<4x2x48xbf16>
    "tpu.trace_start"() <{level = 10 : i32, message = "pbd,pcd->pbc"}> : () -> ()
    %cst_112 = arith.constant dense<0.000000e+00> : vector<4x2x2xf32>
    %289 = tpu.matmul %282, %285, %cst_112 {dimension_numbers = #tpu.dot_dimension_numbers<[2], [2], [1], [1], [0, 0, 0, 1, 1, 1], [0], [0]>} : vector<4x2x48xbf16>, vector<4x2x48xbf16>, vector<4x2x2xf32> -> vector<4x2x2xf32>
    "tpu.trace_stop"() : () -> ()
    %cst_113 = arith.constant 0.144337565 : f32
    %290 = vector.broadcast %cst_113 : f32 to vector<4x2x2xf32>
    %291 = arith.mulf %289, %290 : vector<4x2x2xf32>
    %cst_114 = arith.constant dense<0xFF800000> : vector<4x2xf32>
    %292 = vector.multi_reduction <maximumf>, %291, %cst_114 [2] : vector<4x2x2xf32> to vector<4x2xf32>
    %293 = vector.shape_cast %292 : vector<4x2xf32> to vector<4x2x1xf32>
    %294 = vector.broadcast %293 : vector<4x2x1xf32> to vector<4x2x2xf32>
    %295 = arith.subf %291, %294 : vector<4x2x2xf32>
    %296 = math.exp %295 : vector<4x2x2xf32>
    %cst_115 = arith.constant dense<0.000000e+00> : vector<4x2xf32>
    %297 = vector.multi_reduction <add>, %296, %cst_115 [2] : vector<4x2x2xf32> to vector<4x2xf32>
    %298 = vector.shape_cast %297 : vector<4x2xf32> to vector<4x2x1xf32>
    %299 = tpu.reciprocal %298 {approx = true} : vector<4x2x1xf32> -> vector<4x2x1xf32>
    %300 = vector.broadcast %299 : vector<4x2x1xf32> to vector<4x2x2xf32>
    %301 = arith.mulf %296, %300 : vector<4x2x2xf32>
    %302 = arith.truncf %301 : vector<4x2x2xf32> to vector<4x2x2xbf16>
    "tpu.trace_start"() <{level = 10 : i32, message = "pbc,pcd->pbd"}> : () -> ()
    %cst_116 = arith.constant dense<0.000000e+00> : vector<4x2x48xf32>
    %303 = tpu.matmul %302, %288, %cst_116 {dimension_numbers = #tpu.dot_dimension_numbers<[2], [1], [1], [2], [0, 0, 0, 1, 1, 2], [0], [0]>} : vector<4x2x2xbf16>, vector<4x2x48xbf16>, vector<4x2x48xf32> -> vector<4x2x48xf32>
    "tpu.trace_stop"() : () -> ()
    %304 = vector.shape_cast %303 : vector<4x2x48xf32> to vector<8x48xf32>
    %305 = vector.extract_strided_slice %229 {offsets = [0, 144], sizes = [8, 48], strides = [1, 1]} : vector<8x576xf32> to vector<8x48xf32>
    %306 = arith.truncf %305 : vector<8x48xf32> to vector<8x48xbf16>
    %307 = vector.shape_cast %306 : vector<8x48xbf16> to vector<4x2x48xbf16>
    %308 = vector.extract_strided_slice %229 {offsets = [0, 336], sizes = [8, 48], strides = [1, 1]} : vector<8x576xf32> to vector<8x48xf32>
    %309 = arith.truncf %308 : vector<8x48xf32> to vector<8x48xbf16>
    %310 = vector.shape_cast %309 : vector<8x48xbf16> to vector<4x2x48xbf16>
    %311 = vector.extract_strided_slice %229 {offsets = [0, 528], sizes = [8, 48], strides = [1, 1]} : vector<8x576xf32> to vector<8x48xf32>
    %312 = arith.truncf %311 : vector<8x48xf32> to vector<8x48xbf16>
    %313 = vector.shape_cast %312 : vector<8x48xbf16> to vector<4x2x48xbf16>
    "tpu.trace_start"() <{level = 10 : i32, message = "pbd,pcd->pbc"}> : () -> ()
    %cst_117 = arith.constant dense<0.000000e+00> : vector<4x2x2xf32>
    %314 = tpu.matmul %307, %310, %cst_117 {dimension_numbers = #tpu.dot_dimension_numbers<[2], [2], [1], [1], [0, 0, 0, 1, 1, 1], [0], [0]>} : vector<4x2x48xbf16>, vector<4x2x48xbf16>, vector<4x2x2xf32> -> vector<4x2x2xf32>
    "tpu.trace_stop"() : () -> ()
    %cst_118 = arith.constant 0.144337565 : f32
    %315 = vector.broadcast %cst_118 : f32 to vector<4x2x2xf32>
    %316 = arith.mulf %314, %315 : vector<4x2x2xf32>
    %cst_119 = arith.constant dense<0xFF800000> : vector<4x2xf32>
    %317 = vector.multi_reduction <maximumf>, %316, %cst_119 [2] : vector<4x2x2xf32> to vector<4x2xf32>
    %318 = vector.shape_cast %317 : vector<4x2xf32> to vector<4x2x1xf32>
    %319 = vector.broadcast %318 : vector<4x2x1xf32> to vector<4x2x2xf32>
    %320 = arith.subf %316, %319 : vector<4x2x2xf32>
    %321 = math.exp %320 : vector<4x2x2xf32>
    %cst_120 = arith.constant dense<0.000000e+00> : vector<4x2xf32>
    %322 = vector.multi_reduction <add>, %321, %cst_120 [2] : vector<4x2x2xf32> to vector<4x2xf32>
    %323 = vector.shape_cast %322 : vector<4x2xf32> to vector<4x2x1xf32>
    %324 = tpu.reciprocal %323 {approx = true} : vector<4x2x1xf32> -> vector<4x2x1xf32>
    %325 = vector.broadcast %324 : vector<4x2x1xf32> to vector<4x2x2xf32>
    %326 = arith.mulf %321, %325 : vector<4x2x2xf32>
    %327 = arith.truncf %326 : vector<4x2x2xf32> to vector<4x2x2xbf16>
    "tpu.trace_start"() <{level = 10 : i32, message = "pbc,pcd->pbd"}> : () -> ()
    %cst_121 = arith.constant dense<0.000000e+00> : vector<4x2x48xf32>
    %328 = tpu.matmul %327, %313, %cst_121 {dimension_numbers = #tpu.dot_dimension_numbers<[2], [1], [1], [2], [0, 0, 0, 1, 1, 2], [0], [0]>} : vector<4x2x2xbf16>, vector<4x2x48xbf16>, vector<4x2x48xf32> -> vector<4x2x48xf32>
    "tpu.trace_stop"() : () -> ()
    %329 = vector.shape_cast %328 : vector<4x2x48xf32> to vector<8x48xf32>
    %330 = tpu.concatenate %254, %279, %304, %329 in 1 : vector<8x48xf32>, vector<8x48xf32>, vector<8x48xf32>, vector<8x48xf32> -> vector<8x192xf32>
    %331 = arith.truncf %330 : vector<8x192xf32> to vector<8x192xbf16>
    %c1_122 = arith.constant 1 : index
    %c0_123 = arith.constant 0 : index
    %c0_124 = arith.constant 0 : index
    %332 = vector.load %arg12[%c1_122, %c0_123, %c0_124] : memref<2x192x192xbf16, #tpu.memory_space<vmem>>, vector<1x192x192xbf16>
    %333 = vector.shape_cast %332 : vector<1x192x192xbf16> to vector<192x192xbf16>
    %cst_125 = arith.constant dense<0.000000e+00> : vector<8x192xf32>
    %334 = tpu.matmul %331, %333, %cst_125 {dimension_numbers = #tpu.dot_dimension_numbers<[1], [0], [0], [1], [0, 0, 1, 1], [], []>} : vector<8x192xbf16>, vector<192x192xbf16>, vector<8x192xf32> -> vector<8x192xf32>
    %c1_126 = arith.constant 1 : index
    %c0_127 = arith.constant 0 : index
    %c0_128 = arith.constant 0 : index
    %335 = vector.load %arg13[%c1_126, %c0_127, %c0_128] : memref<2x1x192xf32, #tpu.memory_space<vmem>>, vector<1x1x192xf32>
    %336 = vector.shape_cast %335 : vector<1x1x192xf32> to vector<1x192xf32>
    %337 = vector.broadcast %336 : vector<1x192xf32> to vector<8x192xf32>
    %338 = arith.addf %334, %337 : vector<8x192xf32>
    %339 = arith.addf %221, %338 : vector<8x192xf32>
    %cst_129 = arith.constant dense<0.000000e+00> : vector<8xf32>
    %340 = vector.multi_reduction <add>, %339, %cst_129 [1] : vector<8x192xf32> to vector<8xf32>
    %341 = vector.shape_cast %340 : vector<8xf32> to vector<8x1xf32>
    %cst_130 = arith.constant 1.920000e+02 : f32
    %342 = vector.broadcast %cst_130 : f32 to vector<8x1xf32>
    %343 = arith.divf %341, %342 : vector<8x1xf32>
    %344 = vector.broadcast %343 : vector<8x1xf32> to vector<8x192xf32>
    %345 = arith.subf %339, %344 : vector<8x192xf32>
    %346 = arith.mulf %345, %345 : vector<8x192xf32>
    %cst_131 = arith.constant dense<0.000000e+00> : vector<8xf32>
    %347 = vector.multi_reduction <add>, %346, %cst_131 [1] : vector<8x192xf32> to vector<8xf32>
    %348 = vector.shape_cast %347 : vector<8xf32> to vector<8x1xf32>
    %cst_132 = arith.constant 1.920000e+02 : f32
    %349 = vector.broadcast %cst_132 : f32 to vector<8x1xf32>
    %350 = arith.divf %348, %349 : vector<8x1xf32>
    %351 = vector.broadcast %343 : vector<8x1xf32> to vector<8x192xf32>
    %352 = arith.subf %339, %351 : vector<8x192xf32>
    %cst_133 = arith.constant 9.99999974E-6 : f32
    %353 = vector.broadcast %cst_133 : f32 to vector<8x1xf32>
    %354 = arith.addf %350, %353 : vector<8x1xf32>
    %355 = math.rsqrt %354 : vector<8x1xf32>
    %356 = vector.broadcast %355 : vector<8x1xf32> to vector<8x192xf32>
    %357 = arith.mulf %352, %356 : vector<8x192xf32>
    %c1_134 = arith.constant 1 : index
    %c0_135 = arith.constant 0 : index
    %c0_136 = arith.constant 0 : index
    %358 = vector.load %arg14[%c1_134, %c0_135, %c0_136] : memref<2x1x192xf32, #tpu.memory_space<vmem>>, vector<1x1x192xf32>
    %359 = vector.shape_cast %358 : vector<1x1x192xf32> to vector<1x192xf32>
    %360 = vector.broadcast %359 : vector<1x192xf32> to vector<8x192xf32>
    %361 = arith.mulf %357, %360 : vector<8x192xf32>
    %c1_137 = arith.constant 1 : index
    %c0_138 = arith.constant 0 : index
    %c0_139 = arith.constant 0 : index
    %362 = vector.load %arg15[%c1_137, %c0_138, %c0_139] : memref<2x1x192xf32, #tpu.memory_space<vmem>>, vector<1x1x192xf32>
    %363 = vector.shape_cast %362 : vector<1x1x192xf32> to vector<1x192xf32>
    %364 = vector.broadcast %363 : vector<1x192xf32> to vector<8x192xf32>
    %365 = arith.addf %361, %364 : vector<8x192xf32>
    %366 = arith.truncf %365 : vector<8x192xf32> to vector<8x192xbf16>
    %c1_140 = arith.constant 1 : index
    %c0_141 = arith.constant 0 : index
    %c0_142 = arith.constant 0 : index
    %367 = vector.load %arg16[%c1_140, %c0_141, %c0_142] : memref<2x192x768xbf16, #tpu.memory_space<vmem>>, vector<1x192x768xbf16>
    %368 = vector.shape_cast %367 : vector<1x192x768xbf16> to vector<192x768xbf16>
    %cst_143 = arith.constant dense<0.000000e+00> : vector<8x768xf32>
    %369 = tpu.matmul %366, %368, %cst_143 {dimension_numbers = #tpu.dot_dimension_numbers<[1], [0], [0], [1], [0, 0, 1, 1], [], []>} : vector<8x192xbf16>, vector<192x768xbf16>, vector<8x768xf32> -> vector<8x768xf32>
    %c1_144 = arith.constant 1 : index
    %c0_145 = arith.constant 0 : index
    %c0_146 = arith.constant 0 : index
    %370 = vector.load %arg17[%c1_144, %c0_145, %c0_146] : memref<2x1x768xf32, #tpu.memory_space<vmem>>, vector<1x1x768xf32>
    %371 = vector.shape_cast %370 : vector<1x1x768xf32> to vector<1x768xf32>
    %372 = vector.broadcast %371 : vector<1x768xf32> to vector<8x768xf32>
    %373 = arith.addf %369, %372 : vector<8x768xf32>
    %374 = arith.mulf %373, %373 : vector<8x768xf32>
    %375 = arith.mulf %373, %374 : vector<8x768xf32>
    %cst_147 = arith.constant 4.471500e-02 : f32
    %376 = vector.broadcast %cst_147 : f32 to vector<8x768xf32>
    %377 = arith.mulf %376, %375 : vector<8x768xf32>
    %378 = arith.addf %373, %377 : vector<8x768xf32>
    %cst_148 = arith.constant 0.797884583 : f32
    %379 = vector.broadcast %cst_148 : f32 to vector<8x768xf32>
    %380 = arith.mulf %379, %378 : vector<8x768xf32>
    %381 = math.tanh %380 : vector<8x768xf32>
    %cst_149 = arith.constant 1.000000e+00 : f32
    %382 = vector.broadcast %cst_149 : f32 to vector<8x768xf32>
    %383 = arith.addf %382, %381 : vector<8x768xf32>
    %cst_150 = arith.constant 5.000000e-01 : f32
    %384 = vector.broadcast %cst_150 : f32 to vector<8x768xf32>
    %385 = arith.mulf %384, %383 : vector<8x768xf32>
    %386 = arith.mulf %373, %385 : vector<8x768xf32>
    %387 = arith.truncf %386 : vector<8x768xf32> to vector<8x768xbf16>
    %c1_151 = arith.constant 1 : index
    %c0_152 = arith.constant 0 : index
    %c0_153 = arith.constant 0 : index
    %388 = vector.load %arg18[%c1_151, %c0_152, %c0_153] : memref<2x768x192xbf16, #tpu.memory_space<vmem>>, vector<1x768x192xbf16>
    %389 = vector.shape_cast %388 : vector<1x768x192xbf16> to vector<768x192xbf16>
    %cst_154 = arith.constant dense<0.000000e+00> : vector<8x192xf32>
    %390 = tpu.matmul %387, %389, %cst_154 {dimension_numbers = #tpu.dot_dimension_numbers<[1], [0], [0], [1], [0, 0, 1, 1], [], []>} : vector<8x768xbf16>, vector<768x192xbf16>, vector<8x192xf32> -> vector<8x192xf32>
    %c1_155 = arith.constant 1 : index
    %c0_156 = arith.constant 0 : index
    %c0_157 = arith.constant 0 : index
    %391 = vector.load %arg19[%c1_155, %c0_156, %c0_157] : memref<2x1x192xf32, #tpu.memory_space<vmem>>, vector<1x1x192xf32>
    %392 = vector.shape_cast %391 : vector<1x1x192xf32> to vector<1x192xf32>
    %393 = vector.broadcast %392 : vector<1x192xf32> to vector<8x192xf32>
    %394 = arith.addf %390, %393 : vector<8x192xf32>
    %395 = arith.addf %365, %394 : vector<8x192xf32>
    %cst_158 = arith.constant dense<0.000000e+00> : vector<8xf32>
    %396 = vector.multi_reduction <add>, %395, %cst_158 [1] : vector<8x192xf32> to vector<8xf32>
    %397 = vector.shape_cast %396 : vector<8xf32> to vector<8x1xf32>
    %cst_159 = arith.constant 1.920000e+02 : f32
    %398 = vector.broadcast %cst_159 : f32 to vector<8x1xf32>
    %399 = arith.divf %397, %398 : vector<8x1xf32>
    %400 = vector.broadcast %399 : vector<8x1xf32> to vector<8x192xf32>
    %401 = arith.subf %395, %400 : vector<8x192xf32>
    %402 = arith.mulf %401, %401 : vector<8x192xf32>
    %cst_160 = arith.constant dense<0.000000e+00> : vector<8xf32>
    %403 = vector.multi_reduction <add>, %402, %cst_160 [1] : vector<8x192xf32> to vector<8xf32>
    %404 = vector.shape_cast %403 : vector<8xf32> to vector<8x1xf32>
    %cst_161 = arith.constant 1.920000e+02 : f32
    %405 = vector.broadcast %cst_161 : f32 to vector<8x1xf32>
    %406 = arith.divf %404, %405 : vector<8x1xf32>
    %407 = vector.broadcast %399 : vector<8x1xf32> to vector<8x192xf32>
    %408 = arith.subf %395, %407 : vector<8x192xf32>
    %cst_162 = arith.constant 9.99999974E-6 : f32
    %409 = vector.broadcast %cst_162 : f32 to vector<8x1xf32>
    %410 = arith.addf %406, %409 : vector<8x1xf32>
    %411 = math.rsqrt %410 : vector<8x1xf32>
    %412 = vector.broadcast %411 : vector<8x1xf32> to vector<8x192xf32>
    %413 = arith.mulf %408, %412 : vector<8x192xf32>
    %c1_163 = arith.constant 1 : index
    %c0_164 = arith.constant 0 : index
    %c0_165 = arith.constant 0 : index
    %414 = vector.load %arg20[%c1_163, %c0_164, %c0_165] : memref<2x1x192xf32, #tpu.memory_space<vmem>>, vector<1x1x192xf32>
    %415 = vector.shape_cast %414 : vector<1x1x192xf32> to vector<1x192xf32>
    %416 = vector.broadcast %415 : vector<1x192xf32> to vector<8x192xf32>
    %417 = arith.mulf %413, %416 : vector<8x192xf32>
    %c1_166 = arith.constant 1 : index
    %c0_167 = arith.constant 0 : index
    %c0_168 = arith.constant 0 : index
    %418 = vector.load %arg21[%c1_166, %c0_167, %c0_168] : memref<2x1x192xf32, #tpu.memory_space<vmem>>, vector<1x1x192xf32>
    %419 = vector.shape_cast %418 : vector<1x1x192xf32> to vector<1x192xf32>
    %420 = vector.broadcast %419 : vector<1x192xf32> to vector<8x192xf32>
    %421 = arith.addf %417, %420 : vector<8x192xf32>
    %422 = vector.extract_strided_slice %421 {offsets = [0, 0], sizes = [2, 192], strides = [1, 1]} : vector<8x192xf32> to vector<2x192xf32>
    %423 = vector.extract_strided_slice %421 {offsets = [2, 0], sizes = [2, 192], strides = [1, 1]} : vector<8x192xf32> to vector<2x192xf32>
    %424 = arith.addf %422, %423 : vector<2x192xf32>
    %425 = vector.extract_strided_slice %421 {offsets = [4, 0], sizes = [2, 192], strides = [1, 1]} : vector<8x192xf32> to vector<2x192xf32>
    %426 = arith.addf %424, %425 : vector<2x192xf32>
    %427 = vector.extract_strided_slice %421 {offsets = [6, 0], sizes = [2, 192], strides = [1, 1]} : vector<8x192xf32> to vector<2x192xf32>
    %428 = arith.addf %426, %427 : vector<2x192xf32>
    %cst_169 = arith.constant 2.500000e-01 : f32
    %429 = vector.broadcast %cst_169 : f32 to vector<2x192xf32>
    %430 = arith.mulf %428, %429 : vector<2x192xf32>
    %431 = arith.truncf %430 : vector<2x192xf32> to vector<2x192xbf16>
    %c0_170 = arith.constant 0 : index
    %c0_171 = arith.constant 0 : index
    %432 = vector.load %arg22[%c0_170, %c0_171] : memref<192x192xbf16, #tpu.memory_space<vmem>>, vector<192x192xbf16>
    %cst_172 = arith.constant dense<0.000000e+00> : vector<2x192xf32>
    %433 = tpu.matmul %431, %432, %cst_172 {dimension_numbers = #tpu.dot_dimension_numbers<[1], [0], [0], [1], [0, 0, 1, 1], [], []>} : vector<2x192xbf16>, vector<192x192xbf16>, vector<2x192xf32> -> vector<2x192xf32>
    %c0_173 = arith.constant 0 : index
    %c0_174 = arith.constant 0 : index
    %434 = vector.load %arg23[%c0_173, %c0_174] : memref<1x192xf32, #tpu.memory_space<vmem>>, vector<1x192xf32>
    %435 = vector.broadcast %434 : vector<1x192xf32> to vector<2x192xf32>
    %436 = arith.addf %433, %435 : vector<2x192xf32>
    %c0_175 = arith.constant 0 : index
    %c0_176 = arith.constant 0 : index
    %437 = vector.load %arg24[%c0_175, %c0_176] : memref<2x3xf32, #tpu.memory_space<vmem>>, vector<2x3xf32>
    %438 = arith.truncf %437 : vector<2x3xf32> to vector<2x3xbf16>
    %c0_177 = arith.constant 0 : index
    %c0_178 = arith.constant 0 : index
    %439 = vector.load %arg25[%c0_177, %c0_178] : memref<3x64xbf16, #tpu.memory_space<vmem>>, vector<3x64xbf16>
    %cst_179 = arith.constant dense<0.000000e+00> : vector<2x64xf32>
    %440 = tpu.matmul %438, %439, %cst_179 {dimension_numbers = #tpu.dot_dimension_numbers<[1], [0], [0], [1], [0, 0, 1, 1], [], []>} : vector<2x3xbf16>, vector<3x64xbf16>, vector<2x64xf32> -> vector<2x64xf32>
    %c0_180 = arith.constant 0 : index
    %c0_181 = arith.constant 0 : index
    %441 = vector.load %arg26[%c0_180, %c0_181] : memref<1x64xf32, #tpu.memory_space<vmem>>, vector<1x64xf32>
    %442 = vector.broadcast %441 : vector<1x64xf32> to vector<2x64xf32>
    %443 = arith.addf %440, %442 : vector<2x64xf32>
    %cst_182 = arith.constant 0.000000e+00 : f32
    %444 = vector.broadcast %cst_182 : f32 to vector<2x64xf32>
    %445 = arith.maximumf %443, %444 : vector<2x64xf32>
    %446 = arith.truncf %445 : vector<2x64xf32> to vector<2x64xbf16>
    %c0_183 = arith.constant 0 : index
    %c0_184 = arith.constant 0 : index
    %447 = vector.load %arg27[%c0_183, %c0_184] : memref<64x128xbf16, #tpu.memory_space<vmem>>, vector<64x128xbf16>
    %cst_185 = arith.constant dense<0.000000e+00> : vector<2x128xf32>
    %448 = tpu.matmul %446, %447, %cst_185 {dimension_numbers = #tpu.dot_dimension_numbers<[1], [0], [0], [1], [0, 0, 1, 1], [], []>} : vector<2x64xbf16>, vector<64x128xbf16>, vector<2x128xf32> -> vector<2x128xf32>
    %c0_186 = arith.constant 0 : index
    %c0_187 = arith.constant 0 : index
    %449 = vector.load %arg28[%c0_186, %c0_187] : memref<1x128xf32, #tpu.memory_space<vmem>>, vector<1x128xf32>
    %450 = vector.broadcast %449 : vector<1x128xf32> to vector<2x128xf32>
    %451 = arith.addf %448, %450 : vector<2x128xf32>
    %cst_188 = arith.constant 0.000000e+00 : f32
    %452 = vector.broadcast %cst_188 : f32 to vector<2x128xf32>
    %453 = arith.maximumf %451, %452 : vector<2x128xf32>
    %454 = arith.truncf %436 : vector<2x192xf32> to vector<2x192xbf16>
    %c0_189 = arith.constant 0 : index
    %c0_190 = arith.constant 0 : index
    %455 = vector.load %arg29[%c0_189, %c0_190] : memref<192x512xbf16, #tpu.memory_space<vmem>>, vector<192x512xbf16>
    %cst_191 = arith.constant dense<0.000000e+00> : vector<2x512xf32>
    %456 = tpu.matmul %454, %455, %cst_191 {dimension_numbers = #tpu.dot_dimension_numbers<[1], [0], [0], [1], [0, 0, 1, 1], [], []>} : vector<2x192xbf16>, vector<192x512xbf16>, vector<2x512xf32> -> vector<2x512xf32>
    %457 = arith.truncf %453 : vector<2x128xf32> to vector<2x128xbf16>
    %c0_192 = arith.constant 0 : index
    %c0_193 = arith.constant 0 : index
    %458 = vector.load %arg30[%c0_192, %c0_193] : memref<128x512xbf16, #tpu.memory_space<vmem>>, vector<128x512xbf16>
    %cst_194 = arith.constant dense<0.000000e+00> : vector<2x512xf32>
    %459 = tpu.matmul %457, %458, %cst_194 {dimension_numbers = #tpu.dot_dimension_numbers<[1], [0], [0], [1], [0, 0, 1, 1], [], []>} : vector<2x128xbf16>, vector<128x512xbf16>, vector<2x512xf32> -> vector<2x512xf32>
    %460 = arith.addf %456, %459 : vector<2x512xf32>
    %c0_195 = arith.constant 0 : index
    %c0_196 = arith.constant 0 : index
    %461 = vector.load %arg31[%c0_195, %c0_196] : memref<1x512xf32, #tpu.memory_space<vmem>>, vector<1x512xf32>
    %462 = vector.broadcast %461 : vector<1x512xf32> to vector<2x512xf32>
    %463 = arith.addf %460, %462 : vector<2x512xf32>
    %cst_197 = arith.constant 0.000000e+00 : f32
    %464 = vector.broadcast %cst_197 : f32 to vector<2x512xf32>
    %465 = arith.maximumf %463, %464 : vector<2x512xf32>
    %466 = arith.truncf %465 : vector<2x512xf32> to vector<2x512xbf16>
    %c0_198 = arith.constant 0 : index
    %c0_199 = arith.constant 0 : index
    %467 = vector.load %arg32[%c0_198, %c0_199] : memref<512x128xbf16, #tpu.memory_space<vmem>>, vector<512x128xbf16>
    %cst_200 = arith.constant dense<0.000000e+00> : vector<2x128xf32>
    %468 = tpu.matmul %466, %467, %cst_200 {dimension_numbers = #tpu.dot_dimension_numbers<[1], [0], [0], [1], [0, 0, 1, 1], [], []>} : vector<2x512xbf16>, vector<512x128xbf16>, vector<2x128xf32> -> vector<2x128xf32>
    %c0_201 = arith.constant 0 : index
    %c0_202 = arith.constant 0 : index
    %469 = vector.load %arg33[%c0_201, %c0_202] : memref<1x128xf32, #tpu.memory_space<vmem>>, vector<1x128xf32>
    %470 = vector.broadcast %469 : vector<1x128xf32> to vector<2x128xf32>
    %471 = arith.addf %468, %470 : vector<2x128xf32>
    %c0_203 = arith.constant 0 : index
    %c0_204 = arith.constant 0 : index
    %472 = vector.load %arg35[%c0_203, %c0_204] : memref<2x128xf32, #tpu.memory_space<vmem>>, vector<2x128xf32>
    tpu.vector_store %arg35[%c0_203, %c0_204], %471 {strides = array<i32>} : memref<2x128xf32, #tpu.memory_space<vmem>>, vector<2x128xf32>,
    return
  }
  func.func @transform_0(%arg0: i32) -> (i32, i32) {
    %c0_i32 = arith.constant 0 : i32
    %c0_i32_0 = arith.constant 0 : i32
    %c0_i32_1 = arith.constant 0 : i32
    return %c0_i32, %c0_i32_0 : i32, i32
  }
  func.func @transform_1(%arg0: i32) -> (i32, i32) {
    %c0_i32 = arith.constant 0 : i32
    %c0_i32_0 = arith.constant 0 : i32
    %c0_i32_1 = arith.constant 0 : i32
    return %c0_i32, %c0_i32_0 : i32, i32
  }
  func.func @transform_2(%arg0: i32) -> (i32, i32) {
    %c0_i32 = arith.constant 0 : i32
    %c0_i32_0 = arith.constant 0 : i32
    %c0_i32_1 = arith.constant 0 : i32
    return %c0_i32, %c0_i32_0 : i32, i32
  }
  func.func @transform_3(%arg0: i32) -> (i32, i32) {
    %c0_i32 = arith.constant 0 : i32
    %c0_i32_0 = arith.constant 0 : i32
    %c0_i32_1 = arith.constant 0 : i32
    return %c0_i32, %c0_i32_0 : i32, i32
  }
  func.func @transform_4(%arg0: i32) -> (i32, i32) {
    %c0_i32 = arith.constant 0 : i32
    %c0_i32_0 = arith.constant 0 : i32
    %c0_i32_1 = arith.constant 0 : i32
    return %c0_i32, %c0_i32_0 : i32, i32
  }
  func.func @transform_5(%arg0: i32) -> (i32, i32) {
    %c0_i32 = arith.constant 0 : i32
    %c0_i32_0 = arith.constant 0 : i32
    %c0_i32_1 = arith.constant 0 : i32
    return %c0_i32, %c0_i32_0 : i32, i32
  }
  func.func @transform_6(%arg0: i32) -> (i32, i32) {
    %c0_i32 = arith.constant 0 : i32
    %c0_i32_0 = arith.constant 0 : i32
    %c0_i32_1 = arith.constant 0 : i32
    return %c0_i32, %c0_i32_0 : i32, i32
  }
  func.func @transform_7(%arg0: i32) -> (i32, i32) {
    %c0_i32 = arith.constant 0 : i32
    %c0_i32_0 = arith.constant 0 : i32
    %c0_i32_1 = arith.constant 0 : i32
    return %c0_i32, %c0_i32_0 : i32, i32
  }
  func.func @transform_8(%arg0: i32) -> (i32, i32) {
    %c0_i32 = arith.constant 0 : i32
    %c0_i32_0 = arith.constant 0 : i32
    %c0_i32_1 = arith.constant 0 : i32
    return %c0_i32, %c0_i32_0 : i32, i32
  }
  func.func @transform_9(%arg0: i32) -> (i32, i32, i32) {
    %c0_i32 = arith.constant 0 : i32
    %c0_i32_0 = arith.constant 0 : i32
    %c0_i32_1 = arith.constant 0 : i32
    %c0_i32_2 = arith.constant 0 : i32
    return %c0_i32, %c0_i32_0, %c0_i32_1 : i32, i32, i32
  }
  func.func @transform_10(%arg0: i32) -> (i32, i32, i32) {
    %c0_i32 = arith.constant 0 : i32
    %c0_i32_0 = arith.constant 0 : i32
    %c0_i32_1 = arith.constant 0 : i32
    %c0_i32_2 = arith.constant 0 : i32
    return %c0_i32, %c0_i32_0, %c0_i32_1 : i32, i32, i32
  }
  func.func @transform_11(%arg0: i32) -> (i32, i32, i32) {
    %c0_i32 = arith.constant 0 : i32
    %c0_i32_0 = arith.constant 0 : i32
    %c0_i32_1 = arith.constant 0 : i32
    %c0_i32_2 = arith.constant 0 : i32
    return %c0_i32, %c0_i32_0, %c0_i32_1 : i32, i32, i32
  }
  func.func @transform_12(%arg0: i32) -> (i32, i32, i32) {
    %c0_i32 = arith.constant 0 : i32
    %c0_i32_0 = arith.constant 0 : i32
    %c0_i32_1 = arith.constant 0 : i32
    %c0_i32_2 = arith.constant 0 : i32
    return %c0_i32, %c0_i32_0, %c0_i32_1 : i32, i32, i32
  }
  func.func @transform_13(%arg0: i32) -> (i32, i32, i32) {
    %c0_i32 = arith.constant 0 : i32
    %c0_i32_0 = arith.constant 0 : i32
    %c0_i32_1 = arith.constant 0 : i32
    %c0_i32_2 = arith.constant 0 : i32
    return %c0_i32, %c0_i32_0, %c0_i32_1 : i32, i32, i32
  }
  func.func @transform_14(%arg0: i32) -> (i32, i32, i32) {
    %c0_i32 = arith.constant 0 : i32
    %c0_i32_0 = arith.constant 0 : i32
    %c0_i32_1 = arith.constant 0 : i32
    %c0_i32_2 = arith.constant 0 : i32
    return %c0_i32, %c0_i32_0, %c0_i32_1 : i32, i32, i32
  }
  func.func @transform_15(%arg0: i32) -> (i32, i32, i32) {
    %c0_i32 = arith.constant 0 : i32
    %c0_i32_0 = arith.constant 0 : i32
    %c0_i32_1 = arith.constant 0 : i32
    %c0_i32_2 = arith.constant 0 : i32
    return %c0_i32, %c0_i32_0, %c0_i32_1 : i32, i32, i32
  }
  func.func @transform_16(%arg0: i32) -> (i32, i32, i32) {
    %c0_i32 = arith.constant 0 : i32
    %c0_i32_0 = arith.constant 0 : i32
    %c0_i32_1 = arith.constant 0 : i32
    %c0_i32_2 = arith.constant 0 : i32
    return %c0_i32, %c0_i32_0, %c0_i32_1 : i32, i32, i32
  }
  func.func @transform_17(%arg0: i32) -> (i32, i32, i32) {
    %c0_i32 = arith.constant 0 : i32
    %c0_i32_0 = arith.constant 0 : i32
    %c0_i32_1 = arith.constant 0 : i32
    %c0_i32_2 = arith.constant 0 : i32
    return %c0_i32, %c0_i32_0, %c0_i32_1 : i32, i32, i32
  }
  func.func @transform_18(%arg0: i32) -> (i32, i32, i32) {
    %c0_i32 = arith.constant 0 : i32
    %c0_i32_0 = arith.constant 0 : i32
    %c0_i32_1 = arith.constant 0 : i32
    %c0_i32_2 = arith.constant 0 : i32
    return %c0_i32, %c0_i32_0, %c0_i32_1 : i32, i32, i32
  }
  func.func @transform_19(%arg0: i32) -> (i32, i32, i32) {
    %c0_i32 = arith.constant 0 : i32
    %c0_i32_0 = arith.constant 0 : i32
    %c0_i32_1 = arith.constant 0 : i32
    %c0_i32_2 = arith.constant 0 : i32
    return %c0_i32, %c0_i32_0, %c0_i32_1 : i32, i32, i32
  }
  func.func @transform_20(%arg0: i32) -> (i32, i32, i32) {
    %c0_i32 = arith.constant 0 : i32
    %c0_i32_0 = arith.constant 0 : i32
    %c0_i32_1 = arith.constant 0 : i32
    %c0_i32_2 = arith.constant 0 : i32
    return %c0_i32, %c0_i32_0, %c0_i32_1 : i32, i32, i32
  }
  func.func @transform_21(%arg0: i32) -> (i32, i32) {
    %c0_i32 = arith.constant 0 : i32
    %c0_i32_0 = arith.constant 0 : i32
    %c0_i32_1 = arith.constant 0 : i32
    return %c0_i32, %c0_i32_0 : i32, i32
  }
  func.func @transform_22(%arg0: i32) -> (i32, i32) {
    %c0_i32 = arith.constant 0 : i32
    %c0_i32_0 = arith.constant 0 : i32
    %c0_i32_1 = arith.constant 0 : i32
    return %c0_i32, %c0_i32_0 : i32, i32
  }
  func.func @transform_23(%arg0: i32) -> (i32, i32) {
    %c0_i32 = arith.constant 0 : i32
    %c0_i32_0 = arith.constant 0 : i32
    %c0_i32_1 = arith.constant 0 : i32
    return %c0_i32, %c0_i32_0 : i32, i32
  }
  func.func @transform_24(%arg0: i32) -> (i32, i32) {
    %c0_i32 = arith.constant 0 : i32
    %c0_i32_0 = arith.constant 0 : i32
    %c0_i32_1 = arith.constant 0 : i32
    return %c0_i32, %c0_i32_0 : i32, i32
  }
  func.func @transform_25(%arg0: i32) -> (i32, i32) {
    %c0_i32 = arith.constant 0 : i32
    %c0_i32_0 = arith.constant 0 : i32
    %c0_i32_1 = arith.constant 0 : i32
    return %c0_i32, %c0_i32_0 : i32, i32
  }
  func.func @transform_26(%arg0: i32) -> (i32, i32) {
    %c0_i32 = arith.constant 0 : i32
    %c0_i32_0 = arith.constant 0 : i32
    %c0_i32_1 = arith.constant 0 : i32
    return %c0_i32, %c0_i32_0 : i32, i32
  }
  func.func @transform_27(%arg0: i32) -> (i32, i32) {
    %c0_i32 = arith.constant 0 : i32
    %c0_i32_0 = arith.constant 0 : i32
    %c0_i32_1 = arith.constant 0 : i32
    return %c0_i32, %c0_i32_0 : i32, i32
  }
  func.func @transform_28(%arg0: i32) -> (i32, i32) {
    %c0_i32 = arith.constant 0 : i32
    %c0_i32_0 = arith.constant 0 : i32
    %c0_i32_1 = arith.constant 0 : i32
    return %c0_i32, %c0_i32_0 : i32, i32
  }
  func.func @transform_29(%arg0: i32) -> (i32, i32) {
    %c0_i32 = arith.constant 0 : i32
    %c0_i32_0 = arith.constant 0 : i32
    %c0_i32_1 = arith.constant 0 : i32
    return %c0_i32, %c0_i32_0 : i32, i32
  }
  func.func @transform_30(%arg0: i32) -> (i32, i32) {
    %c0_i32 = arith.constant 0 : i32
    %c0_i32_0 = arith.constant 0 : i32
    %c0_i32_1 = arith.constant 0 : i32
    return %c0_i32, %c0_i32_0 : i32, i32
  }
  func.func @transform_31(%arg0: i32) -> (i32, i32) {
    %c0_i32 = arith.constant 0 : i32
    %c0_i32_0 = arith.constant 0 : i32
    %c0_i32_1 = arith.constant 0 : i32
    return %c0_i32, %c0_i32_0 : i32, i32
  }
  func.func @transform_32(%arg0: i32) -> (i32, i32) {
    %c0_i32 = arith.constant 0 : i32
    %c0_i32_0 = arith.constant 0 : i32
    %c0_i32_1 = arith.constant 0 : i32
    return %c0_i32, %c0_i32_0 : i32, i32
  }
  func.func @transform_33(%arg0: i32) -> (i32, i32) {
    %c0_i32 = arith.constant 0 : i32
    %c0_i32_0 = arith.constant 0 : i32
    %c0_i32_1 = arith.constant 0 : i32
    return %c0_i32, %c0_i32_0 : i32, i32
  }
  func.func @transform_34(%arg0: i32) -> (i32, i32) {
    %c0_i32 = arith.constant 0 : i32
    %c0_i32_0 = arith.constant 0 : i32
    %c0_i32_1 = arith.constant 0 : i32
    return %c0_i32, %c0_i32_0 : i32, i32
  }
}

</mosaic_0001>

<bundles_post_ra>
// kernel: chest_xray_forward.1
= control target key start
LH: loop header
LB: loop body
LE: loop exit
PB: predicated region body
PF: predicated region fallthrough
CT: control target
= control target key end

     0   :  { %s14785_s6 = smov 1   ;;  %s14786_s10 = smov 2   ;;  %s17103_s0 = inlined_call_operand.smem [shape: u32[35], index: -1, kind: input, shape index: {}] }
   0x1   :  { %s14841_s5 = sld [smem:[%s17103_s0]]   ;;  %s14787_s14 = smov 3  }
   0x2   :  { %s14846_s9 = sld [smem:[%s17103_s0 + %s14785_s6]]   ;;  %s14788_s18 = smov 4  }
   0x3   :  { %s14851_s13 = sld [smem:[%s17103_s0 + %s14786_s10]]   ;;  %s14789_s22 = smov 5  }
   0x4   :  { %s14856_s17 = sld [smem:[%s17103_s0 + %s14787_s14]]   ;;  %s14790_s26 = smov 6  }
   0x5   :  { %s14861_s21 = sld [smem:[%s17103_s0 + %s14788_s18]]   ;;  %s14791_s30 = smov 7  }
   0x6   :  { %s14866_s25 = sld [smem:[%s17103_s0 + %s14789_s22]]   ;;  %s14792_s4 = smov 8  }
   0x7   :  { %s14871_s29 = sld [smem:[%s17103_s0 + %s14790_s26]]   ;;  %s14793_s10 = smov 9  }
   0x8   :  { %s14876_s3 = sld [smem:[%s17103_s0 + %s14791_s30]]   ;;  %s14794_s15 = smov 10  }
   0x9   :  { %s14881_s8 = sld [smem:[%s17103_s0 + %s14792_s4]]   ;;  %s14795_s20 = smov 11  }
   0xa   :  { %s14886_s14 = sld [smem:[%s17103_s0 + %s14793_s10]]   ;;  %s14796_s26 = smov 12  }
   0xb   :  { %s14891_s19 = sld [smem:[%s17103_s0 + %s14794_s15]]   ;;  %s14797_s1 = smov 13  }
   0xc   :  { %s14896_s24 = sld [smem:[%s17103_s0 + %s14795_s20]]   ;;  %s14798_s7 = smov 14  }
   0xd   :  { %s14901_s30 = sld [smem:[%s17103_s0 + %s14796_s26]]   ;;  %s14799_s15 = smov 15  }
   0xe   :  { %s14906_s6 = sld [smem:[%s17103_s0 + %s14797_s1]]   ;;  %s14800_s22 = smov 16  }
   0xf   :  { %s14911_s12 = sld [smem:[%s17103_s0 + %s14798_s7]]   ;;  %s14801_s28 = smov 17  }
  0x10   :  { %s14916_s20 = sld [smem:[%s17103_s0 + %s14799_s15]]   ;;  %s14802_s7 = smov 18  }
  0x11   :  { %s14921_s27 = sld [smem:[%s17103_s0 + %s14800_s22]]   ;;  %s14803_s15 = smov 19  }
  0x12   :  { %s14926_s4 = sld [smem:[%s17103_s0 + %s14801_s28]]   ;;  %s14804_s22 = smov 20  }
  0x13   :  { %s14805_s28 = smov 21  }
  0x14   :  { %17115 = sst [smem:[#allocation5_spill]] %s14906_s6 }
  0x15   :  { %17116 = sst [smem:[#allocation6_spill]] %s14911_s12 }
  0x16   :  { %s14931_s12 = sld [smem:[%s17103_s0 + %s14802_s7]]   ;;  %s14806_s7 = smov 22  }
  0x17   :  { %17117 = sst [smem:[#allocation7_spill]] %s14921_s27 }
  0x18   :  { %17118 = sst [smem:[#allocation8_spill]] %s14926_s4 }
  0x19   :  { %s14936_s6 = sld [smem:[%s17103_s0 + %s14803_s15]]   ;;  %s14807_s15 = smov 23  }
  0x1a   :  { %s14941_s27 = sld [smem:[%s17103_s0 + %s14804_s22]]   ;;  %s14808_s22 = smov 24  }
  0x1b   :  { %s14946_s4 = sld [smem:[%s17103_s0 + %s14805_s28]]   ;;  %s14809_s28 = smov 25  }
  0x1c   :  { %17119 = sst [smem:[#allocation9_spill]] %s14931_s12 }
  0x1d   :  { %s14951_s12 = sld [smem:[%s17103_s0 + %s14806_s7]]   ;;  %s14810_s7 = smov 26  }
  0x1f   :  { %17120 = sst [smem:[#allocation10_spill]] %s14936_s6 }
  0x20   :  { %17121 = sst [smem:[#allocation11_spill]] %s14941_s27 }
  0x21   :  { %17122 = sst [smem:[#allocation12_spill]] %s14946_s4 }
  0x22   :  { %s14956_s6 = sld [smem:[%s17103_s0 + %s14807_s15]]   ;;  %s14811_s15 = smov 27  }
  0x23   :  { %17123 = sst [smem:[#allocation13_spill]] %s14951_s12 }
  0x24   :  { %s14961_s27 = sld [smem:[%s17103_s0 + %s14808_s22]]   ;;  %s14812_s22 = smov 28  }
  0x25   :  { %s14966_s4 = sld [smem:[%s17103_s0 + %s14809_s28]]   ;;  %s14813_s28 = smov 29  }
  0x26   :  { %s14971_s12 = sld [smem:[%s17103_s0 + %s14810_s7]]   ;;  %s14814_s7 = smov 30  }
  0x28   :  { %17124 = sst [smem:[#allocation14_spill]] %s14956_s6 }
  0x29   :  { %s14976_s6 = sld [smem:[%s17103_s0 + %s14811_s15]]   ;;  %s14815_s15 = smov 31  }
  0x2a   :  { %17125 = sst [smem:[#allocation15_spill]] %s14961_s27 }
  0x2b   :  { %17126 = sst [smem:[#allocation16_spill]] %s14966_s4 }
  0x2c   :  { %17127 = sst [smem:[#allocation17_spill]] %s14971_s12 }
  0x2d   :  { %s14981_s27 = sld [smem:[%s17103_s0 + %s14812_s22]]   ;;  %s14816_s22 = smov 32  }
  0x2e   :  { %s14986_s4 = sld [smem:[%s17103_s0 + %s14813_s28]]   ;;  %s14817_s28 = smov 33  }
  0x2f   :  { %17128 = sst [smem:[#allocation18_spill]] %s14976_s6 }
  0x30   :  { %s14991_s12 = sld [smem:[%s17103_s0 + %s14814_s7]]   ;;  %s14818_s7 = smov 34  }
  0x31   :  { %s14996_s6 = sld [smem:[%s17103_s0 + %s14815_s15]]  }
  0x33   :  { %17129 = sst [smem:[#allocation19_spill]] %s14981_s27 }
  0x34   :  { %17130 = sst [smem:[#allocation20_spill]] %s14986_s4 }
  0x35   :  { %s15001_s27 = sld [smem:[%s17103_s0 + %s14816_s22]]  }
  0x36   :  { %17131 = sst [smem:[#allocation21_spill]] %s14991_s12 }
  0x37   :  { %s15006_s4 = sld [smem:[%s17103_s0 + %s14817_s28]]  }
  0x38   :  { %s15011_s12 = sld [smem:[%s17103_s0 + %s14818_s7]]  }
  0x39   :  { %vm163_vm0 = vcmask 1043456   ;;  %vm164_vm1 = vcmask 1044480   ;;  %v13592_v0 = vld [vmem:[%s14856_s17 + $0x4] ss:$8 sps:$4 sm:$0x1f]   ;;  %v14819_v1 = vmov 65535  }
  0x3a   :  { %v165_v2 = vsel %vm163_vm0, 4294967295, %v14819_v1  ;;  %vm236_vm2 = vcmask 1045504   ;;  %v237_v3 = vsel %vm164_vm1, 4294967295, %v14819_v1  ;;  %v13596_v6 = vld [vmem:[%s14856_s17] ss:$8 sps:$4 sm:$0x1f]  }
  0x3b   :  { %v166_v4 = vsel %vm164_vm1, %v165_v2, 0  ;;  %v238_v7 = vsel %vm236_vm2, %v237_v3, 0  ;;  %v14820_v8 = vmov 0   ;;  %v13594_v9 = vld [vmem:[%s14851_s13 + $0x10] ss:$8 sps:$4 sm:$0x3f]  }
  0x3c   :  { %v171_v5 = vand.u32 %v13592_v0, %v166_v4  ;;  %205 = vmatprep.mubr.bf16.mxu0 %v14820_v8  ;;  %v168_v10 = vand.u32 %v13596_v6, %v166_v4  ;;  %v148_v11 = vld [vmem:[%s14846_s9] sm:$0xf]  ;;  %v13599_v12 = vld [vmem:[%s14851_s13 + $0x4] ss:$8 sps:$4 sm:$0xff]   ;;  %vm159_vm3 = vcmask 72704   ;;  %v240_v21 = vand.u32 %v13594_v9, %v238_v7  ;;  %v13635_v33 = vld [vmem:[%s14876_s3 + $0x50] sm:$0xff]  }
  0x3d   :  { %v13600_v13 = vld [vmem:[%s14851_s13 + $0x14] ss:$8 sps:$4 sm:$0x3f]   ;;  %v13597_v14 = vld [vmem:[%s14851_s13] ss:$8 sps:$4 sm:$0xff]   ;;  %vm232_vm4 = vcmask 220160  }
  0x3e   :  { %173 = vmatprep.subr.bf16.mxu0 %v171_v5  ;;  %v13601_v15 = vld [vmem:[%s14866_s25 + $0x4] ss:$8 sps:$4 sm:$0xff]   ;;  %v13603_v16 = vld [vmem:[%s14866_s25] ss:$8 sps:$4 sm:$0xff]   ;;  %v243_v17 = vand.u32 %v13600_v13, %v238_v7  ;;  %v13604_v18 = vld [vmem:[%s14866_s25 + $0x14] ss:$8 sps:$4 sm:$0xff]   ;;  %v288_v5 = vlaneseq }
  0x3f   :  { %174 = vmatpush1.bf16.msra.mxu0 %v168_v10  ;;  %682 = vmatprep.subr.bf16.mxu1 %v13601_v15  ;;  %v13606_v19 = vld [vmem:[%s14866_s25 + $0x10] ss:$8 sps:$4 sm:$0xff]   ;;  %v13607_v20 = vld [vmem:[%s14866_s25 + $0x24] ss:$8 sps:$4 sm:$0xff]   ;;  %v13609_v22 = vld [vmem:[%s14866_s25 + $0x20] ss:$8 sps:$4 sm:$0xff]  }
  0x40   :  { %245 = vmatprep.subr.bf16.mxu0 %v13599_v12  ;;  %683 = vmatpush1.bf16.msra.mxu1 %v13603_v16  ;;  %v13610_v23 = vld [vmem:[%s14866_s25 + $0x34] ss:$8 sps:$4 sm:$0xff]   ;;  %v143_v24 = vld [vmem:[%s14841_s5] sm:$0xf]  ;;  %v13612_v25 = vld [vmem:[%s14866_s25 + $0x30] ss:$8 sps:$4 sm:$0xff]  }
  0x41   :  { %684 = vmatprep.subr.bf16.mxu1 %v13604_v18  ;;  %v13625_v26 = vld [vmem:[%s14876_s3 + $0x40] sm:$0xff]   ;;  %v13630_v30 = vld [vmem:[%s14876_s3 + $0x48] sm:$0xff]   ;;  %v13616_v31 = vld [vmem:[%s14866_s25 + $0x54] ss:$8 sps:$4 sm:$0xff]   ;;  %v15075_v6 = vshrl.u32 %v288_v5, 7 }
  0x42   :  { %11878 = vmatmul.mubr.msk.bf16.vlgmr.msra.gmra.mrb[0].mxu0 %vm159_vm3, %v148_v11  ;;  %v13613_v27 = vld [vmem:[%s14866_s25 + $0x44] ss:$8 sps:$4 sm:$0xff]   ;;  %v13615_v28 = vld [vmem:[%s14866_s25 + $0x40] ss:$8 sps:$4 sm:$0xff]   ;;  %v13618_v34 = vld [vmem:[%s14866_s25 + $0x50] ss:$8 sps:$4 sm:$0xff]  }
  0x43   :  { %246 = vmatpush1.bf16.msra.mxu0 %v13597_v14  ;;  %277 = vmatprep.mubr.bf16.mxu0 %v14820_v8  ;;  %v13628_v29 = vld [vmem:[%s14876_s3] sm:$0xff]   ;;  %v13633_v32 = vld [vmem:[%s14876_s3 + $0x8] sm:$0xff]   ;;  %v13638_v36 = vld [vmem:[%s14876_s3 + $0x10] sm:$0xff]   ;;  %v15079_v13 = vsub.s32 0, %v15075_v6  ;;  %v15082_v14 = vsub.s32 1, %v15075_v6 }
  0x44   :  { %247 = vmatprep.subr.bf16.mxu0 %v243_v17  ;;  %685 = vmatpush1.bf16.msra.mxu1 %v13606_v19  ;;  %v13619_v35 = vld [vmem:[%s14866_s25 + $0x64] ss:$8 sps:$4 sm:$0xff]   ;;  %v13640_v37 = vld [vmem:[%s14876_s3 + $0x58] sm:$0xff]   ;;  %v13621_v38 = vld [vmem:[%s14866_s25 + $0x60] ss:$8 sps:$4 sm:$0xff]  }
  0x45   :  { %686 = vmatprep.subr.bf16.mxu1 %v13607_v20  ;;  %v13622_v39 = vld [vmem:[%s14866_s25 + $0x74] ss:$8 sps:$4 sm:$0xff]   ;;  %v13624_v41 = vld [vmem:[%s14866_s25 + $0x70] ss:$8 sps:$4 sm:$0xff]   ;;  %v13626_v42 = vld [vmem:[%s14866_s25 + $0x84] ss:$8 sps:$4 sm:$0xff]  }
  0x46   :  { %v13643_v40 = vld [vmem:[%s14876_s3 + $0x18] sm:$0xff]   ;;  %v13629_v43 = vld [vmem:[%s14866_s25 + $0x80] ss:$8 sps:$4 sm:$0xff]   ;;  %v13636_v46 = vld [vmem:[%s14866_s25 + $0xa4] ss:$8 sps:$4 sm:$0xff]  }
  0x47   :  { %248 = vmatpush1.bf16.msra.mxu0 %v240_v21  ;;  %v13631_v44 = vld [vmem:[%s14866_s25 + $0x94] ss:$8 sps:$4 sm:$0xff]   ;;  %v13634_v45 = vld [vmem:[%s14866_s25 + $0x90] ss:$8 sps:$4 sm:$0xff]   ;;  %v13639_v47 = vld [vmem:[%s14866_s25 + $0xa0] ss:$8 sps:$4 sm:$0xff]  }
  0x48   :  { %687 = vmatpush1.bf16.msra.mxu1 %v13609_v22  ;;  %12941 = vmatprep.subr.bf16.mxu0 %v13625_v26  ;;  %v13641_v48 = vld [vmem:[%s14866_s25 + $0xb4] ss:$8 sps:$4 sm:$0xff]   ;;  %v13644_v49 = vld [vmem:[%s14866_s25 + $0xb0] ss:$8 sps:$4 sm:$0xff]   ;;  %v13645_v50 = vld [vmem:[%s14876_s3 + $0x60] sm:$0xff]  }
  0x49   :  { %688 = vmatprep.subr.bf16.mxu1 %v13610_v23  ;;  %v13646_v51 = vld [vmem:[%s14866_s25 + $0xc4] ss:$8 sps:$4 sm:$0xff]   ;;  %v13649_v53 = vld [vmem:[%s14866_s25 + $0xc0] ss:$8 sps:$4 sm:$0xff]   ;;  %v13651_v55 = vld [vmem:[%s14866_s25 + $0xd4] ss:$8 sps:$4 sm:$0xff]  }
  0x4a   :  { %11883 = vmatmul.mubr.msk.bf16.vlgmr.msra.gmra.mrb[4].mxu0 %vm232_vm4, %v143_v24  ;;  %v13648_v52 = vld [vmem:[%s14876_s3 + $0x20] sm:$0xff]   ;;  %v13650_v54 = vld [vmem:[%s14876_s3 + $0x68] sm:$0xff]   ;;  %v13654_v57 = vld [vmem:[%s14866_s25 + $0xd0] ss:$8 sps:$4 sm:$0xff]  }
  0x4b   :  { %12942 = vmatpush3.bf16.msra.mxu0 %v13628_v29  ;;  %v13653_v56 = vld [vmem:[%s14876_s3 + $0x28] sm:$0xff]   ;;  %v13655_v58 = vld [vmem:[%s14876_s3 + $0x70] sm:$0xff]   ;;  %v13660_v62 = vld [vmem:[%s14876_s3 + $0x78] sm:$0xff]  }
  0x4c   :  { %689 = vmatpush1.bf16.msra.mxu1 %v13612_v25  ;;  %12943 = vmatprep.subr.bf16.mxu0 %v13630_v30  ;;  %v13656_v59 = vld [vmem:[%s14866_s25 + $0xe4] ss:$8 sps:$4 sm:$0xff]   ;;  %v13658_v60 = vld [vmem:[%s14876_s3 + $0x30] sm:$0xff]   ;;  %v13659_v61 = vld [vmem:[%s14866_s25 + $0xe0] ss:$8 sps:$4 sm:$0xff]  }
  0x4d   :  { %690 = vmatprep.subr.bf16.mxu1 %v13613_v27  ;;  %v13661_v63 = vld [vmem:[%s14866_s25 + $0xf4] ss:$8 sps:$4 sm:$0xff]   ;;  %v13664_v2 = vld [vmem:[%s14866_s25 + $0xf0] ss:$8 sps:$4 sm:$0xff]   ;;  %v13670_v4 = vld [vmem:[%s14886_s14 + $0xc] ss:$20 sps:$4 sm:$0xff]  }
  0x4e   :  { %v13663_v0 = vld [vmem:[%s14876_s3 + $0x38] sm:$0xff]   ;;  %v286_v11 = vld [vmem:[%s14861_s21] sm:$0x3] }
  0x4f   :  { %12944 = vmatpush3.bf16.msra.mxu0 %v13633_v32  ;;  %v13667_v3 = vld [vmem:[%s14886_s14 + $0x4] ss:$20 sps:$4 sm:$0xff]   ;;  %v291_v15 = vrot.slane %v286_v11, %v15079_v13  ;;  %v295_v17 = vrot.slane %v286_v11, %v15082_v14  ;;  %v13665_v25 = vld [vmem:[%s14886_s14] ss:$20 sps:$4 sm:$0xff]   ;;  %v13668_v26 = vld [vmem:[%s14886_s14 + $0x8] ss:$20 sps:$4 sm:$0xff]  }
  0x50   :  { %691 = vmatpush1.bf16.msra.mxu1 %v13615_v28  ;;  %12945 = vmatprep.subr.bf16.mxu0 %v13635_v33  ;;  %v13673_v27 = vld [vmem:[%s14886_s14 + $0x2c] ss:$20 sps:$4 sm:$0xff]   ;;  %v13676_v28 = vld [vmem:[%s14886_s14 + $0x34] ss:$20 sps:$4 sm:$0xff]   ;;  %v13674_v32 = vld [vmem:[%s14886_s14 + $0x30] ss:$20 sps:$4 sm:$0xff]  }
  0x51   :  { %692 = vmatprep.subr.bf16.mxu1 %v13616_v31  ;;  %v13671_v31 = vld [vmem:[%s14886_s14 + $0x28] ss:$20 sps:$4 sm:$0xff]   ;;  %v13728_v5 = vld [vmem:[%s14886_s14 + $0x198] ss:$20 sps:$4 sm:$0xff]  }
  0x52   :  { %v13679_v33 = vld [vmem:[%s14886_s14 + $0x54] ss:$20 sps:$4 sm:$0xff]  }
  0x53   :  { %12946 = vmatpush3.bf16.msra.mxu0 %v13638_v36  ;;  %v13680_v36 = vld [vmem:[%s14886_s14 + $0x58] ss:$20 sps:$4 sm:$0xff]  }
  0x54   :  { %693 = vmatpush1.bf16.msra.mxu1 %v13618_v34  ;;  %12947 = vmatprep.subr.bf16.mxu0 %v13640_v37  ;;  %v13682_v34 = vld [vmem:[%s14886_s14 + $0x5c] ss:$20 sps:$4 sm:$0xff]  }
  0x55   :  { %694 = vmatprep.subr.bf16.mxu1 %v13619_v35  ;;  %v13677_v35 = vld [vmem:[%s14886_s14 + $0x50] ss:$20 sps:$4 sm:$0xff]  }
  0x56   :  { %v13685_v37 = vld [vmem:[%s14886_s14 + $0x7c] ss:$20 sps:$4 sm:$0xff]  }
  0x57   :  { %12948 = vmatpush3.bf16.msra.mxu0 %v13643_v40  ;;  %v13686_v40 = vld [vmem:[%s14886_s14 + $0x80] ss:$20 sps:$4 sm:$0xff]  }
  0x58   :  { %695 = vmatpush1.bf16.msra.mxu1 %v13621_v38  ;;  %12949 = vmatprep.subr.bf16.mxu0 %v13645_v50  ;;  %v13688_v38 = vld [vmem:[%s14886_s14 + $0x84] ss:$20 sps:$4 sm:$0xff]   ;;  %v13706_v50 = vld [vmem:[%s14886_s14 + $0xfc] ss:$20 sps:$4 sm:$0xff]  }
  0x59   :  { %696 = vmatprep.subr.bf16.mxu1 %v13622_v39  ;;  %v13683_v39 = vld [vmem:[%s14886_s14 + $0x78] ss:$20 sps:$4 sm:$0xff]  }
  0x5b   :  { %12950 = vmatpush3.bf16.msra.mxu0 %v13648_v52  ;;  %v13704_v52 = vld [vmem:[%s14886_s14 + $0xf8] ss:$20 sps:$4 sm:$0xff]  }
  0x5c   :  { %697 = vmatpush1.bf16.msra.mxu1 %v13624_v41  ;;  %12951 = vmatprep.subr.bf16.mxu0 %v13650_v54  ;;  %v13691_v41 = vld [vmem:[%s14886_s14 + $0xa4] ss:$20 sps:$4 sm:$0xff]  }
  0x5d   :  { %698 = vmatprep.subr.bf16.mxu1 %v13626_v42  ;;  %v13694_v42 = vld [vmem:[%s14886_s14 + $0xac] ss:$20 sps:$4 sm:$0xff]   ;;  %v13712_v54 = vld [vmem:[%s14886_s14 + $0x124] ss:$20 sps:$4 sm:$0xff]  }
  0x5f   :  { %12952 = vmatpush3.bf16.msra.mxu0 %v13653_v56  ;;  %v13710_v56 = vld [vmem:[%s14886_s14 + $0x120] ss:$20 sps:$4 sm:$0xff]  }
  0x60   :  { %699 = vmatpush1.bf16.msra.mxu1 %v13629_v43  ;;  %12953 = vmatprep.subr.bf16.mxu0 %v13655_v58  ;;  %v13689_v43 = vld [vmem:[%s14886_s14 + $0xa0] ss:$20 sps:$4 sm:$0xff]  }
  0x61   :  { %700 = vmatprep.subr.bf16.mxu1 %v13631_v44  ;;  %v13692_v44 = vld [vmem:[%s14886_s14 + $0xa8] ss:$20 sps:$4 sm:$0xff]   ;;  %v13718_v58 = vld [vmem:[%s14886_s14 + $0x14c] ss:$20 sps:$4 sm:$0xff]  }
  0x63   :  { %12954 = vmatpush3.bf16.msra.mxu0 %v13658_v60  ;;  %v13716_v60 = vld [vmem:[%s14886_s14 + $0x148] ss:$20 sps:$4 sm:$0xff]  }
  0x64   :  { %701 = vmatpush1.bf16.msra.mxu1 %v13634_v45  ;;  %12955 = vmatprep.subr.bf16.mxu0 %v13660_v62  ;;  %v13697_v45 = vld [vmem:[%s14886_s14 + $0xcc] ss:$20 sps:$4 sm:$0xff]   ;;  %v13724_v62 = vld [vmem:[%s14886_s14 + $0x174] ss:$20 sps:$4 sm:$0xff]  }
  0x65   :  { %702 = vmatprep.subr.bf16.mxu1 %v13636_v46  ;;  %v13700_v46 = vld [vmem:[%s14886_s14 + $0xd4] ss:$20 sps:$4 sm:$0xff]  }
  0x67   :  { %12956 = vmatpush3.bf16.msra.mxu0 %v13663_v0  ;;  %v13722_v0 = vld [vmem:[%s14886_s14 + $0x170] ss:$20 sps:$4 sm:$0xff]  }
  0x68   :  { %703 = vmatpush1.bf16.msra.mxu1 %v13639_v47  ;;  %1140 = vmatprep.subr.bf16.mxu0 %v13667_v3  ;;  %v13695_v47 = vld [vmem:[%s14886_s14 + $0xc8] ss:$20 sps:$4 sm:$0xff]  }
  0x69   :  { %704 = vmatprep.subr.bf16.mxu1 %v13641_v48  ;;  %v13698_v48 = vld [vmem:[%s14886_s14 + $0xd0] ss:$20 sps:$4 sm:$0xff]  }
  0x6a   :  { %v13730_v3 = vld [vmem:[%s14886_s14 + $0x19c] ss:$20 sps:$4 sm:$0xff]  }
  0x6c   :  { %705 = vmatpush1.bf16.msra.mxu1 %v13644_v49  ;;  %v13703_v49 = vld [vmem:[%s14886_s14 + $0xf4] ss:$20 sps:$4 sm:$0xff]  }
  0x6d   :  { %706 = vmatprep.subr.bf16.mxu1 %v13646_v51  ;;  %v13701_v51 = vld [vmem:[%s14886_s14 + $0xf0] ss:$20 sps:$4 sm:$0xff]  }
  0x70   :  { %707 = vmatpush1.bf16.msra.mxu1 %v13649_v53  ;;  %v13709_v53 = vld [vmem:[%s14886_s14 + $0x11c] ss:$20 sps:$4 sm:$0xff]  }
  0x71   :  { %708 = vmatprep.subr.bf16.mxu1 %v13651_v55  ;;  %v13707_v55 = vld [vmem:[%s14886_s14 + $0x118] ss:$20 sps:$4 sm:$0xff]  }
  0x74   :  { %709 = vmatpush1.bf16.msra.mxu1 %v13654_v57  ;;  %v13715_v57 = vld [vmem:[%s14886_s14 + $0x144] ss:$20 sps:$4 sm:$0xff]  }
  0x75   :  { %710 = vmatprep.subr.bf16.mxu1 %v13656_v59  ;;  %v13713_v59 = vld [vmem:[%s14886_s14 + $0x140] ss:$20 sps:$4 sm:$0xff]  }
  0x78   :  { %711 = vmatpush1.bf16.msra.mxu1 %v13659_v61  ;;  %v13721_v61 = vld [vmem:[%s14886_s14 + $0x16c] ss:$20 sps:$4 sm:$0xff]  }
  0x79   :  { %712 = vmatprep.subr.bf16.mxu1 %v13661_v63  ;;  %v13719_v63 = vld [vmem:[%s14886_s14 + $0x168] ss:$20 sps:$4 sm:$0xff]  }
  0x7c   :  { %713 = vmatpush1.bf16.msra.mxu1 %v13664_v2  ;;  %v13727_v2 = vld [vmem:[%s14886_s14 + $0x194] ss:$20 sps:$4 sm:$0xff]  }
  0x7d   :  { %1181 = vmatprep.subr.bf16.mxu1 %v13670_v4  ;;  %v13725_v4 = vld [vmem:[%s14886_s14 + $0x190] ss:$20 sps:$4 sm:$0xff]  }
 0x115   :  { %v207_v7 = vpop.f32.mrb[0].mxu0 }
 0x116   :  { %v209_v9 = vpop.f32.mrb[1].mxu0 }
 0x117   :  { %v211_v10 = vpop.f32.mrb[2].mxu0 }
 0x118   :  { %v212_v12 = vpop.f32.mrb[3].mxu0 }
 0x11d   :  { %v279_v16 = vpop.f32.mrb[4].mxu0 }
 0x11e   :  { %v280_v18 = vadd.f32 %v279_v16, %v207_v7  ;;  %v281_v19 = vpop.f32.mrb[5].mxu0 }
 0x11f   :  { %v282_v20 = vadd.f32 %v281_v19, %v209_v9  ;;  %v283_v21 = vpop.f32.mrb[6].mxu0 }
 0x120   :  { %v298_v22 = vadd.f32 %v291_v15, %v280_v18  ;;  %v284_v23 = vpop.f32.mrb[7].mxu0 }
 0x121   :  { %v299_v24 = vadd.f32 %v295_v17, %v282_v20 }
 0x122   :  { %v300_v30 = vpack.c.bf16 %v298_v22, %v298_v22 }
 0x123   :  { %v301_v29 = vpack.c.bf16 %v299_v24, %v299_v24 }
 0x125   :  { %469 = vmatprep.mubr.bf16.mxu0 %v301_v29  ;;  %714 = vmatprep.mubr.bf16.mxu1 %v301_v29 }
 0x126   :  { %470 = vmatmul.mubr.bf16.vlgmr.msra.gmra.mrb[8].mxu0 %v300_v30  ;;  %715 = vmatmul.mubr.bf16.vlgmr.msra.gmra.mrb[0].mxu1 %v300_v30 }
 0x127   :  { %1141 = vmatpush1.bf16.msra.mxu0 %v13665_v25  ;;  %1182 = vmatpush1.bf16.msra.mxu1 %v13668_v26 }
 0x128   :  { %1142 = vmatprep.subr.bf16.mxu0 %v13673_v27  ;;  %1183 = vmatprep.subr.bf16.mxu1 %v13676_v28 }
 0x12b   :  { %1143 = vmatpush1.bf16.msra.mxu0 %v13671_v31  ;;  %1184 = vmatpush1.bf16.msra.mxu1 %v13674_v32 }
 0x12c   :  { %1144 = vmatprep.subr.bf16.mxu0 %v13679_v33  ;;  %1185 = vmatprep.subr.bf16.mxu1 %v13682_v34 }
 0x12f   :  { %1145 = vmatpush1.bf16.msra.mxu0 %v13677_v35  ;;  %1186 = vmatpush1.bf16.msra.mxu1 %v13680_v36 }
 0x130   :  { %1146 = vmatprep.subr.bf16.mxu0 %v13685_v37  ;;  %1187 = vmatprep.subr.bf16.mxu1 %v13688_v38 }
 0x133   :  { %1147 = vmatpush1.bf16.msra.mxu0 %v13683_v39  ;;  %1188 = vmatpush1.bf16.msra.mxu1 %v13686_v40 }
 0x134   :  { %1148 = vmatprep.subr.bf16.mxu0 %v13691_v41  ;;  %1189 = vmatprep.subr.bf16.mxu1 %v13694_v42 }
 0x137   :  { %1149 = vmatpush1.bf16.msra.mxu0 %v13689_v43  ;;  %1190 = vmatpush1.bf16.msra.mxu1 %v13692_v44 }
 0x138   :  { %1150 = vmatprep.subr.bf16.mxu0 %v13697_v45  ;;  %1191 = vmatprep.subr.bf16.mxu1 %v13700_v46 }
 0x13b   :  { %1151 = vmatpush1.bf16.msra.mxu0 %v13695_v47  ;;  %1192 = vmatpush1.bf16.msra.mxu1 %v13698_v48 }
 0x13c   :  { %1152 = vmatprep.subr.bf16.mxu0 %v13703_v49  ;;  %1193 = vmatprep.subr.bf16.mxu1 %v13706_v50 }
 0x13f   :  { %1153 = vmatpush1.bf16.msra.mxu0 %v13701_v51  ;;  %1194 = vmatpush1.bf16.msra.mxu1 %v13704_v52 }
 0x140   :  { %1154 = vmatprep.subr.bf16.mxu0 %v13709_v53  ;;  %1195 = vmatprep.subr.bf16.mxu1 %v13712_v54 }
 0x143   :  { %1155 = vmatpush1.bf16.msra.mxu0 %v13707_v55  ;;  %1196 = vmatpush1.bf16.msra.mxu1 %v13710_v56 }
 0x144   :  { %1156 = vmatprep.subr.bf16.mxu0 %v13715_v57  ;;  %1197 = vmatprep.subr.bf16.mxu1 %v13718_v58 }
 0x147   :  { %1157 = vmatpush1.bf16.msra.mxu0 %v13713_v59  ;;  %1198 = vmatpush1.bf16.msra.mxu1 %v13716_v60 }
 0x148   :  { %1158 = vmatprep.subr.bf16.mxu0 %v13721_v61  ;;  %1199 = vmatprep.subr.bf16.mxu1 %v13724_v62 }
 0x14b   :  { %1159 = vmatpush1.bf16.msra.mxu0 %v13719_v63  ;;  %1200 = vmatpush1.bf16.msra.mxu1 %v13722_v0 }
 0x14c   :  { %1160 = vmatprep.subr.bf16.mxu0 %v13727_v2  ;;  %1201 = vmatprep.subr.bf16.mxu1 %v13730_v3 }
 0x14f   :  { %1161 = vmatpush1.bf16.msra.mxu0 %v13725_v4  ;;  %1202 = vmatpush1.bf16.msra.mxu1 %v13728_v5 }
 0x150   :  { %75 = vsyncpa [#allocation3], 0  ;;  %v13733_v7 = vld [vmem:[%s14886_s14 + $0x1bc] ss:$20 sps:$4 sm:$0xff]   ;;  %v13731_v9 = vld [vmem:[%s14886_s14 + $0x1b8] ss:$20 sps:$4 sm:$0xff]  }
 0x151   :  { %v13736_v10 = vld [vmem:[%s14886_s14 + $0x1c4] ss:$20 sps:$4 sm:$0xff]   ;;  %1162 = vmatprep.subr.bf16.mxu0 %v13733_v7  ;;  %v13734_v11 = vld [vmem:[%s14886_s14 + $0x1c0] ss:$20 sps:$4 sm:$0xff]   ;;  %vm1136_vm5 = vcmask 523264   ;;  %v15173_v44 = vsub.s32 2, %v15075_v6 }
 0x152   :  { %1203 = vmatprep.subr.bf16.mxu1 %v13736_v10  ;;  %v510_v12 = vld [vmem:[%s14871_s29] sm:$0x3]  ;;  %v13737_v31 = vld [vmem:[%s14886_s14 + $0x10] ss:$20 sps:$4 sm:$0xff]   ;;  %v13738_v33 = vld [vmem:[%s14886_s14 + $0x38] ss:$20 sps:$4 sm:$0xff]  }
 0x153   :  { %1163 = vmatpush1.bf16.msra.mxu0 %v13731_v9  ;;  %1204 = vmatpush1.bf16.msra.mxu1 %v13734_v11  ;;  %v515_v15 = vrot.slane %v510_v12, %v15079_v13  ;;  %v519_v16 = vrot.slane %v510_v12, %v15082_v14  ;;  %v11884_v20 = vld [vmem:[%s14881_s8] ss:$0 sm:$0xff]  ;;  %v13740_v35 = vld [vmem:[%s14886_s14 + $0x88] ss:$20 sps:$4 sm:$0xff]   ;;  %v13741_v36 = vld [vmem:[%s14886_s14 + $0xb0] ss:$20 sps:$4 sm:$0xff]  }
 0x154   :  { %1222 = vmatprep.subr.bf16.mxu0 %v14820_v8  ;;  %v13739_v34 = vld [vmem:[%s14886_s14 + $0x60] ss:$20 sps:$4 sm:$0xff]   ;;  %v13742_v37 = vld [vmem:[%s14886_s14 + $0xd8] ss:$20 sps:$4 sm:$0xff]   ;;  %v13744_v39 = vld [vmem:[%s14886_s14 + $0x128] ss:$20 sps:$4 sm:$0xff]  }
 0x155   :  { %v13743_v38 = vld [vmem:[%s14886_s14 + $0x100] ss:$20 sps:$4 sm:$0xff]   ;;  %v13745_v40 = vld [vmem:[%s14886_s14 + $0x150] ss:$20 sps:$4 sm:$0xff]   ;;  %v13746_v41 = vld [vmem:[%s14886_s14 + $0x178] ss:$20 sps:$4 sm:$0xff]  }
 0x156   :  { %v13747_v42 = vld [vmem:[%s14886_s14 + $0x1a0] ss:$20 sps:$4 sm:$0xff]   ;;  %v13748_v43 = vld [vmem:[%s14886_s14 + $0x1c8] ss:$20 sps:$4 sm:$0xff]   ;;  %v14821_v45 = vmov 1966171168  }
 0x157   :  { %v1265_v46 = vunpack.c.l.s4 %v14821_v45  ;;  %v797_v47 = vld [vmem:[%s14891_s19] sm:$0x1f]  ;;  %v14822_v0 = vmov 0.0   ;;  %vm14823_vm6 = vmmov 0   ;;  %s14824_s0 = smov 64   ;;  %vm1356_vm7 = vcmask 392192  }
 0x158   :  { %v802_v48 = vrot.slane %v797_v47, %v15079_v13  ;;  %v810_v49 = vrot.slane %v797_v47, %v15173_v44  ;;  %v806_v51 = vrot.slane %v797_v47, %v15082_v14  ;;  %13142 = vmatprep.subr.bf16.mxu1 %v14822_v0  ;;  %vm1646_vm8 = vcmask 1040384   ;;  %s14825_s5 = smov 16   ;;  %s14826_s9 = smov 80  }
 0x159   :  { %v1266_v50 = vunpack.c.0.s8 %v1265_v46  ;;  %vm1593_vm9 = vcmask 9216   ;;  %vm1642_vm10 = vcmask 15360   ;;  %vm1897_vm11 = vcmask 130048   ;;  %s14828_s13 = smov 96   ;;  %s14829_s17 = smov 32  }
 0x15a   :  { %vm2614_vm12 = vcmask 261120   ;;  %s14830_s21 = smov 48   ;;  %s14831_s25 = smov 112   ;;  %vm3908_vm13 = vcmask 785408   ;;  %vm10665_vm14 = vcmask 1041408   ;;  %vm10661_vm15 = vcmask 23552  }
 0x15b   :  { %v15184_v58 = vsub.s32 %v1266_v50, %v15075_v6  ;;  %s17132_s29 = sld [smem:[#allocation8_spill]]  ;;  %s17133_s3 = sld [smem:[#allocation5_spill]] }
 0x15c   :  { %s17134_s8 = sld [smem:[#allocation6_spill]]  ;;  %s17136_s15 = sld [smem:[#allocation9_spill]] }
 0x15d   :  { %s17137_s16 = sld [smem:[#allocation10_spill]]  ;;  %s17138_s18 = sld [smem:[#allocation11_spill]] }
 0x15e   :  { %s17144_s22 = sld [smem:[#allocation16_spill]]  ;;  %s17145_s23 = sld [smem:[#allocation19_spill]] }
 0x15f   :  { %s17146_s26 = sld [smem:[#allocation13_spill]]  ;;  %s17147_s28 = sld [smem:[#allocation18_spill]] }
 0x160   :  { %s17148_s1 = sld [smem:[#allocation21_spill]] }
 0x1f9   :  { %v12957_v17 = vpop.f32.mrb[8].mxu0  ;;  %v716_v18 = vpop.f32.mrb[0].mxu1 }
 0x1fa   :  { %v15136_v19 = vadd.f32 %v716_v18, %v515_v15  ;;  %v12958_v21 = vpop.f32.mrb[9].mxu0  ;;  %v718_v22 = vpop.f32.mrb[1].mxu1 }
 0x1fb   :  { %v12959_v23 = vadd.f32 %v12958_v21, %v12957_v17  ;;  %v15139_v24 = vadd.f32 %v718_v22, %v519_v16  ;;  %v12960_v25 = vpop.f32.mrb[10].mxu0  ;;  %v720_v26 = vpop.f32.mrb[2].mxu1 }
 0x1fc   :  { %v12961_v27 = vpop.f32.mrb[11].mxu0  ;;  %v721_v28 = vpop.f32.mrb[3].mxu1  ;;  %v723_v32 = vpack.c.bf16 %v15136_v19, %v15136_v19  ;;  %v15228_v25 = vsub.s32 3, %v15075_v6  ;;  %v15231_v26 = vsub.s32 4, %v15075_v6 }
 0x1fd   :  { %v472_v29 = vadd.f32 %v12959_v23, %v11884_v20  ;;  %v724_v30 = vpack.c.bf16 %v15139_v24, %v15139_v24 }
 0x1fe   :  { %v814_v27 = vrot.slane %v797_v47, %v15228_v25  ;;  %v818_v28 = vrot.slane %v797_v47, %v15231_v26 }
 0x1ff   :  { %477 = vst [vmem:[%s15006_s4] sm:$0xff] %v472_v29  ;;  %11993 = vmatprep.mubr.msk.bf16.mxu0 %vm1136_vm5, %v724_v30  ;;  %11994 = vmatprep.mubr.msk.bf16.mxu1 %vm1136_vm5, %v724_v30  ;;  %s17135_s4 = sld [smem:[#allocation7_spill]] }
 0x200   :  { %1173 = vmatmul.mubr.bf16.vlgmr.msra.gmra.mrb[12].mxu0 %v723_v32  ;;  %1214 = vmatmul.mubr.bf16.vlgmr.msra.gmra.mrb[4].mxu1 %v723_v32 }
 0x201   :  { %1223 = vmatpush1.bf16.msra.mxu0 %v13737_v31  ;;  %11995 = vmatprep.mubr.msk.bf16.mxu0 %vm1136_vm5, %v724_v30 }
 0x202   :  { %1224 = vmatprep.subr.bf16.mxu0 %v14820_v8  ;;  %13144 = vmatprep.mubr.msk.bf16.mxu1 %vm14823_vm6, %v14822_v0 }
 0x205   :  { %1225 = vmatpush1.bf16.msra.mxu0 %v13738_v33 }
 0x206   :  { %1226 = vmatprep.subr.bf16.mxu0 %v14820_v8 }
 0x209   :  { %1227 = vmatpush1.bf16.msra.mxu0 %v13739_v34 }
 0x20a   :  { %1228 = vmatprep.subr.bf16.mxu0 %v14820_v8 }
 0x20d   :  { %1229 = vmatpush1.bf16.msra.mxu0 %v13740_v35 }
 0x20e   :  { %1230 = vmatprep.subr.bf16.mxu0 %v14820_v8 }
 0x211   :  { %1231 = vmatpush1.bf16.msra.mxu0 %v13741_v36 }
 0x212   :  { %1232 = vmatprep.subr.bf16.mxu0 %v14820_v8 }
 0x215   :  { %1233 = vmatpush1.bf16.msra.mxu0 %v13742_v37 }
 0x216   :  { %1234 = vmatprep.subr.bf16.mxu0 %v14820_v8 }
 0x219   :  { %1235 = vmatpush1.bf16.msra.mxu0 %v13743_v38 }
 0x21a   :  { %1236 = vmatprep.subr.bf16.mxu0 %v14820_v8 }
 0x21d   :  { %1237 = vmatpush1.bf16.msra.mxu0 %v13744_v39 }
 0x21e   :  { %1238 = vmatprep.subr.bf16.mxu0 %v14820_v8 }
 0x221   :  { %1239 = vmatpush1.bf16.msra.mxu0 %v13745_v40 }
 0x222   :  { %1240 = vmatprep.subr.bf16.mxu0 %v14820_v8 }
 0x225   :  { %1241 = vmatpush1.bf16.msra.mxu0 %v13746_v41 }
 0x226   :  { %1242 = vmatprep.subr.bf16.mxu0 %v14820_v8 }
 0x229   :  { %1243 = vmatpush1.bf16.msra.mxu0 %v13747_v42 }
 0x22a   :  { %1244 = vmatprep.subr.bf16.mxu0 %v14820_v8 }
 0x22d   :  { %1245 = vmatpush1.bf16.msra.mxu0 %v13748_v43 }
 0x22e   :  { %13154 = vmatprep.subr.bf16.mxu0 %v14822_v0 }
 0x230   :  { %1255 = vmatmul.mubr.bf16.vlgmr.msra.gmra.mrb[16].mxu0 %v723_v32 }
 0x231   :  { %13156 = vmatprep.mubr.msk.bf16.mxu0 %vm14823_vm6, %v14822_v0 }
 0x2d3   :  { %v1174_v52 = vpop.f32.mrb[12].mxu0  ;;  %v1215_v53 = vpop.f32.mrb[4].mxu1 }
 0x2d4   :  { %v15179_v54 = vadd.f32 %v1174_v52, %v802_v48  ;;  %v15181_v55 = vadd.f32 %v1215_v53, %v810_v49  ;;  %v1176_v56 = vpop.f32.mrb[13].mxu0  ;;  %v1217_v57 = vpop.f32.mrb[5].mxu1 }
 0x2d5   :  { %v15186_v59 = vadd.f32 %v1176_v56, %v806_v51  ;;  %v1178_v60 = vpop.f32.mrb[14].mxu0  ;;  %v1219_v61 = vpop.f32.mrb[6].mxu1  ;;  %v15235_v30 = vadd.f32 %v1217_v57, %v814_v27 }
 0x2d6   :  { %v1179_v62 = vpop.f32.mrb[15].mxu0  ;;  %v1220_v63 = vpop.f32.mrb[7].mxu1  ;;  %v1262_v36 = vpack.c.bf16 %v15179_v54, %v15179_v54 }
 0x2d7   :  { %v1288_v2 = vpack.c.bf16 %v15186_v59, %v15186_v59  ;;  %v12004_v3 = vpack.c.bf16 %v15181_v55, %v15186_v59  ;;  %v12013_v4 = vpack.c.bf16 %v15186_v59, %v15179_v54  ;;  %v1314_v37 = vpack.c.bf16 %v15235_v30, %v15235_v30 }
 0x2d8   :  { %v1270_v39 = vrot.slane %v1262_v36, %v15184_v58 }
 0x2d9   :  { %v1296_v5 = vrot.slane %v1288_v2, %v15184_v58  ;;  %v1322_v42 = vrot.slane %v1314_v37, %v15184_v58  ;;  %v1837_v36 = vrot.slane %v12004_v3, %v15184_v58 }
 0x2da   :  { %v15251_v45 = vrot.slane %v1270_v39, %v15184_v58  ;;  %v1271_v50 = vcombine.high %v1270_v39, %v1270_v39 }
 0x2db   :  { %v1297_v7 = vcombine.high %v1296_v5, %v1296_v5  ;;  %v1304_v9 = vrot.slane %v1296_v5, %v15184_v58  ;;  %v15255_v47 = vrot.slane %v1322_v42, %v15184_v58  ;;  %v1323_v56 = vcombine.high %v1322_v42, %v1322_v42 }
 0x2dc   :  { %v15259_v48 = vcombine.high %v15251_v45, %v15251_v45  ;;  %v15275_v53 = vrot.slane %v1271_v50, %v15184_v58 }
 0x2dd   :  { %v1311_v10 = vrot.slane %v1297_v7, %v15184_v58  ;;  %v1346_v11 = vrot.slane %v1304_v9, %v15184_v58  ;;  %v1312_v12 = vcombine.high %v1304_v9, %v1304_v9  ;;  %v1648_v51 = vsel %vm1646_vm8, %v15255_v47, 0 }
 0x2de   :  { %v15284_v60 = vrot.slane %v1323_v56, %v15184_v58  ;;  %v15288_v61 = vcombine.high %v15275_v53, %v15275_v53 }
 0x2df   :  { %v1313_v15 = vcombine.high %v1311_v10, %v1311_v10  ;;  %v15205_v16 = vrot.slane %v1346_v11, %v15184_v58  ;;  %v1471_v17 = vrot.slane %v1312_v12, %v15184_v58  ;;  %v1409_v18 = vrot.slane %v1311_v10, %v15184_v58 }
 0x2e0   :  { %v1694_v62 = vsel %vm1646_vm8, %v15284_v60, 0 }
 0x2e1   :  { %1354 = vrot.lane.b32.xlu0 %v15205_v16, %s14824_s0  ;;  %v15212_v20 = vrot.slane %v1471_v17, %v15184_v58  ;;  %v1533_v21 = vrot.slane %v1313_v15, %v15184_v58  ;;  %v15218_v22 = vrot.slane %v1409_v18, %v15184_v58 }
 0x2e3   :  { %1479 = vrot.lane.b32.xlu1 %v15212_v20, %s14824_s0  ;;  %v15223_v23 = vrot.slane %v1533_v21, %v15184_v58 }
 0x2e5   :  { %1417 = vrot.lane.b32.xlu0 %v15218_v22, %s14824_s0 }
 0x2e7   :  { %1541 = vrot.lane.b32.xlu1 %v15223_v23, %s14824_s0 }
 0x303   :  { %v1256_v29 = vpop.f32.mrb[16].mxu0 }
 0x304   :  { %v15237_v31 = vadd.f32 %v1256_v29, %v818_v28  ;;  %v1258_v32 = vpop.f32.mrb[17].mxu0 }
 0x305   :  { %v1259_v33 = vpop.f32.mrb[18].mxu0 }
 0x306   :  { %v12014_v34 = vpack.c.bf16 %v15237_v31, %v15235_v30  ;;  %v1260_v35 = vpop.f32.mrb[19].mxu0 }
 0x353   :  { %v1355_v38 = vpop.permute.xlu0 %1354 }
 0x354   :  { %v1361_v40 = vsel %vm1356_vm7, %v1355_v38, 0 }
 0x355   :  { %13143 = vmatpush3.bf16.xpose.msra.mxu1 %v1361_v40  ;;  %v1480_v41 = vpop.permute.xlu1 %1479 }
 0x356   :  { %v1485_v43 = vsel %vm1356_vm7, %v1480_v41, 0  ;;  %13148 = vmatprep.subr.bf16.mxu1 %v14822_v0 }
 0x357   :  { %13155 = vmatpush3.bf16.xpose.msra.mxu0 %v1485_v43  ;;  %v1418_v46 = vpop.permute.xlu0 %1417  ;;  %v1845_v43 = vrot.slane %v1837_v36, %v15184_v58 }
 0x358   :  { %13166 = vmatprep.subr.bf16.mxu0 %v14822_v0  ;;  %v1423_v49 = vsel %vm1356_vm7, %v1418_v46, 0 }
 0x359   :  { %v1542_v52 = vpop.permute.xlu1 %1541  ;;  %v1877_v46 = vrot.slane %v1845_v43, %v15184_v58 }
 0x35a   :  { %v1547_v57 = vsel %vm1356_vm7, %v1542_v52, 0 }
 0x35c   :  { %13145 = vmatmul.mubr.msk.bf16.vlgmr.msra.gmra.mrb[8].mxu1 %vm1356_vm7, %v15251_v45 }
 0x35d   :  { %13149 = vmatpush3.bf16.xpose.msra.mxu1 %v1423_v49  ;;  %13150 = vmatprep.mubr.msk.bf16.mxu1 %vm14823_vm6, %v14822_v0  ;;  %v1885_v49 = vrot.slane %v1877_v46, %v15184_v58 }
 0x35e   :  { %13157 = vmatmul.mubr.msk.bf16.vlgmr.msra.gmra.mrb[20].mxu0 %vm1356_vm7, %v15259_v48  ;;  %13160 = vmatprep.subr.bf16.mxu1 %v14822_v0 }
 0x35f   :  { %13167 = vmatpush3.bf16.msra.mxu0 %v1648_v51  ;;  %13168 = vmatprep.mubr.msk.bf16.mxu0 %vm14823_vm6, %v14822_v0 }
 0x360   :  { %13178 = vmatprep.subr.bf16.mxu0 %v14822_v0 }
 0x364   :  { %13151 = vmatmul.mubr.msk.bf16.vlgmr.msra.gmra.mrb[12].mxu1 %vm1356_vm7, %v15275_v53 }
 0x365   :  { %13161 = vmatpush3.bf16.xpose.msra.mxu1 %v1547_v57  ;;  %13162 = vmatprep.mubr.msk.bf16.mxu1 %vm14823_vm6, %v14822_v0 }
 0x366   :  { %13172 = vmatprep.subr.bf16.mxu1 %v14822_v0 }
 0x36c   :  { %13163 = vmatmul.mubr.msk.bf16.vlgmr.msra.gmra.mrb[16].mxu1 %vm1356_vm7, %v15288_v61 }
 0x36d   :  { %13173 = vmatpush3.bf16.msra.mxu1 %v1694_v62  ;;  %13174 = vmatprep.mubr.msk.bf16.mxu1 %vm14823_vm6, %v14822_v0 }
 0x36e   :  { %13184 = vmatprep.subr.bf16.mxu1 %v14822_v0 }
 0x42f   :  { %v1397_v63 = vpop.f32.mrb[8].mxu1 }
 0x430   :  { %v1589_v2 = vmul.f32 0.14433756, %v1397_v63  ;;  %v13146_v5 = vpop.f32.mrb[9].mxu1 }
 0x431   :  { %v1400_v7 = vpop.f32.mrb[10].mxu1  ;;  %v1521_v9 = vpop.f32.mrb[20].mxu0 }
 0x432   :  { %v1591_v10 = vmul.f32 0.14433756, %v1521_v9  ;;  %v13147_v11 = vpop.f32.mrb[11].mxu1  ;;  %v13158_v12 = vpop.f32.mrb[21].mxu0  ;;  %v1594_v15 = vsel %vm1593_vm9, %v1589_v2, -inf }
 0x433   :  { %1595 = vmax.xlane.f32.xlu0 %v1594_v15  ;;  %v1524_v17 = vpop.f32.mrb[22].mxu0 }
 0x434   :  { %v13159_v18 = vpop.f32.mrb[23].mxu0  ;;  %v1600_v21 = vsel %vm1593_vm9, %v1591_v10, -inf }
 0x437   :  { %1601 = vmax.xlane.f32.xlu0 %v1600_v21  ;;  %v1459_v27 = vpop.f32.mrb[12].mxu1  ;;  %v1853_v21 = vcombine.high %v1845_v43, %v1845_v43  ;;  %v1951_v43 = vrot.slane %v15275_v53, %v15184_v58 }
 0x438   :  { %v1590_v28 = vmul.f32 0.14433756, %v1459_v27  ;;  %v13152_v29 = vpop.f32.mrb[13].mxu1 }
 0x439   :  { %v1462_v32 = vpop.f32.mrb[14].mxu1  ;;  %v2056_v29 = vrot.slane %v1853_v21, %v15184_v58 }
 0x43a   :  { %v13153_v33 = vpop.f32.mrb[15].mxu1  ;;  %v1597_v35 = vsel %vm1593_vm9, %v1590_v28, -inf }
 0x43b   :  { %1598 = vmax.xlane.f32.xlu1 %v1597_v35  ;;  %v2057_v35 = vcombine.high %v2056_v29, %v2056_v29 }
 0x43f   :  { %v1583_v37 = vpop.f32.mrb[16].mxu1 }
 0x440   :  { %v15304_v38 = vmul.f32 0.14433756, %v1583_v37  ;;  %v13164_v39 = vpop.f32.mrb[17].mxu1  ;;  %v1878_v37 = vcombine.high %v1877_v46, %v1877_v46  ;;  %v1958_v46 = vrot.slane %v1951_v43, %v15184_v58 }
 0x441   :  { %v1586_v40 = vpop.f32.mrb[18].mxu1  ;;  %v2071_v39 = vrot.slane %v2057_v35, %v15184_v58  ;;  %v15382_v35 = vcombine.high %v15284_v60, %v15284_v60 }
 0x442   :  { %v13165_v41 = vpop.f32.mrb[19].mxu1  ;;  %v1603_v42 = vsel %vm1593_vm9, %v15304_v38, -inf }
 0x443   :  { %1604 = vmax.xlane.f32.xlu0 %v1603_v42  ;;  %v1892_v41 = vrot.slane %v1878_v37, %v15184_v58 }
 0x44c   :  { %1893 = vrot.lane.b32.xlu1 %v1885_v49, %s14825_s5  ;;  %v2129_v49 = vrot.slane %v15288_v61, %v15184_v58 }
 0x4c0   :  { %v1596_v3 = vpop.xlane.xlu0 %1595 }
 0x4c1   :  { %v1606_v50 = vsub.f32 %v1589_v2, %v1596_v3 }
 0x4c3   :  { %v1610_v51 = vmul.f32 1.442695, %v1606_v50 }
 0x4c4   :  { %v1602_v52 = vpop.xlane.xlu0 %1601 }
 0x4c5   :  { %14601 = vpow2.f32 %v1610_v51  ;;  %v1608_v56 = vsub.f32 %v1591_v10, %v1602_v52  ;;  %v1838_v10 = vcombine.high %v1837_v36, %v1837_v36  ;;  %v2136_v51 = vrot.slane %v2129_v49, %v15184_v58 }
 0x4c6   :  { %v2270_v52 = vrot.slane %v15255_v47, %v15184_v58 }
 0x4c7   :  { %v1614_v57 = vmul.f32 1.442695, %v1608_v56  ;;  %v1852_v17 = vrot.slane %v1838_v10, %v15184_v58 }
 0x4c8   :  { %v1599_v62 = vpop.xlane.xlu1 %1598  ;;  %v2277_v56 = vrot.slane %v2270_v52, %v15184_v58 }
 0x4c9   :  { %14603 = vpow2.f32 %v1614_v57  ;;  %v1607_v63 = vsub.f32 %v1590_v28, %v1599_v62  ;;  %v1967_v18 = vrot.slane %v1852_v17, %v15184_v58  ;;  %v1854_v32 = vcombine.high %v1852_v17, %v1852_v17 }
 0x4cb   :  { %v1612_v5 = vmul.f32 1.442695, %v1607_v63  ;;  %v1975_v27 = vrot.slane %v1967_v18, %v15184_v58  ;;  %v1968_v28 = vcombine.high %v1967_v18, %v1967_v18  ;;  %v2145_v36 = vrot.slane %v1854_v32, %v15184_v58 }
 0x4cc   :  { %v1861_v63 = vrot.slane %v15251_v45, %v15184_v58  ;;  %v1894_v10 = vpop.permute.xlu1 %1893 }
 0x4cd   :  { %14605 = vpow2.f32 %v1612_v5  ;;  %v1982_v33 = vrot.slane %v1968_v28, %v15184_v58  ;;  %v2146_v40 = vcombine.high %v2145_v36, %v2145_v36  ;;  %v2153_v62 = vrot.slane %v2145_v36, %v15184_v58 }
 0x4ce   :  { %v1868_v5 = vrot.slane %v1861_v63, %v15184_v58 }
 0x4cf   :  { %v15312_v7 = vpop.eup %14601  ;;  %v2160_v42 = vrot.slane %v2146_v40, %v15184_v58 }
 0x4d0   :  { %v1618_v9 = vsel %vm1593_vm9, %v15312_v7, 0.0  ;;  %v1605_v3 = vpop.xlane.xlu0 %1604 }
 0x4d1   :  { %1619 = vadd.xlane.f32.xlu1 %v1618_v9  ;;  %v1609_v50 = vsub.f32 %v15304_v38, %v1605_v3  ;;  %v2064_v38 = vrot.slane %v2056_v29, %v15184_v58  ;;  %v2040_v9 = vrot.slane %v15259_v48, %v15184_v58 }
 0x4d3   :  { %v15316_v11 = vpop.eup %14603  ;;  %v1616_v53 = vmul.f32 1.442695, %v1609_v50 }
 0x4d4   :  { %v1624_v2 = vsel %vm1593_vm9, %v15316_v11, 0.0 }
 0x4d5   :  { %1625 = vadd.xlane.f32.xlu1 %v1624_v2  ;;  %14607 = vpow2.f32 %v1616_v53  ;;  %v2047_v2 = vrot.slane %v2040_v9, %v15184_v58 }
 0x4d7   :  { %v15320_v12 = vpop.eup %14605 }
 0x4d8   :  { %v1621_v15 = vsel %vm1593_vm9, %v15320_v12, 0.0 }
 0x4d9   :  { %1622 = vadd.xlane.f32.xlu0 %v1621_v15 }
 0x4df   :  { %v15351_v61 = vpop.eup %14607 }
 0x4e0   :  { %v1627_v57 = vsel %vm1593_vm9, %v15351_v61, 0.0 }
 0x4e6   :  { %1983 = vrot.lane.b32.xlu1 %v1975_v27, %s14825_s5  ;;  %v15370_v27 = vcombine.high %v15255_v47, %v15255_v47 }
 0x4e8   :  { %v1740_v29 = vsel %vm1646_vm8, %v15370_v27, 0 }
 0x4ea   :  { %1985 = vrot.lane.b32.xlu1 %v1982_v33, %s14825_s5 }
 0x4ee   :  { %2074 = vrot.lane.b32.xlu1 %v2071_v39, %s14825_s5 }
 0x4ef   :  { %1895 = vrot.lane.b32.xlu0 %v1892_v41, %s14825_s5 }
 0x4f2   :  { %2163 = vrot.lane.b32.xlu1 %v2160_v42, %s14825_s5 }
 0x4f6   :  { %1959 = vrot.lane.b32.xlu1 %v1958_v46, %s14826_s9 }
 0x4fa   :  { %2137 = vrot.lane.b32.xlu1 %v2136_v51, %s14826_s9 }
 0x4fe   :  { %2278 = vrot.lane.b32.xlu1 %v2277_v56, %s14826_s9 }
 0x50e   :  { %1628 = vadd.xlane.f32.xlu0 %v1627_v57 }
 0x524   :  { %2072 = vrot.lane.b32.xlu0 %v2064_v38, %s14825_s5 }
 0x528   :  { %2161 = vrot.lane.b32.xlu0 %v2153_v62, %s14825_s5 }
 0x52c   :  { %1869 = vrot.lane.b32.xlu0 %v1868_v5, %s14826_s9 }
 0x530   :  { %2048 = vrot.lane.b32.xlu0 %v2047_v2, %s14826_s9 }
 0x55e   :  { %v1620_v15 = vpop.xlane.xlu1 %1619 }
 0x55f   :  { %14609 = vrcp.f32 %v1620_v15 }
 0x562   :  { %v1626_v17 = vpop.xlane.xlu1 %1625 }
 0x563   :  { %14611 = vrcp.f32 %v1626_v17 }
 0x566   :  { %v1623_v18 = vpop.xlane.xlu0 %1622 }
 0x567   :  { %14613 = vrcp.f32 %v1623_v18 }
 0x569   :  { %v14610_v45 = vpop.eup %14609 }
 0x56a   :  { %v1634_v21 = vmul.f32 %v14610_v45, %v15312_v7  ;;  %v1896_v47 = vpop.permute.xlu0 %1895 }
 0x56b   :  { %v1898_v36 = vsel %vm1897_vm11, %v1894_v10, %v1896_v47 }
 0x56c   :  { %v1638_v48 = vpack.c.bf16 %v1634_v21, %v1634_v21  ;;  %v1903_v40 = vsel %vm1356_vm7, %v1898_v36, 0 }
 0x56d   :  { %v14612_v28 = vpop.eup %14611 }
 0x56e   :  { %13169 = vmatmul.mubr.msk.bf16.vlgmr.msra.gmra.mrb[24].mxu0 %vm1642_vm10, %v1638_v48  ;;  %v1636_v32 = vmul.f32 %v14612_v28, %v15316_v11  ;;  %v1786_v11 = vsel %vm1646_vm8, %v15382_v35, 0 }
 0x56f   :  { %13179 = vmatpush3.bf16.msra.mxu0 %v1740_v29  ;;  %13180 = vmatprep.mubr.msk.bf16.mxu0 %vm14823_vm6, %v14822_v0 }
 0x570   :  { %13190 = vmatprep.subr.bf16.mxu0 %v14822_v0  ;;  %v1640_v37 = vpack.c.bf16 %v1636_v32, %v1636_v32 }
 0x571   :  { %v14614_v7 = vpop.eup %14613 }
 0x572   :  { %v1635_v33 = vmul.f32 %v14614_v7, %v15320_v12  ;;  %v1984_v12 = vpop.permute.xlu1 %1983 }
 0x574   :  { %v1639_v39 = vpack.c.bf16 %v1635_v33, %v1635_v33 }
 0x576   :  { %13181 = vmatmul.mubr.msk.bf16.vlgmr.msra.gmra.mrb[28].mxu0 %vm1642_vm10, %v1640_v37  ;;  %13175 = vmatmul.mubr.msk.bf16.vlgmr.msra.gmra.mrb[20].mxu1 %vm1642_vm10, %v1639_v39  ;;  %v1986_v41 = vpop.permute.xlu1 %1985  ;;  %v14827_v39 = vmov 1983009808  }
 0x577   :  { %13185 = vmatpush3.bf16.msra.mxu1 %v1786_v11  ;;  %13192 = vmatprep.mubr.msk.bf16.mxu0 %vm14823_vm6, %v14822_v0  ;;  %v1987_v38 = vsel %vm1897_vm11, %v1984_v12, %v1986_v41  ;;  %v3820_v11 = vunpack.c.l.s4 %v14827_v39  ;;  %v2456_v39 = vrot.slane %v15382_v35, %v15184_v58  ;;  %v1828_v35 = vpack.c.bf16 %v15181_v55, %v15181_v55 }
 0x578   :  { %13191 = vmatpush3.bf16.xpose.msra.mxu0 %v1903_v40  ;;  %13186 = vmatprep.mubr.msk.bf16.mxu1 %vm14823_vm6, %v14822_v0  ;;  %v1992_v5 = vsel %vm1356_vm7, %v1987_v38, 0 }
 0x579   :  { %13202 = vmatprep.subr.bf16.mxu0 %v14822_v0  ;;  %13196 = vmatprep.subr.bf16.mxu1 %v14822_v0  ;;  %v3821_v40 = vunpack.c.0.s8 %v3820_v11  ;;  %v2463_v11 = vrot.slane %v2456_v39, %v15184_v58 }
 0x57a   :  { %v2075_v42 = vpop.permute.xlu1 %2074 }
 0x57e   :  { %v2164_v43 = vpop.permute.xlu1 %2163 }
 0x582   :  { %v1960_v3 = vpop.permute.xlu1 %1959 }
 0x586   :  { %v2138_v53 = vpop.permute.xlu1 %2137 }
 0x59b   :  { %v1629_v46 = vpop.xlane.xlu0 %1628 }
 0x59c   :  { %14615 = vrcp.f32 %v1629_v46 }
 0x59f   :  { %v2073_v49 = vpop.permute.xlu0 %2072 }
 0x5a0   :  { %v2076_v51 = vsel %vm1897_vm11, %v2073_v49, %v2075_v42 }
 0x5a1   :  { %v2081_v62 = vsel %vm1356_vm7, %v2076_v51, 0 }
 0x5a3   :  { %v2162_v50 = vpop.permute.xlu0 %2161 }
 0x5a4   :  { %v2165_v10 = vsel %vm1897_vm11, %v2162_v50, %v2164_v43  ;;  %v15424_v43 = vsub.s32 %v3821_v40, %v15075_v6  ;;  %v2332_v40 = vrot.slane %v15284_v60, %v15184_v58 }
 0x5a5   :  { %v2170_v15 = vsel %vm1356_vm7, %v2165_v10, 0 }
 0x5a6   :  { %v14616_v52 = vpop.eup %14615 }
 0x5a7   :  { %v1870_v56 = vpop.permute.xlu0 %1869  ;;  %v1637_v57 = vmul.f32 %v14616_v52, %v15351_v61  ;;  %v2279_v61 = vpop.permute.xlu1 %2278 }
 0x5a8   :  { %13193 = vmatmul.mubr.msk.bf16.vlgmr.msra.gmra.mrb[32].mxu0 %vm1356_vm7, %v1870_v56  ;;  %v2284_v2 = vsel %vm1646_vm8, %v2279_v61, 0 }
 0x5a9   :  { %13203 = vmatpush3.bf16.xpose.msra.mxu0 %v2081_v62  ;;  %v1641_v63 = vpack.c.bf16 %v1637_v57, %v1637_v57  ;;  %13204 = vmatprep.mubr.msk.bf16.mxu0 %vm14823_vm6, %v14822_v0 }
 0x5aa   :  { %13214 = vmatprep.subr.bf16.mxu0 %v14822_v0 }
 0x5ab   :  { %13187 = vmatmul.mubr.msk.bf16.vlgmr.msra.gmra.mrb[24].mxu1 %vm1642_vm10, %v1641_v63  ;;  %v2049_v9 = vpop.permute.xlu0 %2048 }
 0x5ac   :  { %13197 = vmatpush3.bf16.xpose.msra.mxu1 %v1992_v5  ;;  %13198 = vmatprep.mubr.msk.bf16.mxu1 %vm14823_vm6, %v14822_v0 }
 0x5ad   :  { %13208 = vmatprep.subr.bf16.mxu1 %v14822_v0 }
 0x5b0   :  { %13205 = vmatmul.mubr.msk.bf16.vlgmr.msra.gmra.mrb[36].mxu0 %vm1356_vm7, %v2049_v9 }
 0x5b1   :  { %13215 = vmatpush3.bf16.msra.mxu0 %v2284_v2  ;;  %13216 = vmatprep.mubr.msk.bf16.mxu0 %vm14823_vm6, %v14822_v0 }
 0x5b2   :  { %13226 = vmatprep.subr.bf16.mxu0 %v14822_v0 }
 0x5b3   :  { %13199 = vmatmul.mubr.msk.bf16.vlgmr.msra.gmra.mrb[28].mxu1 %vm1356_vm7, %v1960_v3 }
 0x5b4   :  { %13209 = vmatpush3.bf16.xpose.msra.mxu1 %v2170_v15  ;;  %13210 = vmatprep.mubr.msk.bf16.mxu1 %vm14823_vm6, %v14822_v0 }
 0x5b5   :  { %13220 = vmatprep.subr.bf16.mxu1 %v14822_v0 }
 0x5bb   :  { %13211 = vmatmul.mubr.msk.bf16.vlgmr.msra.gmra.mrb[32].mxu1 %vm1356_vm7, %v2138_v53 }
 0x5bc   :  { %13222 = vmatprep.mubr.msk.bf16.mxu1 %vm14823_vm6, %v14822_v0 }
 0x641   :  { %v1684_v17 = vpop.f32.mrb[24].mxu0 }
 0x642   :  { %v13170_v18 = vpop.f32.mrb[25].mxu0 }
 0x643   :  { %v1687_v45 = vpop.f32.mrb[26].mxu0 }
 0x644   :  { %v13171_v21 = vpop.f32.mrb[27].mxu0 }
 0x649   :  { %v1730_v48 = vpop.f32.mrb[20].mxu1  ;;  %v1776_v28 = vpop.f32.mrb[28].mxu0 }
 0x64a   :  { %v3817_v29 = vcombine.low %v1684_v17, %v1730_v48  ;;  %v13176_v32 = vpop.f32.mrb[21].mxu1  ;;  %v13182_v7 = vpop.f32.mrb[29].mxu0 }
 0x64b   :  { %v1733_v47 = vpop.f32.mrb[22].mxu1  ;;  %v1779_v33 = vpop.f32.mrb[30].mxu0 }
 0x64c   :  { %v13177_v36 = vpop.f32.mrb[23].mxu1  ;;  %v13183_v37 = vpop.f32.mrb[31].mxu0  ;;  %v15428_v56 = vrot.slane %v3817_v29, %v15424_v43 }
 0x64d   :  { %v2394_v36 = vrot.slane %v15370_v27, %v15184_v58 }
 0x64f   :  { %v2401_v37 = vrot.slane %v2394_v36, %v15184_v58 }
 0x67b   :  { %v1939_v12 = vpop.f32.mrb[32].mxu0 }
 0x67c   :  { %v2212_v41 = vmul.f32 0.14433756, %v1939_v12  ;;  %v13194_v42 = vpop.f32.mrb[33].mxu0  ;;  %v2339_v12 = vrot.slane %v2332_v40, %v15184_v58 }
 0x67d   :  { %v1942_v46 = vpop.f32.mrb[34].mxu0 }
 0x67e   :  { %v1822_v49 = vpop.f32.mrb[24].mxu1  ;;  %v13195_v3 = vpop.f32.mrb[35].mxu0  ;;  %v2216_v50 = vsel %vm1593_vm9, %v2212_v41, -inf }
 0x67f   :  { %v3818_v51 = vcombine.low %v1776_v28, %v1822_v49  ;;  %2217 = vmax.xlane.f32.xlu0 %v2216_v50  ;;  %v13188_v52 = vpop.f32.mrb[25].mxu1 }
 0x680   :  { %v1825_v53 = vpop.f32.mrb[26].mxu1 }
 0x681   :  { %v15431_v57 = vrot.slane %v3818_v51, %v15424_v43  ;;  %v13189_v38 = vpop.f32.mrb[27].mxu1  ;;  %v2543_v53 = vrot.slane %v1828_v35, %v15184_v58 }
 0x683   :  { %v3833_v62 = vcombine.low %v15428_v56, %v15431_v57  ;;  %v2117_v63 = vpop.f32.mrb[36].mxu0 }
 0x684   :  { %v2214_v5 = vmul.f32 0.14433756, %v2117_v63  ;;  %v13206_v61 = vpop.f32.mrb[37].mxu0 }
 0x685   :  { %v2120_v9 = vpop.f32.mrb[38].mxu0 }
 0x686   :  { %v2028_v2 = vpop.f32.mrb[28].mxu1  ;;  %v13207_v10 = vpop.f32.mrb[39].mxu0  ;;  %v2222_v15 = vsel %vm1593_vm9, %v2214_v5, -inf }
 0x687   :  { %v2213_v17 = vmul.f32 0.14433756, %v2028_v2  ;;  %2223 = vmax.xlane.f32.xlu0 %v2222_v15  ;;  %v13200_v18 = vpop.f32.mrb[29].mxu1 }
 0x688   :  { %v2031_v45 = vpop.f32.mrb[30].mxu1 }
 0x689   :  { %v13201_v21 = vpop.f32.mrb[31].mxu1  ;;  %v2219_v48 = vsel %vm1593_vm9, %v2213_v17, -inf }
 0x68a   :  { %2220 = vmax.xlane.f32.xlu1 %v2219_v48 }
 0x68e   :  { %v2206_v28 = vpop.f32.mrb[32].mxu1 }
 0x68f   :  { %v2215_v29 = vmul.f32 0.14433756, %v2206_v28  ;;  %v13212_v32 = vpop.f32.mrb[33].mxu1 }
 0x690   :  { %v2209_v7 = vpop.f32.mrb[34].mxu1 }
 0x691   :  { %v13213_v47 = vpop.f32.mrb[35].mxu1  ;;  %v2225_v33 = vsel %vm1593_vm9, %v2215_v29, -inf }
 0x692   :  { %2226 = vmax.xlane.f32.xlu0 %v2225_v33  ;;  %v2519_v47 = vrot.slane %v12013_v4, %v15184_v58 }
 0x694   :  { %v2520_v33 = vcombine.high %v2519_v47, %v2519_v47  ;;  %v2527_v36 = vrot.slane %v2519_v47, %v15184_v58 }
 0x696   :  { %v2534_v39 = vrot.slane %v2520_v33, %v15184_v58 }
 0x698   :  { %v2684_v54 = vrot.slane %v2534_v39, %v15184_v58  ;;  %v2536_v35 = vcombine.high %v2534_v39, %v2534_v39 }
 0x69a   :  { %v2685_v4 = vcombine.high %v2684_v54, %v2684_v54 }
 0x69b   :  { %2402 = vrot.lane.b32.xlu1 %v2401_v37, %s14826_s9 }
 0x69f   :  { %2464 = vrot.lane.b32.xlu1 %v2463_v11, %s14826_s9 }
 0x6a8   :  { %2340 = vrot.lane.b32.xlu0 %v2339_v12, %s14826_s9 }
 0x70c   :  { %v2218_v42 = vpop.xlane.xlu0 %2217 }
 0x70d   :  { %v2228_v27 = vsub.f32 %v2212_v41, %v2218_v42  ;;  %v2544_v41 = vcombine.high %v2543_v53, %v2543_v53  ;;  %v2535_v42 = vcombine.high %v2527_v36, %v2527_v36 }
 0x70f   :  { %v2232_v46 = vmul.f32 1.442695, %v2228_v27  ;;  %v2558_v9 = vrot.slane %v2544_v41, %v15184_v58  ;;  %v2699_v27 = vrot.slane %v2685_v4, %v15184_v58 }
 0x711   :  { %14617 = vpow2.f32 %v2232_v46  ;;  %v2711_v10 = vrot.slane %v2558_v9, %v15184_v58  ;;  %v2560_v12 = vcombine.high %v2558_v9, %v2558_v9 }
 0x713   :  { %v15466_v15 = vrot.slane %v2711_v10, %v15184_v58  ;;  %v2889_v46 = vrot.slane %v2560_v12, %v15184_v58 }
 0x714   :  { %v2224_v52 = vpop.xlane.xlu0 %2223 }
 0x715   :  { %v2230_v45 = vsub.f32 %v2214_v5, %v2224_v52 }
 0x717   :  { %v2221_v49 = vpop.xlane.xlu1 %2220  ;;  %v2236_v48 = vmul.f32 1.442695, %v2230_v45 }
 0x718   :  { %v2229_v3 = vsub.f32 %v2213_v17, %v2221_v49  ;;  %v2551_v17 = vrot.slane %v2543_v53, %v15184_v58  ;;  %v2773_v49 = vrot.slane %v2535_v42, %v15184_v58  ;;  %v2862_v53 = vrot.slane %v2536_v35, %v15184_v58 }
 0x71a   :  { %v2234_v50 = vmul.f32 1.442695, %v2229_v3  ;;  %v2622_v18 = vrot.slane %v2551_v17, %v15184_v58  ;;  %v2570_v3 = vrot.slane %v12014_v34, %v15184_v58  ;;  %v2774_v52 = vcombine.high %v2773_v49, %v2773_v49 }
 0x71b   :  { %v15452_v51 = vpop.eup %14617  ;;  %v2870_v33 = vrot.slane %v2862_v53, %v15184_v58  ;;  %v2403_v39 = vpop.permute.xlu1 %2402 }
 0x71c   :  { %14619 = vpow2.f32 %v2234_v50  ;;  %v2240_v60 = vsel %vm1593_vm9, %v15452_v51, 0.0  ;;  %v15473_v21 = vrot.slane %v2622_v18, %v15184_v58  ;;  %v15504_v50 = vrot.slane %v2889_v46, %v15184_v58 }
 0x71d   :  { %2241 = vadd.xlane.f32.xlu1 %v2240_v60  ;;  %14621 = vpow2.f32 %v2236_v48  ;;  %v2571_v60 = vcombine.high %v2570_v3, %v2570_v3  ;;  %v2788_v41 = vrot.slane %v2774_v52, %v15184_v58  ;;  %v2692_v18 = vrot.slane %v2684_v54, %v15184_v58 }
 0x71e   :  { %v2408_v42 = vsel %vm1646_vm8, %v2403_v39, 0 }
 0x71f   :  { %v2227_v38 = vpop.xlane.xlu0 %2226  ;;  %v15519_v9 = vrot.slane %v2571_v60, %v15184_v58 }
 0x720   :  { %v2231_v28 = vsub.f32 %v2215_v29, %v2227_v38  ;;  %v2594_v29 = vrot.slane %v2527_v36, %v15184_v58  ;;  %v15510_v38 = vrot.slane %v2570_v3, %v15184_v58 }
 0x721   :  { %v3076_v45 = vrot.slane %v15519_v9, %v15184_v58 }
 0x722   :  { %v2238_v32 = vmul.f32 1.442695, %v2231_v28  ;;  %v2595_v40 = vcombine.high %v2594_v29, %v2594_v29  ;;  %v2602_v30 = vrot.slane %v2594_v29, %v15184_v58 }
 0x723   :  { %v2341_v63 = vpop.permute.xlu0 %2340  ;;  %v3084_v28 = vrot.slane %v3076_v45, %v15184_v58 }
 0x724   :  { %v2346_v61 = vsel %vm1646_vm8, %v2341_v63, 0  ;;  %14623 = vpow2.f32 %v2238_v32  ;;  %v2609_v59 = vrot.slane %v2595_v40, %v15184_v58  ;;  %v2863_v63 = vcombine.high %v2862_v53, %v2862_v53 }
 0x725   :  { %13221 = vmatpush3.bf16.msra.mxu1 %v2346_v61  ;;  %v3003_v61 = vrot.slane %v15510_v38, %v15184_v58  ;;  %v3077_v32 = vcombine.high %v3076_v45, %v3076_v45 }
 0x726   :  { %v15459_v55 = vpop.eup %14619  ;;  %13232 = vmatprep.subr.bf16.mxu1 %v14822_v0  ;;  %v2877_v34 = vrot.slane %v2863_v63, %v15184_v58 }
 0x727   :  { %v2243_v2 = vsel %vm1593_vm9, %v15459_v55, 0.0  ;;  %v15477_v7 = vpop.eup %14621  ;;  %v3011_v10 = vrot.slane %v3003_v61, %v15184_v58  ;;  %v3091_v47 = vrot.slane %v3077_v32, %v15184_v58  ;;  %v3004_v36 = vcombine.high %v3003_v61, %v3003_v61 }
 0x728   :  { %2244 = vadd.xlane.f32.xlu0 %v2243_v2  ;;  %v2246_v5 = vsel %vm1593_vm9, %v15477_v7, 0.0  ;;  %v2559_v2 = vcombine.high %v2551_v17, %v2551_v17 }
 0x729   :  { %v3018_v29 = vrot.slane %v3004_v36, %v15184_v58 }
 0x72a   :  { %v2800_v48 = vrot.slane %v2559_v2, %v15184_v58 }
 0x72c   :  { %v15532_v17 = vrot.slane %v2800_v48, %v15184_v58 }
 0x72e   :  { %2719 = vrot.lane.b32.xlu1 %v15466_v15, %s14828_s13  ;;  %v15486_v37 = vpop.eup %14623 }
 0x72f   :  { %v2249_v11 = vsel %vm1593_vm9, %v15486_v37, 0.0 }
 0x73e   :  { %2630 = vrot.lane.b32.xlu0 %v15473_v21, %s14828_s13 }
 0x752   :  { %2247 = vadd.xlane.f32.xlu1 %v2246_v5  ;;  %v2781_v5 = vrot.slane %v2773_v49, %v15184_v58 }
 0x75d   :  { %2250 = vadd.xlane.f32.xlu0 %v2249_v11  ;;  %v2465_v11 = vpop.permute.xlu1 %2464 }
 0x75e   :  { %v2470_v35 = vsel %vm1646_vm8, %v2465_v11, 0 }
 0x763   :  { %2612 = vrot.lane.b32.xlu1 %v2609_v59, %s14829_s17 }
 0x767   :  { %2702 = vrot.lane.b32.xlu1 %v2699_v27, %s14829_s17 }
 0x76b   :  { %2897 = vrot.lane.b32.xlu1 %v15504_v50, %s14828_s13 }
 0x76f   :  { %2791 = vrot.lane.b32.xlu1 %v2788_v41, %s14829_s17 }
 0x773   :  { %2880 = vrot.lane.b32.xlu1 %v2877_v34, %s14829_s17  ;;  %2610 = vrot.lane.b32.xlu0 %v2602_v30, %s14829_s17 }
 0x777   :  { %3019 = vrot.lane.b32.xlu1 %v3011_v10, %s14829_s17  ;;  %2700 = vrot.lane.b32.xlu0 %v2692_v18, %s14829_s17 }
 0x77b   :  { %3092 = vrot.lane.b32.xlu1 %v3084_v28, %s14829_s17  ;;  %2808 = vrot.lane.b32.xlu0 %v15532_v17, %s14828_s13 }
 0x77f   :  { %3094 = vrot.lane.b32.xlu1 %v3091_v47, %s14829_s17  ;;  %2789 = vrot.lane.b32.xlu0 %v2781_v5, %s14829_s17 }
 0x783   :  { %2878 = vrot.lane.b32.xlu0 %v2870_v33, %s14829_s17 }
 0x787   :  { %3021 = vrot.lane.b32.xlu0 %v3018_v29, %s14829_s17 }
 0x7aa   :  { %v2242_v40 = vpop.xlane.xlu1 %2241 }
 0x7ab   :  { %14625 = vrcp.f32 %v2242_v40 }
 0x7b5   :  { %v14626_v54 = vpop.eup %14625  ;;  %v2245_v59 = vpop.xlane.xlu0 %2244 }
 0x7b6   :  { %14627 = vrcp.f32 %v2245_v59  ;;  %v2256_v4 = vmul.f32 %v14626_v54, %v15452_v51  ;;  %v2720_v51 = vpop.permute.xlu1 %2719 }
 0x7b7   :  { %v2725_v36 = vsel %vm1356_vm7, %v2720_v51, 0 }
 0x7b8   :  { %v2260_v12 = vpack.c.bf16 %v2256_v4, %v2256_v4 }
 0x7b9   :  { %v2631_v53 = vpop.permute.xlu0 %2630 }
 0x7ba   :  { %13217 = vmatmul.mubr.msk.bf16.vlgmr.msra.gmra.mrb[40].mxu0 %vm1642_vm10, %v2260_v12  ;;  %v2636_v2 = vsel %vm1356_vm7, %v2631_v53, 0 }
 0x7bb   :  { %13227 = vmatpush3.bf16.msra.mxu0 %v2408_v42  ;;  %13228 = vmatprep.mubr.msk.bf16.mxu0 %vm14823_vm6, %v14822_v0 }
 0x7bc   :  { %13238 = vmatprep.subr.bf16.mxu0 %v14822_v0 }
 0x7c0   :  { %v14628_v27 = vpop.eup %14627 }
 0x7c1   :  { %v2257_v46 = vmul.f32 %v14628_v27, %v15459_v55 }
 0x7c3   :  { %v2261_v49 = vpack.c.bf16 %v2257_v46, %v2257_v46 }
 0x7c5   :  { %13223 = vmatmul.mubr.msk.bf16.vlgmr.msra.gmra.mrb[36].mxu1 %vm1642_vm10, %v2261_v49 }
 0x7c6   :  { %13233 = vmatpush3.bf16.msra.mxu1 %v2470_v35  ;;  %13234 = vmatprep.mubr.msk.bf16.mxu1 %vm14823_vm6, %v14822_v0 }
 0x7c7   :  { %13244 = vmatprep.subr.bf16.mxu1 %v14822_v0 }
 0x7df   :  { %v2248_v3 = vpop.xlane.xlu1 %2247 }
 0x7e0   :  { %14629 = vrcp.f32 %v2248_v3 }
 0x7e3   :  { %v2613_v52 = vpop.permute.xlu1 %2612 }
 0x7e7   :  { %v2703_v60 = vpop.permute.xlu1 %2702 }
 0x7ea   :  { %v14630_v41 = vpop.eup %14629  ;;  %v2251_v63 = vpop.xlane.xlu0 %2250 }
 0x7eb   :  { %14631 = vrcp.f32 %v2251_v63  ;;  %v2898_v55 = vpop.permute.xlu1 %2897  ;;  %v2258_v30 = vmul.f32 %v14630_v41, %v15477_v7 }
 0x7ec   :  { %v2903_v54 = vsel %vm1356_vm7, %v2898_v55, 0 }
 0x7ed   :  { %v2262_v34 = vpack.c.bf16 %v2258_v30, %v2258_v30 }
 0x7ee   :  { %v2611_v61 = vpop.permute.xlu0 %2610 }
 0x7ef   :  { %13229 = vmatmul.mubr.msk.bf16.vlgmr.msra.gmra.mrb[44].mxu0 %vm1642_vm10, %v2262_v34  ;;  %v2792_v10 = vpop.permute.xlu1 %2791  ;;  %v2615_v28 = vsel %vm2614_vm12, %v2611_v61, %v2613_v52 }
 0x7f0   :  { %13239 = vmatpush3.bf16.xpose.msra.mxu0 %v2636_v2  ;;  %13240 = vmatprep.mubr.msk.bf16.mxu0 %vm14823_vm6, %v14822_v0 }
 0x7f1   :  { %13250 = vmatprep.subr.bf16.mxu0 %v14822_v0 }
 0x7f2   :  { %v2701_v18 = vpop.permute.xlu0 %2700 }
 0x7f3   :  { %v2881_v45 = vpop.permute.xlu1 %2880  ;;  %v2704_v40 = vsel %vm2614_vm12, %v2701_v18, %v2703_v60 }
 0x7f5   :  { %v14632_v48 = vpop.eup %14631 }
 0x7f6   :  { %v2809_v7 = vpop.permute.xlu0 %2808  ;;  %v2259_v32 = vmul.f32 %v14632_v48, %v15486_v37 }
 0x7f7   :  { %v2814_v47 = vsel %vm1356_vm7, %v2809_v7, 0  ;;  %13241 = vmatmul.mubr.msk.bf16.vlgmr.msra.gmra.mrb[48].mxu0 %vm1356_vm7, %v2615_v28  ;;  %v3020_v5 = vpop.permute.xlu1 %3019 }
 0x7f8   :  { %13251 = vmatpush3.bf16.xpose.msra.mxu0 %v2814_v47  ;;  %v2263_v33 = vpack.c.bf16 %v2259_v32, %v2259_v32  ;;  %13252 = vmatprep.mubr.msk.bf16.mxu0 %vm14823_vm6, %v14822_v0 }
 0x7f9   :  { %13262 = vmatprep.subr.bf16.mxu0 %v14822_v0 }
 0x7fa   :  { %13235 = vmatmul.mubr.msk.bf16.vlgmr.msra.gmra.mrb[40].mxu1 %vm1642_vm10, %v2263_v33  ;;  %v2790_v29 = vpop.permute.xlu0 %2789 }
 0x7fb   :  { %13245 = vmatpush3.bf16.xpose.msra.mxu1 %v2725_v36  ;;  %13246 = vmatprep.mubr.msk.bf16.mxu1 %vm14823_vm6, %v14822_v0  ;;  %v2793_v37 = vsel %vm2614_vm12, %v2790_v29, %v2792_v10  ;;  %v3093_v39 = vpop.permute.xlu1 %3092 }
 0x7fc   :  { %13256 = vmatprep.subr.bf16.mxu1 %v14822_v0 }
 0x7fe   :  { %v2879_v11 = vpop.permute.xlu0 %2878 }
 0x7ff   :  { %13253 = vmatmul.mubr.msk.bf16.vlgmr.msra.gmra.mrb[52].mxu0 %vm1356_vm7, %v2793_v37  ;;  %v3095_v12 = vpop.permute.xlu1 %3094  ;;  %v2882_v46 = vsel %vm2614_vm12, %v2879_v11, %v2881_v45 }
 0x800   :  { %13264 = vmatprep.mubr.msk.bf16.mxu0 %vm14823_vm6, %v14822_v0  ;;  %v3096_v27 = vsel %vm2614_vm12, %v3093_v39, %v3095_v12 }
 0x801   :  { %v3101_v49 = vsel %vm1646_vm8, %v3096_v27, 0 }
 0x802   :  { %13247 = vmatmul.mubr.msk.bf16.vlgmr.msra.gmra.mrb[44].mxu1 %vm1356_vm7, %v2704_v40  ;;  %v3022_v59 = vpop.permute.xlu0 %3021 }
 0x803   :  { %13257 = vmatpush3.bf16.xpose.msra.mxu1 %v2903_v54  ;;  %v3023_v4 = vsel %vm2614_vm12, %v3020_v5, %v3022_v59  ;;  %13258 = vmatprep.mubr.msk.bf16.mxu1 %vm14823_vm6, %v14822_v0 }
 0x804   :  { %v3028_v42 = vsel %vm1646_vm8, %v3023_v4, 0  ;;  %13268 = vmatprep.subr.bf16.mxu1 %v14822_v0 }
 0x805   :  { %13263 = vmatpush3.bf16.msra.mxu0 %v3028_v42 }
 0x806   :  { %13274 = vmatprep.subr.bf16.mxu0 %v14822_v0 }
 0x80a   :  { %13259 = vmatmul.mubr.msk.bf16.vlgmr.msra.gmra.mrb[48].mxu1 %vm1356_vm7, %v2882_v46 }
 0x80b   :  { %13269 = vmatpush3.bf16.msra.mxu1 %v3101_v49  ;;  %13270 = vmatprep.mubr.msk.bf16.mxu1 %vm14823_vm6, %v14822_v0 }
 0x80c   :  { %13280 = vmatprep.subr.bf16.mxu1 %v14822_v0 }
 0x88d   :  { %v2320_v35 = vpop.f32.mrb[40].mxu0 }
 0x88e   :  { %v13218_v51 = vpop.f32.mrb[41].mxu0 }
 0x88f   :  { %v2323_v3 = vpop.f32.mrb[42].mxu0 }
 0x890   :  { %v13219_v52 = vpop.f32.mrb[43].mxu0  ;;  %v2586_v3 = vcombine.high %v15510_v38, %v15510_v38 }
 0x898   :  { %v2382_v53 = vpop.f32.mrb[36].mxu1 }
 0x899   :  { %v3839_v60 = vcombine.low %v2320_v35, %v2382_v53  ;;  %v13224_v41 = vpop.f32.mrb[37].mxu1 }
 0x89a   :  { %v2385_v63 = vpop.f32.mrb[38].mxu1 }
 0x89b   :  { %v13225_v55 = vpop.f32.mrb[39].mxu1  ;;  %v15597_v36 = vrot.slane %v3839_v60, %v15424_v43 }
 0x8c2   :  { %v2444_v30 = vpop.f32.mrb[44].mxu0 }
 0x8c3   :  { %v13230_v34 = vpop.f32.mrb[45].mxu0 }
 0x8c4   :  { %v2447_v61 = vpop.f32.mrb[46].mxu0 }
 0x8c5   :  { %v13231_v2 = vpop.f32.mrb[47].mxu0 }
 0x8ca   :  { %v2672_v10 = vpop.f32.mrb[48].mxu0 }
 0x8cb   :  { %v2945_v18 = vmul.f32 0.14433756, %v2672_v10  ;;  %v13242_v45 = vpop.f32.mrb[49].mxu0 }
 0x8cc   :  { %v2675_v48 = vpop.f32.mrb[50].mxu0 }
 0x8cd   :  { %v2506_v28 = vpop.f32.mrb[40].mxu1  ;;  %v13243_v7 = vpop.f32.mrb[51].mxu0  ;;  %v2949_v32 = vsel %vm1593_vm9, %v2945_v18, -inf }
 0x8ce   :  { %v3840_v47 = vcombine.low %v2444_v30, %v2506_v28  ;;  %2950 = vmax.xlane.f32.xlu0 %v2949_v32  ;;  %v13236_v5 = vpop.f32.mrb[41].mxu1  ;;  %v3149_v30 = vrot.slane %v2586_v3, %v15184_v58 }
 0x8cf   :  { %v2509_v33 = vpop.f32.mrb[42].mxu1  ;;  %v2587_v5 = vcombine.high %v15519_v9, %v15519_v9 }
 0x8d0   :  { %v15600_v29 = vrot.slane %v3840_v47, %v15424_v43  ;;  %v13237_v37 = vpop.f32.mrb[43].mxu1  ;;  %v3150_v34 = vcombine.high %v3149_v30, %v3149_v30  ;;  %v3157_v2 = vrot.slane %v3149_v30, %v15184_v58 }
 0x8d1   :  { %v3222_v33 = vrot.slane %v2587_v5, %v15184_v58 }
 0x8d2   :  { %v2850_v39 = vpop.f32.mrb[52].mxu0  ;;  %v3855_v11 = vcombine.low %v15597_v36, %v15600_v29  ;;  %v3164_v61 = vrot.slane %v3150_v34, %v15184_v58 }
 0x8d3   :  { %v2947_v40 = vmul.f32 0.14433756, %v2850_v39  ;;  %v13254_v54 = vpop.f32.mrb[53].mxu0 }
 0x8d4   :  { %v2853_v59 = vpop.f32.mrb[54].mxu0 }
 0x8d5   :  { %v2761_v4 = vpop.f32.mrb[44].mxu1  ;;  %v13255_v12 = vpop.f32.mrb[55].mxu0  ;;  %v2955_v42 = vsel %vm1593_vm9, %v2947_v40, -inf }
 0x8d6   :  { %v2946_v27 = vmul.f32 0.14433756, %v2761_v4  ;;  %2956 = vmax.xlane.f32.xlu0 %v2955_v42  ;;  %v13248_v46 = vpop.f32.mrb[45].mxu1  ;;  %v3230_v12 = vrot.slane %v3222_v33, %v15184_v58 }
 0x8d7   :  { %v2764_v49 = vpop.f32.mrb[46].mxu1 }
 0x8d8   :  { %v13249_v35 = vpop.f32.mrb[47].mxu1  ;;  %v2952_v51 = vsel %vm1593_vm9, %v2946_v27, -inf }
 0x8d9   :  { %2953 = vmax.xlane.f32.xlu1 %v2952_v51 }
 0x8dd   :  { %v2939_v52 = vpop.f32.mrb[48].mxu1 }
 0x8de   :  { %v2948_v53 = vmul.f32 0.14433756, %v2939_v52  ;;  %v13260_v60 = vpop.f32.mrb[49].mxu1 }
 0x8df   :  { %v2942_v41 = vpop.f32.mrb[50].mxu1 }
 0x8e0   :  { %v13261_v63 = vpop.f32.mrb[51].mxu1  ;;  %v2958_v55 = vsel %vm1593_vm9, %v2948_v53, -inf }
 0x8e1   :  { %2959 = vmax.xlane.f32.xlu0 %v2958_v55 }
 0x8ea   :  { %3167 = vrot.lane.b32.xlu1 %v3164_v61, %s14829_s17 }
 0x8f7   :  { %3165 = vrot.lane.b32.xlu0 %v3157_v2, %s14829_s17 }
 0x95b   :  { %v2951_v38 = vpop.xlane.xlu0 %2950 }
 0x95c   :  { %v2961_v10 = vsub.f32 %v2945_v18, %v2951_v38  ;;  %v3223_v18 = vcombine.high %v3222_v33, %v3222_v33 }
 0x95e   :  { %v2965_v45 = vmul.f32 1.442695, %v2961_v10  ;;  %v3237_v54 = vrot.slane %v3223_v18, %v15184_v58 }
 0x960   :  { %14633 = vpow2.f32 %v2965_v45 }
 0x963   :  { %v2957_v59 = vpop.xlane.xlu0 %2956 }
 0x964   :  { %v2963_v4 = vsub.f32 %v2947_v40, %v2957_v59 }
 0x966   :  { %v2954_v48 = vpop.xlane.xlu1 %2953  ;;  %v2969_v42 = vmul.f32 1.442695, %v2963_v4 }
 0x967   :  { %v2962_v28 = vsub.f32 %v2946_v27, %v2954_v48 }
 0x969   :  { %v2967_v7 = vmul.f32 1.442695, %v2962_v28 }
 0x96a   :  { %v14634_v32 = vpop.eup %14633 }
 0x96b   :  { %14635 = vpow2.f32 %v2967_v7  ;;  %v2973_v47 = vsel %vm1593_vm9, %v14634_v32, 0.0 }
 0x96c   :  { %2974 = vadd.xlane.f32.xlu1 %v2973_v47  ;;  %14637 = vpow2.f32 %v2969_v42 }
 0x96e   :  { %v2960_v9 = vpop.xlane.xlu0 %2959 }
 0x96f   :  { %v2964_v27 = vsub.f32 %v2948_v53, %v2960_v9 }
 0x971   :  { %v2971_v46 = vmul.f32 1.442695, %v2964_v27 }
 0x972   :  { %v3166_v40 = vpop.permute.xlu0 %3165 }
 0x973   :  { %14639 = vpow2.f32 %v2971_v46 }
 0x975   :  { %v14636_v37 = vpop.eup %14635 }
 0x976   :  { %v2976_v39 = vsel %vm1593_vm9, %v14636_v37, 0.0  ;;  %v14638_v49 = vpop.eup %14637 }
 0x977   :  { %2977 = vadd.xlane.f32.xlu0 %v2976_v39  ;;  %v2979_v35 = vsel %vm1593_vm9, %v14638_v49, 0.0 }
 0x97d   :  { %3240 = vrot.lane.b32.xlu1 %v3237_v54, %s14829_s17  ;;  %v14640_v51 = vpop.eup %14639 }
 0x97e   :  { %v2982_v3 = vsel %vm1593_vm9, %v14640_v51, 0.0 }
 0x98d   :  { %3238 = vrot.lane.b32.xlu0 %v3230_v12, %s14829_s17 }
 0x9a1   :  { %2980 = vadd.xlane.f32.xlu1 %v2979_v35 }
 0x9ac   :  { %2983 = vadd.xlane.f32.xlu0 %v2982_v3 }
 0x9b2   :  { %3365 = vrot.lane.b32.xlu1 %v15466_v15, %s14830_s21  ;;  %v3168_v15 = vpop.permute.xlu1 %3167 }
 0x9b3   :  { %v3169_v53 = vsel %vm2614_vm12, %v3166_v40, %v3168_v15 }
 0x9b4   :  { %v3174_v60 = vsel %vm1646_vm8, %v3169_v53, 0 }
 0x9b6   :  { %3363 = vrot.lane.b32.xlu1 %v15218_v22, %s14831_s25 }
 0x9ba   :  { %3465 = vrot.lane.b32.xlu1 %v15504_v50, %s14830_s21 }
 0x9be   :  { %3463 = vrot.lane.b32.xlu1 %v15223_v23, %s14831_s25 }
 0x9c2   :  { %3315 = vrot.lane.b32.xlu0 %v15473_v21, %s14830_s21 }
 0x9c6   :  { %3313 = vrot.lane.b32.xlu0 %v15205_v16, %s14831_s25 }
 0x9ca   :  { %3415 = vrot.lane.b32.xlu0 %v15532_v17, %s14830_s21 }
 0x9ce   :  { %3413 = vrot.lane.b32.xlu0 %v15212_v20, %s14831_s25 }
 0x9f9   :  { %v2975_v22 = vpop.xlane.xlu1 %2974 }
 0x9fa   :  { %14641 = vrcp.f32 %v2975_v22 }
 0x9fd   :  { %v3241_v17 = vpop.permute.xlu1 %3240 }
 0xa04   :  { %v14642_v50 = vpop.eup %14641  ;;  %v2978_v52 = vpop.xlane.xlu0 %2977 }
 0xa05   :  { %14643 = vrcp.f32 %v2978_v52  ;;  %v2989_v23 = vmul.f32 %v14642_v50, %v14634_v32 }
 0xa07   :  { %v2993_v21 = vpack.c.bf16 %v2989_v23, %v2989_v23 }
 0xa08   :  { %v3239_v16 = vpop.permute.xlu0 %3238 }
 0xa09   :  { %13265 = vmatmul.mubr.msk.bf16.vlgmr.msra.gmra.mrb[56].mxu0 %vm1642_vm10, %v2993_v21  ;;  %v3242_v63 = vsel %vm2614_vm12, %v3239_v16, %v3241_v17 }
 0xa0a   :  { %13275 = vmatpush3.bf16.msra.mxu0 %v3174_v60  ;;  %13276 = vmatprep.mubr.msk.bf16.mxu0 %vm14823_vm6, %v14822_v0  ;;  %v3247_v30 = vsel %vm1646_vm8, %v3242_v63, 0 }
 0xa0b   :  { %13286 = vmatprep.subr.bf16.mxu0 %v14822_v0 }
 0xa0f   :  { %v14644_v20 = vpop.eup %14643 }
 0xa10   :  { %v2990_v41 = vmul.f32 %v14644_v20, %v14636_v37 }
 0xa12   :  { %v2994_v55 = vpack.c.bf16 %v2990_v41, %v2990_v41 }
 0xa14   :  { %13271 = vmatmul.mubr.msk.bf16.vlgmr.msra.gmra.mrb[52].mxu1 %vm1642_vm10, %v2994_v55 }
 0xa15   :  { %13281 = vmatpush3.bf16.msra.mxu1 %v3247_v30  ;;  %13282 = vmatprep.mubr.msk.bf16.mxu1 %vm14823_vm6, %v14822_v0 }
 0xa16   :  { %13292 = vmatprep.subr.bf16.mxu1 %v14822_v0 }
 0xa2e   :  { %v2981_v34 = vpop.xlane.xlu1 %2980 }
 0xa2f   :  { %14645 = vrcp.f32 %v2981_v34 }
 0xa32   :  { %v3366_v7 = vpop.permute.xlu1 %3365 }
 0xa33   :  { %v3371_v18 = vsel %vm1356_vm7, %v3366_v7, 0 }
 0xa36   :  { %v3364_v39 = vpop.permute.xlu1 %3363 }
 0xa39   :  { %v14646_v61 = vpop.eup %14645  ;;  %v2984_v2 = vpop.xlane.xlu0 %2983 }
 0xa3a   :  { %14647 = vrcp.f32 %v2984_v2  ;;  %v2991_v38 = vmul.f32 %v14646_v61, %v14638_v49  ;;  %v3466_v59 = vpop.permute.xlu1 %3465 }
 0xa3b   :  { %v3471_v4 = vsel %vm1356_vm7, %v3466_v59, 0 }
 0xa3c   :  { %v2995_v10 = vpack.c.bf16 %v2991_v38, %v2991_v38 }
 0xa3d   :  { %v3316_v45 = vpop.permute.xlu0 %3315 }
 0xa3e   :  { %v3321_v48 = vsel %vm1356_vm7, %v3316_v45, 0  ;;  %13277 = vmatmul.mubr.msk.bf16.vlgmr.msra.gmra.mrb[60].mxu0 %vm1642_vm10, %v2995_v10  ;;  %v3464_v12 = vpop.permute.xlu1 %3463 }
 0xa3f   :  { %13287 = vmatpush3.bf16.xpose.msra.mxu0 %v3321_v48  ;;  %13288 = vmatprep.mubr.msk.bf16.mxu0 %vm14823_vm6, %v14822_v0 }
 0xa40   :  { %13298 = vmatprep.subr.bf16.mxu0 %v14822_v0 }
 0xa41   :  { %v3314_v28 = vpop.permute.xlu0 %3313 }
 0xa44   :  { %v14648_v32 = vpop.eup %14647 }
 0xa45   :  { %v3416_v47 = vpop.permute.xlu0 %3415  ;;  %v2992_v5 = vmul.f32 %v14648_v32, %v14640_v51 }
 0xa46   :  { %v3421_v33 = vsel %vm1356_vm7, %v3416_v47, 0  ;;  %13289 = vmatmul.mubr.msk.bf16.vlgmr.msra.gmra.mrb[64].mxu0 %vm1356_vm7, %v3314_v28 }
 0xa47   :  { %13299 = vmatpush3.bf16.xpose.msra.mxu0 %v3421_v33  ;;  %v2996_v37 = vpack.c.bf16 %v2992_v5, %v2992_v5  ;;  %13300 = vmatprep.mubr.msk.bf16.mxu0 %vm14823_vm6, %v14822_v0 }
 0xa48   :  { %13310 = vmatprep.subr.bf16.mxu0 %v14822_v0 }
 0xa49   :  { %13283 = vmatmul.mubr.msk.bf16.vlgmr.msra.gmra.mrb[56].mxu1 %vm1642_vm10, %v2996_v37  ;;  %v3414_v54 = vpop.permute.xlu0 %3413  ;;  %v2561_v37 = vpack.c.bf16 %v15237_v31, %v15237_v31 }
 0xa4a   :  { %13293 = vmatpush3.bf16.xpose.msra.mxu1 %v3371_v18  ;;  %13294 = vmatprep.mubr.msk.bf16.mxu1 %vm14823_vm6, %v14822_v0 }
 0xa4b   :  { %13304 = vmatprep.subr.bf16.mxu1 %v14822_v0 }
 0xa4e   :  { %13301 = vmatmul.mubr.msk.bf16.vlgmr.msra.gmra.mrb[68].mxu0 %vm1356_vm7, %v3414_v54  ;;  %v3295_v54 = vrot.slane %v2561_v37, %v15184_v58 }
 0xa4f   :  { %13312 = vmatprep.mubr.msk.bf16.mxu0 %vm14823_vm6, %v14822_v0 }
 0xa51   :  { %13295 = vmatmul.mubr.msk.bf16.vlgmr.msra.gmra.mrb[60].mxu1 %vm1356_vm7, %v3364_v39 }
 0xa52   :  { %13305 = vmatpush3.bf16.xpose.msra.mxu1 %v3471_v4  ;;  %13306 = vmatprep.mubr.msk.bf16.mxu1 %vm14823_vm6, %v14822_v0 }
 0xa53   :  { %13316 = vmatprep.subr.bf16.mxu1 %v14822_v0 }
 0xa59   :  { %13307 = vmatmul.mubr.msk.bf16.vlgmr.msra.gmra.mrb[64].mxu1 %vm1356_vm7, %v3464_v12 }
 0xa5a   :  { %13318 = vmatprep.mubr.msk.bf16.mxu1 %vm14823_vm6, %v14822_v0 }
 0xadc   :  { %v3064_v42 = vpop.f32.mrb[56].mxu0 }
 0xadd   :  { %v13266_v9 = vpop.f32.mrb[57].mxu0 }
 0xade   :  { %v3067_v27 = vpop.f32.mrb[58].mxu0  ;;  %v3303_v9 = vrot.slane %v3295_v54, %v15184_v58 }
 0xadf   :  { %v13267_v46 = vpop.f32.mrb[59].mxu0 }
 0xae7   :  { %v3137_v49 = vpop.f32.mrb[52].mxu1 }
 0xae8   :  { %v3863_v35 = vcombine.low %v3064_v42, %v3137_v49  ;;  %v13272_v51 = vpop.f32.mrb[53].mxu1  ;;  %v3571_v49 = vrot.slane %v3303_v9, %v15184_v58 }
 0xae9   :  { %v3140_v3 = vpop.f32.mrb[54].mxu1 }
 0xaea   :  { %v13273_v15 = vpop.f32.mrb[55].mxu1  ;;  %v15681_v30 = vrot.slane %v3863_v35, %v15424_v43  ;;  %v3578_v31 = vrot.slane %v3571_v49, %v15184_v58 }
 0xb11   :  { %v3210_v22 = vpop.f32.mrb[60].mxu0 }
 0xb12   :  { %v13278_v40 = vpop.f32.mrb[61].mxu0 }
 0xb13   :  { %v3213_v50 = vpop.f32.mrb[62].mxu0 }
 0xb14   :  { %v13279_v52 = vpop.f32.mrb[63].mxu0 }
 0xb19   :  { %v3357_v23 = vpop.f32.mrb[64].mxu0 }
 0xb1a   :  { %v3513_v53 = vmul.f32 0.14433756, %v3357_v23  ;;  %v13290_v21 = vpop.f32.mrb[65].mxu0 }
 0xb1b   :  { %v3360_v60 = vpop.f32.mrb[66].mxu0 }
 0xb1c   :  { %v3283_v16 = vpop.f32.mrb[56].mxu1  ;;  %v13291_v20 = vpop.f32.mrb[67].mxu0  ;;  %v3517_v17 = vsel %vm1593_vm9, %v3513_v53, -inf }
 0xb1d   :  { %v3864_v41 = vcombine.low %v3210_v22, %v3283_v16  ;;  %3518 = vmax.xlane.f32.xlu0 %v3517_v17  ;;  %v13284_v63 = vpop.f32.mrb[57].mxu1 }
 0xb1e   :  { %v3286_v55 = vpop.f32.mrb[58].mxu1 }
 0xb1f   :  { %v15684_v34 = vrot.slane %v3864_v41, %v15424_v43  ;;  %v13285_v61 = vpop.f32.mrb[59].mxu1 }
 0xb21   :  { %v3457_v2 = vpop.f32.mrb[68].mxu0  ;;  %v3879_v38 = vcombine.low %v15681_v30, %v15684_v34 }
 0xb22   :  { %v3515_v10 = vmul.f32 0.14433756, %v3457_v2  ;;  %v13302_v45 = vpop.f32.mrb[69].mxu0 }
 0xb23   :  { %v3460_v48 = vpop.f32.mrb[70].mxu0 }
 0xb24   :  { %v3407_v28 = vpop.f32.mrb[60].mxu1  ;;  %v13303_v7 = vpop.f32.mrb[71].mxu0  ;;  %v3523_v32 = vsel %vm1593_vm9, %v3515_v10, -inf  ;;  %v3311_v48 = vcombine.high %v3303_v9, %v3303_v9 }
 0xb25   :  { %v3514_v47 = vmul.f32 0.14433756, %v3407_v28  ;;  %3524 = vmax.xlane.f32.xlu0 %v3523_v32  ;;  %v13296_v5 = vpop.f32.mrb[61].mxu1 }
 0xb26   :  { %v3410_v33 = vpop.f32.mrb[62].mxu1  ;;  %v3695_v32 = vrot.slane %v3311_v48, %v15184_v58  ;;  %v13775_v48 = vld [vmem:[%s14896_s24 + $0x84] ss:$8 sps:$4 sm:$0xff]  }
 0xb27   :  { %v13297_v39 = vpop.f32.mrb[63].mxu1  ;;  %v3520_v18 = vsel %vm1593_vm9, %v3514_v47, -inf }
 0xb28   :  { %3521 = vmax.xlane.f32.xlu1 %v3520_v18  ;;  %v3702_v5 = vrot.slane %v3695_v32, %v15184_v58  ;;  %v13776_v32 = vld [vmem:[%s14896_s24 + $0x90] ss:$8 sps:$4 sm:$0xff]  }
 0xb2c   :  { %v3507_v59 = vpop.f32.mrb[64].mxu1 }
 0xb2d   :  { %v3516_v4 = vmul.f32 0.14433756, %v3507_v59  ;;  %v13308_v12 = vpop.f32.mrb[65].mxu1 }
 0xb2e   :  { %v3510_v42 = vpop.f32.mrb[66].mxu1 }
 0xb2f   :  { %v13309_v27 = vpop.f32.mrb[67].mxu1  ;;  %v3526_v46 = vsel %vm1593_vm9, %v3516_v4, -inf }
 0xb30   :  { %3527 = vmax.xlane.f32.xlu0 %v3526_v46 }
 0xb39   :  { %3579 = vrot.lane.b32.xlu1 %v3578_v31, %s14831_s25 }
 0xbaa   :  { %v3519_v35 = vpop.xlane.xlu0 %3518 }
 0xbab   :  { %v3529_v51 = vsub.f32 %v3513_v53, %v3519_v35 }
 0xbad   :  { %v3533_v3 = vmul.f32 1.442695, %v3529_v51 }
 0xbaf   :  { %14649 = vpow2.f32 %v3533_v3 }
 0xbb2   :  { %v3525_v15 = vpop.xlane.xlu0 %3524 }
 0xbb3   :  { %v3531_v22 = vsub.f32 %v3515_v10, %v3525_v15  ;;  %v3296_v10 = vcombine.high %v3295_v54, %v3295_v54 }
 0xbb5   :  { %v3537_v40 = vmul.f32 1.442695, %v3531_v22  ;;  %v3522_v50 = vpop.xlane.xlu1 %3521  ;;  %v3310_v45 = vrot.slane %v3296_v10, %v15184_v58  ;;  %v13772_v10 = vld [vmem:[%s14896_s24 + $0x74] ss:$8 sps:$4 sm:$0xff]  }
 0xbb6   :  { %v3530_v52 = vsub.f32 %v3514_v47, %v3522_v50  ;;  %v13749_v50 = vld [vmem:[%s14896_s24] ss:$8 sps:$4 sm:$0xff]  }
 0xbb7   :  { %14651 = vpow2.f32 %v3537_v40  ;;  %v3312_v47 = vcombine.high %v3310_v45, %v3310_v45  ;;  %v3633_v39 = vrot.slane %v3310_v45, %v15184_v58  ;;  %v13770_v45 = vld [vmem:[%s14896_s24 + $0x70] ss:$8 sps:$4 sm:$0xff]  }
 0xbb8   :  { %v3535_v23 = vmul.f32 1.442695, %v3530_v52  ;;  %v13751_v52 = vld [vmem:[%s14896_s24 + $0x4] ss:$8 sps:$4 sm:$0xff]  }
 0xbb9   :  { %v14650_v21 = vpop.eup %14649  ;;  %v3580_v60 = vpop.permute.xlu1 %3579  ;;  %v3757_v33 = vrot.slane %v3312_v47, %v15184_v58  ;;  %v3640_v18 = vrot.slane %v3633_v39, %v15184_v58  ;;  %v13781_v47 = vld [vmem:[%s14896_s24 + $0xa4] ss:$8 sps:$4 sm:$0xff]  }
 0xbba   :  { %14653 = vpow2.f32 %v3535_v23  ;;  %v3585_v16 = vsel %vm1646_vm8, %v3580_v60, 0  ;;  %v3541_v20 = vsel %vm1593_vm9, %v14650_v21, 0.0  ;;  %v13754_v23 = vld [vmem:[%s14896_s24 + $0x14] ss:$8 sps:$4 sm:$0xff]   ;;  %v13757_v60 = vld [vmem:[%s14896_s24 + $0x24] ss:$8 sps:$4 sm:$0xff]  }
 0xbbb   :  { %3542 = vadd.xlane.f32.xlu1 %v3541_v20  ;;  %13311 = vmatpush3.bf16.msra.mxu0 %v3585_v16  ;;  %v3764_v37 = vrot.slane %v3757_v33, %v15184_v58  ;;  %v13755_v16 = vld [vmem:[%s14896_s24 + $0x20] ss:$8 sps:$4 sm:$0xff]   ;;  %v13760_v20 = vld [vmem:[%s14896_s24 + $0x34] ss:$8 sps:$4 sm:$0xff]  }
 0xbbc   :  { %13322 = vmatprep.subr.bf16.mxu0 %v14822_v0 }
 0xbbd   :  { %v3528_v53 = vpop.xlane.xlu0 %3527 }
 0xbbe   :  { %v3532_v17 = vsub.f32 %v3516_v4, %v3528_v53  ;;  %v13758_v53 = vld [vmem:[%s14896_s24 + $0x30] ss:$8 sps:$4 sm:$0xff]  }
 0xbc0   :  { %v3539_v41 = vmul.f32 1.442695, %v3532_v17  ;;  %v13763_v17 = vld [vmem:[%s14896_s24 + $0x44] ss:$8 sps:$4 sm:$0xff]  }
 0xbc1   :  { %v14652_v63 = vpop.eup %14651 }
 0xbc2   :  { %14655 = vpow2.f32 %v3539_v41  ;;  %v3547_v55 = vsel %vm1593_vm9, %v14652_v63, 0.0  ;;  %v13761_v41 = vld [vmem:[%s14896_s24 + $0x40] ss:$8 sps:$4 sm:$0xff]  }
 0xbc3   :  { %3548 = vadd.xlane.f32.xlu1 %v3547_v55  ;;  %v13764_v55 = vld [vmem:[%s14896_s24 + $0x50] ss:$8 sps:$4 sm:$0xff]  }
 0xbc4   :  { %v14654_v61 = vpop.eup %14653 }
 0xbc5   :  { %v3544_v2 = vsel %vm1593_vm9, %v14654_v61, 0.0 }
 0xbc6   :  { %3545 = vadd.xlane.f32.xlu0 %v3544_v2  ;;  %v13767_v2 = vld [vmem:[%s14896_s24 + $0x60] ss:$8 sps:$4 sm:$0xff]  }
 0xbcc   :  { %v14656_v28 = vpop.eup %14655 }
 0xbcd   :  { %v3550_v7 = vsel %vm1593_vm9, %v14656_v28, 0.0 }
 0xbce   :  { %3551 = vadd.xlane.f32.xlu0 %v3550_v7  ;;  %v13778_v7 = vld [vmem:[%s14896_s24 + $0x94] ss:$8 sps:$4 sm:$0xff]  }
 0xbd4   :  { %3703 = vrot.lane.b32.xlu1 %v3702_v5, %s14831_s25  ;;  %v13779_v5 = vld [vmem:[%s14896_s24 + $0xa0] ss:$8 sps:$4 sm:$0xff]  }
 0xbd8   :  { %3765 = vrot.lane.b32.xlu1 %v3764_v37, %s14831_s25 }
 0xbdc   :  { %3880 = vrot.lane.b32.xlu1 %v3879_v38, %s14828_s13 }
 0xbe4   :  { %3641 = vrot.lane.b32.xlu0 %v3640_v18, %s14831_s25 }
 0xbe8   :  { %3856 = vrot.lane.b32.xlu0 %v3855_v11, %s14830_s21 }
 0xc48   :  { %v3543_v54 = vpop.xlane.xlu1 %3542 }
 0xc49   :  { %14657 = vrcp.f32 %v3543_v54 }
 0xc50   :  { %v3549_v59 = vpop.xlane.xlu1 %3548 }
 0xc51   :  { %14659 = vrcp.f32 %v3549_v59 }
 0xc53   :  { %v14658_v4 = vpop.eup %14657  ;;  %v3546_v12 = vpop.xlane.xlu0 %3545 }
 0xc54   :  { %14661 = vrcp.f32 %v3546_v12  ;;  %v3557_v30 = vmul.f32 %v14658_v4, %v14650_v21  ;;  %v3704_v34 = vpop.permute.xlu1 %3703  ;;  %v13752_v21 = vld [vmem:[%s14896_s24 + $0x10] ss:$8 sps:$4 sm:$0xff]  }
 0xc55   :  { %v3709_v42 = vsel %vm1646_vm8, %v3704_v34, 0 }
 0xc56   :  { %v3561_v38 = vpack.c.bf16 %v3557_v30, %v3557_v30 }
 0xc58   :  { %13313 = vmatmul.mubr.msk.bf16.vlgmr.msra.gmra.mrb[72].mxu0 %vm1642_vm10, %v3561_v38  ;;  %v3766_v35 = vpop.permute.xlu1 %3765 }
 0xc59   :  { %13323 = vmatpush3.bf16.msra.mxu0 %v3709_v42  ;;  %13324 = vmatprep.mubr.msk.bf16.mxu0 %vm14823_vm6, %v14822_v0  ;;  %v3771_v3 = vsel %vm1646_vm8, %v3766_v35, 0 }
 0xc5a   :  { %4073 = vmatprep.subr.bf16.mxu0 %v13751_v52 }
 0xc5b   :  { %v14660_v36 = vpop.eup %14659  ;;  %v3552_v29 = vpop.xlane.xlu0 %3551 }
 0xc5c   :  { %14663 = vrcp.f32 %v3552_v29  ;;  %v3559_v11 = vmul.f32 %v14660_v36, %v14652_v63  ;;  %v13766_v63 = vld [vmem:[%s14896_s24 + $0x54] ss:$8 sps:$4 sm:$0xff]   ;;  %v13782_v29 = vld [vmem:[%s14896_s24 + $0xb0] ss:$8 sps:$4 sm:$0xff]  }
 0xc5e   :  { %v14662_v9 = vpop.eup %14661  ;;  %v3563_v27 = vpack.c.bf16 %v3559_v11, %v3559_v11  ;;  %v13784_v11 = vld [vmem:[%s14896_s24 + $0xb4] ss:$8 sps:$4 sm:$0xff]  }
 0xc5f   :  { %v3642_v46 = vpop.permute.xlu0 %3641  ;;  %v3558_v49 = vmul.f32 %v14662_v9, %v14654_v61  ;;  %v13769_v61 = vld [vmem:[%s14896_s24 + $0x64] ss:$8 sps:$4 sm:$0xff]  }
 0xc60   :  { %v3647_v31 = vsel %vm1646_vm8, %v3642_v46, 0  ;;  %13325 = vmatmul.mubr.msk.bf16.vlgmr.msra.gmra.mrb[76].mxu0 %vm1642_vm10, %v3563_v27 }
 0xc61   :  { %13317 = vmatpush3.bf16.msra.mxu1 %v3647_v31  ;;  %v3562_v51 = vpack.c.bf16 %v3558_v49, %v3558_v49  ;;  %4074 = vmatpush1.bf16.msra.mxu0 %v13749_v50 }
 0xc62   :  { %13328 = vmatprep.subr.bf16.mxu1 %v14822_v0  ;;  %4075 = vmatprep.subr.bf16.mxu0 %v13754_v23 }
 0xc64   :  { %13319 = vmatmul.mubr.msk.bf16.vlgmr.msra.gmra.mrb[68].mxu1 %vm1642_vm10, %v3562_v51 }
 0xc65   :  { %13329 = vmatpush3.bf16.msra.mxu1 %v3771_v3  ;;  %13330 = vmatprep.mubr.msk.bf16.mxu1 %vm14823_vm6, %v14822_v0 }
 0xc66   :  { %v14664_v15 = vpop.eup %14663  ;;  %4076 = vmatpush1.bf16.msra.mxu0 %v13752_v21 }
 0xc67   :  { %v3560_v22 = vmul.f32 %v14664_v15, %v14656_v28  ;;  %4077 = vmatprep.subr.bf16.mxu0 %v13757_v60  ;;  %v13773_v28 = vld [vmem:[%s14896_s24 + $0x80] ss:$8 sps:$4 sm:$0xff]   ;;  %v3857_v15 = vpop.permute.xlu0 %3856 }
 0xc69   :  { %v3564_v40 = vpack.c.bf16 %v3560_v22, %v3560_v22  ;;  %v3907_v22 = vsel %vm1356_vm7, %v3833_v62, %v3857_v15 }
 0xc6a   :  { %4078 = vmatpush1.bf16.msra.mxu0 %v13755_v16  ;;  %v3938_v16 = vld [vmem:[%s14901_s30] sm:$0x3] }
 0xc6b   :  { %4079 = vmatprep.subr.bf16.mxu0 %v13760_v20  ;;  %v3943_v20 = vrot.slane %v3938_v16, %v15079_v13  ;;  %v3947_v56 = vrot.slane %v3938_v16, %v15082_v14  ;;  %v13830_v16 = vld [vmem:[%s14916_s20 + $0x158] ss:$24 sps:$4 sm:$0xff]  }
 0xc6c   :  { %13331 = vmatmul.mubr.msk.bf16.vlgmr.msra.gmra.mrb[72].mxu1 %vm1642_vm10, %v3564_v40  ;;  %v3881_v40 = vpop.permute.xlu1 %3880 }
 0xc6d   :  { %v3909_v50 = vsel %vm3908_vm13, %v3907_v22, %v3881_v40 }
 0xc6e   :  { %4080 = vmatpush1.bf16.msra.mxu0 %v13758_v53  ;;  %v3912_v60 = vpack.c.bf16 %v3909_v50, %v3909_v50  ;;  %v13826_v50 = vld [vmem:[%s14916_s20 + $0x12c] ss:$24 sps:$4 sm:$0xff]  }
 0xc6f   :  { %4081 = vmatprep.subr.bf16.mxu0 %v13763_v17 }
 0xc72   :  { %4082 = vmatpush1.bf16.msra.mxu0 %v13761_v41 }
 0xc73   :  { %4083 = vmatprep.subr.bf16.mxu0 %v13766_v63 }
 0xc76   :  { %4084 = vmatpush1.bf16.msra.mxu0 %v13764_v55 }
 0xc77   :  { %4085 = vmatprep.subr.bf16.mxu0 %v13769_v61 }
 0xc7a   :  { %4086 = vmatpush1.bf16.msra.mxu0 %v13767_v2 }
 0xc7b   :  { %4087 = vmatprep.subr.bf16.mxu0 %v13772_v10 }
 0xc7e   :  { %4088 = vmatpush1.bf16.msra.mxu0 %v13770_v45  ;;  %v13785_v45 = vld [vmem:[%s14916_s20] ss:$24 sps:$4 sm:$0xff]  }
 0xc7f   :  { %4089 = vmatprep.subr.bf16.mxu0 %v13775_v48  ;;  %v13787_v48 = vld [vmem:[%s14916_s20 + $0x4] ss:$24 sps:$4 sm:$0xff]  }
 0xc80   :  { %4632 = vmatprep.subr.bf16.mxu1 %v13787_v48  ;;  %v13856_v48 = vld [vmem:[%s14916_s20 + $0x21c] ss:$24 sps:$4 sm:$0xff]  }
 0xc81   :  { %4633 = vmatpush1.bf16.msra.mxu1 %v13785_v45  ;;  %v13851_v45 = vld [vmem:[%s14916_s20 + $0x210] ss:$24 sps:$4 sm:$0xff]  }
 0xc82   :  { %4090 = vmatpush1.bf16.msra.mxu0 %v13773_v28  ;;  %v13788_v28 = vld [vmem:[%s14916_s20 + $0x8] ss:$24 sps:$4 sm:$0xff]  }
 0xc83   :  { %4091 = vmatprep.subr.bf16.mxu0 %v13778_v7  ;;  %v13790_v7 = vld [vmem:[%s14916_s20 + $0xc] ss:$24 sps:$4 sm:$0xff]  }
 0xc86   :  { %4092 = vmatpush1.bf16.msra.mxu0 %v13776_v32  ;;  %v13793_v32 = vld [vmem:[%s14916_s20 + $0x34] ss:$24 sps:$4 sm:$0xff]  }
 0xc87   :  { %4093 = vmatprep.subr.bf16.mxu0 %v13781_v47  ;;  %v13796_v47 = vld [vmem:[%s14916_s20 + $0x3c] ss:$24 sps:$4 sm:$0xff]   ;;  %4634 = vmatprep.subr.bf16.mxu1 %v13793_v32  ;;  %v13895_v32 = vld [vmem:[%s17132_s29 + $0x4] ss:$8 sps:$4 sm:$0xff]  }
 0xc8a   :  { %4094 = vmatpush1.bf16.msra.mxu0 %v13779_v5  ;;  %v13799_v5 = vld [vmem:[%s14916_s20 + $0x64] ss:$24 sps:$4 sm:$0xff]  }
 0xc8b   :  { %4095 = vmatprep.subr.bf16.mxu0 %v13784_v11  ;;  %v13818_v11 = vld [vmem:[%s14916_s20 + $0xf8] ss:$24 sps:$4 sm:$0xff]  }
 0xc8e   :  { %4096 = vmatpush1.bf16.msra.mxu0 %v13782_v29  ;;  %v13815_v29 = vld [vmem:[%s14916_s20 + $0xf0] ss:$24 sps:$4 sm:$0xff]  }
 0xc8f   :  { %4673 = vmatprep.subr.bf16.mxu0 %v13790_v7  ;;  %v13854_v7 = vld [vmem:[%s14916_s20 + $0x218] ss:$24 sps:$4 sm:$0xff]  }
 0xd2b   :  { %v3621_v33 = vpop.f32.mrb[72].mxu0 }
 0xd2c   :  { %v13314_v37 = vpop.f32.mrb[73].mxu0 }
 0xd2d   :  { %v3624_v39 = vpop.f32.mrb[74].mxu0  ;;  %v13797_v37 = vld [vmem:[%s14916_s20 + $0x60] ss:$24 sps:$4 sm:$0xff]  }
 0xd2e   :  { %v13315_v18 = vpop.f32.mrb[75].mxu0  ;;  %v13800_v39 = vld [vmem:[%s14916_s20 + $0x68] ss:$24 sps:$4 sm:$0xff]  }
 0xd2f   :  { %v13805_v18 = vld [vmem:[%s14916_s20 + $0x94] ss:$24 sps:$4 sm:$0xff]  }
 0xd33   :  { %v3745_v54 = vpop.f32.mrb[76].mxu0 }
 0xd34   :  { %v13326_v59 = vpop.f32.mrb[77].mxu0 }
 0xd35   :  { %v3748_v4 = vpop.f32.mrb[78].mxu0  ;;  %v13803_v59 = vld [vmem:[%s14916_s20 + $0x90] ss:$24 sps:$4 sm:$0xff]  }
 0xd36   :  { %v13327_v12 = vpop.f32.mrb[79].mxu0  ;;  %v13806_v4 = vld [vmem:[%s14916_s20 + $0x98] ss:$24 sps:$4 sm:$0xff]  }
 0xd37   :  { %v3683_v30 = vpop.f32.mrb[68].mxu1  ;;  %v13811_v12 = vld [vmem:[%s14916_s20 + $0xc4] ss:$24 sps:$4 sm:$0xff]  }
 0xd38   :  { %v3887_v34 = vcombine.low %v3621_v33, %v3683_v30  ;;  %v13320_v38 = vpop.f32.mrb[69].mxu1  ;;  %v13802_v33 = vld [vmem:[%s14916_s20 + $0x6c] ss:$24 sps:$4 sm:$0xff]  }
 0xd39   :  { %v3686_v42 = vpop.f32.mrb[70].mxu1  ;;  %v13814_v30 = vld [vmem:[%s14916_s20 + $0xcc] ss:$24 sps:$4 sm:$0xff]   ;;  %v13812_v38 = vld [vmem:[%s14916_s20 + $0xc8] ss:$24 sps:$4 sm:$0xff]  }
 0xd3a   :  { %v13321_v36 = vpop.f32.mrb[71].mxu1  ;;  %v3895_v31 = vrot.slane %v3887_v34, %v15424_v43  ;;  %v13809_v34 = vld [vmem:[%s14916_s20 + $0xc0] ss:$24 sps:$4 sm:$0xff]   ;;  %v13817_v42 = vld [vmem:[%s14916_s20 + $0xf4] ss:$24 sps:$4 sm:$0xff]  }
 0xd3b   :  { %v13820_v36 = vld [vmem:[%s14916_s20 + $0xfc] ss:$24 sps:$4 sm:$0xff]  }
 0xd3f   :  { %v3807_v9 = vpop.f32.mrb[72].mxu1 }
 0xd40   :  { %v3888_v27 = vcombine.low %v3745_v54, %v3807_v9  ;;  %v13332_v46 = vpop.f32.mrb[73].mxu1  ;;  %v13808_v54 = vld [vmem:[%s14916_s20 + $0x9c] ss:$24 sps:$4 sm:$0xff]  }
 0xd41   :  { %v3810_v49 = vpop.f32.mrb[74].mxu1  ;;  %v13823_v9 = vld [vmem:[%s14916_s20 + $0x124] ss:$24 sps:$4 sm:$0xff]  }
 0xd42   :  { %v3902_v35 = vrot.slane %v3888_v27, %v15424_v43  ;;  %v13333_v51 = vpop.f32.mrb[75].mxu1  ;;  %v13821_v27 = vld [vmem:[%s14916_s20 + $0x120] ss:$24 sps:$4 sm:$0xff]  }
 0xd44   :  { %v3903_v3 = vcombine.low %v3895_v31, %v3902_v35 }
 0xd46   :  { %3904 = vrot.lane.b32.xlu0 %v3903_v3, %s14825_s5 }
 0xdb8   :  { %v3905_v52 = vpop.permute.xlu0 %3904 }
 0xdb9   :  { %v3911_v23 = vsel %vm1897_vm11, %v3881_v40, %v3905_v52  ;;  %v13824_v40 = vld [vmem:[%s14916_s20 + $0x128] ss:$24 sps:$4 sm:$0xff]  }
 0xdba   :  { %v3913_v21 = vpack.c.bf16 %v3911_v23, %v3911_v23  ;;  %v13827_v52 = vld [vmem:[%s14916_s20 + $0x150] ss:$24 sps:$4 sm:$0xff]   ;;  %v13829_v23 = vld [vmem:[%s14916_s20 + $0x154] ss:$24 sps:$4 sm:$0xff]  }
 0xdbc   :  { %12055 = vmatprep.mubr.msk.bf16.mxu0 %vm1136_vm5, %v3913_v21  ;;  %v13832_v21 = vld [vmem:[%s14916_s20 + $0x15c] ss:$24 sps:$4 sm:$0xff]  }
 0xdbd   :  { %4106 = vmatmul.mubr.bf16.vlgmr.msra.gmra.mrb[80].mxu0 %v3912_v60  ;;  %v13835_v60 = vld [vmem:[%s14916_s20 + $0x184] ss:$24 sps:$4 sm:$0xff]  }
 0xdbe   :  { %4674 = vmatpush1.bf16.msra.mxu0 %v13788_v28  ;;  %v13859_v28 = vld [vmem:[%s14916_s20 + $0x14] ss:$24 sps:$4 sm:$0xff]  }
 0xdbf   :  { %4675 = vmatprep.subr.bf16.mxu0 %v13796_v47 }
 0xe90   :  { %v4107_v57 = vpop.f32.mrb[80].mxu0 }
 0xe91   :  { %v4108_v62 = vadd.f32 %v4107_v57, %v3943_v20  ;;  %v4109_v53 = vpop.f32.mrb[81].mxu0  ;;  %v13833_v20 = vld [vmem:[%s14916_s20 + $0x180] ss:$24 sps:$4 sm:$0xff]   ;;  %v13841_v57 = vld [vmem:[%s14916_s20 + $0x1b4] ss:$24 sps:$4 sm:$0xff]  }
 0xe92   :  { %v4110_v17 = vadd.f32 %v4109_v53, %v3947_v56  ;;  %v4111_v41 = vpop.f32.mrb[82].mxu0  ;;  %v13838_v56 = vld [vmem:[%s14916_s20 + $0x18c] ss:$24 sps:$4 sm:$0xff]   ;;  %v13839_v53 = vld [vmem:[%s14916_s20 + $0x1b0] ss:$24 sps:$4 sm:$0xff]  }
 0xe93   :  { %v4112_v63 = vpop.f32.mrb[83].mxu0  ;;  %v4114_v61 = vadd.f32 %v4108_v62, %v15136_v19  ;;  %v13791_v19 = vld [vmem:[%s14916_s20 + $0x30] ss:$24 sps:$4 sm:$0xff]   ;;  %v13847_v41 = vld [vmem:[%s14916_s20 + $0x1e4] ss:$24 sps:$4 sm:$0xff]  }
 0xe94   :  { %v4115_v55 = vadd.f32 %v4110_v17, %v15139_v24  ;;  %v13794_v24 = vld [vmem:[%s14916_s20 + $0x38] ss:$24 sps:$4 sm:$0xff]   ;;  %4635 = vmatpush1.bf16.msra.mxu1 %v13791_v19  ;;  %v13836_v62 = vld [vmem:[%s14916_s20 + $0x188] ss:$24 sps:$4 sm:$0xff]   ;;  %v13844_v17 = vld [vmem:[%s14916_s20 + $0x1bc] ss:$24 sps:$4 sm:$0xff]  }
 0xe95   :  { %4676 = vmatpush1.bf16.msra.mxu0 %v13794_v24  ;;  %4636 = vmatprep.subr.bf16.mxu1 %v13799_v5  ;;  %v13842_v63 = vld [vmem:[%s14916_s20 + $0x1b8] ss:$24 sps:$4 sm:$0xff]   ;;  %v4135_v5 = vld [vmem:[%s17133_s3] sm:$0x3] }
 0xe96   :  { %v4116_v2 = vsel %vm1136_vm5, %v4115_v55, 0.0  ;;  %4677 = vmatprep.subr.bf16.mxu0 %v13802_v33  ;;  %v4149_v33 = vld [vmem:[%s17134_s8] sm:$0x3] }
 0xe97   :  { %v4117_v10 = vadd.f32 %v4116_v2, %v4114_v61  ;;  %v13853_v2 = vld [vmem:[%s14916_s20 + $0x214] ss:$24 sps:$4 sm:$0xff]  }
 0xe98   :  { %4637 = vmatpush1.bf16.msra.mxu1 %v13797_v37  ;;  %v4144_v37 = vrot.slane %v4135_v5, %v15082_v14 }
 0xe99   :  { %4118 = vadd.xlane.f32.xlu1 %v4117_v10  ;;  %4678 = vmatpush1.bf16.msra.mxu0 %v13800_v39  ;;  %v13848_v10 = vld [vmem:[%s14916_s20 + $0x1e8] ss:$24 sps:$4 sm:$0xff]   ;;  %v4140_v39 = vrot.slane %v4135_v5, %v15079_v13  ;;  %v13898_v5 = vld [vmem:[%s17132_s29 + $0x104] ss:$8 sps:$4 sm:$0xff]  }
 0xe9a   :  { %4638 = vmatprep.subr.bf16.mxu1 %v13805_v18  ;;  %4679 = vmatprep.subr.bf16.mxu0 %v13808_v54 }
 0xe9c   :  { %4639 = vmatpush1.bf16.msra.mxu1 %v13803_v59 }
 0xe9d   :  { %4680 = vmatpush1.bf16.msra.mxu0 %v13806_v4  ;;  %4640 = vmatprep.subr.bf16.mxu1 %v13811_v12  ;;  %v4158_v4 = vrot.slane %v4149_v33, %v15082_v14  ;;  %v4154_v12 = vrot.slane %v4149_v33, %v15079_v13  ;;  %v13896_v33 = vld [vmem:[%s17132_s29 + $0x100] ss:$8 sps:$4 sm:$0xff]  }
 0xe9e   :  { %4681 = vmatprep.subr.bf16.mxu0 %v13814_v30 }
 0xea0   :  { %4641 = vmatpush1.bf16.msra.mxu1 %v13809_v34 }
 0xea1   :  { %4682 = vmatpush1.bf16.msra.mxu0 %v13812_v38  ;;  %4642 = vmatprep.subr.bf16.mxu1 %v13817_v42 }
 0xea2   :  { %4683 = vmatprep.subr.bf16.mxu0 %v13820_v36 }
 0xea4   :  { %4643 = vmatpush1.bf16.msra.mxu1 %v13815_v29  ;;  %v13857_v29 = vld [vmem:[%s14916_s20 + $0x10] ss:$24 sps:$4 sm:$0xff]  }
 0xea5   :  { %4684 = vmatpush1.bf16.msra.mxu0 %v13818_v11  ;;  %4644 = vmatprep.subr.bf16.mxu1 %v13823_v9  ;;  %v13862_v9 = vld [vmem:[%s14916_s20 + $0x44] ss:$24 sps:$4 sm:$0xff]  }
 0xea6   :  { %4685 = vmatprep.subr.bf16.mxu0 %v13826_v50  ;;  %v13866_v50 = vld [vmem:[%s14916_s20 + $0xa0] ss:$24 sps:$4 sm:$0xff]  }
 0xea8   :  { %4645 = vmatpush1.bf16.msra.mxu1 %v13821_v27  ;;  %v13893_v27 = vld [vmem:[%s17132_s29] ss:$8 sps:$4 sm:$0xff]  }
 0xea9   :  { %4686 = vmatpush1.bf16.msra.mxu0 %v13824_v40  ;;  %4646 = vmatprep.subr.bf16.mxu1 %v13829_v23  ;;  %v13913_v40 = vld [vmem:[%s17132_s29 + $0x34] ss:$8 sps:$4 sm:$0xff]   ;;  %v13911_v23 = vld [vmem:[%s17132_s29 + $0x30] ss:$8 sps:$4 sm:$0xff]  }
 0xeaa   :  { %4687 = vmatprep.subr.bf16.mxu0 %v13832_v21  ;;  %v13919_v21 = vld [vmem:[%s17132_s29 + $0x44] ss:$8 sps:$4 sm:$0xff]  }
 0xeac   :  { %4647 = vmatpush1.bf16.msra.mxu1 %v13827_v52  ;;  %v13871_v52 = vld [vmem:[%s14916_s20 + $0xd4] ss:$24 sps:$4 sm:$0xff]  }
 0xead   :  { %4648 = vmatprep.subr.bf16.mxu1 %v13835_v60  ;;  %4688 = vmatpush1.bf16.msra.mxu0 %v13830_v16  ;;  %v13869_v60 = vld [vmem:[%s14916_s20 + $0xd0] ss:$24 sps:$4 sm:$0xff]   ;;  %v13874_v16 = vld [vmem:[%s14916_s20 + $0x104] ss:$24 sps:$4 sm:$0xff]  }
 0xeae   :  { %4689 = vmatprep.subr.bf16.mxu0 %v13838_v56  ;;  %v13925_v56 = vld [vmem:[%s17132_s29 + $0x54] ss:$8 sps:$4 sm:$0xff]  }
 0xeb0   :  { %4649 = vmatpush1.bf16.msra.mxu1 %v13833_v20  ;;  %v13917_v20 = vld [vmem:[%s17132_s29 + $0x40] ss:$8 sps:$4 sm:$0xff]  }
 0xeb1   :  { %4650 = vmatprep.subr.bf16.mxu1 %v13841_v57  ;;  %4690 = vmatpush1.bf16.msra.mxu0 %v13836_v62  ;;  %v13872_v57 = vld [vmem:[%s14916_s20 + $0x100] ss:$24 sps:$4 sm:$0xff]   ;;  %v13877_v62 = vld [vmem:[%s14916_s20 + $0x134] ss:$24 sps:$4 sm:$0xff]  }
 0xeb2   :  { %4691 = vmatprep.subr.bf16.mxu0 %v13844_v17  ;;  %v13931_v17 = vld [vmem:[%s17132_s29 + $0x64] ss:$8 sps:$4 sm:$0xff]  }
 0xeb4   :  { %4651 = vmatpush1.bf16.msra.mxu1 %v13839_v53  ;;  %v13923_v53 = vld [vmem:[%s17132_s29 + $0x50] ss:$8 sps:$4 sm:$0xff]  }
 0xeb5   :  { %4652 = vmatprep.subr.bf16.mxu1 %v13847_v41  ;;  %4692 = vmatpush1.bf16.msra.mxu0 %v13842_v63  ;;  %v13875_v41 = vld [vmem:[%s14916_s20 + $0x130] ss:$24 sps:$4 sm:$0xff]   ;;  %v13880_v63 = vld [vmem:[%s14916_s20 + $0x164] ss:$24 sps:$4 sm:$0xff]  }
 0xf26   :  { %v4119_v46 = vpop.xlane.xlu1 %4118 }
 0xf27   :  { %v4121_v49 = vmul.f32 0.0052083335, %v4119_v46  ;;  %v13901_v46 = vld [vmem:[%s17132_s29 + $0x14] ss:$8 sps:$4 sm:$0xff]  }
 0xf29   :  { %v15800_v31 = vsub.f32 %v4114_v61, %v4121_v49  ;;  %v15802_v35 = vsub.f32 %v4115_v55, %v4121_v49  ;;  %v13845_v55 = vld [vmem:[%s14916_s20 + $0x1e0] ss:$24 sps:$4 sm:$0xff]   ;;  %v13850_v61 = vld [vmem:[%s14916_s20 + $0x1ec] ss:$24 sps:$4 sm:$0xff]  }
 0xf2a   :  { %4653 = vmatpush1.bf16.msra.mxu1 %v13845_v55  ;;  %4693 = vmatprep.subr.bf16.mxu0 %v13850_v61  ;;  %v13860_v49 = vld [vmem:[%s14916_s20 + $0x40] ss:$24 sps:$4 sm:$0xff]   ;;  %v13937_v61 = vld [vmem:[%s17132_s29 + $0x74] ss:$8 sps:$4 sm:$0xff]  }
 0xf2b   :  { %v4124_v51 = vmul.f32 %v15800_v31, %v15800_v31  ;;  %v4125_v3 = vmul.f32 %v15802_v35, %v15802_v35  ;;  %4654 = vmatprep.subr.bf16.mxu1 %v13853_v2  ;;  %4694 = vmatpush1.bf16.msra.mxu0 %v13848_v10  ;;  %v13929_v55 = vld [vmem:[%s17132_s29 + $0x60] ss:$8 sps:$4 sm:$0xff]   ;;  %v13883_v10 = vld [vmem:[%s14916_s20 + $0x194] ss:$24 sps:$4 sm:$0xff]  }
 0xf2c   :  { %4695 = vmatprep.subr.bf16.mxu0 %v13856_v48  ;;  %v13878_v2 = vld [vmem:[%s14916_s20 + $0x160] ss:$24 sps:$4 sm:$0xff]   ;;  %v13881_v48 = vld [vmem:[%s14916_s20 + $0x190] ss:$24 sps:$4 sm:$0xff]  }
 0xf2d   :  { %v4126_v15 = vsel %vm1136_vm5, %v4125_v3, 0.0  ;;  %v13863_v3 = vld [vmem:[%s14916_s20 + $0x70] ss:$24 sps:$4 sm:$0xff]  }
 0xf2e   :  { %v4127_v22 = vadd.f32 %v4126_v15, %v4124_v51  ;;  %4655 = vmatpush1.bf16.msra.mxu1 %v13851_v45  ;;  %v13907_v51 = vld [vmem:[%s17132_s29 + $0x24] ss:$8 sps:$4 sm:$0xff]   ;;  %v13935_v45 = vld [vmem:[%s17132_s29 + $0x70] ss:$8 sps:$4 sm:$0xff]  }
 0xf2f   :  { %4714 = vmatprep.subr.bf16.mxu1 %v13859_v28  ;;  %4696 = vmatpush1.bf16.msra.mxu0 %v13854_v7  ;;  %v13868_v15 = vld [vmem:[%s14916_s20 + $0xa4] ss:$24 sps:$4 sm:$0xff]   ;;  %v13884_v7 = vld [vmem:[%s14916_s20 + $0x1c0] ss:$24 sps:$4 sm:$0xff]  }
 0xf30   :  { %4128 = vadd.xlane.f32.xlu0 %v4127_v22  ;;  %5403 = vmatprep.subr.bf16.mxu0 %v13895_v32  ;;  %v13905_v22 = vld [vmem:[%s17132_s29 + $0x20] ss:$8 sps:$4 sm:$0xff]   ;;  %v13886_v28 = vld [vmem:[%s14916_s20 + $0x1c4] ss:$24 sps:$4 sm:$0xff]   ;;  %v13889_v32 = vld [vmem:[%s14916_s20 + $0x1f4] ss:$24 sps:$4 sm:$0xff]  }
 0xfbd   :  { %v4129_v47 = vpop.xlane.xlu0 %4128 }
 0xfbe   :  { %v4130_v19 = vmul.f32 0.0052083335, %v4129_v47  ;;  %v13887_v47 = vld [vmem:[%s14916_s20 + $0x1f0] ss:$24 sps:$4 sm:$0xff]  }
 0xfc0   :  { %v4131_v24 = vadd.f32 1e-05, %v4130_v19  ;;  %v13892_v19 = vld [vmem:[%s14916_s20 + $0x224] ss:$24 sps:$4 sm:$0xff]  }
 0xfc2   :  { %14665 = vrsqrt.f32 %v4131_v24  ;;  %v13890_v24 = vld [vmem:[%s14916_s20 + $0x220] ss:$24 sps:$4 sm:$0xff]  }
 0xfcc   :  { %v14666_v18 = vpop.eup %14665 }
 0xfcd   :  { %v4133_v54 = vmul.f32 %v14666_v18, %v15800_v31  ;;  %v4134_v59 = vmul.f32 %v14666_v18, %v15802_v35  ;;  %v13865_v31 = vld [vmem:[%s14916_s20 + $0x74] ss:$24 sps:$4 sm:$0xff]   ;;  %v13899_v35 = vld [vmem:[%s17132_s29 + $0x10] ss:$8 sps:$4 sm:$0xff]  }
 0xfce   :  { %v13910_v18 = vld [vmem:[%s17132_s29 + $0x124] ss:$8 sps:$4 sm:$0xff]  }
 0xfcf   :  { %v4148_v30 = vmul.f32 %v4144_v37, %v4134_v59  ;;  %v4147_v34 = vmul.f32 %v4140_v39, %v4133_v54  ;;  %v13904_v37 = vld [vmem:[%s17132_s29 + $0x114] ss:$8 sps:$4 sm:$0xff]   ;;  %v13902_v39 = vld [vmem:[%s17132_s29 + $0x110] ss:$8 sps:$4 sm:$0xff]   ;;  %v13908_v54 = vld [vmem:[%s17132_s29 + $0x120] ss:$8 sps:$4 sm:$0xff]  }
 0xfd0   :  { %v13916_v59 = vld [vmem:[%s17132_s29 + $0x134] ss:$8 sps:$4 sm:$0xff]  }
 0xfd1   :  { %v15841_v38 = vadd.f32 %v4158_v4, %v4148_v30  ;;  %v15843_v42 = vadd.f32 %v4154_v12, %v4147_v34  ;;  %v13914_v4 = vld [vmem:[%s17132_s29 + $0x130] ss:$8 sps:$4 sm:$0xff]   ;;  %v13922_v12 = vld [vmem:[%s17132_s29 + $0x144] ss:$8 sps:$4 sm:$0xff]   ;;  %v13920_v30 = vld [vmem:[%s17132_s29 + $0x140] ss:$8 sps:$4 sm:$0xff]  }
 0xfd2   :  { %v13928_v34 = vld [vmem:[%s17132_s29 + $0x154] ss:$8 sps:$4 sm:$0xff]  }
 0xfd3   :  { %v4164_v36 = vpack.c.bf16 %v15841_v38, %v15841_v38  ;;  %v15850_v11 = vpack.c.bf16 %v15843_v42, %v15843_v42 }
 0xfd5   :  { %12128 = vmatprep.mubr.msk.bf16.mxu1 %vm1136_vm5, %v4164_v36  ;;  %12129 = vmatprep.mubr.msk.bf16.mxu0 %vm1136_vm5, %v4164_v36 }
 0xfd6   :  { %4665 = vmatmul.mubr.bf16.vlgmr.msra.gmra.mrb[76].mxu1 %v15850_v11  ;;  %4706 = vmatmul.mubr.bf16.vlgmr.msra.gmra.mrb[84].mxu0 %v15850_v11 }
 0xfd7   :  { %4715 = vmatpush1.bf16.msra.mxu1 %v13857_v29  ;;  %12130 = vmatprep.mubr.msk.bf16.mxu1 %vm1136_vm5, %v4164_v36  ;;  %v13926_v36 = vld [vmem:[%s17132_s29 + $0x150] ss:$8 sps:$4 sm:$0xff]   ;;  %v13934_v29 = vld [vmem:[%s17132_s29 + $0x164] ss:$8 sps:$4 sm:$0xff]  }
 0xfd8   :  { %4716 = vmatprep.subr.bf16.mxu1 %v13862_v9  ;;  %5404 = vmatpush1.bf16.msra.mxu0 %v13893_v27  ;;  %v13940_v9 = vld [vmem:[%s17132_s29 + $0x174] ss:$8 sps:$4 sm:$0xff]   ;;  %v13938_v27 = vld [vmem:[%s17132_s29 + $0x170] ss:$8 sps:$4 sm:$0xff]  }
 0xfd9   :  { %5405 = vmatprep.subr.bf16.mxu0 %v13901_v46  ;;  %v13941_v46 = vld [vmem:[%s17132_s29 + $0x80] ss:$8 sps:$4 sm:$0xff]  }
 0xfdb   :  { %4717 = vmatpush1.bf16.msra.mxu1 %v13860_v49  ;;  %v13943_v49 = vld [vmem:[%s17132_s29 + $0x84] ss:$8 sps:$4 sm:$0xff]  }
 0xfdc   :  { %4718 = vmatprep.subr.bf16.mxu1 %v13865_v31  ;;  %5406 = vmatpush1.bf16.msra.mxu0 %v13899_v35  ;;  %v13944_v31 = vld [vmem:[%s17132_s29 + $0x180] ss:$8 sps:$4 sm:$0xff]   ;;  %v13946_v35 = vld [vmem:[%s17132_s29 + $0x184] ss:$8 sps:$4 sm:$0xff]  }
 0xfdd   :  { %5407 = vmatprep.subr.bf16.mxu0 %v13907_v51  ;;  %v13949_v51 = vld [vmem:[%s17132_s29 + $0x94] ss:$8 sps:$4 sm:$0xff]  }
 0xfdf   :  { %4719 = vmatpush1.bf16.msra.mxu1 %v13863_v3  ;;  %v13952_v3 = vld [vmem:[%s17132_s29 + $0x194] ss:$8 sps:$4 sm:$0xff]  }
 0xfe0   :  { %4720 = vmatprep.subr.bf16.mxu1 %v13868_v15  ;;  %5408 = vmatpush1.bf16.msra.mxu0 %v13905_v22  ;;  %v13947_v15 = vld [vmem:[%s17132_s29 + $0x90] ss:$8 sps:$4 sm:$0xff]  }
 0xfe1   :  { %5409 = vmatprep.subr.bf16.mxu0 %v13913_v40  ;;  %v13950_v22 = vld [vmem:[%s17132_s29 + $0x190] ss:$8 sps:$4 sm:$0xff]   ;;  %v13955_v40 = vld [vmem:[%s17132_s29 + $0xa4] ss:$8 sps:$4 sm:$0xff]  }
 0xfe3   :  { %4721 = vmatpush1.bf16.msra.mxu1 %v13866_v50  ;;  %v13958_v50 = vld [vmem:[%s17132_s29 + $0x1a4] ss:$8 sps:$4 sm:$0xff]  }
 0xfe4   :  { %4722 = vmatprep.subr.bf16.mxu1 %v13871_v52  ;;  %5410 = vmatpush1.bf16.msra.mxu0 %v13911_v23  ;;  %v13953_v52 = vld [vmem:[%s17132_s29 + $0xa0] ss:$8 sps:$4 sm:$0xff]  }
 0xfe5   :  { %5411 = vmatprep.subr.bf16.mxu0 %v13919_v21  ;;  %v13956_v23 = vld [vmem:[%s17132_s29 + $0x1a0] ss:$8 sps:$4 sm:$0xff]   ;;  %v13961_v21 = vld [vmem:[%s17132_s29 + $0xb4] ss:$8 sps:$4 sm:$0xff]  }
 0xfe7   :  { %4723 = vmatpush1.bf16.msra.mxu1 %v13869_v60  ;;  %v13964_v60 = vld [vmem:[%s17132_s29 + $0x1b4] ss:$8 sps:$4 sm:$0xff]  }
 0xfe8   :  { %4724 = vmatprep.subr.bf16.mxu1 %v13874_v16  ;;  %5412 = vmatpush1.bf16.msra.mxu0 %v13917_v20  ;;  %v13959_v16 = vld [vmem:[%s17132_s29 + $0xb0] ss:$8 sps:$4 sm:$0xff]  }
 0xfe9   :  { %5413 = vmatprep.subr.bf16.mxu0 %v13925_v56  ;;  %v13962_v20 = vld [vmem:[%s17132_s29 + $0x1b0] ss:$8 sps:$4 sm:$0xff]   ;;  %v13967_v56 = vld [vmem:[%s17132_s29 + $0xc4] ss:$8 sps:$4 sm:$0xff]  }
 0xfeb   :  { %4725 = vmatpush1.bf16.msra.mxu1 %v13872_v57  ;;  %v13970_v57 = vld [vmem:[%s17132_s29 + $0x1c4] ss:$8 sps:$4 sm:$0xff]  }
 0xfec   :  { %4726 = vmatprep.subr.bf16.mxu1 %v13877_v62  ;;  %5414 = vmatpush1.bf16.msra.mxu0 %v13923_v53  ;;  %v13965_v62 = vld [vmem:[%s17132_s29 + $0xc0] ss:$8 sps:$4 sm:$0xff]  }
 0xfed   :  { %5415 = vmatprep.subr.bf16.mxu0 %v13931_v17  ;;  %v13968_v53 = vld [vmem:[%s17132_s29 + $0x1c0] ss:$8 sps:$4 sm:$0xff]   ;;  %v13973_v17 = vld [vmem:[%s17132_s29 + $0xd4] ss:$8 sps:$4 sm:$0xff]  }
 0xfef   :  { %4727 = vmatpush1.bf16.msra.mxu1 %v13875_v41  ;;  %v13976_v41 = vld [vmem:[%s17132_s29 + $0x1d4] ss:$8 sps:$4 sm:$0xff]  }
 0xff0   :  { %4728 = vmatprep.subr.bf16.mxu1 %v13880_v63  ;;  %5416 = vmatpush1.bf16.msra.mxu0 %v13929_v55  ;;  %v13971_v63 = vld [vmem:[%s17132_s29 + $0xd0] ss:$8 sps:$4 sm:$0xff]  }
 0xff1   :  { %5417 = vmatprep.subr.bf16.mxu0 %v13937_v61  ;;  %v13974_v55 = vld [vmem:[%s17132_s29 + $0x1d0] ss:$8 sps:$4 sm:$0xff]   ;;  %v13979_v61 = vld [vmem:[%s17132_s29 + $0xe4] ss:$8 sps:$4 sm:$0xff]  }
 0xff3   :  { %4729 = vmatpush1.bf16.msra.mxu1 %v13878_v2  ;;  %v13982_v2 = vld [vmem:[%s17132_s29 + $0x1e4] ss:$8 sps:$4 sm:$0xff]  }
 0xff4   :  { %4730 = vmatprep.subr.bf16.mxu1 %v13883_v10  ;;  %5418 = vmatpush1.bf16.msra.mxu0 %v13935_v45  ;;  %v13977_v10 = vld [vmem:[%s17132_s29 + $0xe0] ss:$8 sps:$4 sm:$0xff]  }
 0xff5   :  { %5419 = vmatprep.subr.bf16.mxu0 %v13943_v49  ;;  %v13980_v45 = vld [vmem:[%s17132_s29 + $0x1e0] ss:$8 sps:$4 sm:$0xff]  }
 0xff7   :  { %4731 = vmatpush1.bf16.msra.mxu1 %v13881_v48  ;;  %v13985_v48 = vld [vmem:[%s17132_s29 + $0xf4] ss:$8 sps:$4 sm:$0xff]  }
 0xff8   :  { %4732 = vmatprep.subr.bf16.mxu1 %v13886_v28  ;;  %5420 = vmatpush1.bf16.msra.mxu0 %v13941_v46  ;;  %v13988_v28 = vld [vmem:[%s17132_s29 + $0x1f4] ss:$8 sps:$4 sm:$0xff]  }
 0xff9   :  { %5421 = vmatprep.subr.bf16.mxu0 %v13949_v51 }
 0xffb   :  { %4733 = vmatpush1.bf16.msra.mxu1 %v13884_v7  ;;  %v13983_v7 = vld [vmem:[%s17132_s29 + $0xf0] ss:$8 sps:$4 sm:$0xff]  }
 0xffc   :  { %4734 = vmatprep.subr.bf16.mxu1 %v13889_v32  ;;  %5422 = vmatpush1.bf16.msra.mxu0 %v13947_v15  ;;  %v13986_v32 = vld [vmem:[%s17132_s29 + $0x1f0] ss:$8 sps:$4 sm:$0xff]  }
 0xffd   :  { %5423 = vmatprep.subr.bf16.mxu0 %v13955_v40 }
 0xfff   :  { %4735 = vmatpush1.bf16.msra.mxu1 %v13887_v47  ;;  %v13991_v47 = vld [vmem:[%s17132_s29 + $0x204] ss:$8 sps:$4 sm:$0xff]  }
0x1000   :  { %4736 = vmatprep.subr.bf16.mxu1 %v13892_v19  ;;  %5424 = vmatpush1.bf16.msra.mxu0 %v13953_v52  ;;  %v15945_v19 = vld [vmem:[%s17135_s4] sm:$0x3f] }
0x1001   :  { %5425 = vmatprep.subr.bf16.mxu0 %v13961_v21 }
0x1003   :  { %4737 = vmatpush1.bf16.msra.mxu1 %v13890_v24  ;;  %v4242_v24 = vrot.slane %v15945_v19, %v15079_v13 }
0x1004   :  { %5444 = vmatprep.subr.bf16.mxu1 %v13898_v5  ;;  %5426 = vmatpush1.bf16.msra.mxu0 %v13959_v16  ;;  %v4250_v5 = vrot.slane %v15945_v19, %v15173_v44 }
0x1005   :  { %5427 = vmatprep.subr.bf16.mxu0 %v13967_v56 }
0x1006   :  { %4747 = vmatmul.mubr.bf16.vlgmr.msra.gmra.mrb[80].mxu1 %v15850_v11  ;;  %v13932_v11 = vld [vmem:[%s17132_s29 + $0x160] ss:$8 sps:$4 sm:$0xff]  }
0x1007   :  { %5445 = vmatpush1.bf16.msra.mxu1 %v13896_v33  ;;  %v4246_v33 = vrot.slane %v15945_v19, %v15082_v14 }
0x1008   :  { %5446 = vmatprep.subr.bf16.mxu1 %v13904_v37  ;;  %5428 = vmatpush1.bf16.msra.mxu0 %v13965_v62  ;;  %v4254_v37 = vrot.slane %v15945_v19, %v15228_v25 }
0x1009   :  { %5429 = vmatprep.subr.bf16.mxu0 %v13973_v17 }
0x100b   :  { %5447 = vmatpush1.bf16.msra.mxu1 %v13902_v39 }
0x100c   :  { %5448 = vmatprep.subr.bf16.mxu1 %v13910_v18  ;;  %5430 = vmatpush1.bf16.msra.mxu0 %v13971_v63 }
0x100d   :  { %5431 = vmatprep.subr.bf16.mxu0 %v13979_v61 }
0x100f   :  { %5449 = vmatpush1.bf16.msra.mxu1 %v13908_v54 }
0x1010   :  { %5450 = vmatprep.subr.bf16.mxu1 %v13916_v59  ;;  %5432 = vmatpush1.bf16.msra.mxu0 %v13977_v10 }
0x1011   :  { %5433 = vmatprep.subr.bf16.mxu0 %v13985_v48 }
0x1013   :  { %5451 = vmatpush1.bf16.msra.mxu1 %v13914_v4 }
0x1014   :  { %5452 = vmatprep.subr.bf16.mxu1 %v13922_v12  ;;  %5434 = vmatpush1.bf16.msra.mxu0 %v13983_v7 }
0x1015   :  { %5485 = vmatprep.subr.bf16.mxu0 %v13991_v47 }
0x1017   :  { %5453 = vmatpush1.bf16.msra.mxu1 %v13920_v30 }
0x1018   :  { %5454 = vmatprep.subr.bf16.mxu1 %v13928_v34 }
0x101b   :  { %5455 = vmatpush1.bf16.msra.mxu1 %v13926_v36 }
0x101c   :  { %5456 = vmatprep.subr.bf16.mxu1 %v13934_v29 }
0x101f   :  { %5457 = vmatpush1.bf16.msra.mxu1 %v13932_v11 }
0x1020   :  { %5458 = vmatprep.subr.bf16.mxu1 %v13940_v9 }
0x1023   :  { %5459 = vmatpush1.bf16.msra.mxu1 %v13938_v27 }
0x1024   :  { %5460 = vmatprep.subr.bf16.mxu1 %v13946_v35 }
0x1027   :  { %5461 = vmatpush1.bf16.msra.mxu1 %v13944_v31 }
0x1028   :  { %5462 = vmatprep.subr.bf16.mxu1 %v13952_v3 }
0x102b   :  { %5463 = vmatpush1.bf16.msra.mxu1 %v13950_v22 }
0x102c   :  { %5464 = vmatprep.subr.bf16.mxu1 %v13958_v50 }
0x102f   :  { %5465 = vmatpush1.bf16.msra.mxu1 %v13956_v23 }
0x1030   :  { %5466 = vmatprep.subr.bf16.mxu1 %v13964_v60 }
0x1033   :  { %5467 = vmatpush1.bf16.msra.mxu1 %v13962_v20 }
0x1034   :  { %5468 = vmatprep.subr.bf16.mxu1 %v13970_v57 }
0x1037   :  { %5469 = vmatpush1.bf16.msra.mxu1 %v13968_v53 }
0x1038   :  { %5470 = vmatprep.subr.bf16.mxu1 %v13976_v41 }
0x103b   :  { %5471 = vmatpush1.bf16.msra.mxu1 %v13974_v55 }
0x103c   :  { %5472 = vmatprep.subr.bf16.mxu1 %v13982_v2 }
0x103f   :  { %5473 = vmatpush1.bf16.msra.mxu1 %v13980_v45 }
0x1040   :  { %5474 = vmatprep.subr.bf16.mxu1 %v13988_v28 }
0x1043   :  { %5475 = vmatpush1.bf16.msra.mxu1 %v13986_v32 }
0x10a9   :  { %v4666_v39 = vpop.f32.mrb[76].mxu1  ;;  %v4707_v18 = vpop.f32.mrb[84].mxu0 }
0x10aa   :  { %v4667_v54 = vadd.f32 %v4666_v39, %v4242_v24  ;;  %v4708_v59 = vadd.f32 %v4707_v18, %v4250_v5  ;;  %v4668_v4 = vpop.f32.mrb[77].mxu1  ;;  %v4709_v12 = vpop.f32.mrb[85].mxu0 }
0x10ab   :  { %v4669_v30 = vadd.f32 %v4668_v4, %v4246_v33  ;;  %v4710_v34 = vadd.f32 %v4709_v12, %v4254_v37  ;;  %v4670_v36 = vpop.f32.mrb[78].mxu1  ;;  %v4711_v29 = vpop.f32.mrb[86].mxu0  ;;  %v13989_v37 = vld [vmem:[%s17132_s29 + $0x200] ss:$8 sps:$4 sm:$0xff]   ;;  %v13994_v4 = vld [vmem:[%s17132_s29 + $0x214] ss:$8 sps:$4 sm:$0xff]  }
0x10ac   :  { %v4755_v11 = vmul.f32 %v4667_v54, %v4667_v54  ;;  %v4757_v9 = vmul.f32 %v4708_v59, %v4708_v59  ;;  %v4671_v27 = vpop.f32.mrb[79].mxu1  ;;  %v4712_v46 = vpop.f32.mrb[87].mxu0  ;;  %v4261_v36 = vsub.s32 5, %v15075_v6  ;;  %v13998_v29 = vld [vmem:[%s17132_s29 + $0x230] ss:$8 sps:$4 sm:$0xff]  }
0x10ad   :  { %v4756_v49 = vmul.f32 %v4669_v30, %v4669_v30  ;;  %v4758_v31 = vmul.f32 %v4710_v34, %v4710_v34 }
0x10ae   :  { %v4761_v35 = vmul.f32 %v4755_v11, %v4667_v54  ;;  %v4763_v51 = vmul.f32 %v4757_v9, %v4708_v59  ;;  %v4258_v11 = vrot.slane %v15945_v19, %v15231_v26  ;;  %v14003_v9 = vld [vmem:[%s17132_s29 + $0x244] ss:$8 sps:$4 sm:$0xff]   ;;  %v4262_v27 = vrot.slane %v15945_v19, %v4261_v36  ;;  %v14004_v19 = vld [vmem:[%s17132_s29 + $0x250] ss:$8 sps:$4 sm:$0xff]  }
0x10af   :  { %v4762_v3 = vmul.f32 %v4756_v49, %v4669_v30  ;;  %v4764_v15 = vmul.f32 %v4758_v31, %v4710_v34  ;;  %v14001_v49 = vld [vmem:[%s17132_s29 + $0x240] ss:$8 sps:$4 sm:$0xff]  }
0x10b0   :  { %v4767_v22 = vmul.f32 0.044715, %v4761_v35  ;;  %v4769_v40 = vmul.f32 0.044715, %v4763_v51  ;;  %v14006_v51 = vld [vmem:[%s17132_s29 + $0x254] ss:$8 sps:$4 sm:$0xff]  }
0x10b1   :  { %v4768_v50 = vmul.f32 0.044715, %v4762_v3  ;;  %v4770_v52 = vmul.f32 0.044715, %v4764_v15 }
0x10b2   :  { %v4773_v23 = vadd.f32 %v4767_v22, %v4667_v54  ;;  %v4775_v21 = vadd.f32 %v4769_v40, %v4708_v59 }
0x10b3   :  { %v4774_v60 = vadd.f32 %v4768_v50, %v4669_v30  ;;  %v4776_v16 = vadd.f32 %v4770_v52, %v4710_v34  ;;  %v14009_v52 = vld [vmem:[%s17132_s29 + $0x264] ss:$8 sps:$4 sm:$0xff]  }
0x10b4   :  { %v4779_v20 = vmul.f32 0.7978846, %v4773_v23  ;;  %v4781_v56 = vmul.f32 0.7978846, %v4775_v21 }
0x10b5   :  { %v4780_v57 = vmul.f32 0.7978846, %v4774_v60  ;;  %v4782_v62 = vmul.f32 0.7978846, %v4776_v16  ;;  %v14007_v16 = vld [vmem:[%s17132_s29 + $0x260] ss:$8 sps:$4 sm:$0xff]  }
0x10b6   :  { %14667 = vtanh.f32 %v4779_v20  ;;  %v14012_v20 = vld [vmem:[%s17132_s29 + $0x274] ss:$8 sps:$4 sm:$0xff]  }
0x10b7   :  { %14669 = vtanh.f32 %v4781_v56 }
0x10b8   :  { %14671 = vtanh.f32 %v4780_v57 }
0x10b9   :  { %14673 = vtanh.f32 %v4782_v62 }
0x10c0   :  { %v14668_v53 = vpop.eup %14667 }
0x10c1   :  { %v14670_v17 = vpop.eup %14669  ;;  %v4791_v41 = vadd.f32 1.0, %v14668_v53  ;;  %v14010_v53 = vld [vmem:[%s17132_s29 + $0x270] ss:$8 sps:$4 sm:$0xff]  }
0x10c2   :  { %v14672_v63 = vpop.eup %14671  ;;  %v4793_v55 = vadd.f32 1.0, %v14670_v17  ;;  %v14015_v17 = vld [vmem:[%s17132_s29 + $0x284] ss:$8 sps:$4 sm:$0xff]  }
0x10c3   :  { %v14674_v61 = vpop.eup %14673  ;;  %v4792_v2 = vadd.f32 1.0, %v14672_v63  ;;  %v4797_v10 = vmul.f32 0.5, %v4791_v41  ;;  %v14013_v63 = vld [vmem:[%s17132_s29 + $0x280] ss:$8 sps:$4 sm:$0xff]  }
0x10c4   :  { %v4794_v45 = vadd.f32 1.0, %v14674_v61  ;;  %v4799_v48 = vmul.f32 0.5, %v4793_v55  ;;  %v14018_v55 = vld [vmem:[%s17132_s29 + $0x294] ss:$8 sps:$4 sm:$0xff]  }
0x10c5   :  { %v4798_v28 = vmul.f32 0.5, %v4792_v2  ;;  %v4803_v32 = vmul.f32 %v4797_v10, %v4667_v54  ;;  %v13992_v54 = vld [vmem:[%s17132_s29 + $0x210] ss:$8 sps:$4 sm:$0xff]   ;;  %v14021_v10 = vld [vmem:[%s17132_s29 + $0x2a4] ss:$8 sps:$4 sm:$0xff]  }
0x10c6   :  { %v4800_v7 = vmul.f32 0.5, %v4794_v45  ;;  %v4805_v24 = vmul.f32 %v4799_v48, %v4708_v59  ;;  %v13997_v59 = vld [vmem:[%s17132_s29 + $0x224] ss:$8 sps:$4 sm:$0xff]   ;;  %v14016_v2 = vld [vmem:[%s17132_s29 + $0x290] ss:$8 sps:$4 sm:$0xff]  }
0x10c7   :  { %v4804_v47 = vmul.f32 %v4798_v28, %v4669_v30  ;;  %v4809_v18 = vpack.c.bf16 %v4803_v32, %v4803_v32  ;;  %v13995_v30 = vld [vmem:[%s17132_s29 + $0x220] ss:$8 sps:$4 sm:$0xff]   ;;  %v14024_v28 = vld [vmem:[%s17132_s29 + $0x2b4] ss:$8 sps:$4 sm:$0xff]  }
0x10c8   :  { %v4806_v5 = vmul.f32 %v4800_v7, %v4710_v34  ;;  %v4811_v12 = vpack.c.bf16 %v4805_v24, %v4805_v24  ;;  %v14000_v34 = vld [vmem:[%s17132_s29 + $0x234] ss:$8 sps:$4 sm:$0xff]   ;;  %v14019_v48 = vld [vmem:[%s17132_s29 + $0x2a0] ss:$8 sps:$4 sm:$0xff]  }
0x10c9   :  { %v4810_v33 = vpack.c.bf16 %v4804_v47, %v4804_v47  ;;  %v14022_v47 = vld [vmem:[%s17132_s29 + $0x2b0] ss:$8 sps:$4 sm:$0xff]  }
0x10ca   :  { %v4812_v39 = vpack.c.bf16 %v4806_v5, %v4806_v5  ;;  %v14027_v5 = vld [vmem:[%s17132_s29 + $0x2c4] ss:$8 sps:$4 sm:$0xff]  }
0x10cb   :  { %5435 = vmatprep.mubr.bf16.mxu0 %v4810_v33 }
0x10cc   :  { %5476 = vmatprep.mubr.bf16.mxu1 %v4812_v39  ;;  %5436 = vmatmul.mubr.bf16.vlgmr.msra.gmra.mrb[88].mxu0 %v4809_v18  ;;  %v14030_v39 = vld [vmem:[%s17132_s29 + $0x2d4] ss:$8 sps:$4 sm:$0xff]  }
0x10cd   :  { %5477 = vmatmul.mubr.bf16.vlgmr.msra.gmra.mrb[84].mxu1 %v4811_v12  ;;  %5486 = vmatpush1.bf16.msra.mxu0 %v13989_v37  ;;  %v14025_v37 = vld [vmem:[%s17132_s29 + $0x2c0] ss:$8 sps:$4 sm:$0xff]   ;;  %v14033_v12 = vld [vmem:[%s17132_s29 + $0x2e4] ss:$8 sps:$4 sm:$0xff]  }
0x10ce   :  { %5487 = vmatprep.subr.bf16.mxu0 %v13994_v4  ;;  %v14028_v4 = vld [vmem:[%s17132_s29 + $0x2d0] ss:$8 sps:$4 sm:$0xff]  }
0x10d1   :  { %5488 = vmatpush1.bf16.msra.mxu0 %v13992_v54 }
0x10d2   :  { %5489 = vmatprep.subr.bf16.mxu0 %v13997_v59  ;;  %v14031_v59 = vld [vmem:[%s17132_s29 + $0x2e0] ss:$8 sps:$4 sm:$0xff]  }
0x10d5   :  { %5490 = vmatpush1.bf16.msra.mxu0 %v13995_v30  ;;  %v14036_v30 = vld [vmem:[%s17132_s29 + $0x2f4] ss:$8 sps:$4 sm:$0xff]  }
0x10d6   :  { %5491 = vmatprep.subr.bf16.mxu0 %v14000_v34 }
0x10d9   :  { %5492 = vmatpush1.bf16.msra.mxu0 %v13998_v29  ;;  %v4748_v46 = vpop.f32.mrb[80].mxu1  ;;  %v14034_v29 = vld [vmem:[%s17132_s29 + $0x2f0] ss:$8 sps:$4 sm:$0xff]  }
0x10da   :  { %v15970_v31 = vadd.f32 %v4748_v46, %v4258_v11  ;;  %v4750_v35 = vpop.f32.mrb[81].mxu1  ;;  %5493 = vmatprep.subr.bf16.mxu0 %v14003_v9 }
0x10db   :  { %v4751_v3 = vadd.f32 %v4750_v35, %v4262_v27  ;;  %v4752_v15 = vpop.f32.mrb[82].mxu1  ;;  %v4911_v27 = vld [vmem:[%s17136_s15] sm:$0x3] }
0x10dc   :  { %v4753_v22 = vpop.f32.mrb[83].mxu1  ;;  %v4759_v40 = vmul.f32 %v15970_v31, %v15970_v31  ;;  %v4916_v46 = vrot.slane %v4911_v27, %v15079_v13 }
0x10dd   :  { %v4760_v50 = vmul.f32 %v4751_v3, %v4751_v3  ;;  %5494 = vmatpush1.bf16.msra.mxu0 %v14001_v49  ;;  %v4920_v49 = vrot.slane %v4911_v27, %v15082_v14 }
0x10de   :  { %5495 = vmatprep.subr.bf16.mxu0 %v14006_v51  ;;  %v4765_v21 = vmul.f32 %v4759_v40, %v15970_v31 }
0x10df   :  { %v4766_v23 = vmul.f32 %v4760_v50, %v4751_v3 }
0x10e0   :  { %v4771_v57 = vmul.f32 0.044715, %v4765_v21 }
0x10e1   :  { %v4772_v60 = vmul.f32 0.044715, %v4766_v23  ;;  %5496 = vmatpush1.bf16.msra.mxu0 %v14004_v19 }
0x10e2   :  { %5497 = vmatprep.subr.bf16.mxu0 %v14009_v52  ;;  %v4777_v41 = vadd.f32 %v4771_v57, %v15970_v31 }
0x10e3   :  { %v4778_v56 = vadd.f32 %v4772_v60, %v4751_v3 }
0x10e4   :  { %v4783_v61 = vmul.f32 0.7978846, %v4777_v41 }
0x10e5   :  { %v4784_v62 = vmul.f32 0.7978846, %v4778_v56  ;;  %5498 = vmatpush1.bf16.msra.mxu0 %v14007_v16 }
0x10e6   :  { %5499 = vmatprep.subr.bf16.mxu0 %v14012_v20 }
0x10e7   :  { %14675 = vtanh.f32 %v4784_v62 }
0x10e8   :  { %14677 = vtanh.f32 %v4783_v61  ;;  %v14039_v61 = vld [vmem:[%s14886_s14 + $0x1e4] ss:$20 sps:$4 sm:$0xff]  }
0x10e9   :  { %5500 = vmatpush1.bf16.msra.mxu0 %v14010_v53  ;;  %5992 = vmatprep.subr.bf16.mxu1 %v14039_v61 }
0x10ea   :  { %5501 = vmatprep.subr.bf16.mxu0 %v14015_v17 }
0x10ed   :  { %5502 = vmatpush1.bf16.msra.mxu0 %v14013_v63 }
0x10ee   :  { %5503 = vmatprep.subr.bf16.mxu0 %v14018_v55  ;;  %v14037_v55 = vld [vmem:[%s14886_s14 + $0x1e0] ss:$20 sps:$4 sm:$0xff]  }
0x10ef   :  { %5993 = vmatpush1.bf16.msra.mxu1 %v14037_v55 }
0x10f1   :  { %v14676_v45 = vpop.eup %14675  ;;  %5504 = vmatpush1.bf16.msra.mxu0 %v14016_v2  ;;  %v14040_v2 = vld [vmem:[%s14886_s14 + $0x1f0] ss:$20 sps:$4 sm:$0xff]  }
0x10f2   :  { %5505 = vmatprep.subr.bf16.mxu0 %v14021_v10  ;;  %v4796_v7 = vadd.f32 1.0, %v14676_v45  ;;  %v14678_v18 = vpop.eup %14677  ;;  %v14043_v10 = vld [vmem:[%s14886_s14 + $0x20c] ss:$20 sps:$4 sm:$0xff]  }
0x10f3   :  { %v4795_v54 = vadd.f32 1.0, %v14678_v18  ;;  %v14044_v45 = vld [vmem:[%s14886_s14 + $0x218] ss:$20 sps:$4 sm:$0xff]   ;;  %5994 = vmatprep.subr.bf16.mxu1 %v14043_v10  ;;  %v14057_v18 = vld [vmem:[%s14886_s14 + $0x2a8] ss:$20 sps:$4 sm:$0xff]  }
0x10f4   :  { %v4802_v32 = vmul.f32 0.5, %v4796_v7  ;;  %v14051_v7 = vld [vmem:[%s14886_s14 + $0x25c] ss:$20 sps:$4 sm:$0xff]  }
0x10f5   :  { %5506 = vmatpush1.bf16.msra.mxu0 %v14019_v48  ;;  %v4801_v34 = vmul.f32 0.5, %v4795_v54  ;;  %v14048_v48 = vld [vmem:[%s14886_s14 + $0x240] ss:$20 sps:$4 sm:$0xff]  }
0x10f6   :  { %5507 = vmatprep.subr.bf16.mxu0 %v14024_v28  ;;  %v4808_v24 = vmul.f32 %v4802_v32, %v4751_v3  ;;  %v14045_v28 = vld [vmem:[%s14886_s14 + $0x230] ss:$20 sps:$4 sm:$0xff]   ;;  %v14052_v32 = vld [vmem:[%s14886_s14 + $0x268] ss:$20 sps:$4 sm:$0xff]  }
0x10f7   :  { %v4807_v11 = vmul.f32 %v4801_v34, %v15970_v31 }
0x10f8   :  { %v4814_v33 = vpack.c.bf16 %v4808_v24, %v4808_v24  ;;  %v14055_v24 = vld [vmem:[%s14886_s14 + $0x284] ss:$20 sps:$4 sm:$0xff]  }
0x10f9   :  { %5508 = vmatpush1.bf16.msra.mxu0 %v14022_v47  ;;  %v4813_v9 = vpack.c.bf16 %v4807_v11, %v4807_v11  ;;  %v14049_v47 = vld [vmem:[%s14886_s14 + $0x258] ss:$20 sps:$4 sm:$0xff]  }
0x10fa   :  { %5517 = vmatprep.mubr.bf16.mxu0 %v4814_v33  ;;  %5509 = vmatprep.subr.bf16.mxu0 %v14027_v5  ;;  %v14056_v5 = vld [vmem:[%s14886_s14 + $0x290] ss:$20 sps:$4 sm:$0xff]   ;;  %v14053_v33 = vld [vmem:[%s14886_s14 + $0x280] ss:$20 sps:$4 sm:$0xff]  }
0x10fd   :  { %5510 = vmatpush1.bf16.msra.mxu0 %v14025_v37  ;;  %v14059_v37 = vld [vmem:[%s14886_s14 + $0x2ac] ss:$20 sps:$4 sm:$0xff]  }
0x10fe   :  { %5511 = vmatprep.subr.bf16.mxu0 %v14030_v39  ;;  %v14060_v39 = vld [vmem:[%s14886_s14 + $0x2b8] ss:$20 sps:$4 sm:$0xff]  }
0x1101   :  { %5512 = vmatpush1.bf16.msra.mxu0 %v14028_v4  ;;  %v14063_v4 = vld [vmem:[%s14886_s14 + $0x2d4] ss:$20 sps:$4 sm:$0xff]  }
0x1102   :  { %5513 = vmatprep.subr.bf16.mxu0 %v14033_v12  ;;  %v14061_v12 = vld [vmem:[%s14886_s14 + $0x2d0] ss:$20 sps:$4 sm:$0xff]  }
0x1105   :  { %5514 = vmatpush1.bf16.msra.mxu0 %v14031_v59 }
0x1106   :  { %5515 = vmatprep.subr.bf16.mxu0 %v14036_v30 }
0x1109   :  { %5516 = vmatpush1.bf16.msra.mxu0 %v14034_v29 }
0x110a   :  { %6074 = vmatprep.subr.bf16.mxu0 %v14820_v8 }
0x110c   :  { %5518 = vmatmul.mubr.bf16.vlgmr.msra.gmra.mrb[92].mxu0 %v4813_v9 }
0x110d   :  { %6075 = vmatpush1.bf16.msra.mxu0 %v14040_v2 }
0x110e   :  { %6076 = vmatprep.subr.bf16.mxu0 %v14820_v8 }
0x1111   :  { %6077 = vmatpush1.bf16.msra.mxu0 %v14044_v45 }
0x1112   :  { %6078 = vmatprep.subr.bf16.mxu0 %v14820_v8 }
0x1115   :  { %6079 = vmatpush1.bf16.msra.mxu0 %v14048_v48 }
0x1116   :  { %6080 = vmatprep.subr.bf16.mxu0 %v14820_v8 }
0x1119   :  { %6081 = vmatpush1.bf16.msra.mxu0 %v14052_v32  ;;  %v14085_v32 = vld [vmem:[%s14886_s14 + $0x1e8] ss:$20 sps:$4 sm:$0xff]  }
0x111a   :  { %6082 = vmatprep.subr.bf16.mxu0 %v14820_v8 }
0x111d   :  { %6083 = vmatpush1.bf16.msra.mxu0 %v14056_v5  ;;  %v14088_v5 = vld [vmem:[%s14886_s14 + $0x210] ss:$20 sps:$4 sm:$0xff]  }
0x111e   :  { %6084 = vmatprep.subr.bf16.mxu0 %v14820_v8 }
0x1121   :  { %6085 = vmatpush1.bf16.msra.mxu0 %v14060_v39  ;;  %v14096_v39 = vld [vmem:[%s14886_s14 + $0x264] ss:$20 sps:$4 sm:$0xff]  }
0x1122   :  { %6086 = vmatprep.subr.bf16.mxu0 %v14820_v8 }
0x119f   :  { %v5437_v35 = vpop.f32.mrb[88].mxu0 }
0x11a0   :  { %v5438_v51 = vadd.f32 %v5437_v35, %v4916_v46  ;;  %v5478_v3 = vpop.f32.mrb[84].mxu1  ;;  %v5439_v15 = vpop.f32.mrb[89].mxu0  ;;  %v14064_v46 = vld [vmem:[%s14886_s14 + $0x2e0] ss:$20 sps:$4 sm:$0xff]   ;;  %v14067_v35 = vld [vmem:[%s14886_s14 + $0x2fc] ss:$20 sps:$4 sm:$0xff]  }
0x11a1   :  { %v5440_v22 = vadd.f32 %v5439_v15, %v4920_v49  ;;  %v5480_v40 = vpop.f32.mrb[85].mxu1  ;;  %v5441_v50 = vpop.f32.mrb[90].mxu0  ;;  %v14065_v49 = vld [vmem:[%s14886_s14 + $0x2f8] ss:$20 sps:$4 sm:$0xff]   ;;  %6087 = vmatpush1.bf16.msra.mxu0 %v14064_v46  ;;  %v14069_v15 = vld [vmem:[%s14886_s14 + $0x320] ss:$20 sps:$4 sm:$0xff]  }
0x11a2   :  { %v5479_v19 = vadd.f32 %v5478_v3, %v5438_v51  ;;  %v5482_v31 = vpop.f32.mrb[86].mxu1  ;;  %v5442_v52 = vpop.f32.mrb[91].mxu0  ;;  %v14068_v51 = vld [vmem:[%s14886_s14 + $0x308] ss:$20 sps:$4 sm:$0xff]   ;;  %v14071_v3 = vld [vmem:[%s14886_s14 + $0x324] ss:$20 sps:$4 sm:$0xff]   ;;  %6088 = vmatprep.subr.bf16.mxu0 %v14820_v8 }
0x11a3   :  { %v5481_v23 = vadd.f32 %v5480_v40, %v5440_v22  ;;  %v5483_v21 = vpop.f32.mrb[87].mxu1  ;;  %v14075_v22 = vld [vmem:[%s14886_s14 + $0x34c] ss:$20 sps:$4 sm:$0xff]   ;;  %v14072_v40 = vld [vmem:[%s14886_s14 + $0x330] ss:$20 sps:$4 sm:$0xff]  }
0x11a4   :  { %v14073_v50 = vld [vmem:[%s14886_s14 + $0x348] ss:$20 sps:$4 sm:$0xff]   ;;  %v14076_v31 = vld [vmem:[%s14886_s14 + $0x358] ss:$20 sps:$4 sm:$0xff]   ;;  %v14077_v52 = vld [vmem:[%s14886_s14 + $0x370] ss:$20 sps:$4 sm:$0xff]  }
0x11a5   :  { %6089 = vmatpush1.bf16.msra.mxu0 %v14068_v51  ;;  %v14080_v21 = vld [vmem:[%s14886_s14 + $0x380] ss:$20 sps:$4 sm:$0xff]   ;;  %v14115_v51 = vld [vmem:[%s14886_s14 + $0x378] ss:$20 sps:$4 sm:$0xff]  }
0x11a6   :  { %6090 = vmatprep.subr.bf16.mxu0 %v14820_v8  ;;  %v14114_v46 = vld [vmem:[%s14886_s14 + $0x354] ss:$20 sps:$4 sm:$0xff]  }
0x11a9   :  { %6091 = vmatpush1.bf16.msra.mxu0 %v14072_v40 }
0x11aa   :  { %6092 = vmatprep.subr.bf16.mxu0 %v14820_v8 }
0x11ad   :  { %6093 = vmatpush1.bf16.msra.mxu0 %v14076_v31 }
0x11ae   :  { %6094 = vmatprep.subr.bf16.mxu0 %v14820_v8 }
0x11b1   :  { %6095 = vmatpush1.bf16.msra.mxu0 %v14080_v21 }
0x11b2   :  { %6096 = vmatprep.subr.bf16.mxu0 %v14820_v8 }
0x11df   :  { %v5519_v60 = vpop.f32.mrb[92].mxu0 }
0x11e0   :  { %v5520_v16 = vadd.f32 %v5519_v60, %v5479_v19  ;;  %v5521_v20 = vpop.f32.mrb[93].mxu0  ;;  %v14079_v19 = vld [vmem:[%s14886_s14 + $0x374] ss:$20 sps:$4 sm:$0xff]   ;;  %v14081_v60 = vld [vmem:[%s14886_s14 + $0x398] ss:$20 sps:$4 sm:$0xff]  }
0x11e1   :  { %v5522_v56 = vadd.f32 %v5521_v20, %v5481_v23  ;;  %v5523_v57 = vpop.f32.mrb[94].mxu0  ;;  %v14083_v23 = vld [vmem:[%s14886_s14 + $0x39c] ss:$20 sps:$4 sm:$0xff]  }
0x11e2   :  { %v5524_v62 = vpop.f32.mrb[95].mxu0  ;;  %v5526_v17 = vadd.f32 %v5520_v16, %v15843_v42  ;;  %v14047_v42 = vld [vmem:[%s14886_s14 + $0x234] ss:$20 sps:$4 sm:$0xff]   ;;  %v14087_v16 = vld [vmem:[%s14886_s14 + $0x1ec] ss:$20 sps:$4 sm:$0xff]  }
0x11e3   :  { %v5527_v53 = vadd.f32 %v5522_v56, %v15841_v38  ;;  %v14041_v38 = vld [vmem:[%s14886_s14 + $0x208] ss:$20 sps:$4 sm:$0xff]  }
0x11e4   :  { %5995 = vmatpush1.bf16.msra.mxu1 %v14041_v38  ;;  %v14084_v20 = vld [vmem:[%s14886_s14 + $0x3a8] ss:$20 sps:$4 sm:$0xff]  }
0x11e5   :  { %v5528_v41 = vsel %vm1136_vm5, %v5527_v53, 0.0  ;;  %5996 = vmatprep.subr.bf16.mxu1 %v14047_v42  ;;  %6097 = vmatpush1.bf16.msra.mxu0 %v14084_v20 }
0x11e6   :  { %v5529_v63 = vadd.f32 %v5528_v41, %v5526_v17  ;;  %13346 = vmatprep.subr.bf16.mxu0 %v14822_v0 }
0x11e8   :  { %5530 = vadd.xlane.f32.xlu0 %v5529_v63  ;;  %5997 = vmatpush1.bf16.msra.mxu1 %v14045_v28 }
0x11e9   :  { %5998 = vmatprep.subr.bf16.mxu1 %v14051_v7 }
0x11ec   :  { %5999 = vmatpush1.bf16.msra.mxu1 %v14049_v47 }
0x11ed   :  { %6000 = vmatprep.subr.bf16.mxu1 %v14055_v24  ;;  %v14090_v24 = vld [vmem:[%s14886_s14 + $0x214] ss:$20 sps:$4 sm:$0xff]  }
0x11f0   :  { %6001 = vmatpush1.bf16.msra.mxu1 %v14053_v33  ;;  %v14093_v33 = vld [vmem:[%s14886_s14 + $0x23c] ss:$20 sps:$4 sm:$0xff]  }
0x11f1   :  { %6002 = vmatprep.subr.bf16.mxu1 %v14059_v37  ;;  %v14091_v37 = vld [vmem:[%s14886_s14 + $0x238] ss:$20 sps:$4 sm:$0xff]  }
0x11f4   :  { %6003 = vmatpush1.bf16.msra.mxu1 %v14057_v18  ;;  %v14094_v18 = vld [vmem:[%s14886_s14 + $0x260] ss:$20 sps:$4 sm:$0xff]  }
0x11f5   :  { %6004 = vmatprep.subr.bf16.mxu1 %v14063_v4  ;;  %v14099_v4 = vld [vmem:[%s14886_s14 + $0x28c] ss:$20 sps:$4 sm:$0xff]  }
0x11f8   :  { %6005 = vmatpush1.bf16.msra.mxu1 %v14061_v12  ;;  %v14097_v12 = vld [vmem:[%s14886_s14 + $0x288] ss:$20 sps:$4 sm:$0xff]  }
0x11f9   :  { %6006 = vmatprep.subr.bf16.mxu1 %v14067_v35  ;;  %v14117_v35 = vld [vmem:[%s14886_s14 + $0x37c] ss:$20 sps:$4 sm:$0xff]  }
0x11fc   :  { %6007 = vmatpush1.bf16.msra.mxu1 %v14065_v49  ;;  %v14112_v49 = vld [vmem:[%s14886_s14 + $0x350] ss:$20 sps:$4 sm:$0xff]  }
0x11fd   :  { %6008 = vmatprep.subr.bf16.mxu1 %v14071_v3  ;;  %v14120_v3 = vld [vmem:[%s14886_s14 + $0x3a4] ss:$20 sps:$4 sm:$0xff]  }
0x1200   :  { %6009 = vmatpush1.bf16.msra.mxu1 %v14069_v15  ;;  %v14118_v15 = vld [vmem:[%s14886_s14 + $0x3a0] ss:$20 sps:$4 sm:$0xff]  }
0x1201   :  { %6010 = vmatprep.subr.bf16.mxu1 %v14075_v22  ;;  %v12299_v22 = vld [vmem:[%s14891_s19 + $0x5] sm:$0x1f]  ;;  %s17140_s19 = sld [smem:[#allocation15_spill]] }
0x1202   :  { %v5655_v40 = vrot.slane %v12299_v22, %v15079_v13 }
0x1204   :  { %6011 = vmatpush1.bf16.msra.mxu1 %v14073_v50  ;;  %v5659_v50 = vrot.slane %v12299_v22, %v15082_v14 }
0x1205   :  { %6012 = vmatprep.subr.bf16.mxu1 %v14079_v19 }
0x1208   :  { %6013 = vmatpush1.bf16.msra.mxu1 %v14077_v52 }
0x1209   :  { %6014 = vmatprep.subr.bf16.mxu1 %v14083_v23 }
0x120c   :  { %6015 = vmatpush1.bf16.msra.mxu1 %v14081_v60 }
0x120d   :  { %6033 = vmatprep.subr.bf16.mxu1 %v14087_v16 }
0x1275   :  { %v5531_v54 = vpop.xlane.xlu0 %5530 }
0x1276   :  { %v5532_v59 = vmul.f32 0.0052083335, %v5531_v54  ;;  %v14102_v54 = vld [vmem:[%s14886_s14 + $0x2b4] ss:$20 sps:$4 sm:$0xff]  }
0x1278   :  { %v5533_v30 = vsub.f32 %v5526_v17, %v5532_v59  ;;  %v5534_v34 = vsub.f32 %v5527_v53, %v5532_v59  ;;  %v5546_v53 = vld [vmem:[%s17137_s16] sm:$0x3]  ;;  %v14100_v59 = vld [vmem:[%s14886_s14 + $0x2b0] ss:$20 sps:$4 sm:$0xff]  }
0x1279   :  { %v5560_v17 = vld [vmem:[%s17138_s18] sm:$0x3]  ;;  %v5555_v41 = vrot.slane %v5546_v53, %v15082_v14  ;;  %v5551_v63 = vrot.slane %v5546_v53, %v15079_v13 }
0x127a   :  { %v5535_v29 = vmul.f32 %v5533_v30, %v5533_v30  ;;  %v5536_v11 = vmul.f32 %v5534_v34, %v5534_v34  ;;  %v5569_v10 = vrot.slane %v5560_v17, %v15082_v14  ;;  %v5565_v45 = vrot.slane %v5560_v17, %v15079_v13 }
0x127c   :  { %v5537_v9 = vsel %vm1136_vm5, %v5536_v11, 0.0  ;;  %v14106_v11 = vld [vmem:[%s14886_s14 + $0x300] ss:$20 sps:$4 sm:$0xff]  }
0x127d   :  { %v5538_v27 = vadd.f32 %v5537_v9, %v5535_v29  ;;  %v14108_v29 = vld [vmem:[%s14886_s14 + $0x304] ss:$20 sps:$4 sm:$0xff]   ;;  %v14111_v9 = vld [vmem:[%s14886_s14 + $0x32c] ss:$20 sps:$4 sm:$0xff]  }
0x127f   :  { %5539 = vadd.xlane.f32.xlu1 %v5538_v27  ;;  %v14109_v27 = vld [vmem:[%s14886_s14 + $0x328] ss:$20 sps:$4 sm:$0xff]  }
0x130c   :  { %v5540_v56 = vpop.xlane.xlu1 %5539 }
0x130d   :  { %v5541_v57 = vmul.f32 0.0052083335, %v5540_v56 }
0x130f   :  { %v5542_v62 = vadd.f32 1e-05, %v5541_v57 }
0x1311   :  { %14679 = vrsqrt.f32 %v5542_v62 }
0x131b   :  { %v14680_v55 = vpop.eup %14679 }
0x131c   :  { %v5544_v61 = vmul.f32 %v14680_v55, %v5533_v30  ;;  %v5545_v2 = vmul.f32 %v14680_v55, %v5534_v34  ;;  %v14105_v30 = vld [vmem:[%s14886_s14 + $0x2dc] ss:$20 sps:$4 sm:$0xff]   ;;  %v14103_v34 = vld [vmem:[%s14886_s14 + $0x2d8] ss:$20 sps:$4 sm:$0xff]   ;;  %s17139_s14 = sld [smem:[#allocation12_spill]] }
0x131e   :  { %v5559_v38 = vmul.f32 %v5555_v41, %v5545_v2  ;;  %v5558_v42 = vmul.f32 %v5551_v63, %v5544_v61 }
0x1320   :  { %v16062_v48 = vadd.f32 %v5569_v10, %v5559_v38  ;;  %v16064_v28 = vadd.f32 %v5565_v45, %v5558_v42 }
0x1322   :  { %v5575_v7 = vpack.c.bf16 %v16062_v48, %v16062_v48  ;;  %v5574_v47 = vpack.c.bf16 %v16064_v28, %v16064_v28 }
0x1324   :  { %12360 = vmatprep.mubr.msk.bf16.mxu1 %vm1136_vm5, %v5575_v7  ;;  %12362 = vmatprep.mubr.msk.bf16.mxu0 %vm1136_vm5, %v5575_v7 }
0x1325   :  { %6025 = vmatmul.mubr.bf16.vlgmr.msra.gmra.mrb[88].mxu1 %v5574_v47  ;;  %6107 = vmatmul.mubr.bf16.vlgmr.msra.gmra.mrb[96].mxu0 %v5574_v47 }
0x1326   :  { %6034 = vmatpush1.bf16.msra.mxu1 %v14085_v32  ;;  %12361 = vmatprep.mubr.msk.bf16.mxu1 %vm1136_vm5, %v5575_v7 }
0x1327   :  { %6035 = vmatprep.subr.bf16.mxu1 %v14090_v24  ;;  %13348 = vmatprep.mubr.msk.bf16.mxu0 %vm14823_vm6, %v14822_v0 }
0x132a   :  { %6036 = vmatpush1.bf16.msra.mxu1 %v14088_v5  ;;  %v5663_v5 = vrot.slane %v12299_v22, %v15173_v44 }
0x132b   :  { %6037 = vmatprep.subr.bf16.mxu1 %v14093_v33  ;;  %v5671_v33 = vrot.slane %v12299_v22, %v15231_v26 }
0x132e   :  { %6038 = vmatpush1.bf16.msra.mxu1 %v14091_v37  ;;  %v5667_v37 = vrot.slane %v12299_v22, %v15228_v25 }
0x132f   :  { %6039 = vmatprep.subr.bf16.mxu1 %v14096_v39 }
0x1332   :  { %6040 = vmatpush1.bf16.msra.mxu1 %v14094_v18 }
0x1333   :  { %6041 = vmatprep.subr.bf16.mxu1 %v14099_v4 }
0x1336   :  { %6042 = vmatpush1.bf16.msra.mxu1 %v14097_v12 }
0x1337   :  { %6043 = vmatprep.subr.bf16.mxu1 %v14102_v54 }
0x133a   :  { %6044 = vmatpush1.bf16.msra.mxu1 %v14100_v59 }
0x133b   :  { %6045 = vmatprep.subr.bf16.mxu1 %v14105_v30 }
0x133e   :  { %6046 = vmatpush1.bf16.msra.mxu1 %v14103_v34 }
0x133f   :  { %6047 = vmatprep.subr.bf16.mxu1 %v14108_v29 }
0x1342   :  { %6048 = vmatpush1.bf16.msra.mxu1 %v14106_v11 }
0x1343   :  { %6049 = vmatprep.subr.bf16.mxu1 %v14111_v9 }
0x1346   :  { %6050 = vmatpush1.bf16.msra.mxu1 %v14109_v27 }
0x1347   :  { %6051 = vmatprep.subr.bf16.mxu1 %v14114_v46 }
0x134a   :  { %6052 = vmatpush1.bf16.msra.mxu1 %v14112_v49 }
0x134b   :  { %6053 = vmatprep.subr.bf16.mxu1 %v14117_v35 }
0x134e   :  { %6054 = vmatpush1.bf16.msra.mxu1 %v14115_v51 }
0x134f   :  { %6055 = vmatprep.subr.bf16.mxu1 %v14120_v3 }
0x1352   :  { %6056 = vmatpush1.bf16.msra.mxu1 %v14118_v15 }
0x1353   :  { %13334 = vmatprep.subr.bf16.mxu1 %v14822_v0 }
0x1355   :  { %6066 = vmatmul.mubr.bf16.vlgmr.msra.gmra.mrb[92].mxu1 %v5574_v47 }
0x1356   :  { %13336 = vmatprep.mubr.msk.bf16.mxu1 %vm14823_vm6, %v14822_v0 }
0x13f8   :  { %v6026_v19 = vpop.f32.mrb[88].mxu1  ;;  %v6108_v31 = vpop.f32.mrb[96].mxu0 }
0x13f9   :  { %v16104_v52 = vadd.f32 %v6026_v19, %v5655_v40  ;;  %v6028_v23 = vpop.f32.mrb[89].mxu1  ;;  %v6110_v21 = vpop.f32.mrb[97].mxu0  ;;  %v16144_v12 = vadd.f32 %v6108_v31, %v5671_v33 }
0x13fa   :  { %v16106_v60 = vadd.f32 %v6028_v23, %v5659_v50  ;;  %v6030_v16 = vpop.f32.mrb[90].mxu1  ;;  %v6111_v20 = vpop.f32.mrb[98].mxu0 }
0x13fb   :  { %v6031_v56 = vpop.f32.mrb[91].mxu1  ;;  %v6112_v57 = vpop.f32.mrb[99].mxu0  ;;  %v6114_v11 = vpack.c.bf16 %v16104_v52, %v16104_v52 }
0x13fc   :  { %v6140_v62 = vpack.c.bf16 %v16106_v60, %v16106_v60  ;;  %v12380_v53 = vpack.c.bf16 %v16106_v60, %v16104_v52 }
0x13fd   :  { %v6122_v46 = vrot.slane %v6114_v11, %v15184_v58 }
0x13fe   :  { %v6148_v17 = vrot.slane %v6140_v62, %v15184_v58 }
0x13ff   :  { %v16160_v51 = vrot.slane %v6122_v46, %v15184_v58  ;;  %v6123_v50 = vcombine.high %v6122_v46, %v6122_v46 }
0x1400   :  { %v6149_v41 = vcombine.high %v6148_v17, %v6148_v17  ;;  %v6156_v63 = vrot.slane %v6148_v17, %v15184_v58 }
0x1401   :  { %v16176_v31 = vcombine.high %v16160_v51, %v16160_v51  ;;  %v16179_v21 = vrot.slane %v6123_v50, %v15184_v58 }
0x1402   :  { %v6198_v55 = vrot.slane %v6156_v63, %v15184_v58  ;;  %v6163_v61 = vrot.slane %v6149_v41, %v15184_v58  ;;  %v6164_v2 = vcombine.high %v6156_v63, %v6156_v63 }
0x1403   :  { %v16199_v62 = vcombine.high %v16179_v21, %v16179_v21 }
0x1404   :  { %v16117_v10 = vrot.slane %v6198_v55, %v15184_v58  ;;  %v6260_v45 = vrot.slane %v6163_v61, %v15184_v58  ;;  %v6165_v38 = vcombine.high %v6163_v61, %v6163_v61  ;;  %v6322_v32 = vrot.slane %v6164_v2, %v15184_v58 }
0x1406   :  { %6206 = vrot.lane.b32.xlu0 %v16117_v10, %s14824_s0  ;;  %v16123_v42 = vrot.slane %v6260_v45, %v15184_v58  ;;  %v6384_v7 = vrot.slane %v6165_v38, %v15184_v58  ;;  %v16135_v24 = vrot.slane %v6322_v32, %v15184_v58 }
0x1408   :  { %6268 = vrot.lane.b32.xlu1 %v16123_v42, %s14824_s0  ;;  %v16130_v47 = vrot.slane %v6384_v7, %v15184_v58 }
0x140a   :  { %6392 = vrot.lane.b32.xlu0 %v16130_v47, %s14824_s0 }
0x140c   :  { %6330 = vrot.lane.b32.xlu1 %v16135_v24, %s14824_s0 }
0x1428   :  { %v6067_v39 = vpop.f32.mrb[92].mxu1 }
0x1429   :  { %v16142_v18 = vadd.f32 %v6067_v39, %v5663_v5  ;;  %v6069_v4 = vpop.f32.mrb[93].mxu1 }
0x142a   :  { %v16146_v54 = vadd.f32 %v6069_v4, %v5667_v37  ;;  %v6071_v59 = vpop.f32.mrb[94].mxu1 }
0x142b   :  { %v12371_v30 = vpack.c.bf16 %v16142_v18, %v16106_v60  ;;  %v6072_v34 = vpop.f32.mrb[95].mxu1 }
0x142c   :  { %v12381_v29 = vpack.c.bf16 %v16144_v12, %v16146_v54  ;;  %v6166_v35 = vpack.c.bf16 %v16146_v54, %v16146_v54 }
0x142d   :  { %v6685_v2 = vrot.slane %v12371_v30, %v15184_v58 }
0x142e   :  { %v6174_v15 = vrot.slane %v6166_v35, %v15184_v58 }
0x142f   :  { %v6693_v7 = vrot.slane %v6685_v2, %v15184_v58 }
0x1430   :  { %v16172_v19 = vrot.slane %v6174_v15, %v15184_v58  ;;  %v6175_v20 = vcombine.high %v6174_v15, %v6174_v15 }
0x1431   :  { %v6725_v30 = vrot.slane %v6693_v7, %v15184_v58 }
0x1432   :  { %v6496_v16 = vsel %vm1646_vm8, %v16172_v19, 0  ;;  %v16195_v57 = vrot.slane %v6175_v20, %v15184_v58  ;;  %v6686_v20 = vcombine.high %v6685_v2, %v6685_v2 }
0x1433   :  { %v6733_v50 = vrot.slane %v6725_v30, %v15184_v58 }
0x1434   :  { %v6542_v17 = vsel %vm1646_vm8, %v16195_v57, 0 }
0x1478   :  { %v6207_v9 = vpop.permute.xlu0 %6206 }
0x1479   :  { %v6212_v27 = vsel %vm1356_vm7, %v6207_v9, 0 }
0x147a   :  { %13335 = vmatpush3.bf16.xpose.msra.mxu1 %v6212_v27  ;;  %v6269_v49 = vpop.permute.xlu1 %6268 }
0x147b   :  { %13340 = vmatprep.subr.bf16.mxu1 %v14822_v0  ;;  %v6274_v40 = vsel %vm1356_vm7, %v6269_v49, 0  ;;  %v6726_v49 = vcombine.high %v6725_v30, %v6725_v30 }
0x147c   :  { %v6393_v23 = vpop.permute.xlu0 %6392 }
0x147d   :  { %v6398_v56 = vsel %vm1356_vm7, %v6393_v23, 0 }
0x147e   :  { %v6331_v3 = vpop.permute.xlu1 %6330 }
0x147f   :  { %v6336_v22 = vsel %vm1356_vm7, %v6331_v3, 0 }
0x1480   :  { %13347 = vmatpush3.bf16.xpose.msra.mxu0 %v6336_v22 }
0x1481   :  { %13337 = vmatmul.mubr.msk.bf16.vlgmr.msra.gmra.mrb[96].mxu1 %vm1356_vm7, %v16160_v51  ;;  %13358 = vmatprep.subr.bf16.mxu0 %v14822_v0 }
0x1482   :  { %13341 = vmatpush3.bf16.xpose.msra.mxu1 %v6274_v40  ;;  %13342 = vmatprep.mubr.msk.bf16.mxu1 %vm14823_vm6, %v14822_v0  ;;  %v6740_v40 = vrot.slane %v6726_v49, %v15184_v58 }
0x1483   :  { %13352 = vmatprep.subr.bf16.mxu1 %v14822_v0 }
0x1487   :  { %13349 = vmatmul.mubr.msk.bf16.vlgmr.msra.gmra.mrb[100].mxu0 %vm1356_vm7, %v16176_v31 }
0x1488   :  { %13359 = vmatpush3.bf16.msra.mxu0 %v6496_v16  ;;  %13360 = vmatprep.mubr.msk.bf16.mxu0 %vm14823_vm6, %v14822_v0 }
0x1489   :  { %13343 = vmatmul.mubr.msk.bf16.vlgmr.msra.gmra.mrb[100].mxu1 %vm1356_vm7, %v16179_v21  ;;  %13370 = vmatprep.subr.bf16.mxu0 %v14822_v0 }
0x148a   :  { %13353 = vmatpush3.bf16.xpose.msra.mxu1 %v6398_v56  ;;  %13354 = vmatprep.mubr.msk.bf16.mxu1 %vm14823_vm6, %v14822_v0  ;;  %v6700_v56 = vrot.slane %v6686_v20, %v15184_v58 }
0x148b   :  { %13364 = vmatprep.subr.bf16.mxu1 %v14822_v0 }
0x1491   :  { %13355 = vmatmul.mubr.msk.bf16.vlgmr.msra.gmra.mrb[104].mxu1 %vm1356_vm7, %v16199_v62 }
0x1492   :  { %13365 = vmatpush3.bf16.msra.mxu1 %v6542_v17  ;;  %13366 = vmatprep.mubr.msk.bf16.mxu1 %vm14823_vm6, %v14822_v0  ;;  %v6814_v17 = vrot.slane %v6700_v56, %v15184_v58 }
0x1493   :  { %13376 = vmatprep.subr.bf16.mxu1 %v14822_v0 }
0x1554   :  { %v6248_v41 = vpop.f32.mrb[96].mxu1 }
0x1555   :  { %v6440_v63 = vmul.f32 0.14433756, %v6248_v41  ;;  %v13338_v55 = vpop.f32.mrb[97].mxu1  ;;  %v6822_v41 = vrot.slane %v6814_v17, %v15184_v58 }
0x1556   :  { %v6251_v61 = vpop.f32.mrb[98].mxu1 }
0x1557   :  { %v13339_v45 = vpop.f32.mrb[99].mxu1  ;;  %v6444_v38 = vsel %vm1593_vm9, %v6440_v63, -inf }
0x1558   :  { %6445 = vmax.xlane.f32.xlu1 %v6444_v38 }
0x155a   :  { %v6372_v32 = vpop.f32.mrb[100].mxu0 }
0x155b   :  { %v6442_v5 = vmul.f32 0.14433756, %v6372_v32  ;;  %v13350_v33 = vpop.f32.mrb[101].mxu0 }
0x155c   :  { %v6310_v37 = vpop.f32.mrb[100].mxu1  ;;  %v6375_v39 = vpop.f32.mrb[102].mxu0 }
0x155d   :  { %v13344_v4 = vpop.f32.mrb[101].mxu1  ;;  %v6441_v59 = vmul.f32 0.14433756, %v6310_v37  ;;  %v13351_v34 = vpop.f32.mrb[103].mxu0  ;;  %v6450_v11 = vsel %vm1593_vm9, %v6442_v5, -inf }
0x155e   :  { %v6313_v9 = vpop.f32.mrb[102].mxu1  ;;  %6451 = vmax.xlane.f32.xlu0 %v6450_v11  ;;  %v6701_v11 = vcombine.high %v6693_v7, %v6693_v7 }
0x155f   :  { %v13345_v27 = vpop.f32.mrb[103].mxu1  ;;  %v6447_v46 = vsel %vm1593_vm9, %v6441_v59, -inf }
0x1562   :  { %6448 = vmax.xlane.f32.xlu0 %v6447_v46 }
0x1564   :  { %v6434_v35 = vpop.f32.mrb[104].mxu1 }
0x1565   :  { %v13356_v3 = vpop.f32.mrb[105].mxu1  ;;  %v6443_v23 = vmul.f32 0.14433756, %v6434_v35 }
0x1566   :  { %v6437_v15 = vpop.f32.mrb[106].mxu1 }
0x1567   :  { %v13357_v22 = vpop.f32.mrb[107].mxu1  ;;  %v6453_v16 = vsel %vm1593_vm9, %v6443_v23, -inf }
0x1569   :  { %6743 = vrot.lane.b32.xlu1 %v6740_v40, %s14825_s5 }
0x1578   :  { %6741 = vrot.lane.b32.xlu0 %v6733_v50, %s14825_s5 }
0x158d   :  { %6454 = vmax.xlane.f32.xlu1 %v6453_v16 }
0x159e   :  { %6830 = vrot.lane.b32.xlu1 %v6822_v41, %s14825_s5 }
0x15e5   :  { %v6446_v55 = vpop.xlane.xlu1 %6445 }
0x15e6   :  { %v6456_v61 = vsub.f32 %v6440_v63, %v6446_v55  ;;  %v6815_v63 = vcombine.high %v6814_v17, %v6814_v17  ;;  %v6798_v55 = vrot.slane %v16179_v21, %v15184_v58  ;;  %v6887_v21 = vrot.slane %v16176_v31, %v15184_v58 }
0x15e8   :  { %v6460_v45 = vmul.f32 1.442695, %v6456_v61  ;;  %v6829_v9 = vrot.slane %v6815_v63, %v15184_v58 }
0x15e9   :  { %v16236_v46 = vpop.permute.xlu1 %6743 }
0x15ea   :  { %14681 = vpow2.f32 %v6460_v45  ;;  %v6805_v45 = vrot.slane %v6798_v55, %v15184_v58 }
0x15eb   :  { %v6452_v38 = vpop.xlane.xlu0 %6451 }
0x15ec   :  { %v6458_v30 = vsub.f32 %v6442_v5, %v6452_v38  ;;  %v6702_v5 = vcombine.high %v6700_v56, %v6700_v56  ;;  %v6709_v56 = vrot.slane %v16160_v51, %v15184_v58  ;;  %v6976_v38 = vrot.slane %v16199_v62, %v15184_v58 }
0x15ed   :  { %v7117_v51 = vrot.slane %v16172_v19, %v15184_v58  ;;  %v6894_v62 = vrot.slane %v6887_v21, %v15184_v58 }
0x15ee   :  { %v6464_v49 = vmul.f32 1.442695, %v6458_v30  ;;  %v6992_v20 = vrot.slane %v6702_v5, %v15184_v58 }
0x15ef   :  { %v6449_v32 = vpop.xlane.xlu0 %6448  ;;  %v7124_v31 = vrot.slane %v7117_v51, %v15184_v58 }
0x15f0   :  { %v6457_v33 = vsub.f32 %v6441_v59, %v6449_v32  ;;  %v6903_v59 = vrot.slane %v6701_v11, %v15184_v58  ;;  %v6993_v17 = vcombine.high %v6992_v20, %v6992_v20  ;;  %v7000_v61 = vrot.slane %v6992_v20, %v15184_v58 }
0x15f1   :  { %v6716_v32 = vrot.slane %v6709_v56, %v15184_v58 }
0x15f2   :  { %v6462_v37 = vmul.f32 1.442695, %v6457_v33  ;;  %v6911_v27 = vrot.slane %v6903_v59, %v15184_v58  ;;  %v6904_v16 = vcombine.high %v6903_v59, %v6903_v59  ;;  %v7007_v41 = vrot.slane %v6993_v17, %v15184_v58 }
0x15f3   :  { %v6983_v33 = vrot.slane %v6976_v38, %v15184_v58  ;;  %v6742_v11 = vpop.permute.xlu0 %6741 }
0x15f4   :  { %v16223_v39 = vpop.eup %14681  ;;  %14683 = vpow2.f32 %v6462_v37  ;;  %v6190_v37 = vcombine.high %v16172_v19, %v16172_v19 }
0x15f5   :  { %v6468_v2 = vsel %vm1593_vm9, %v16223_v39, 0.0  ;;  %14685 = vpow2.f32 %v6464_v49 }
0x15f6   :  { %6469 = vadd.xlane.f32.xlu0 %v6468_v2  ;;  %v7179_v2 = vrot.slane %v16195_v57, %v15184_v58  ;;  %v7241_v63 = vrot.slane %v6190_v37, %v15184_v58 }
0x15f8   :  { %v7248_v19 = vrot.slane %v7241_v63, %v15184_v58 }
0x15fe   :  { %v16227_v4 = vpop.eup %14683 }
0x15ff   :  { %v6471_v34 = vsel %vm1593_vm9, %v16227_v4, 0.0  ;;  %v16238_v22 = vpop.eup %14685 }
0x1600   :  { %6472 = vadd.xlane.f32.xlu1 %v6471_v34  ;;  %v6474_v7 = vsel %vm1593_vm9, %v16238_v22, 0.0  ;;  %v7186_v34 = vrot.slane %v7179_v2, %v15184_v58 }
0x160c   :  { %6832 = vrot.lane.b32.xlu0 %v6829_v9, %s14825_s5 }
0x1611   :  { %6919 = vrot.lane.b32.xlu1 %v6911_v27, %s14825_s5 }
0x161a   :  { %v6455_v35 = vpop.xlane.xlu1 %6454 }
0x161b   :  { %v6459_v3 = vsub.f32 %v6443_v23, %v6455_v35  ;;  %v6918_v23 = vrot.slane %v6904_v16, %v15184_v58 }
0x161d   :  { %v6466_v15 = vmul.f32 1.442695, %v6459_v3  ;;  %v6588_v3 = vsel %vm1646_vm8, %v6190_v37, 0 }
0x161e   :  { %v6831_v59 = vpop.permute.xlu1 %6830 }
0x161f   :  { %14687 = vpow2.f32 %v6466_v15 }
0x1629   :  { %v16242_v40 = vpop.eup %14687 }
0x162a   :  { %v6477_v50 = vsel %vm1593_vm9, %v16242_v40, 0.0 }
0x162b   :  { %6475 = vadd.xlane.f32.xlu0 %v6474_v7 }
0x1635   :  { %6478 = vadd.xlane.f32.xlu1 %v6477_v50  ;;  %v16291_v50 = vcombine.high %v16195_v57, %v16195_v57 }
0x1637   :  { %v6634_v5 = vsel %vm1646_vm8, %v16291_v50, 0 }
0x1641   :  { %6921 = vrot.lane.b32.xlu0 %v6918_v23, %s14825_s5 }
0x1645   :  { %7010 = vrot.lane.b32.xlu0 %v7007_v41, %s14825_s5 }
0x1646   :  { %7008 = vrot.lane.b32.xlu1 %v7000_v61, %s14825_s5  ;;  %v6745_v61 = vsel %vm1897_vm11, %v6742_v11, %v16236_v46 }
0x1649   :  { %6806 = vrot.lane.b32.xlu0 %v6805_v45, %s14826_s9  ;;  %v6750_v45 = vsel %vm1356_vm7, %v6745_v61, 0  ;;  %v6676_v61 = vpack.c.bf16 %v16142_v18, %v16142_v18 }
0x164a   :  { %6717 = vrot.lane.b32.xlu1 %v6716_v32, %s14826_s9 }
0x164d   :  { %6984 = vrot.lane.b32.xlu0 %v6983_v33, %s14826_s9 }
0x164e   :  { %6895 = vrot.lane.b32.xlu1 %v6894_v62, %s14826_s9 }
0x1651   :  { %7125 = vrot.lane.b32.xlu0 %v7124_v31, %s14826_s9 }
0x1652   :  { %7187 = vrot.lane.b32.xlu1 %v7186_v34, %s14826_s9 }
0x1656   :  { %7249 = vrot.lane.b32.xlu1 %v7248_v19, %s14826_s9 }
0x1683   :  { %v6470_v9 = vpop.xlane.xlu0 %6469 }
0x1684   :  { %14689 = vrcp.f32 %v6470_v9 }
0x1687   :  { %v6833_v16 = vpop.permute.xlu0 %6832 }
0x1688   :  { %v6834_v37 = vsel %vm1897_vm11, %v6831_v59, %v6833_v16 }
0x1689   :  { %v6839_v31 = vsel %vm1356_vm7, %v6834_v37, 0  ;;  %v7390_v37 = vrot.slane %v6676_v61, %v15184_v58 }
0x168b   :  { %v7391_v60 = vcombine.high %v7390_v37, %v7390_v37 }
0x168d   :  { %v6473_v30 = vpop.xlane.xlu1 %6472 }
0x168e   :  { %v14690_v27 = vpop.eup %14689  ;;  %14691 = vrcp.f32 %v6473_v30 }
0x168f   :  { %v6484_v49 = vmul.f32 %v14690_v27, %v16223_v39 }
0x1691   :  { %v6488_v35 = vpack.c.bf16 %v6484_v49, %v6484_v49  ;;  %v6920_v23 = vpop.permute.xlu1 %6919 }
0x1693   :  { %13361 = vmatmul.mubr.msk.bf16.vlgmr.msra.gmra.mrb[104].mxu0 %vm1642_vm10, %v6488_v35 }
0x1694   :  { %13371 = vmatpush3.bf16.msra.mxu0 %v6588_v3  ;;  %13372 = vmatprep.mubr.msk.bf16.mxu0 %vm14823_vm6, %v14822_v0 }
0x1695   :  { %13382 = vmatprep.subr.bf16.mxu0 %v14822_v0 }
0x1698   :  { %v14692_v15 = vpop.eup %14691 }
0x1699   :  { %v6485_v7 = vmul.f32 %v14692_v15, %v16227_v4 }
0x169b   :  { %v6489_v39 = vpack.c.bf16 %v6485_v7, %v6485_v7 }
0x169d   :  { %13367 = vmatmul.mubr.msk.bf16.vlgmr.msra.gmra.mrb[108].mxu1 %vm1642_vm10, %v6489_v39 }
0x169e   :  { %13377 = vmatpush3.bf16.msra.mxu1 %v6634_v5  ;;  %13378 = vmatprep.mubr.msk.bf16.mxu1 %vm14823_vm6, %v14822_v0 }
0x169f   :  { %13388 = vmatprep.subr.bf16.mxu1 %v14822_v0 }
0x16b8   :  { %v6476_v20 = vpop.xlane.xlu0 %6475 }
0x16b9   :  { %14693 = vrcp.f32 %v6476_v20 }
0x16bc   :  { %v6922_v4 = vpop.permute.xlu0 %6921 }
0x16bd   :  { %v6923_v21 = vsel %vm1897_vm11, %v6920_v23, %v6922_v4 }
0x16be   :  { %v6928_v62 = vsel %vm1356_vm7, %v6923_v21, 0 }
0x16c0   :  { %v7011_v57 = vpop.permute.xlu0 %7010 }
0x16c2   :  { %v6479_v41 = vpop.xlane.xlu1 %6478 }
0x16c3   :  { %v14694_v17 = vpop.eup %14693  ;;  %14695 = vrcp.f32 %v6479_v41 }
0x16c4   :  { %v6486_v55 = vmul.f32 %v14694_v17, %v16238_v22  ;;  %v6807_v38 = vpop.permute.xlu0 %6806 }
0x16c6   :  { %v6490_v56 = vpack.c.bf16 %v6486_v55, %v6486_v55  ;;  %v7009_v32 = vpop.permute.xlu1 %7008 }
0x16c7   :  { %v7012_v63 = vsel %vm1897_vm11, %v7009_v32, %v7011_v57 }
0x16c8   :  { %13373 = vmatmul.mubr.msk.bf16.vlgmr.msra.gmra.mrb[108].mxu0 %vm1642_vm10, %v6490_v56  ;;  %v6985_v51 = vpop.permute.xlu0 %6984  ;;  %v7017_v11 = vsel %vm1356_vm7, %v7012_v63, 0 }
0x16c9   :  { %13383 = vmatpush3.bf16.xpose.msra.mxu0 %v6750_v45  ;;  %13384 = vmatprep.mubr.msk.bf16.mxu0 %vm14823_vm6, %v14822_v0 }
0x16ca   :  { %13394 = vmatprep.subr.bf16.mxu0 %v14822_v0  ;;  %v6718_v46 = vpop.permute.xlu1 %6717 }
0x16cd   :  { %v14696_v22 = vpop.eup %14695 }
0x16ce   :  { %v6487_v33 = vmul.f32 %v14696_v22, %v16242_v40  ;;  %v7126_v40 = vpop.permute.xlu0 %7125  ;;  %v6896_v34 = vpop.permute.xlu1 %6895 }
0x16cf   :  { %v7131_v19 = vsel %vm1646_vm8, %v7126_v40, 0  ;;  %v16349_v40 = vrot.slane %v7390_v37, %v15184_v58 }
0x16d0   :  { %13385 = vmatmul.mubr.msk.bf16.vlgmr.msra.gmra.mrb[112].mxu0 %vm1356_vm7, %v6718_v46  ;;  %v6491_v2 = vpack.c.bf16 %v6487_v33, %v6487_v33 }
0x16d1   :  { %13395 = vmatpush3.bf16.xpose.msra.mxu0 %v6928_v62  ;;  %13396 = vmatprep.mubr.msk.bf16.mxu0 %vm14823_vm6, %v14822_v0 }
0x16d2   :  { %13406 = vmatprep.subr.bf16.mxu0 %v14822_v0  ;;  %13379 = vmatmul.mubr.msk.bf16.vlgmr.msra.gmra.mrb[112].mxu1 %vm1642_vm10, %v6491_v2  ;;  %v7188_v9 = vpop.permute.xlu1 %7187 }
0x16d3   :  { %13389 = vmatpush3.bf16.xpose.msra.mxu1 %v6839_v31  ;;  %13390 = vmatprep.mubr.msk.bf16.mxu1 %vm14823_vm6, %v14822_v0  ;;  %v7193_v59 = vsel %vm1646_vm8, %v7188_v9, 0 }
0x16d4   :  { %13400 = vmatprep.subr.bf16.mxu1 %v14822_v0 }
0x16d8   :  { %13397 = vmatmul.mubr.msk.bf16.vlgmr.msra.gmra.mrb[116].mxu0 %vm1356_vm7, %v6896_v34 }
0x16d9   :  { %13407 = vmatpush3.bf16.msra.mxu0 %v7131_v19  ;;  %13408 = vmatprep.mubr.msk.bf16.mxu0 %vm14823_vm6, %v14822_v0 }
0x16da   :  { %13418 = vmatprep.subr.bf16.mxu0 %v14822_v0  ;;  %13391 = vmatmul.mubr.msk.bf16.vlgmr.msra.gmra.mrb[116].mxu1 %vm1356_vm7, %v6807_v38 }
0x16db   :  { %13401 = vmatpush3.bf16.xpose.msra.mxu1 %v7017_v11  ;;  %13402 = vmatprep.mubr.msk.bf16.mxu1 %vm14823_vm6, %v14822_v0 }
0x16dc   :  { %13412 = vmatprep.subr.bf16.mxu1 %v14822_v0 }
0x16e2   :  { %13403 = vmatmul.mubr.msk.bf16.vlgmr.msra.gmra.mrb[120].mxu1 %vm1356_vm7, %v6985_v51 }
0x16e3   :  { %13413 = vmatpush3.bf16.msra.mxu1 %v7193_v59  ;;  %13414 = vmatprep.mubr.msk.bf16.mxu1 %vm14823_vm6, %v14822_v0 }
0x16e4   :  { %13424 = vmatprep.subr.bf16.mxu1 %v14822_v0 }
0x1766   :  { %v6532_v27 = vpop.f32.mrb[104].mxu0 }
0x1767   :  { %v13362_v30 = vpop.f32.mrb[105].mxu0 }
0x1768   :  { %v6535_v49 = vpop.f32.mrb[106].mxu0 }
0x1769   :  { %v13363_v35 = vpop.f32.mrb[107].mxu0  ;;  %v7468_v49 = vrot.slane %v16349_v40, %v15184_v58 }
0x1770   :  { %v6578_v3 = vpop.f32.mrb[108].mxu1 }
0x1771   :  { %v8663_v15 = vcombine.low %v6532_v27, %v6578_v3  ;;  %v13368_v7 = vpop.f32.mrb[109].mxu1 }
0x1772   :  { %v6581_v39 = vpop.f32.mrb[110].mxu1 }
0x1773   :  { %v13369_v5 = vpop.f32.mrb[111].mxu1  ;;  %v16340_v33 = vrot.slane %v8663_v15, %v15424_v43  ;;  %v16356_v15 = vrot.slane %v7468_v49, %v15184_v58 }
0x179b   :  { %v6624_v16 = vpop.f32.mrb[108].mxu0 }
0x179c   :  { %v13374_v20 = vpop.f32.mrb[109].mxu0 }
0x179d   :  { %v6627_v4 = vpop.f32.mrb[110].mxu0 }
0x179e   :  { %v13375_v23 = vpop.f32.mrb[111].mxu0 }
0x17a3   :  { %v6786_v17 = vpop.f32.mrb[112].mxu0 }
0x17a4   :  { %v7059_v57 = vmul.f32 0.14433756, %v6786_v17  ;;  %v13386_v41 = vpop.f32.mrb[113].mxu0  ;;  %v7366_v17 = vrot.slane %v12380_v53, %v15184_v58 }
0x17a5   :  { %v6789_v55 = vpop.f32.mrb[114].mxu0  ;;  %v6670_v56 = vpop.f32.mrb[112].mxu1 }
0x17a6   :  { %v13387_v45 = vpop.f32.mrb[115].mxu0  ;;  %v7063_v38 = vsel %vm1593_vm9, %v7059_v57, -inf  ;;  %v8664_v32 = vcombine.low %v6624_v16, %v6670_v56  ;;  %v13380_v21 = vpop.f32.mrb[113].mxu1  ;;  %v7303_v16 = vrot.slane %v16291_v50, %v15184_v58  ;;  %v7374_v41 = vrot.slane %v7366_v17, %v15184_v58 }
0x17a7   :  { %7064 = vmax.xlane.f32.xlu1 %v7063_v38  ;;  %v6673_v22 = vpop.f32.mrb[114].mxu1  ;;  %v16373_v50 = vpop.permute.xlu1 %7249 }
0x17a8   :  { %v16343_v51 = vrot.slane %v8664_v32, %v15424_v43  ;;  %v13381_v46 = vpop.f32.mrb[115].mxu1  ;;  %v7310_v20 = vrot.slane %v7303_v16, %v15184_v58  ;;  %v7441_v55 = vrot.slane %v7374_v41, %v15184_v58 }
0x17aa   :  { %v8679_v18 = vcombine.low %v16340_v33, %v16343_v51  ;;  %v7449_v61 = vrot.slane %v7441_v55, %v15184_v58 }
0x17ab   :  { %v6964_v62 = vpop.f32.mrb[116].mxu0 }
0x17ac   :  { %v13398_v2 = vpop.f32.mrb[117].mxu0  ;;  %v7061_v59 = vmul.f32 0.14433756, %v6964_v62 }
0x17ad   :  { %v6967_v31 = vpop.f32.mrb[118].mxu0  ;;  %v6875_v34 = vpop.f32.mrb[116].mxu1  ;;  %v7367_v2 = vcombine.high %v7366_v17, %v7366_v17 }
0x17ae   :  { %v13399_v63 = vpop.f32.mrb[119].mxu0  ;;  %v7060_v19 = vmul.f32 0.14433756, %v6875_v34  ;;  %v13392_v11 = vpop.f32.mrb[117].mxu1  ;;  %v7069_v35 = vsel %vm1593_vm9, %v7061_v59, -inf }
0x17af   :  { %v6878_v9 = vpop.f32.mrb[118].mxu1  ;;  %v7381_v34 = vrot.slane %v7367_v2, %v15184_v58 }
0x17b0   :  { %v13393_v27 = vpop.f32.mrb[119].mxu1  ;;  %v7066_v30 = vsel %vm1593_vm9, %v7060_v19, -inf }
0x17b1   :  { %7067 = vmax.xlane.f32.xlu0 %v7066_v30  ;;  %v7530_v37 = vrot.slane %v7381_v34, %v15184_v58 }
0x17b5   :  { %7070 = vmax.xlane.f32.xlu0 %v7069_v35  ;;  %v7053_v3 = vpop.f32.mrb[120].mxu1 }
0x17b6   :  { %v13404_v7 = vpop.f32.mrb[121].mxu1  ;;  %v7062_v4 = vmul.f32 0.14433756, %v7053_v3 }
0x17b7   :  { %v7056_v39 = vpop.f32.mrb[122].mxu1 }
0x17b8   :  { %7476 = vrot.lane.b32.xlu1 %v16356_v15, %s14828_s13  ;;  %v13405_v5 = vpop.f32.mrb[123].mxu1  ;;  %v7072_v23 = vsel %vm1593_vm9, %v7062_v4, -inf }
0x17cb   :  { %7311 = vrot.lane.b32.xlu0 %v7310_v20, %s14826_s9  ;;  %v7406_v20 = vcombine.high %v16349_v40, %v16349_v40 }
0x17dc   :  { %7073 = vmax.xlane.f32.xlu1 %v7072_v23  ;;  %v7382_v23 = vcombine.high %v7374_v41, %v7374_v41  ;;  %v7383_v41 = vcombine.high %v7381_v34, %v7381_v34 }
0x17de   :  { %v7619_v40 = vrot.slane %v7382_v23, %v15184_v58 }
0x17ed   :  { %7457 = vrot.lane.b32.xlu1 %v7449_v61, %s14829_s17  ;;  %v7531_v61 = vcombine.high %v7530_v37, %v7530_v37 }
0x1834   :  { %v7065_v56 = vpop.xlane.xlu1 %7064 }
0x1835   :  { %v7075_v45 = vsub.f32 %v7059_v57, %v7065_v56  ;;  %v7405_v57 = vrot.slane %v7391_v60, %v15184_v58  ;;  %v7417_v56 = vrot.slane %v12381_v29, %v15184_v58 }
0x1837   :  { %v7079_v38 = vmul.f32 1.442695, %v7075_v45  ;;  %v7557_v31 = vrot.slane %v7405_v57, %v15184_v58  ;;  %v7646_v45 = vrot.slane %v7406_v20, %v15184_v58  ;;  %v7418_v54 = vcombine.high %v7417_v56, %v7417_v56 }
0x1838   :  { %v16394_v27 = vpop.permute.xlu1 %7476 }
0x1839   :  { %14697 = vpow2.f32 %v7079_v38  ;;  %v16387_v63 = vrot.slane %v7557_v31, %v15184_v58  ;;  %v7545_v38 = vrot.slane %v7531_v61, %v15184_v58 }
0x183e   :  { %v7068_v32 = vpop.xlane.xlu0 %7067 }
0x183f   :  { %v7076_v21 = vsub.f32 %v7060_v19, %v7068_v32  ;;  %v7538_v19 = vrot.slane %v7530_v37, %v15184_v58  ;;  %v7425_v32 = vrot.slane %v7417_v56, %v15184_v58 }
0x1841   :  { %v7081_v22 = vmul.f32 1.442695, %v7076_v21  ;;  %v16419_v21 = vrot.slane %v7646_v45, %v15184_v58  ;;  %v7849_v60 = vrot.slane %v7425_v32, %v15184_v58 }
0x1842   :  { %v7071_v11 = vpop.xlane.xlu0 %7070 }
0x1843   :  { %v16375_v46 = vpop.eup %14697  ;;  %14699 = vpow2.f32 %v7081_v22  ;;  %v7077_v9 = vsub.f32 %v7061_v59, %v7071_v11  ;;  %v7442_v59 = vcombine.high %v7441_v55, %v7441_v55  ;;  %v7620_v22 = vcombine.high %v7619_v40, %v7619_v40 }
0x1844   :  { %v7087_v52 = vsel %vm1593_vm9, %v16375_v46, 0.0  ;;  %v7850_v37 = vcombine.high %v7849_v60, %v7849_v60 }
0x1845   :  { %7088 = vadd.xlane.f32.xlu0 %v7087_v52  ;;  %v7083_v30 = vmul.f32 1.442695, %v7077_v9  ;;  %v7456_v17 = vrot.slane %v7442_v59, %v15184_v58  ;;  %v7708_v52 = vrot.slane %v7383_v41, %v15184_v58  ;;  %v7634_v2 = vrot.slane %v7620_v22, %v15184_v58 }
0x1846   :  { %v7433_v9 = vcombine.high %v7425_v32, %v7425_v32  ;;  %v7312_v20 = vpop.permute.xlu0 %7311 }
0x1847   :  { %14701 = vpow2.f32 %v7083_v30  ;;  %v7709_v31 = vcombine.high %v7708_v52, %v7708_v52  ;;  %v7716_v34 = vrot.slane %v7708_v52, %v15184_v58  ;;  %v7864_v30 = vrot.slane %v7850_v37, %v15184_v58 }
0x1848   :  { %v7317_v32 = vsel %vm1646_vm8, %v7312_v20, 0  ;;  %v7482_v37 = vsel %vm1356_vm7, %v16394_v27, 0 }
0x184d   :  { %v16379_v53 = vpop.eup %14699 }
0x184e   :  { %v7090_v62 = vsel %vm1593_vm9, %v16379_v53, 0.0 }
0x184f   :  { %7091 = vadd.xlane.f32.xlu1 %v7090_v62  ;;  %v7627_v62 = vrot.slane %v7619_v40, %v15184_v58 }
0x1851   :  { %v16396_v7 = vpop.eup %14701 }
0x1852   :  { %v7093_v39 = vsel %vm1593_vm9, %v16396_v7, 0.0 }
0x185b   :  { %7565 = vrot.lane.b32.xlu0 %v16387_v63, %s14828_s13 }
0x1860   :  { %7546 = vrot.lane.b32.xlu1 %v7538_v19, %s14829_s17  ;;  %v7723_v19 = vrot.slane %v7709_v31, %v15184_v58 }
0x1869   :  { %v7074_v49 = vpop.xlane.xlu1 %7073 }
0x186a   :  { %v7078_v35 = vsub.f32 %v7062_v4, %v7074_v49  ;;  %v7407_v4 = vcombine.high %v7405_v57, %v7405_v57  ;;  %v16432_v57 = vrot.slane %v7418_v54, %v15184_v58  ;;  %v7857_v49 = vrot.slane %v7849_v60, %v15184_v58 }
0x186c   :  { %v7085_v3 = vmul.f32 1.442695, %v7078_v35  ;;  %v7735_v55 = vrot.slane %v7407_v4, %v15184_v58  ;;  %v7922_v11 = vrot.slane %v16432_v57, %v15184_v58 }
0x186d   :  { %v7458_v4 = vpop.permute.xlu1 %7457 }
0x186e   :  { %14703 = vpow2.f32 %v7085_v3  ;;  %v16424_v29 = vrot.slane %v7735_v55, %v15184_v58  ;;  %v7923_v35 = vcombine.high %v7922_v11, %v7922_v11  ;;  %v7930_v3 = vrot.slane %v7922_v11, %v15184_v58 }
0x1878   :  { %v16400_v5 = vpop.eup %14703 }
0x1879   :  { %v7096_v16 = vsel %vm1593_vm9, %v16400_v5, 0.0 }
0x187a   :  { %7094 = vadd.xlane.f32.xlu0 %v7093_v39  ;;  %v16449_v39 = vrot.slane %v7433_v9, %v15184_v58 }
0x187c   :  { %v8003_v59 = vrot.slane %v16449_v39, %v15184_v58 }
0x1884   :  { %7097 = vadd.xlane.f32.xlu1 %v7096_v16  ;;  %v7937_v16 = vrot.slane %v7923_v35, %v15184_v58 }
0x1890   :  { %7459 = vrot.lane.b32.xlu0 %v7456_v17, %s14829_s17 }
0x1894   :  { %7548 = vrot.lane.b32.xlu0 %v7545_v38, %s14829_s17  ;;  %v7255_v38 = vsel %vm1646_vm8, %v16373_v50, 0 }
0x1895   :  { %7654 = vrot.lane.b32.xlu1 %v16419_v21, %s14828_s13 }
0x1898   :  { %7743 = vrot.lane.b32.xlu0 %v16424_v29, %s14828_s13 }
0x1899   :  { %7635 = vrot.lane.b32.xlu1 %v7627_v62, %s14829_s17 }
0x189c   :  { %7637 = vrot.lane.b32.xlu0 %v7634_v2, %s14829_s17 }
0x189d   :  { %7724 = vrot.lane.b32.xlu1 %v7716_v34, %s14829_s17 }
0x18a0   :  { %7726 = vrot.lane.b32.xlu0 %v7723_v19, %s14829_s17 }
0x18a1   :  { %7867 = vrot.lane.b32.xlu1 %v7864_v30, %s14829_s17 }
0x18a4   :  { %7865 = vrot.lane.b32.xlu0 %v7857_v49, %s14829_s17 }
0x18a5   :  { %7938 = vrot.lane.b32.xlu1 %v7930_v3, %s14829_s17 }
0x18a8   :  { %7940 = vrot.lane.b32.xlu0 %v7937_v16, %s14829_s17 }
0x18a9   :  { %8011 = vrot.lane.b32.xlu1 %v8003_v59, %s14829_s17 }
0x18d2   :  { %v7089_v23 = vpop.xlane.xlu0 %7088 }
0x18d3   :  { %14705 = vrcp.f32 %v7089_v23 }
0x18d6   :  { %v7566_v50 = vpop.permute.xlu0 %7565 }
0x18d7   :  { %v7571_v16 = vsel %vm1356_vm7, %v7566_v50, 0 }
0x18dc   :  { %v7092_v61 = vpop.xlane.xlu1 %7091 }
0x18dd   :  { %v14706_v17 = vpop.eup %14705  ;;  %14707 = vrcp.f32 %v7092_v61 }
0x18de   :  { %v7103_v56 = vmul.f32 %v14706_v17, %v16375_v46 }
0x18e0   :  { %v7107_v45 = vpack.c.bf16 %v7103_v56, %v7103_v56  ;;  %v7547_v22 = vpop.permute.xlu1 %7546 }
0x18e2   :  { %13409 = vmatmul.mubr.msk.bf16.vlgmr.msra.gmra.mrb[120].mxu0 %vm1642_vm10, %v7107_v45 }
0x18e3   :  { %13419 = vmatpush3.bf16.msra.mxu0 %v7255_v38  ;;  %13420 = vmatprep.mubr.msk.bf16.mxu0 %vm14823_vm6, %v14822_v0 }
0x18e4   :  { %13430 = vmatprep.subr.bf16.mxu0 %v14822_v0 }
0x18e7   :  { %v14708_v55 = vpop.eup %14707 }
0x18e8   :  { %v7104_v40 = vmul.f32 %v14708_v55, %v16379_v53 }
0x18ea   :  { %v7108_v41 = vpack.c.bf16 %v7104_v40, %v7104_v40 }
0x18ec   :  { %13415 = vmatmul.mubr.msk.bf16.vlgmr.msra.gmra.mrb[124].mxu1 %vm1642_vm10, %v7108_v41 }
0x18ed   :  { %13425 = vmatpush3.bf16.msra.mxu1 %v7317_v32  ;;  %13426 = vmatprep.mubr.msk.bf16.mxu1 %vm14823_vm6, %v14822_v0 }
0x18ee   :  { %13436 = vmatprep.subr.bf16.mxu1 %v14822_v0 }
0x1907   :  { %v7095_v46 = vpop.xlane.xlu0 %7094 }
0x1908   :  { %14709 = vrcp.f32 %v7095_v46 }
0x190b   :  { %v7460_v54 = vpop.permute.xlu0 %7459 }
0x190f   :  { %v7549_v52 = vpop.permute.xlu0 %7548 }
0x1910   :  { %v7550_v17 = vsel %vm2614_vm12, %v7547_v22, %v7549_v52 }
0x1911   :  { %v7098_v62 = vpop.xlane.xlu1 %7097 }
0x1912   :  { %v14710_v60 = vpop.eup %14709  ;;  %14711 = vrcp.f32 %v7098_v62 }
0x1913   :  { %v7105_v53 = vmul.f32 %v14710_v60, %v16396_v7  ;;  %v7744_v2 = vpop.permute.xlu0 %7743  ;;  %v7461_v7 = vsel %vm2614_vm12, %v7458_v4, %v7460_v54 }
0x1914   :  { %v7749_v61 = vsel %vm1356_vm7, %v7744_v2, 0 }
0x1915   :  { %v7109_v31 = vpack.c.bf16 %v7105_v53, %v7105_v53  ;;  %v7655_v34 = vpop.permute.xlu1 %7654 }
0x1916   :  { %v7660_v3 = vsel %vm1356_vm7, %v7655_v34, 0 }
0x1917   :  { %13421 = vmatmul.mubr.msk.bf16.vlgmr.msra.gmra.mrb[124].mxu0 %vm1642_vm10, %v7109_v31  ;;  %v7638_v19 = vpop.permute.xlu0 %7637 }
0x1918   :  { %13431 = vmatpush3.bf16.xpose.msra.mxu0 %v7482_v37  ;;  %13432 = vmatprep.mubr.msk.bf16.mxu0 %vm14823_vm6, %v14822_v0 }
0x1919   :  { %13442 = vmatprep.subr.bf16.mxu0 %v14822_v0  ;;  %v7636_v11 = vpop.permute.xlu1 %7635 }
0x191a   :  { %v7639_v23 = vsel %vm2614_vm12, %v7636_v11, %v7638_v19 }
0x191b   :  { %v7727_v30 = vpop.permute.xlu0 %7726 }
0x191c   :  { %v14712_v9 = vpop.eup %14711 }
0x191d   :  { %v7106_v49 = vmul.f32 %v14712_v9, %v16400_v5  ;;  %v7725_v35 = vpop.permute.xlu1 %7724 }
0x191e   :  { %v7728_v55 = vsel %vm2614_vm12, %v7725_v35, %v7727_v30 }
0x191f   :  { %13433 = vmatmul.mubr.msk.bf16.vlgmr.msra.gmra.mrb[128].mxu0 %vm1356_vm7, %v7461_v7  ;;  %v7110_v27 = vpack.c.bf16 %v7106_v49, %v7106_v49  ;;  %v7866_v20 = vpop.permute.xlu0 %7865 }
0x1920   :  { %13443 = vmatpush3.bf16.xpose.msra.mxu0 %v7660_v3  ;;  %13444 = vmatprep.mubr.msk.bf16.mxu0 %vm14823_vm6, %v14822_v0 }
0x1921   :  { %13454 = vmatprep.subr.bf16.mxu0 %v14822_v0  ;;  %13427 = vmatmul.mubr.msk.bf16.vlgmr.msra.gmra.mrb[128].mxu1 %vm1642_vm10, %v7110_v27  ;;  %v7868_v59 = vpop.permute.xlu1 %7867 }
0x1922   :  { %13437 = vmatpush3.bf16.xpose.msra.mxu1 %v7571_v16  ;;  %13438 = vmatprep.mubr.msk.bf16.mxu1 %vm14823_vm6, %v14822_v0  ;;  %v7869_v5 = vsel %vm2614_vm12, %v7866_v20, %v7868_v59 }
0x1923   :  { %13448 = vmatprep.subr.bf16.mxu1 %v14822_v0  ;;  %v7874_v4 = vsel %vm1646_vm8, %v7869_v5, 0  ;;  %v7941_v45 = vpop.permute.xlu0 %7940 }
0x1925   :  { %v7939_v56 = vpop.permute.xlu1 %7938 }
0x1926   :  { %v7942_v38 = vsel %vm2614_vm12, %v7939_v56, %v7941_v45 }
0x1927   :  { %13445 = vmatmul.mubr.msk.bf16.vlgmr.msra.gmra.mrb[132].mxu0 %vm1356_vm7, %v7639_v23  ;;  %v7947_v40 = vsel %vm1646_vm8, %v7942_v38, 0 }
0x1928   :  { %13455 = vmatpush3.bf16.msra.mxu0 %v7874_v4  ;;  %13456 = vmatprep.mubr.msk.bf16.mxu0 %vm14823_vm6, %v14822_v0 }
0x1929   :  { %13466 = vmatprep.subr.bf16.mxu0 %v14822_v0  ;;  %13439 = vmatmul.mubr.msk.bf16.vlgmr.msra.gmra.mrb[132].mxu1 %vm1356_vm7, %v7550_v17 }
0x192a   :  { %13449 = vmatpush3.bf16.xpose.msra.mxu1 %v7749_v61  ;;  %13450 = vmatprep.mubr.msk.bf16.mxu1 %vm14823_vm6, %v14822_v0 }
0x192b   :  { %13460 = vmatprep.subr.bf16.mxu1 %v14822_v0 }
0x1931   :  { %13451 = vmatmul.mubr.msk.bf16.vlgmr.msra.gmra.mrb[136].mxu1 %vm1356_vm7, %v7728_v55 }
0x1932   :  { %13461 = vmatpush3.bf16.msra.mxu1 %v7947_v40  ;;  %13462 = vmatprep.mubr.msk.bf16.mxu1 %vm14823_vm6, %v14822_v0 }
0x1933   :  { %13472 = vmatprep.subr.bf16.mxu1 %v14822_v0 }
0x19b5   :  { %v7167_v41 = vpop.f32.mrb[120].mxu0 }
0x19b6   :  { %v13410_v32 = vpop.f32.mrb[121].mxu0 }
0x19b7   :  { %v7170_v50 = vpop.f32.mrb[122].mxu0 }
0x19b8   :  { %v13411_v46 = vpop.f32.mrb[123].mxu0 }
0x19bf   :  { %v7229_v54 = vpop.f32.mrb[124].mxu1 }
0x19c0   :  { %v8685_v22 = vcombine.low %v7167_v41, %v7229_v54  ;;  %v13416_v52 = vpop.f32.mrb[125].mxu1 }
0x19c1   :  { %v7232_v60 = vpop.f32.mrb[126].mxu1 }
0x19c2   :  { %v13417_v62 = vpop.f32.mrb[127].mxu1  ;;  %v16511_v16 = vrot.slane %v8685_v22, %v15424_v43 }
0x19ea   :  { %v7291_v53 = vpop.f32.mrb[124].mxu0 }
0x19eb   :  { %v13422_v2 = vpop.f32.mrb[125].mxu0 }
0x19ec   :  { %v7294_v31 = vpop.f32.mrb[126].mxu0 }
0x19ed   :  { %v13423_v34 = vpop.f32.mrb[127].mxu0  ;;  %v7996_v31 = vcombine.high %v16449_v39, %v16449_v39 }
0x19f2   :  { %v7518_v37 = vpop.f32.mrb[128].mxu0 }
0x19f3   :  { %v7791_v19 = vmul.f32 0.14433756, %v7518_v37  ;;  %v13434_v11 = vpop.f32.mrb[129].mxu0  ;;  %v8010_v37 = vrot.slane %v7996_v31, %v15184_v58 }
0x19f4   :  { %v7521_v9 = vpop.f32.mrb[130].mxu0  ;;  %v7353_v30 = vpop.f32.mrb[128].mxu1 }
0x19f5   :  { %v13435_v7 = vpop.f32.mrb[131].mxu0  ;;  %v7795_v49 = vsel %vm1593_vm9, %v7791_v19, -inf  ;;  %v8686_v35 = vcombine.low %v7291_v53, %v7353_v30  ;;  %v13428_v3 = vpop.f32.mrb[129].mxu1  ;;  %v7434_v53 = vcombine.high %v16432_v57, %v16432_v57 }
0x19f6   :  { %7796 = vmax.xlane.f32.xlu1 %v7795_v49  ;;  %v7356_v27 = vpop.f32.mrb[130].mxu1  ;;  %v8012_v11 = vpop.permute.xlu1 %8011 }
0x19f7   :  { %v16514_v59 = vrot.slane %v8686_v35, %v15424_v43  ;;  %v13429_v20 = vpop.f32.mrb[131].mxu1  ;;  %v8068_v2 = vrot.slane %v7434_v53, %v15184_v58 }
0x19f9   :  { %v8701_v5 = vcombine.low %v16511_v16, %v16514_v59  ;;  %v8076_v34 = vrot.slane %v8068_v2, %v15184_v58 }
0x19fa   :  { %v7696_v23 = vpop.f32.mrb[132].mxu0 }
0x19fb   :  { %v13446_v4 = vpop.f32.mrb[133].mxu0  ;;  %v7793_v40 = vmul.f32 0.14433756, %v7696_v23  ;;  %v8069_v23 = vcombine.high %v8068_v2, %v8068_v2 }
0x19fc   :  { %v7699_v17 = vpop.f32.mrb[134].mxu0  ;;  %v7607_v61 = vpop.f32.mrb[132].mxu1 }
0x19fd   :  { %v13447_v56 = vpop.f32.mrb[135].mxu0  ;;  %v7792_v45 = vmul.f32 0.14433756, %v7607_v61  ;;  %v13440_v38 = vpop.f32.mrb[133].mxu1  ;;  %v7801_v50 = vsel %vm1593_vm9, %v7793_v40, -inf  ;;  %v8083_v4 = vrot.slane %v8069_v23, %v15184_v58 }
0x19fe   :  { %v7610_v55 = vpop.f32.mrb[134].mxu1 }
0x19ff   :  { %v13441_v41 = vpop.f32.mrb[135].mxu1  ;;  %v7798_v32 = vsel %vm1593_vm9, %v7792_v45, -inf }
0x1a00   :  { %7799 = vmax.xlane.f32.xlu0 %v7798_v32 }
0x1a04   :  { %7802 = vmax.xlane.f32.xlu0 %v7801_v50  ;;  %v7785_v46 = vpop.f32.mrb[136].mxu1 }
0x1a05   :  { %v7794_v54 = vmul.f32 0.14433756, %v7785_v46  ;;  %v13452_v22 = vpop.f32.mrb[137].mxu1 }
0x1a06   :  { %v7788_v52 = vpop.f32.mrb[138].mxu1 }
0x1a07   :  { %v13453_v60 = vpop.f32.mrb[139].mxu1  ;;  %v7804_v62 = vsel %vm1593_vm9, %v7794_v54, -inf }
0x1a08   :  { %7805 = vmax.xlane.f32.xlu1 %v7804_v62 }
0x1a19   :  { %8084 = vrot.lane.b32.xlu1 %v8076_v34, %s14829_s17 }
0x1a1a   :  { %8013 = vrot.lane.b32.xlu0 %v8010_v37, %s14829_s17 }
0x1a83   :  { %v7797_v9 = vpop.xlane.xlu1 %7796 }
0x1a84   :  { %v7807_v30 = vsub.f32 %v7791_v19, %v7797_v9 }
0x1a86   :  { %v7811_v7 = vmul.f32 1.442695, %v7807_v30 }
0x1a88   :  { %14713 = vpow2.f32 %v7811_v7 }
0x1a8d   :  { %v7800_v49 = vpop.xlane.xlu0 %7799 }
0x1a8e   :  { %v7808_v57 = vsub.f32 %v7792_v45, %v7800_v49 }
0x1a90   :  { %v7813_v35 = vmul.f32 1.442695, %v7808_v57 }
0x1a91   :  { %v7803_v19 = vpop.xlane.xlu0 %7802 }
0x1a92   :  { %v14714_v3 = vpop.eup %14713  ;;  %14715 = vpow2.f32 %v7813_v35  ;;  %v7809_v17 = vsub.f32 %v7793_v40, %v7803_v19 }
0x1a93   :  { %v7819_v39 = vsel %vm1593_vm9, %v14714_v3, 0.0 }
0x1a94   :  { %7820 = vadd.xlane.f32.xlu0 %v7819_v39  ;;  %v7815_v61 = vmul.f32 1.442695, %v7809_v17 }
0x1a95   :  { %v7806_v56 = vpop.xlane.xlu1 %7805 }
0x1a96   :  { %14717 = vpow2.f32 %v7815_v61  ;;  %v7810_v45 = vsub.f32 %v7794_v54, %v7806_v56 }
0x1a98   :  { %v7817_v38 = vmul.f32 1.442695, %v7810_v45 }
0x1a99   :  { %v8085_v40 = vpop.permute.xlu1 %8084 }
0x1a9a   :  { %14719 = vpow2.f32 %v7817_v38 }
0x1a9c   :  { %v14716_v27 = vpop.eup %14715 }
0x1a9d   :  { %v7822_v20 = vsel %vm1593_vm9, %v14716_v27, 0.0 }
0x1a9e   :  { %7823 = vadd.xlane.f32.xlu1 %v7822_v20 }
0x1aa0   :  { %v14718_v55 = vpop.eup %14717 }
0x1aa1   :  { %v7825_v41 = vsel %vm1593_vm9, %v14718_v55, 0.0 }
0x1aa4   :  { %v14720_v32 = vpop.eup %14719 }
0x1aa5   :  { %v7828_v50 = vsel %vm1593_vm9, %v14720_v32, 0.0 }
0x1aaa   :  { %8086 = vrot.lane.b32.xlu0 %v8083_v4, %s14829_s17 }
0x1aaf   :  { %8161 = vrot.lane.b32.xlu1 %v16356_v15, %s14830_s21  ;;  %v8014_v15 = vpop.permute.xlu0 %8013 }
0x1ac9   :  { %7826 = vadd.xlane.f32.xlu0 %v7825_v41 }
0x1ad3   :  { %7829 = vadd.xlane.f32.xlu1 %v7828_v50 }
0x1adf   :  { %8211 = vrot.lane.b32.xlu0 %v16387_v63, %s14830_s21 }
0x1ae3   :  { %8209 = vrot.lane.b32.xlu0 %v16123_v42, %s14831_s25 }
0x1ae4   :  { %8159 = vrot.lane.b32.xlu1 %v16117_v10, %s14831_s25  ;;  %v8015_v10 = vsel %vm2614_vm12, %v8012_v11, %v8014_v15 }
0x1ae5   :  { %v8020_v22 = vsel %vm1646_vm8, %v8015_v10, 0 }
0x1ae7   :  { %8311 = vrot.lane.b32.xlu0 %v16424_v29, %s14830_s21 }
0x1ae8   :  { %8261 = vrot.lane.b32.xlu1 %v16419_v21, %s14830_s21 }
0x1aeb   :  { %8309 = vrot.lane.b32.xlu0 %v16130_v47, %s14831_s25 }
0x1aec   :  { %8259 = vrot.lane.b32.xlu1 %v16135_v24, %s14831_s25 }
0x1b21   :  { %v7821_v63 = vpop.xlane.xlu0 %7820 }
0x1b22   :  { %14721 = vrcp.f32 %v7821_v63 }
0x1b25   :  { %v8087_v47 = vpop.permute.xlu0 %8086 }
0x1b26   :  { %v8088_v52 = vsel %vm2614_vm12, %v8085_v40, %v8087_v47 }
0x1b27   :  { %v8093_v62 = vsel %vm1646_vm8, %v8088_v52, 0 }
0x1b2b   :  { %v7824_v46 = vpop.xlane.xlu1 %7823 }
0x1b2c   :  { %v14722_v42 = vpop.eup %14721  ;;  %14723 = vrcp.f32 %v7824_v46 }
0x1b2d   :  { %v7835_v54 = vmul.f32 %v14722_v42, %v14714_v3 }
0x1b2f   :  { %v7839_v29 = vpack.c.bf16 %v7835_v54, %v7835_v54  ;;  %v8162_v2 = vpop.permute.xlu1 %8161 }
0x1b30   :  { %v8167_v30 = vsel %vm1356_vm7, %v8162_v2, 0 }
0x1b31   :  { %13457 = vmatmul.mubr.msk.bf16.vlgmr.msra.gmra.mrb[136].mxu0 %vm1642_vm10, %v7839_v29 }
0x1b32   :  { %13467 = vmatpush3.bf16.msra.mxu0 %v8020_v22  ;;  %13468 = vmatprep.mubr.msk.bf16.mxu0 %vm14823_vm6, %v14822_v0 }
0x1b33   :  { %13478 = vmatprep.subr.bf16.mxu0 %v14822_v0 }
0x1b36   :  { %v14724_v24 = vpop.eup %14723 }
0x1b37   :  { %v7836_v21 = vmul.f32 %v14724_v24, %v14716_v27 }
0x1b39   :  { %v7840_v60 = vpack.c.bf16 %v7836_v21, %v7836_v21 }
0x1b3b   :  { %13463 = vmatmul.mubr.msk.bf16.vlgmr.msra.gmra.mrb[140].mxu1 %vm1642_vm10, %v7840_v60 }
0x1b3c   :  { %13473 = vmatpush3.bf16.msra.mxu1 %v8093_v62  ;;  %13474 = vmatprep.mubr.msk.bf16.mxu1 %vm14823_vm6, %v14822_v0 }
0x1b3d   :  { %13484 = vmatprep.subr.bf16.mxu1 %v14822_v0 }
0x1b56   :  { %v7827_v53 = vpop.xlane.xlu0 %7826 }
0x1b57   :  { %14725 = vrcp.f32 %v7827_v53 }
0x1b5a   :  { %v8212_v7 = vpop.permute.xlu0 %8211 }
0x1b5b   :  { %v8217_v20 = vsel %vm1356_vm7, %v8212_v7, 0 }
0x1b5e   :  { %v8210_v27 = vpop.permute.xlu0 %8209 }
0x1b60   :  { %v7830_v34 = vpop.xlane.xlu1 %7829 }
0x1b61   :  { %v14726_v31 = vpop.eup %14725  ;;  %14727 = vrcp.f32 %v7830_v34 }
0x1b62   :  { %v7837_v37 = vmul.f32 %v14726_v31, %v14718_v55  ;;  %v8312_v4 = vpop.permute.xlu0 %8311 }
0x1b63   :  { %v8317_v19 = vsel %vm1356_vm7, %v8312_v4, 0 }
0x1b64   :  { %v7841_v11 = vpack.c.bf16 %v7837_v37, %v7837_v37  ;;  %v8160_v9 = vpop.permute.xlu1 %8159 }
0x1b66   :  { %13469 = vmatmul.mubr.msk.bf16.vlgmr.msra.gmra.mrb[140].mxu0 %vm1642_vm10, %v7841_v11  ;;  %v8310_v17 = vpop.permute.xlu0 %8309 }
0x1b67   :  { %13479 = vmatpush3.bf16.xpose.msra.mxu0 %v8167_v30  ;;  %13480 = vmatprep.mubr.msk.bf16.mxu0 %vm14823_vm6, %v14822_v0 }
0x1b68   :  { %13490 = vmatprep.subr.bf16.mxu0 %v14822_v0  ;;  %v8262_v49 = vpop.permute.xlu1 %8261 }
0x1b69   :  { %v8267_v3 = vsel %vm1356_vm7, %v8262_v49, 0 }
0x1b6b   :  { %v14728_v57 = vpop.eup %14727 }
0x1b6c   :  { %v7838_v35 = vmul.f32 %v14728_v57, %v14720_v32  ;;  %v8260_v23 = vpop.permute.xlu1 %8259 }
0x1b6e   :  { %13481 = vmatmul.mubr.msk.bf16.vlgmr.msra.gmra.mrb[144].mxu0 %vm1356_vm7, %v8160_v9  ;;  %v7842_v39 = vpack.c.bf16 %v7838_v35, %v7838_v35 }
0x1b6f   :  { %13491 = vmatpush3.bf16.xpose.msra.mxu0 %v8267_v3  ;;  %13492 = vmatprep.mubr.msk.bf16.mxu0 %vm14823_vm6, %v14822_v0 }
0x1b70   :  { %13502 = vmatprep.subr.bf16.mxu0 %v14822_v0  ;;  %13475 = vmatmul.mubr.msk.bf16.vlgmr.msra.gmra.mrb[144].mxu1 %vm1642_vm10, %v7842_v39 }
0x1b71   :  { %13485 = vmatpush3.bf16.xpose.msra.mxu1 %v8217_v20  ;;  %13486 = vmatprep.mubr.msk.bf16.mxu1 %vm14823_vm6, %v14822_v0  ;;  %v7408_v20 = vpack.c.bf16 %v16144_v12, %v16144_v12 }
0x1b72   :  { %13496 = vmatprep.subr.bf16.mxu1 %v14822_v0 }
0x1b76   :  { %13493 = vmatmul.mubr.msk.bf16.vlgmr.msra.gmra.mrb[148].mxu0 %vm1356_vm7, %v8260_v23 }
0x1b77   :  { %13504 = vmatprep.mubr.msk.bf16.mxu0 %vm14823_vm6, %v14822_v0 }
0x1b78   :  { %13487 = vmatmul.mubr.msk.bf16.vlgmr.msra.gmra.mrb[148].mxu1 %vm1356_vm7, %v8210_v27 }
0x1b79   :  { %13497 = vmatpush3.bf16.xpose.msra.mxu1 %v8317_v19  ;;  %13498 = vmatprep.mubr.msk.bf16.mxu1 %vm14823_vm6, %v14822_v0 }
0x1b7a   :  { %13508 = vmatprep.subr.bf16.mxu1 %v14822_v0 }
0x1b80   :  { %13499 = vmatmul.mubr.msk.bf16.vlgmr.msra.gmra.mrb[152].mxu1 %vm1356_vm7, %v8310_v17 }
0x1b81   :  { %13510 = vmatprep.mubr.msk.bf16.mxu1 %vm14823_vm6, %v14822_v0 }
0x1c04   :  { %v7910_v61 = vpop.f32.mrb[136].mxu0 }
0x1c05   :  { %v13458_v56 = vpop.f32.mrb[137].mxu0 }
0x1c06   :  { %v7913_v45 = vpop.f32.mrb[138].mxu0  ;;  %v8141_v56 = vrot.slane %v7408_v20, %v15184_v58 }
0x1c07   :  { %v13459_v38 = vpop.f32.mrb[139].mxu0 }
0x1c0e   :  { %v7983_v55 = vpop.f32.mrb[140].mxu1 }
0x1c0f   :  { %v8709_v41 = vcombine.low %v7910_v61, %v7983_v55  ;;  %v13464_v32 = vpop.f32.mrb[141].mxu1  ;;  %v8142_v55 = vcombine.high %v8141_v56, %v8141_v56 }
0x1c10   :  { %v7986_v50 = vpop.f32.mrb[142].mxu1  ;;  %v8149_v32 = vrot.slane %v8141_v56, %v15184_v58 }
0x1c11   :  { %v13465_v15 = vpop.f32.mrb[143].mxu1  ;;  %v16592_v53 = vrot.slane %v8709_v41, %v15424_v43  ;;  %v8156_v41 = vrot.slane %v8142_v55, %v15184_v58 }
0x1c12   :  { %v8417_v50 = vrot.slane %v8149_v32, %v15184_v58 }
0x1c13   :  { %v8479_v12 = vrot.slane %v8156_v41, %v15184_v58  ;;  %v8158_v20 = vcombine.high %v8156_v41, %v8156_v41 }
0x1c15   :  { %v8486_v15 = vrot.slane %v8479_v12, %v15184_v58 }
0x1c39   :  { %v8056_v63 = vpop.f32.mrb[140].mxu0 }
0x1c3a   :  { %v13470_v40 = vpop.f32.mrb[141].mxu0 }
0x1c3b   :  { %v8059_v42 = vpop.f32.mrb[142].mxu0 }
0x1c3c   :  { %v13471_v46 = vpop.f32.mrb[143].mxu0 }
0x1c41   :  { %v8203_v54 = vpop.f32.mrb[144].mxu0 }
0x1c42   :  { %v8359_v10 = vmul.f32 0.14433756, %v8203_v54  ;;  %v13482_v29 = vpop.f32.mrb[145].mxu0 }
0x1c43   :  { %v8206_v22 = vpop.f32.mrb[146].mxu0  ;;  %v8129_v47 = vpop.f32.mrb[144].mxu1 }
0x1c44   :  { %v13483_v24 = vpop.f32.mrb[147].mxu0  ;;  %v8363_v21 = vsel %vm1593_vm9, %v8359_v10, -inf  ;;  %v8710_v52 = vcombine.low %v8056_v63, %v8129_v47  ;;  %v13476_v60 = vpop.f32.mrb[145].mxu1  ;;  %v8424_v63 = vrot.slane %v8417_v50, %v15184_v58 }
0x1c45   :  { %8364 = vmax.xlane.f32.xlu1 %v8363_v21  ;;  %v8132_v62 = vpop.f32.mrb[146].mxu1 }
0x1c46   :  { %v16595_v2 = vrot.slane %v8710_v52, %v15424_v43  ;;  %v13477_v31 = vpop.f32.mrb[147].mxu1 }
0x1c48   :  { %v8725_v34 = vcombine.low %v16592_v53, %v16595_v2 }
0x1c49   :  { %v8303_v37 = vpop.f32.mrb[148].mxu0 }
0x1c4a   :  { %v13494_v11 = vpop.f32.mrb[149].mxu0  ;;  %v8361_v3 = vmul.f32 0.14433756, %v8303_v37 }
0x1c4b   :  { %v8306_v9 = vpop.f32.mrb[150].mxu0  ;;  %v8253_v30 = vpop.f32.mrb[148].mxu1 }
0x1c4c   :  { %v13495_v7 = vpop.f32.mrb[151].mxu0  ;;  %v8360_v49 = vmul.f32 0.14433756, %v8253_v30  ;;  %v13488_v57 = vpop.f32.mrb[149].mxu1  ;;  %v8369_v23 = vsel %vm1593_vm9, %v8361_v3, -inf }
0x1c4d   :  { %v8256_v35 = vpop.f32.mrb[150].mxu1 }
0x1c4e   :  { %v13489_v39 = vpop.f32.mrb[151].mxu1  ;;  %v8366_v27 = vsel %vm1593_vm9, %v8360_v49, -inf }
0x1c4f   :  { %8367 = vmax.xlane.f32.xlu0 %v8366_v27  ;;  %v8157_v27 = vcombine.high %v8149_v32, %v8149_v32 }
0x1c53   :  { %8370 = vmax.xlane.f32.xlu0 %v8369_v23  ;;  %v8353_v4 = vpop.f32.mrb[152].mxu1  ;;  %v8541_v23 = vrot.slane %v8157_v27, %v15184_v58 }
0x1c54   :  { %v8362_v19 = vmul.f32 0.14433756, %v8353_v4  ;;  %v13500_v17 = vpop.f32.mrb[153].mxu1  ;;  %v8603_v4 = vrot.slane %v8158_v20, %v15184_v58 }
0x1c55   :  { %v8356_v61 = vpop.f32.mrb[154].mxu1 }
0x1c56   :  { %v13501_v45 = vpop.f32.mrb[155].mxu1  ;;  %v8372_v38 = vsel %vm1593_vm9, %v8362_v19, -inf  ;;  %v8610_v17 = vrot.slane %v8603_v4, %v15184_v58 }
0x1c57   :  { %8373 = vmax.xlane.f32.xlu1 %v8372_v38 }
0x1c68   :  { %8487 = vrot.lane.b32.xlu1 %v8486_v15, %s14831_s25 }
0x1c69   :  { %8425 = vrot.lane.b32.xlu0 %v8424_v63, %s14831_s25 }
0x1cd2   :  { %v8365_v40 = vpop.xlane.xlu1 %8364 }
0x1cd3   :  { %v8375_v42 = vsub.f32 %v8359_v10, %v8365_v40 }
0x1cd5   :  { %v8379_v46 = vmul.f32 1.442695, %v8375_v42 }
0x1cd7   :  { %14729 = vpow2.f32 %v8379_v46  ;;  %v14121_v46 = vld [vmem:[%s14896_s24 + $0xc0] ss:$8 sps:$4 sm:$0xff]  }
0x1cdc   :  { %v8368_v54 = vpop.xlane.xlu0 %8367 }
0x1cdd   :  { %v8376_v29 = vsub.f32 %v8360_v49, %v8368_v54  ;;  %v14123_v54 = vld [vmem:[%s14896_s24 + $0xc4] ss:$8 sps:$4 sm:$0xff]  }
0x1cdf   :  { %v8381_v22 = vmul.f32 1.442695, %v8376_v29  ;;  %v14126_v29 = vld [vmem:[%s14896_s24 + $0xd4] ss:$8 sps:$4 sm:$0xff]  }
0x1ce0   :  { %v8371_v24 = vpop.xlane.xlu0 %8370 }
0x1ce1   :  { %v14730_v47 = vpop.eup %14729  ;;  %14731 = vpow2.f32 %v8381_v22  ;;  %v8377_v21 = vsub.f32 %v8361_v3, %v8371_v24  ;;  %v14124_v22 = vld [vmem:[%s14896_s24 + $0xd0] ss:$8 sps:$4 sm:$0xff]   ;;  %v14127_v24 = vld [vmem:[%s14896_s24 + $0xe0] ss:$8 sps:$4 sm:$0xff]  }
0x1ce2   :  { %v8387_v52 = vsel %vm1593_vm9, %v14730_v47, 0.0 }
0x1ce3   :  { %8388 = vadd.xlane.f32.xlu0 %v8387_v52  ;;  %v8383_v60 = vmul.f32 1.442695, %v8377_v21  ;;  %v14132_v21 = vld [vmem:[%s14896_s24 + $0xf4] ss:$8 sps:$4 sm:$0xff]   ;;  %v14130_v52 = vld [vmem:[%s14896_s24 + $0xf0] ss:$8 sps:$4 sm:$0xff]  }
0x1ce4   :  { %v8426_v62 = vpop.permute.xlu0 %8425  ;;  %v8374_v31 = vpop.xlane.xlu1 %8373 }
0x1ce5   :  { %14733 = vpow2.f32 %v8383_v60  ;;  %v8431_v37 = vsel %vm1646_vm8, %v8426_v62, 0  ;;  %v8378_v11 = vsub.f32 %v8362_v19, %v8374_v31  ;;  %v8548_v19 = vrot.slane %v8541_v23, %v15184_v58  ;;  %v14135_v60 = vld [vmem:[%s14896_s24 + $0x104] ss:$8 sps:$4 sm:$0xff]   ;;  %v14133_v62 = vld [vmem:[%s14896_s24 + $0x100] ss:$8 sps:$4 sm:$0xff]  }
0x1ce6   :  { %13503 = vmatpush3.bf16.msra.mxu0 %v8431_v37  ;;  %v14138_v31 = vld [vmem:[%s14896_s24 + $0x114] ss:$8 sps:$4 sm:$0xff]   ;;  %v14136_v37 = vld [vmem:[%s14896_s24 + $0x110] ss:$8 sps:$4 sm:$0xff]  }
0x1ce7   :  { %v8385_v10 = vmul.f32 1.442695, %v8378_v11  ;;  %13514 = vmatprep.subr.bf16.mxu0 %v14822_v0  ;;  %v14141_v11 = vld [vmem:[%s14896_s24 + $0x124] ss:$8 sps:$4 sm:$0xff]  }
0x1ce8   :  { %v8488_v9 = vpop.permute.xlu1 %8487 }
0x1ce9   :  { %14735 = vpow2.f32 %v8385_v10  ;;  %v8493_v30 = vsel %vm1646_vm8, %v8488_v9, 0  ;;  %v14139_v10 = vld [vmem:[%s14896_s24 + $0x120] ss:$8 sps:$4 sm:$0xff]   ;;  %v14144_v9 = vld [vmem:[%s14896_s24 + $0x134] ss:$8 sps:$4 sm:$0xff]  }
0x1cea   :  { %13509 = vmatpush3.bf16.msra.mxu1 %v8493_v30  ;;  %v14142_v30 = vld [vmem:[%s14896_s24 + $0x130] ss:$8 sps:$4 sm:$0xff]  }
0x1ceb   :  { %v14732_v7 = vpop.eup %14731  ;;  %13520 = vmatprep.subr.bf16.mxu1 %v14822_v0 }
0x1cec   :  { %v8390_v49 = vsel %vm1593_vm9, %v14732_v7, 0.0 }
0x1ced   :  { %8391 = vadd.xlane.f32.xlu1 %v8390_v49  ;;  %v14145_v49 = vld [vmem:[%s14896_s24 + $0x140] ss:$8 sps:$4 sm:$0xff]  }
0x1cef   :  { %v14734_v57 = vpop.eup %14733 }
0x1cf0   :  { %v8393_v35 = vsel %vm1593_vm9, %v14734_v57, 0.0 }
0x1cf1   :  { %8394 = vadd.xlane.f32.xlu0 %v8393_v35  ;;  %v14148_v35 = vld [vmem:[%s14896_s24 + $0x150] ss:$8 sps:$4 sm:$0xff]  }
0x1cf3   :  { %v14736_v3 = vpop.eup %14735 }
0x1cf4   :  { %v8396_v39 = vsel %vm1593_vm9, %v14736_v3, 0.0 }
0x1cf5   :  { %8397 = vadd.xlane.f32.xlu1 %v8396_v39  ;;  %v14151_v39 = vld [vmem:[%s14896_s24 + $0x160] ss:$8 sps:$4 sm:$0xff]  }
0x1d06   :  { %8549 = vrot.lane.b32.xlu1 %v8548_v19, %s14831_s25 }
0x1d07   :  { %8611 = vrot.lane.b32.xlu0 %v8610_v17, %s14831_s25 }
0x1d0a   :  { %8702 = vrot.lane.b32.xlu1 %v8701_v5, %s14830_s21 }
0x1d0b   :  { %8726 = vrot.lane.b32.xlu0 %v8725_v34, %s14828_s13 }
0x1d70   :  { %v8389_v61 = vpop.xlane.xlu0 %8388 }
0x1d71   :  { %14737 = vrcp.f32 %v8389_v61 }
0x1d7a   :  { %v8392_v45 = vpop.xlane.xlu1 %8391 }
0x1d7b   :  { %v14738_v56 = vpop.eup %14737  ;;  %14739 = vrcp.f32 %v8392_v45 }
0x1d7c   :  { %v8403_v38 = vmul.f32 %v14738_v56, %v14730_v47  ;;  %v14129_v47 = vld [vmem:[%s14896_s24 + $0xe4] ss:$8 sps:$4 sm:$0xff]  }
0x1d7e   :  { %v8407_v58 = vpack.c.bf16 %v8403_v38, %v8403_v38  ;;  %v8395_v55 = vpop.xlane.xlu0 %8394  ;;  %v14154_v38 = vld [vmem:[%s14896_s24 + $0x170] ss:$8 sps:$4 sm:$0xff]  }
0x1d7f   :  { %14741 = vrcp.f32 %v8395_v55 }
0x1d80   :  { %13505 = vmatmul.mubr.msk.bf16.vlgmr.msra.gmra.mrb[152].mxu0 %vm1642_vm10, %v8407_v58  ;;  %v14156_v58 = vld [vmem:[%s14896_s24 + $0x174] ss:$8 sps:$4 sm:$0xff]  }
0x1d81   :  { %13516 = vmatprep.mubr.msk.bf16.mxu0 %vm14823_vm6, %v14822_v0 }
0x1d82   :  { %v8398_v16 = vpop.xlane.xlu1 %8397  ;;  %v8612_v2 = vpop.permute.xlu0 %8611 }
0x1d83   :  { %14743 = vrcp.f32 %v8398_v16  ;;  %v8617_v50 = vsel %vm1646_vm8, %v8612_v2, 0 }
0x1d85   :  { %v14740_v59 = vpop.eup %14739 }
0x1d86   :  { %v8404_v5 = vmul.f32 %v14740_v59, %v14732_v7  ;;  %v8550_v53 = vpop.permute.xlu1 %8549  ;;  %v14147_v7 = vld [vmem:[%s14896_s24 + $0x144] ss:$8 sps:$4 sm:$0xff]  }
0x1d87   :  { %v8555_v34 = vsel %vm1646_vm8, %v8550_v53, 0 }
0x1d88   :  { %13515 = vmatpush3.bf16.msra.mxu0 %v8555_v34  ;;  %v8408_v41 = vpack.c.bf16 %v8404_v5, %v8404_v5 }
0x1d89   :  { %v14742_v32 = vpop.eup %14741  ;;  %8919 = vmatprep.subr.bf16.mxu0 %v14123_v54 }
0x1d8a   :  { %v8405_v12 = vmul.f32 %v14742_v32, %v14734_v57  ;;  %13511 = vmatmul.mubr.msk.bf16.vlgmr.msra.gmra.mrb[156].mxu1 %vm1642_vm10, %v8408_v41  ;;  %v14150_v57 = vld [vmem:[%s14896_s24 + $0x154] ss:$8 sps:$4 sm:$0xff]  }
0x1d8b   :  { %13521 = vmatpush3.bf16.msra.mxu1 %v8617_v50  ;;  %13522 = vmatprep.mubr.msk.bf16.mxu1 %vm14823_vm6, %v14822_v0 }
0x1d8c   :  { %v8409_v15 = vpack.c.bf16 %v8405_v12, %v8405_v12 }
0x1d8d   :  { %v14744_v63 = vpop.eup %14743 }
0x1d8e   :  { %v8406_v40 = vmul.f32 %v14744_v63, %v14736_v3  ;;  %13517 = vmatmul.mubr.msk.bf16.vlgmr.msra.gmra.mrb[156].mxu0 %vm1642_vm10, %v8409_v15  ;;  %v14153_v3 = vld [vmem:[%s14896_s24 + $0x164] ss:$8 sps:$4 sm:$0xff]   ;;  %v8703_v63 = vpop.permute.xlu1 %8702  ;;  %s17141_s24 = sld [smem:[#allocation14_spill]] }
0x1d8f   :  { %8920 = vmatpush1.bf16.msra.mxu0 %v14121_v46 }
0x1d90   :  { %v8410_v42 = vpack.c.bf16 %v8406_v40, %v8406_v40  ;;  %8921 = vmatprep.subr.bf16.mxu0 %v14126_v29  ;;  %v8753_v40 = vsel %vm1356_vm7, %v8679_v18, %v8703_v63 }
0x1d92   :  { %13523 = vmatmul.mubr.msk.bf16.vlgmr.msra.gmra.mrb[160].mxu1 %vm1642_vm10, %v8410_v42  ;;  %v8727_v42 = vpop.permute.xlu0 %8726 }
0x1d93   :  { %8922 = vmatpush1.bf16.msra.mxu0 %v14124_v22  ;;  %v8754_v46 = vsel %vm3908_vm13, %v8753_v40, %v8727_v42  ;;  %v14198_v40 = vld [vmem:[%s14916_s20 + $0x36c] ss:$24 sps:$4 sm:$0xff]  }
0x1d94   :  { %8923 = vmatprep.subr.bf16.mxu0 %v14129_v47  ;;  %v8756_v47 = vpack.c.bf16 %v8754_v46, %v8754_v46  ;;  %v14199_v46 = vld [vmem:[%s14916_s20 + $0x390] ss:$24 sps:$4 sm:$0xff]  }
0x1d97   :  { %8924 = vmatpush1.bf16.msra.mxu0 %v14127_v24 }
0x1d98   :  { %8925 = vmatprep.subr.bf16.mxu0 %v14132_v21 }
0x1d9b   :  { %8926 = vmatpush1.bf16.msra.mxu0 %v14130_v52 }
0x1d9c   :  { %8927 = vmatprep.subr.bf16.mxu0 %v14135_v60 }
0x1d9f   :  { %8928 = vmatpush1.bf16.msra.mxu0 %v14133_v62 }
0x1da0   :  { %8929 = vmatprep.subr.bf16.mxu0 %v14138_v31 }
0x1da3   :  { %8930 = vmatpush1.bf16.msra.mxu0 %v14136_v37 }
0x1da4   :  { %8931 = vmatprep.subr.bf16.mxu0 %v14141_v11 }
0x1da7   :  { %8932 = vmatpush1.bf16.msra.mxu0 %v14139_v10 }
0x1da8   :  { %8933 = vmatprep.subr.bf16.mxu0 %v14144_v9  ;;  %v14157_v9 = vld [vmem:[%s14916_s20 + $0x240] ss:$24 sps:$4 sm:$0xff]  }
0x1dab   :  { %8934 = vmatpush1.bf16.msra.mxu0 %v14142_v30  ;;  %v14159_v30 = vld [vmem:[%s14916_s20 + $0x244] ss:$24 sps:$4 sm:$0xff]  }
0x1dac   :  { %8935 = vmatprep.subr.bf16.mxu0 %v14147_v7  ;;  %v14160_v7 = vld [vmem:[%s14916_s20 + $0x248] ss:$24 sps:$4 sm:$0xff]   ;;  %9481 = vmatprep.subr.bf16.mxu1 %v14159_v30  ;;  %v14226_v30 = vld [vmem:[%s14916_s20 + $0x458] ss:$24 sps:$4 sm:$0xff]  }
0x1dad   :  { %9482 = vmatpush1.bf16.msra.mxu1 %v14157_v9  ;;  %v14223_v9 = vld [vmem:[%s14916_s20 + $0x450] ss:$24 sps:$4 sm:$0xff]  }
0x1daf   :  { %8936 = vmatpush1.bf16.msra.mxu0 %v14145_v49  ;;  %v14162_v49 = vld [vmem:[%s14916_s20 + $0x24c] ss:$24 sps:$4 sm:$0xff]  }
0x1db0   :  { %8937 = vmatprep.subr.bf16.mxu0 %v14150_v57  ;;  %v14165_v57 = vld [vmem:[%s14916_s20 + $0x274] ss:$24 sps:$4 sm:$0xff]  }
0x1db1   :  { %9483 = vmatprep.subr.bf16.mxu1 %v14165_v57 }
0x1db3   :  { %8938 = vmatpush1.bf16.msra.mxu0 %v14148_v35  ;;  %v14168_v35 = vld [vmem:[%s14916_s20 + $0x27c] ss:$24 sps:$4 sm:$0xff]  }
0x1db4   :  { %8939 = vmatprep.subr.bf16.mxu0 %v14153_v3  ;;  %v14171_v3 = vld [vmem:[%s14916_s20 + $0x2a4] ss:$24 sps:$4 sm:$0xff]  }
0x1db7   :  { %8940 = vmatpush1.bf16.msra.mxu0 %v14151_v39  ;;  %v14174_v39 = vld [vmem:[%s14916_s20 + $0x2ac] ss:$24 sps:$4 sm:$0xff]  }
0x1db8   :  { %8941 = vmatprep.subr.bf16.mxu0 %v14156_v58  ;;  %v14189_v58 = vld [vmem:[%s14916_s20 + $0x334] ss:$24 sps:$4 sm:$0xff]  }
0x1dbb   :  { %8942 = vmatpush1.bf16.msra.mxu0 %v14154_v38  ;;  %v14184_v38 = vld [vmem:[%s14916_s20 + $0x308] ss:$24 sps:$4 sm:$0xff]  }
0x1dbc   :  { %9522 = vmatprep.subr.bf16.mxu0 %v14162_v49  ;;  %v14267_v49 = vld [vmem:[%s17132_s29 + $0x304] ss:$8 sps:$4 sm:$0xff]  }
0x1e53   :  { %v8467_v27 = vpop.f32.mrb[152].mxu0 }
0x1e54   :  { %v13506_v20 = vpop.f32.mrb[153].mxu0 }
0x1e55   :  { %v8470_v23 = vpop.f32.mrb[154].mxu0  ;;  %v14172_v20 = vld [vmem:[%s14916_s20 + $0x2a8] ss:$24 sps:$4 sm:$0xff]  }
0x1e56   :  { %v13507_v4 = vpop.f32.mrb[155].mxu0  ;;  %v14177_v23 = vld [vmem:[%s14916_s20 + $0x2d4] ss:$24 sps:$4 sm:$0xff]  }
0x1e57   :  { %v14180_v4 = vld [vmem:[%s14916_s20 + $0x2dc] ss:$24 sps:$4 sm:$0xff]  }
0x1e5d   :  { %v8529_v19 = vpop.f32.mrb[156].mxu1 }
0x1e5e   :  { %v8733_v17 = vcombine.low %v8467_v27, %v8529_v19  ;;  %v13512_v61 = vpop.f32.mrb[157].mxu1  ;;  %v14169_v27 = vld [vmem:[%s14916_s20 + $0x2a0] ss:$24 sps:$4 sm:$0xff]   ;;  %v14175_v19 = vld [vmem:[%s14916_s20 + $0x2d0] ss:$24 sps:$4 sm:$0xff]  }
0x1e5f   :  { %v8532_v56 = vpop.f32.mrb[158].mxu1  ;;  %v14183_v61 = vld [vmem:[%s14916_s20 + $0x304] ss:$24 sps:$4 sm:$0xff]  }
0x1e60   :  { %v13513_v45 = vpop.f32.mrb[159].mxu1  ;;  %v8741_v32 = vrot.slane %v8733_v17, %v15424_v43  ;;  %v14178_v17 = vld [vmem:[%s14916_s20 + $0x2d8] ss:$24 sps:$4 sm:$0xff]   ;;  %v14186_v56 = vld [vmem:[%s14916_s20 + $0x30c] ss:$24 sps:$4 sm:$0xff]  }
0x1e61   :  { %v8591_v55 = vpop.f32.mrb[156].mxu0  ;;  %v14181_v45 = vld [vmem:[%s14916_s20 + $0x300] ss:$24 sps:$4 sm:$0xff]  }
0x1e62   :  { %v13518_v16 = vpop.f32.mrb[157].mxu0 }
0x1e63   :  { %v8594_v59 = vpop.f32.mrb[158].mxu0  ;;  %v14187_v16 = vld [vmem:[%s14916_s20 + $0x330] ss:$24 sps:$4 sm:$0xff]  }
0x1e64   :  { %v13519_v5 = vpop.f32.mrb[159].mxu0  ;;  %v14190_v59 = vld [vmem:[%s14916_s20 + $0x338] ss:$24 sps:$4 sm:$0xff]  }
0x1e65   :  { %v8653_v53 = vpop.f32.mrb[160].mxu1  ;;  %v14195_v5 = vld [vmem:[%s14916_s20 + $0x364] ss:$24 sps:$4 sm:$0xff]  }
0x1e66   :  { %v8734_v2 = vcombine.low %v8591_v55, %v8653_v53  ;;  %v13524_v34 = vpop.f32.mrb[161].mxu1  ;;  %v14192_v55 = vld [vmem:[%s14916_s20 + $0x33c] ss:$24 sps:$4 sm:$0xff]   ;;  %v14193_v53 = vld [vmem:[%s14916_s20 + $0x360] ss:$24 sps:$4 sm:$0xff]  }
0x1e67   :  { %v8656_v41 = vpop.f32.mrb[162].mxu1 }
0x1e68   :  { %v8748_v12 = vrot.slane %v8734_v2, %v15424_v43  ;;  %v13525_v50 = vpop.f32.mrb[163].mxu1  ;;  %v12422_v43 = vld [vmem:[%s14901_s30 + $0x2] sm:$0x3]  ;;  %s17142_s30 = sld [smem:[#allocation17_spill]] }
0x1e69   :  { %v8789_v24 = vrot.slane %v12422_v43, %v15079_v13  ;;  %v8793_v33 = vrot.slane %v12422_v43, %v15082_v14  ;;  %v14210_v43 = vld [vmem:[%s14916_s20 + $0x3cc] ss:$24 sps:$4 sm:$0xff]  }
0x1e6a   :  { %v8749_v15 = vcombine.low %v8741_v32, %v8748_v12 }
0x1e6c   :  { %8750 = vrot.lane.b32.xlu1 %v8749_v15, %s14825_s5 }
0x1ede   :  { %v8751_v54 = vpop.permute.xlu1 %8750 }
0x1edf   :  { %v8755_v29 = vsel %vm1897_vm11, %v8727_v42, %v8751_v54  ;;  %v14196_v42 = vld [vmem:[%s14916_s20 + $0x368] ss:$24 sps:$4 sm:$0xff]   ;;  %v14201_v54 = vld [vmem:[%s14916_s20 + $0x394] ss:$24 sps:$4 sm:$0xff]  }
0x1ee0   :  { %v8757_v22 = vpack.c.bf16 %v8755_v29, %v8755_v29  ;;  %v14202_v29 = vld [vmem:[%s14916_s20 + $0x398] ss:$24 sps:$4 sm:$0xff]  }
0x1ee2   :  { %12447 = vmatprep.mubr.msk.bf16.mxu0 %vm1136_vm5, %v8757_v22  ;;  %v14204_v22 = vld [vmem:[%s14916_s20 + $0x39c] ss:$24 sps:$4 sm:$0xff]  }
0x1ee3   :  { %8952 = vmatmul.mubr.bf16.vlgmr.msra.gmra.mrb[160].mxu0 %v8756_v47  ;;  %v14207_v47 = vld [vmem:[%s14916_s20 + $0x3c4] ss:$24 sps:$4 sm:$0xff]  }
0x1ee4   :  { %9523 = vmatpush1.bf16.msra.mxu0 %v14160_v7  ;;  %v14231_v7 = vld [vmem:[%s14916_s20 + $0x254] ss:$24 sps:$4 sm:$0xff]  }
0x1ee5   :  { %9524 = vmatprep.subr.bf16.mxu0 %v14168_v35 }
0x1fb6   :  { %v8953_v51 = vpop.f32.mrb[160].mxu0 }
0x1fb7   :  { %v8954_v18 = vadd.f32 %v8953_v51, %v8789_v24  ;;  %v8955_v21 = vpop.f32.mrb[161].mxu0  ;;  %v14205_v24 = vld [vmem:[%s14916_s20 + $0x3c0] ss:$24 sps:$4 sm:$0xff]   ;;  %v14213_v51 = vld [vmem:[%s14916_s20 + $0x3f4] ss:$24 sps:$4 sm:$0xff]  }
0x1fb8   :  { %v8956_v52 = vadd.f32 %v8955_v21, %v8793_v33  ;;  %v8957_v60 = vpop.f32.mrb[162].mxu0  ;;  %v14208_v33 = vld [vmem:[%s14916_s20 + $0x3c8] ss:$24 sps:$4 sm:$0xff]  }
0x1fb9   :  { %v8958_v62 = vpop.f32.mrb[163].mxu0  ;;  %v8960_v37 = vadd.f32 %v8954_v18, %v16064_v28  ;;  %v14166_v28 = vld [vmem:[%s14916_s20 + $0x278] ss:$24 sps:$4 sm:$0xff]   ;;  %v14216_v18 = vld [vmem:[%s14916_s20 + $0x3fc] ss:$24 sps:$4 sm:$0xff]  }
0x1fba   :  { %v8961_v31 = vadd.f32 %v8956_v52, %v16062_v48  ;;  %v14163_v48 = vld [vmem:[%s14916_s20 + $0x270] ss:$24 sps:$4 sm:$0xff]   ;;  %9525 = vmatpush1.bf16.msra.mxu0 %v14166_v28  ;;  %v14219_v60 = vld [vmem:[%s14916_s20 + $0x424] ss:$24 sps:$4 sm:$0xff]   ;;  %v12448_v28 = vld [vmem:[%s17133_s3 + $0x2] sm:$0x3] }
0x1fbb   :  { %9484 = vmatpush1.bf16.msra.mxu1 %v14163_v48  ;;  %9526 = vmatprep.subr.bf16.mxu0 %v14174_v39  ;;  %v14211_v21 = vld [vmem:[%s14916_s20 + $0x3f0] ss:$24 sps:$4 sm:$0xff]   ;;  %v14222_v62 = vld [vmem:[%s14916_s20 + $0x42c] ss:$24 sps:$4 sm:$0xff]   ;;  %v8990_v39 = vrot.slane %v12448_v28, %v15082_v14 }
0x1fbc   :  { %v8962_v11 = vsel %vm1136_vm5, %v8961_v31, 0.0  ;;  %9485 = vmatprep.subr.bf16.mxu1 %v14171_v3  ;;  %v14214_v52 = vld [vmem:[%s14916_s20 + $0x3f8] ss:$24 sps:$4 sm:$0xff]   ;;  %v12449_v3 = vld [vmem:[%s17134_s8 + $0x2] sm:$0x3] }
0x1fbd   :  { %v8963_v10 = vadd.f32 %v8962_v11, %v8960_v37  ;;  %v14225_v11 = vld [vmem:[%s14916_s20 + $0x454] ss:$24 sps:$4 sm:$0xff]  }
0x1fbe   :  { %9527 = vmatpush1.bf16.msra.mxu0 %v14172_v20 }
0x1fbf   :  { %8964 = vadd.xlane.f32.xlu0 %v8963_v10  ;;  %9486 = vmatpush1.bf16.msra.mxu1 %v14169_v27  ;;  %v14228_v10 = vld [vmem:[%s14916_s20 + $0x45c] ss:$24 sps:$4 sm:$0xff]   ;;  %v8986_v27 = vrot.slane %v12448_v28, %v15079_v13  ;;  %v14268_v28 = vld [vmem:[%s17132_s29 + $0x400] ss:$8 sps:$4 sm:$0xff]  }
0x1fc0   :  { %9487 = vmatprep.subr.bf16.mxu1 %v14177_v23  ;;  %9528 = vmatprep.subr.bf16.mxu0 %v14180_v4 }
0x1fc2   :  { %9529 = vmatpush1.bf16.msra.mxu0 %v14178_v17  ;;  %v9001_v17 = vrot.slane %v12449_v3, %v15079_v13 }
0x1fc3   :  { %9488 = vmatpush1.bf16.msra.mxu1 %v14175_v19  ;;  %9530 = vmatprep.subr.bf16.mxu0 %v14186_v56  ;;  %v9005_v19 = vrot.slane %v12449_v3, %v15082_v14  ;;  %v14276_v3 = vld [vmem:[%s17132_s29 + $0x414] ss:$8 sps:$4 sm:$0xff]  }
0x1fc4   :  { %9489 = vmatprep.subr.bf16.mxu1 %v14183_v61 }
0x1fc6   :  { %9531 = vmatpush1.bf16.msra.mxu0 %v14184_v38 }
0x1fc7   :  { %9490 = vmatpush1.bf16.msra.mxu1 %v14181_v45  ;;  %9532 = vmatprep.subr.bf16.mxu0 %v14192_v55  ;;  %v14229_v55 = vld [vmem:[%s14916_s20 + $0x250] ss:$24 sps:$4 sm:$0xff]  }
0x1fc8   :  { %9491 = vmatprep.subr.bf16.mxu1 %v14189_v58 }
0x1fca   :  { %9533 = vmatpush1.bf16.msra.mxu0 %v14190_v59  ;;  %v14234_v59 = vld [vmem:[%s14916_s20 + $0x284] ss:$24 sps:$4 sm:$0xff]  }
0x1fcb   :  { %9492 = vmatpush1.bf16.msra.mxu1 %v14187_v16  ;;  %9534 = vmatprep.subr.bf16.mxu0 %v14198_v40  ;;  %v14238_v40 = vld [vmem:[%s14916_s20 + $0x2e0] ss:$24 sps:$4 sm:$0xff]  }
0x1fcc   :  { %9493 = vmatprep.subr.bf16.mxu1 %v14195_v5  ;;  %v14265_v5 = vld [vmem:[%s17132_s29 + $0x300] ss:$8 sps:$4 sm:$0xff]  }
0x1fce   :  { %9535 = vmatpush1.bf16.msra.mxu0 %v14196_v42  ;;  %v14243_v42 = vld [vmem:[%s14916_s20 + $0x314] ss:$24 sps:$4 sm:$0xff]  }
0x1fcf   :  { %9494 = vmatpush1.bf16.msra.mxu1 %v14193_v53  ;;  %9536 = vmatprep.subr.bf16.mxu0 %v14204_v22  ;;  %v14273_v53 = vld [vmem:[%s17132_s29 + $0x314] ss:$8 sps:$4 sm:$0xff]  }
0x1fd0   :  { %9495 = vmatprep.subr.bf16.mxu1 %v14201_v54  ;;  %v14291_v54 = vld [vmem:[%s17132_s29 + $0x344] ss:$8 sps:$4 sm:$0xff]  }
0x1fd1   :  { %v14246_v22 = vld [vmem:[%s14916_s20 + $0x344] ss:$24 sps:$4 sm:$0xff]  }
0x1fd2   :  { %9537 = vmatpush1.bf16.msra.mxu0 %v14202_v29  ;;  %v14241_v29 = vld [vmem:[%s14916_s20 + $0x310] ss:$24 sps:$4 sm:$0xff]  }
0x1fd3   :  { %9496 = vmatpush1.bf16.msra.mxu1 %v14199_v46  ;;  %9538 = vmatprep.subr.bf16.mxu0 %v14210_v43  ;;  %v14283_v46 = vld [vmem:[%s17132_s29 + $0x330] ss:$8 sps:$4 sm:$0xff]   ;;  %v14297_v43 = vld [vmem:[%s17132_s29 + $0x354] ss:$8 sps:$4 sm:$0xff]  }
0x1fd4   :  { %9497 = vmatprep.subr.bf16.mxu1 %v14207_v47  ;;  %v14289_v47 = vld [vmem:[%s17132_s29 + $0x340] ss:$8 sps:$4 sm:$0xff]  }
0x1fd6   :  { %9539 = vmatpush1.bf16.msra.mxu0 %v14208_v33  ;;  %v14249_v33 = vld [vmem:[%s14916_s20 + $0x374] ss:$24 sps:$4 sm:$0xff]  }
0x1fd7   :  { %9498 = vmatpush1.bf16.msra.mxu1 %v14205_v24  ;;  %9540 = vmatprep.subr.bf16.mxu0 %v14216_v18  ;;  %v14244_v24 = vld [vmem:[%s14916_s20 + $0x340] ss:$24 sps:$4 sm:$0xff]   ;;  %v14303_v18 = vld [vmem:[%s17132_s29 + $0x364] ss:$8 sps:$4 sm:$0xff]  }
0x1fd8   :  { %9499 = vmatprep.subr.bf16.mxu1 %v14213_v51  ;;  %v14295_v51 = vld [vmem:[%s17132_s29 + $0x350] ss:$8 sps:$4 sm:$0xff]  }
0x1fda   :  { %9541 = vmatpush1.bf16.msra.mxu0 %v14214_v52  ;;  %v14252_v52 = vld [vmem:[%s14916_s20 + $0x3a4] ss:$24 sps:$4 sm:$0xff]  }
0x1fdb   :  { %9500 = vmatpush1.bf16.msra.mxu1 %v14211_v21  ;;  %9542 = vmatprep.subr.bf16.mxu0 %v14222_v62  ;;  %v14247_v21 = vld [vmem:[%s14916_s20 + $0x370] ss:$24 sps:$4 sm:$0xff]   ;;  %v14309_v62 = vld [vmem:[%s17132_s29 + $0x374] ss:$8 sps:$4 sm:$0xff]  }
0x1fdc   :  { %9501 = vmatprep.subr.bf16.mxu1 %v14219_v60  ;;  %v14301_v60 = vld [vmem:[%s17132_s29 + $0x360] ss:$8 sps:$4 sm:$0xff]  }
0x204c   :  { %v8965_v2 = vpop.xlane.xlu0 %8964 }
0x204d   :  { %v8966_v34 = vmul.f32 0.0052083335, %v8965_v2  ;;  %v14232_v2 = vld [vmem:[%s14916_s20 + $0x280] ss:$24 sps:$4 sm:$0xff]  }
0x204f   :  { %v16711_v41 = vsub.f32 %v8960_v37, %v8966_v34  ;;  %v16713_v32 = vsub.f32 %v8961_v31, %v8966_v34  ;;  %v14217_v31 = vld [vmem:[%s14916_s20 + $0x420] ss:$24 sps:$4 sm:$0xff]   ;;  %v14237_v34 = vld [vmem:[%s14916_s20 + $0x2b4] ss:$24 sps:$4 sm:$0xff]  }
0x2050   :  { %v14220_v37 = vld [vmem:[%s14916_s20 + $0x428] ss:$24 sps:$4 sm:$0xff]   ;;  %9502 = vmatpush1.bf16.msra.mxu1 %v14217_v31 }
0x2051   :  { %v8969_v12 = vmul.f32 %v16711_v41, %v16711_v41  ;;  %v8970_v50 = vmul.f32 %v16713_v32, %v16713_v32  ;;  %9543 = vmatpush1.bf16.msra.mxu0 %v14220_v37  ;;  %9503 = vmatprep.subr.bf16.mxu1 %v14225_v11  ;;  %v14250_v31 = vld [vmem:[%s14916_s20 + $0x3a0] ss:$24 sps:$4 sm:$0xff]   ;;  %v14255_v37 = vld [vmem:[%s14916_s20 + $0x3d4] ss:$24 sps:$4 sm:$0xff]  }
0x2052   :  { %9544 = vmatprep.subr.bf16.mxu0 %v14228_v10  ;;  %v14307_v11 = vld [vmem:[%s17132_s29 + $0x370] ss:$8 sps:$4 sm:$0xff]  }
0x2053   :  { %v8971_v15 = vsel %vm1136_vm5, %v8970_v50, 0.0  ;;  %v14240_v50 = vld [vmem:[%s14916_s20 + $0x2e4] ss:$24 sps:$4 sm:$0xff]   ;;  %v14253_v10 = vld [vmem:[%s14916_s20 + $0x3d0] ss:$24 sps:$4 sm:$0xff]  }
0x2054   :  { %v8972_v63 = vadd.f32 %v8971_v15, %v8969_v12  ;;  %9504 = vmatpush1.bf16.msra.mxu1 %v14223_v9  ;;  %v14235_v12 = vld [vmem:[%s14916_s20 + $0x2b0] ss:$24 sps:$4 sm:$0xff]   ;;  %v14258_v9 = vld [vmem:[%s14916_s20 + $0x404] ss:$24 sps:$4 sm:$0xff]  }
0x2055   :  { %9545 = vmatpush1.bf16.msra.mxu0 %v14226_v30  ;;  %9563 = vmatprep.subr.bf16.mxu1 %v14231_v7  ;;  %v14277_v15 = vld [vmem:[%s17132_s29 + $0x320] ss:$8 sps:$4 sm:$0xff]   ;;  %v14261_v7 = vld [vmem:[%s14916_s20 + $0x434] ss:$24 sps:$4 sm:$0xff]  }
0x2056   :  { %8973 = vadd.xlane.f32.xlu1 %v8972_v63  ;;  %10254 = vmatprep.subr.bf16.mxu0 %v14267_v49  ;;  %v14285_v63 = vld [vmem:[%s17132_s29 + $0x334] ss:$8 sps:$4 sm:$0xff]   ;;  %v14256_v30 = vld [vmem:[%s14916_s20 + $0x400] ss:$24 sps:$4 sm:$0xff]   ;;  %v14259_v49 = vld [vmem:[%s14916_s20 + $0x430] ss:$24 sps:$4 sm:$0xff]  }
0x20e3   :  { %v8974_v57 = vpop.xlane.xlu1 %8973 }
0x20e4   :  { %v8975_v35 = vmul.f32 0.0052083335, %v8974_v57  ;;  %v14264_v57 = vld [vmem:[%s14916_s20 + $0x464] ss:$24 sps:$4 sm:$0xff]  }
0x20e6   :  { %v8976_v48 = vadd.f32 1e-05, %v8975_v35  ;;  %v14262_v35 = vld [vmem:[%s14916_s20 + $0x460] ss:$24 sps:$4 sm:$0xff]   ;;  %s17143_s20 = sld [smem:[#allocation20_spill]] }
0x20e8   :  { %14745 = vrsqrt.f32 %v8976_v48  ;;  %v14270_v48 = vld [vmem:[%s17132_s29 + $0x404] ss:$8 sps:$4 sm:$0xff]  }
0x20f2   :  { %v14746_v20 = vpop.eup %14745 }
0x20f3   :  { %v8978_v23 = vmul.f32 %v14746_v20, %v16711_v41  ;;  %v8979_v4 = vmul.f32 %v14746_v20, %v16713_v32  ;;  %v14271_v41 = vld [vmem:[%s17132_s29 + $0x310] ss:$8 sps:$4 sm:$0xff]   ;;  %v14279_v32 = vld [vmem:[%s17132_s29 + $0x324] ss:$8 sps:$4 sm:$0xff]   ;;  %v14280_v20 = vld [vmem:[%s17132_s29 + $0x420] ss:$8 sps:$4 sm:$0xff]  }
0x20f5   :  { %v8994_v61 = vmul.f32 %v8990_v39, %v8979_v4  ;;  %v8993_v56 = vmul.f32 %v8986_v27, %v8978_v23  ;;  %v14274_v39 = vld [vmem:[%s17132_s29 + $0x410] ss:$8 sps:$4 sm:$0xff]   ;;  %v14282_v27 = vld [vmem:[%s17132_s29 + $0x424] ss:$8 sps:$4 sm:$0xff]   ;;  %v14288_v23 = vld [vmem:[%s17132_s29 + $0x434] ss:$8 sps:$4 sm:$0xff]  }
0x20f6   :  { %v14286_v4 = vld [vmem:[%s17132_s29 + $0x430] ss:$8 sps:$4 sm:$0xff]  }
0x20f7   :  { %v16752_v45 = vadd.f32 %v9005_v19, %v8994_v61  ;;  %v16754_v38 = vadd.f32 %v9001_v17, %v8993_v56  ;;  %v14294_v19 = vld [vmem:[%s17132_s29 + $0x444] ss:$8 sps:$4 sm:$0xff]   ;;  %v14292_v17 = vld [vmem:[%s17132_s29 + $0x440] ss:$8 sps:$4 sm:$0xff]   ;;  %v14300_v61 = vld [vmem:[%s17132_s29 + $0x454] ss:$8 sps:$4 sm:$0xff]  }
0x20f8   :  { %v14298_v56 = vld [vmem:[%s17132_s29 + $0x450] ss:$8 sps:$4 sm:$0xff]  }
0x20f9   :  { %v9011_v58 = vpack.c.bf16 %v16752_v45, %v16752_v45  ;;  %v16761_v16 = vpack.c.bf16 %v16754_v38, %v16754_v38 }
0x20fb   :  { %12595 = vmatprep.mubr.msk.bf16.mxu1 %vm1136_vm5, %v9011_v58  ;;  %12596 = vmatprep.mubr.msk.bf16.mxu0 %vm1136_vm5, %v9011_v58 }
0x20fc   :  { %9514 = vmatmul.mubr.bf16.vlgmr.msra.gmra.mrb[164].mxu1 %v16761_v16  ;;  %9555 = vmatmul.mubr.bf16.vlgmr.msra.gmra.mrb[164].mxu0 %v16761_v16 }
0x20fd   :  { %9564 = vmatpush1.bf16.msra.mxu1 %v14229_v55  ;;  %12597 = vmatprep.mubr.msk.bf16.mxu1 %vm1136_vm5, %v9011_v58  ;;  %v14306_v58 = vld [vmem:[%s17132_s29 + $0x464] ss:$8 sps:$4 sm:$0xff]   ;;  %v14304_v55 = vld [vmem:[%s17132_s29 + $0x460] ss:$8 sps:$4 sm:$0xff]  }
0x20fe   :  { %9565 = vmatprep.subr.bf16.mxu1 %v14234_v59  ;;  %10255 = vmatpush1.bf16.msra.mxu0 %v14265_v5  ;;  %v14310_v59 = vld [vmem:[%s17132_s29 + $0x470] ss:$8 sps:$4 sm:$0xff]   ;;  %v14315_v5 = vld [vmem:[%s17132_s29 + $0x384] ss:$8 sps:$4 sm:$0xff]  }
0x20ff   :  { %10256 = vmatprep.subr.bf16.mxu0 %v14273_v53  ;;  %v14313_v53 = vld [vmem:[%s17132_s29 + $0x380] ss:$8 sps:$4 sm:$0xff]  }
0x2101   :  { %9566 = vmatpush1.bf16.msra.mxu1 %v14232_v2  ;;  %v14318_v2 = vld [vmem:[%s17132_s29 + $0x484] ss:$8 sps:$4 sm:$0xff]  }
0x2102   :  { %9567 = vmatprep.subr.bf16.mxu1 %v14237_v34  ;;  %10257 = vmatpush1.bf16.msra.mxu0 %v14271_v41  ;;  %v14316_v34 = vld [vmem:[%s17132_s29 + $0x480] ss:$8 sps:$4 sm:$0xff]   ;;  %v14319_v41 = vld [vmem:[%s17132_s29 + $0x390] ss:$8 sps:$4 sm:$0xff]  }
0x2103   :  { %10258 = vmatprep.subr.bf16.mxu0 %v14279_v32  ;;  %v14321_v32 = vld [vmem:[%s17132_s29 + $0x394] ss:$8 sps:$4 sm:$0xff]  }
0x2105   :  { %9568 = vmatpush1.bf16.msra.mxu1 %v14235_v12  ;;  %v14322_v12 = vld [vmem:[%s17132_s29 + $0x490] ss:$8 sps:$4 sm:$0xff]  }
0x2106   :  { %9569 = vmatprep.subr.bf16.mxu1 %v14240_v50  ;;  %10259 = vmatpush1.bf16.msra.mxu0 %v14277_v15  ;;  %v14324_v50 = vld [vmem:[%s17132_s29 + $0x494] ss:$8 sps:$4 sm:$0xff]   ;;  %v14327_v15 = vld [vmem:[%s17132_s29 + $0x3a4] ss:$8 sps:$4 sm:$0xff]  }
0x2107   :  { %10260 = vmatprep.subr.bf16.mxu0 %v14285_v63  ;;  %v14330_v63 = vld [vmem:[%s17132_s29 + $0x4a4] ss:$8 sps:$4 sm:$0xff]  }
0x2109   :  { %9570 = vmatpush1.bf16.msra.mxu1 %v14238_v40  ;;  %v14325_v40 = vld [vmem:[%s17132_s29 + $0x3a0] ss:$8 sps:$4 sm:$0xff]  }
0x210a   :  { %9571 = vmatprep.subr.bf16.mxu1 %v14243_v42  ;;  %10261 = vmatpush1.bf16.msra.mxu0 %v14283_v46  ;;  %v14328_v42 = vld [vmem:[%s17132_s29 + $0x4a0] ss:$8 sps:$4 sm:$0xff]   ;;  %v14333_v46 = vld [vmem:[%s17132_s29 + $0x3b4] ss:$8 sps:$4 sm:$0xff]  }
0x210b   :  { %10262 = vmatprep.subr.bf16.mxu0 %v14291_v54  ;;  %v14336_v54 = vld [vmem:[%s17132_s29 + $0x4b4] ss:$8 sps:$4 sm:$0xff]  }
0x210d   :  { %9572 = vmatpush1.bf16.msra.mxu1 %v14241_v29  ;;  %v14331_v29 = vld [vmem:[%s17132_s29 + $0x3b0] ss:$8 sps:$4 sm:$0xff]  }
0x210e   :  { %9573 = vmatprep.subr.bf16.mxu1 %v14246_v22  ;;  %10263 = vmatpush1.bf16.msra.mxu0 %v14289_v47  ;;  %v14334_v22 = vld [vmem:[%s17132_s29 + $0x4b0] ss:$8 sps:$4 sm:$0xff]   ;;  %v14339_v47 = vld [vmem:[%s17132_s29 + $0x3c4] ss:$8 sps:$4 sm:$0xff]  }
0x210f   :  { %10264 = vmatprep.subr.bf16.mxu0 %v14297_v43  ;;  %v14342_v43 = vld [vmem:[%s17132_s29 + $0x4c4] ss:$8 sps:$4 sm:$0xff]  }
0x2111   :  { %9574 = vmatpush1.bf16.msra.mxu1 %v14244_v24  ;;  %v14337_v24 = vld [vmem:[%s17132_s29 + $0x3c0] ss:$8 sps:$4 sm:$0xff]  }
0x2112   :  { %9575 = vmatprep.subr.bf16.mxu1 %v14249_v33  ;;  %10265 = vmatpush1.bf16.msra.mxu0 %v14295_v51  ;;  %v14340_v33 = vld [vmem:[%s17132_s29 + $0x4c0] ss:$8 sps:$4 sm:$0xff]   ;;  %v14345_v51 = vld [vmem:[%s17132_s29 + $0x3d4] ss:$8 sps:$4 sm:$0xff]  }
0x2113   :  { %10266 = vmatprep.subr.bf16.mxu0 %v14303_v18  ;;  %v14348_v18 = vld [vmem:[%s17132_s29 + $0x4d4] ss:$8 sps:$4 sm:$0xff]  }
0x2115   :  { %9576 = vmatpush1.bf16.msra.mxu1 %v14247_v21  ;;  %v14343_v21 = vld [vmem:[%s17132_s29 + $0x3d0] ss:$8 sps:$4 sm:$0xff]  }
0x2116   :  { %9577 = vmatprep.subr.bf16.mxu1 %v14252_v52  ;;  %10267 = vmatpush1.bf16.msra.mxu0 %v14301_v60  ;;  %v14346_v52 = vld [vmem:[%s17132_s29 + $0x4d0] ss:$8 sps:$4 sm:$0xff]   ;;  %v14351_v60 = vld [vmem:[%s17132_s29 + $0x3e4] ss:$8 sps:$4 sm:$0xff]  }
0x2117   :  { %10268 = vmatprep.subr.bf16.mxu0 %v14309_v62  ;;  %v14354_v62 = vld [vmem:[%s17132_s29 + $0x4e4] ss:$8 sps:$4 sm:$0xff]  }
0x2119   :  { %9578 = vmatpush1.bf16.msra.mxu1 %v14250_v31  ;;  %v14349_v31 = vld [vmem:[%s17132_s29 + $0x3e0] ss:$8 sps:$4 sm:$0xff]  }
0x211a   :  { %9579 = vmatprep.subr.bf16.mxu1 %v14255_v37  ;;  %10269 = vmatpush1.bf16.msra.mxu0 %v14307_v11  ;;  %v14352_v37 = vld [vmem:[%s17132_s29 + $0x4e0] ss:$8 sps:$4 sm:$0xff]   ;;  %v14357_v11 = vld [vmem:[%s17132_s29 + $0x3f4] ss:$8 sps:$4 sm:$0xff]  }
0x211b   :  { %10270 = vmatprep.subr.bf16.mxu0 %v14315_v5 }
0x211d   :  { %9580 = vmatpush1.bf16.msra.mxu1 %v14253_v10  ;;  %v14360_v10 = vld [vmem:[%s17132_s29 + $0x4f4] ss:$8 sps:$4 sm:$0xff]  }
0x211e   :  { %9581 = vmatprep.subr.bf16.mxu1 %v14258_v9  ;;  %10271 = vmatpush1.bf16.msra.mxu0 %v14313_v53  ;;  %v14355_v9 = vld [vmem:[%s17132_s29 + $0x3f0] ss:$8 sps:$4 sm:$0xff]  }
0x211f   :  { %10272 = vmatprep.subr.bf16.mxu0 %v14321_v32 }
0x2121   :  { %9582 = vmatpush1.bf16.msra.mxu1 %v14256_v30  ;;  %v14358_v30 = vld [vmem:[%s17132_s29 + $0x4f0] ss:$8 sps:$4 sm:$0xff]  }
0x2122   :  { %9583 = vmatprep.subr.bf16.mxu1 %v14261_v7  ;;  %10273 = vmatpush1.bf16.msra.mxu0 %v14319_v41  ;;  %v14363_v7 = vld [vmem:[%s17132_s29 + $0x504] ss:$8 sps:$4 sm:$0xff]  }
0x2123   :  { %10274 = vmatprep.subr.bf16.mxu0 %v14327_v15 }
0x2125   :  { %9584 = vmatpush1.bf16.msra.mxu1 %v14259_v49  ;;  %v16856_v49 = vld [vmem:[%s17135_s4 + $0x6] sm:$0x3f] }
0x2126   :  { %9585 = vmatprep.subr.bf16.mxu1 %v14264_v57  ;;  %10275 = vmatpush1.bf16.msra.mxu0 %v14325_v40  ;;  %v9091_v57 = vrot.slane %v16856_v49, %v15079_v13 }
0x2127   :  { %10276 = vmatprep.subr.bf16.mxu0 %v14333_v46 }
0x2129   :  { %9586 = vmatpush1.bf16.msra.mxu1 %v14262_v35  ;;  %v9099_v35 = vrot.slane %v16856_v49, %v15173_v44 }
0x212a   :  { %10295 = vmatprep.subr.bf16.mxu1 %v14270_v48  ;;  %10277 = vmatpush1.bf16.msra.mxu0 %v14331_v29  ;;  %v9095_v48 = vrot.slane %v16856_v49, %v15082_v14 }
0x212b   :  { %10278 = vmatprep.subr.bf16.mxu0 %v14339_v47 }
0x212c   :  { %9596 = vmatmul.mubr.bf16.vlgmr.msra.gmra.mrb[168].mxu1 %v16761_v16  ;;  %v14312_v16 = vld [vmem:[%s17132_s29 + $0x474] ss:$8 sps:$4 sm:$0xff]  }
0x212d   :  { %10296 = vmatpush1.bf16.msra.mxu1 %v14268_v28  ;;  %v9103_v28 = vrot.slane %v16856_v49, %v15228_v25 }
0x212e   :  { %10297 = vmatprep.subr.bf16.mxu1 %v14276_v3  ;;  %10279 = vmatpush1.bf16.msra.mxu0 %v14337_v24 }
0x212f   :  { %10280 = vmatprep.subr.bf16.mxu0 %v14345_v51 }
0x2131   :  { %10298 = vmatpush1.bf16.msra.mxu1 %v14274_v39 }
0x2132   :  { %10299 = vmatprep.subr.bf16.mxu1 %v14282_v27  ;;  %10281 = vmatpush1.bf16.msra.mxu0 %v14343_v21 }
0x2133   :  { %10282 = vmatprep.subr.bf16.mxu0 %v14351_v60 }
0x2135   :  { %10300 = vmatpush1.bf16.msra.mxu1 %v14280_v20 }
0x2136   :  { %10301 = vmatprep.subr.bf16.mxu1 %v14288_v23  ;;  %10283 = vmatpush1.bf16.msra.mxu0 %v14349_v31 }
0x2137   :  { %10284 = vmatprep.subr.bf16.mxu0 %v14357_v11 }
0x2139   :  { %10302 = vmatpush1.bf16.msra.mxu1 %v14286_v4 }
0x213a   :  { %10303 = vmatprep.subr.bf16.mxu1 %v14294_v19  ;;  %10285 = vmatpush1.bf16.msra.mxu0 %v14355_v9 }
0x213b   :  { %10336 = vmatprep.subr.bf16.mxu0 %v14363_v7 }
0x213d   :  { %10304 = vmatpush1.bf16.msra.mxu1 %v14292_v17 }
0x213e   :  { %10305 = vmatprep.subr.bf16.mxu1 %v14300_v61 }
0x2141   :  { %10306 = vmatpush1.bf16.msra.mxu1 %v14298_v56 }
0x2142   :  { %10307 = vmatprep.subr.bf16.mxu1 %v14306_v58 }
0x2145   :  { %10308 = vmatpush1.bf16.msra.mxu1 %v14304_v55 }
0x2146   :  { %10309 = vmatprep.subr.bf16.mxu1 %v14312_v16 }
0x2149   :  { %10310 = vmatpush1.bf16.msra.mxu1 %v14310_v59 }
0x214a   :  { %10311 = vmatprep.subr.bf16.mxu1 %v14318_v2 }
0x214d   :  { %10312 = vmatpush1.bf16.msra.mxu1 %v14316_v34 }
0x214e   :  { %10313 = vmatprep.subr.bf16.mxu1 %v14324_v50 }
0x2151   :  { %10314 = vmatpush1.bf16.msra.mxu1 %v14322_v12 }
0x2152   :  { %10315 = vmatprep.subr.bf16.mxu1 %v14330_v63 }
0x2155   :  { %10316 = vmatpush1.bf16.msra.mxu1 %v14328_v42 }
0x2156   :  { %10317 = vmatprep.subr.bf16.mxu1 %v14336_v54 }
0x2159   :  { %10318 = vmatpush1.bf16.msra.mxu1 %v14334_v22 }
0x215a   :  { %10319 = vmatprep.subr.bf16.mxu1 %v14342_v43 }
0x215d   :  { %10320 = vmatpush1.bf16.msra.mxu1 %v14340_v33 }
0x215e   :  { %10321 = vmatprep.subr.bf16.mxu1 %v14348_v18 }
0x2161   :  { %10322 = vmatpush1.bf16.msra.mxu1 %v14346_v52 }
0x2162   :  { %10323 = vmatprep.subr.bf16.mxu1 %v14354_v62 }
0x2165   :  { %10324 = vmatpush1.bf16.msra.mxu1 %v14352_v37 }
0x2166   :  { %10325 = vmatprep.subr.bf16.mxu1 %v14360_v10 }
0x2169   :  { %10326 = vmatpush1.bf16.msra.mxu1 %v14358_v30 }
0x21cf   :  { %v9515_v3 = vpop.f32.mrb[164].mxu1  ;;  %v9556_v39 = vpop.f32.mrb[164].mxu0 }
0x21d0   :  { %v9516_v27 = vadd.f32 %v9515_v3, %v9091_v57  ;;  %v9557_v20 = vadd.f32 %v9556_v39, %v9099_v35  ;;  %v9517_v23 = vpop.f32.mrb[165].mxu1  ;;  %v9558_v4 = vpop.f32.mrb[165].mxu0  ;;  %v14366_v39 = vld [vmem:[%s17132_s29 + $0x514] ss:$8 sps:$4 sm:$0xff]  }
0x21d1   :  { %v9518_v19 = vadd.f32 %v9517_v23, %v9095_v48  ;;  %v9559_v17 = vadd.f32 %v9558_v4, %v9103_v28  ;;  %v9519_v61 = vpop.f32.mrb[166].mxu1  ;;  %v9560_v56 = vpop.f32.mrb[166].mxu0  ;;  %v14361_v48 = vld [vmem:[%s17132_s29 + $0x500] ss:$8 sps:$4 sm:$0xff]  }
0x21d2   :  { %v9604_v58 = vmul.f32 %v9516_v27, %v9516_v27  ;;  %v9606_v55 = vmul.f32 %v9557_v20, %v9557_v20  ;;  %v9520_v16 = vpop.f32.mrb[167].mxu1  ;;  %v9561_v59 = vpop.f32.mrb[167].mxu0  ;;  %v14367_v4 = vld [vmem:[%s17132_s29 + $0x520] ss:$8 sps:$4 sm:$0xff]   ;;  %v9107_v61 = vrot.slane %v16856_v49, %v15231_v26  ;;  %v14375_v56 = vld [vmem:[%s17132_s29 + $0x544] ss:$8 sps:$4 sm:$0xff]  }
0x21d3   :  { %v9605_v5 = vmul.f32 %v9518_v19, %v9518_v19  ;;  %v9607_v53 = vmul.f32 %v9559_v17, %v9559_v17  ;;  %v14373_v16 = vld [vmem:[%s17132_s29 + $0x540] ss:$8 sps:$4 sm:$0xff]  }
0x21d4   :  { %v9610_v2 = vmul.f32 %v9604_v58, %v9516_v27  ;;  %v9612_v34 = vmul.f32 %v9606_v55, %v9557_v20  ;;  %v9111_v58 = vrot.slane %v16856_v49, %v4261_v36  ;;  %v14376_v36 = vld [vmem:[%s17132_s29 + $0x550] ss:$8 sps:$4 sm:$0xff]   ;;  %v14381_v49 = vld [vmem:[%s17132_s29 + $0x564] ss:$8 sps:$4 sm:$0xff]  }
0x21d5   :  { %v9611_v41 = vmul.f32 %v9605_v5, %v9518_v19  ;;  %v9613_v32 = vmul.f32 %v9607_v53, %v9559_v17  ;;  %v14378_v53 = vld [vmem:[%s17132_s29 + $0x554] ss:$8 sps:$4 sm:$0xff]  }
0x21d6   :  { %v9616_v12 = vmul.f32 0.044715, %v9610_v2  ;;  %v9618_v50 = vmul.f32 0.044715, %v9612_v34 }
0x21d7   :  { %v9617_v15 = vmul.f32 0.044715, %v9611_v41  ;;  %v9619_v63 = vmul.f32 0.044715, %v9613_v32 }
0x21d8   :  { %v9622_v40 = vadd.f32 %v9616_v12, %v9516_v27  ;;  %v9624_v42 = vadd.f32 %v9618_v50, %v9557_v20 }
0x21d9   :  { %v9623_v46 = vadd.f32 %v9617_v15, %v9518_v19  ;;  %v9625_v54 = vadd.f32 %v9619_v63, %v9559_v17  ;;  %v14379_v15 = vld [vmem:[%s17132_s29 + $0x560] ss:$8 sps:$4 sm:$0xff]   ;;  %v14384_v63 = vld [vmem:[%s17132_s29 + $0x574] ss:$8 sps:$4 sm:$0xff]  }
0x21da   :  { %v9628_v29 = vmul.f32 0.7978846, %v9622_v40  ;;  %v9630_v22 = vmul.f32 0.7978846, %v9624_v42 }
0x21db   :  { %v9629_v47 = vmul.f32 0.7978846, %v9623_v46  ;;  %v9631_v43 = vmul.f32 0.7978846, %v9625_v54  ;;  %v14382_v54 = vld [vmem:[%s17132_s29 + $0x570] ss:$8 sps:$4 sm:$0xff]  }
0x21dc   :  { %14747 = vtanh.f32 %v9628_v29  ;;  %v14387_v29 = vld [vmem:[%s17132_s29 + $0x584] ss:$8 sps:$4 sm:$0xff]  }
0x21dd   :  { %14749 = vtanh.f32 %v9630_v22 }
0x21de   :  { %14751 = vtanh.f32 %v9629_v47  ;;  %v14385_v47 = vld [vmem:[%s17132_s29 + $0x580] ss:$8 sps:$4 sm:$0xff]  }
0x21df   :  { %14753 = vtanh.f32 %v9631_v43  ;;  %v14390_v43 = vld [vmem:[%s17132_s29 + $0x594] ss:$8 sps:$4 sm:$0xff]  }
0x21e6   :  { %v14748_v24 = vpop.eup %14747 }
0x21e7   :  { %v14750_v33 = vpop.eup %14749  ;;  %v9640_v51 = vadd.f32 1.0, %v14748_v24 }
0x21e8   :  { %v14752_v18 = vpop.eup %14751  ;;  %v9642_v21 = vadd.f32 1.0, %v14750_v33  ;;  %v14388_v33 = vld [vmem:[%s17132_s29 + $0x590] ss:$8 sps:$4 sm:$0xff]  }
0x21e9   :  { %v14754_v52 = vpop.eup %14753  ;;  %v9641_v60 = vadd.f32 1.0, %v14752_v18  ;;  %v9646_v62 = vmul.f32 0.5, %v9640_v51  ;;  %v14393_v51 = vld [vmem:[%s17132_s29 + $0x5a4] ss:$8 sps:$4 sm:$0xff]  }
0x21ea   :  { %v9643_v31 = vadd.f32 1.0, %v14754_v52  ;;  %v9648_v37 = vmul.f32 0.5, %v9642_v21  ;;  %v14391_v21 = vld [vmem:[%s17132_s29 + $0x5a0] ss:$8 sps:$4 sm:$0xff]   ;;  %v14396_v52 = vld [vmem:[%s17132_s29 + $0x5b4] ss:$8 sps:$4 sm:$0xff]  }
0x21eb   :  { %v9647_v11 = vmul.f32 0.5, %v9641_v60  ;;  %v9652_v9 = vmul.f32 %v9646_v62, %v9516_v27  ;;  %v14364_v27 = vld [vmem:[%s17132_s29 + $0x510] ss:$8 sps:$4 sm:$0xff]  }
0x21ec   :  { %v9649_v10 = vmul.f32 0.5, %v9643_v31  ;;  %v9654_v7 = vmul.f32 %v9648_v37, %v9557_v20  ;;  %v14369_v20 = vld [vmem:[%s17132_s29 + $0x524] ss:$8 sps:$4 sm:$0xff]   ;;  %v14394_v31 = vld [vmem:[%s17132_s29 + $0x5b0] ss:$8 sps:$4 sm:$0xff]  }
0x21ed   :  { %v9653_v30 = vmul.f32 %v9647_v11, %v9518_v19  ;;  %v9658_v3 = vpack.c.bf16 %v9652_v9, %v9652_v9  ;;  %v14372_v19 = vld [vmem:[%s17132_s29 + $0x534] ss:$8 sps:$4 sm:$0xff]   ;;  %v14399_v11 = vld [vmem:[%s17132_s29 + $0x5c4] ss:$8 sps:$4 sm:$0xff]   ;;  %v14397_v9 = vld [vmem:[%s17132_s29 + $0x5c0] ss:$8 sps:$4 sm:$0xff]  }
0x21ee   :  { %v9655_v57 = vmul.f32 %v9649_v10, %v9559_v17  ;;  %v9660_v23 = vpack.c.bf16 %v9654_v7, %v9654_v7  ;;  %v14370_v17 = vld [vmem:[%s17132_s29 + $0x530] ss:$8 sps:$4 sm:$0xff]  }
0x21ef   :  { %v9659_v35 = vpack.c.bf16 %v9653_v30, %v9653_v30  ;;  %v14402_v30 = vld [vmem:[%s17132_s29 + $0x5d4] ss:$8 sps:$4 sm:$0xff]  }
0x21f0   :  { %v9661_v28 = vpack.c.bf16 %v9655_v57, %v9655_v57  ;;  %v14400_v57 = vld [vmem:[%s17132_s29 + $0x5d0] ss:$8 sps:$4 sm:$0xff]  }
0x21f1   :  { %10286 = vmatprep.mubr.bf16.mxu0 %v9659_v35  ;;  %v14405_v35 = vld [vmem:[%s17132_s29 + $0x5e4] ss:$8 sps:$4 sm:$0xff]  }
0x21f2   :  { %10327 = vmatprep.mubr.bf16.mxu1 %v9661_v28  ;;  %10287 = vmatmul.mubr.bf16.vlgmr.msra.gmra.mrb[168].mxu0 %v9658_v3  ;;  %v14403_v28 = vld [vmem:[%s17132_s29 + $0x5e0] ss:$8 sps:$4 sm:$0xff]   ;;  %v14408_v3 = vld [vmem:[%s17132_s29 + $0x5f4] ss:$8 sps:$4 sm:$0xff]  }
0x21f3   :  { %10328 = vmatmul.mubr.bf16.vlgmr.msra.gmra.mrb[172].mxu1 %v9660_v23  ;;  %10337 = vmatpush1.bf16.msra.mxu0 %v14361_v48  ;;  %v14406_v23 = vld [vmem:[%s17132_s29 + $0x5f0] ss:$8 sps:$4 sm:$0xff]  }
0x21f4   :  { %10338 = vmatprep.subr.bf16.mxu0 %v14366_v39 }
0x21f7   :  { %10339 = vmatpush1.bf16.msra.mxu0 %v14364_v27 }
0x21f8   :  { %10340 = vmatprep.subr.bf16.mxu0 %v14369_v20 }
0x21fb   :  { %10341 = vmatpush1.bf16.msra.mxu0 %v14367_v4  ;;  %v12694_v4 = vld [vmem:[%s17136_s15 + $0x2] sm:$0x3] }
0x21fc   :  { %10342 = vmatprep.subr.bf16.mxu0 %v14372_v19  ;;  %v9767_v19 = vrot.slane %v12694_v4, %v15079_v13 }
0x21ff   :  { %10343 = vmatpush1.bf16.msra.mxu0 %v14370_v17  ;;  %v9597_v55 = vpop.f32.mrb[168].mxu1  ;;  %v9771_v17 = vrot.slane %v12694_v4, %v15082_v14 }
0x2200   :  { %v16880_v59 = vadd.f32 %v9597_v55, %v9107_v61  ;;  %v9599_v5 = vpop.f32.mrb[169].mxu1  ;;  %10344 = vmatprep.subr.bf16.mxu0 %v14375_v56 }
0x2201   :  { %v9600_v2 = vadd.f32 %v9599_v5, %v9111_v58  ;;  %v9601_v34 = vpop.f32.mrb[170].mxu1 }
0x2202   :  { %v9602_v26 = vpop.f32.mrb[171].mxu1  ;;  %v9608_v41 = vmul.f32 %v16880_v59, %v16880_v59 }
0x2203   :  { %v9609_v6 = vmul.f32 %v9600_v2, %v9600_v2  ;;  %10345 = vmatpush1.bf16.msra.mxu0 %v14373_v16 }
0x2204   :  { %10346 = vmatprep.subr.bf16.mxu0 %v14378_v53  ;;  %v9614_v12 = vmul.f32 %v9608_v41, %v16880_v59 }
0x2205   :  { %v9615_v32 = vmul.f32 %v9609_v6, %v9600_v2 }
0x2206   :  { %v9620_v42 = vmul.f32 0.044715, %v9614_v12 }
0x2207   :  { %v9621_v50 = vmul.f32 0.044715, %v9615_v32  ;;  %10347 = vmatpush1.bf16.msra.mxu0 %v14376_v36 }
0x2208   :  { %10348 = vmatprep.subr.bf16.mxu0 %v14381_v49  ;;  %v9626_v22 = vadd.f32 %v9620_v42, %v16880_v59 }
0x2209   :  { %v9627_v40 = vadd.f32 %v9621_v50, %v9600_v2 }
0x220a   :  { %v9632_v24 = vmul.f32 0.7978846, %v9626_v22  ;;  %v14412_v22 = vld [vmem:[%s17139_s14 + $0x10] ss:$8 sps:$4 sm:$0xff]  }
0x220b   :  { %v9633_v46 = vmul.f32 0.7978846, %v9627_v40  ;;  %10349 = vmatpush1.bf16.msra.mxu0 %v14379_v15 }
0x220c   :  { %10350 = vmatprep.subr.bf16.mxu0 %v14384_v63 }
0x220d   :  { %14755 = vtanh.f32 %v9633_v46  ;;  %v14409_v46 = vld [vmem:[%s17139_s14] ss:$8 sps:$4 sm:$0xff]  }
0x220e   :  { %14757 = vtanh.f32 %v9632_v24 }
0x220f   :  { %10351 = vmatpush1.bf16.msra.mxu0 %v14382_v54  ;;  %v14411_v54 = vld [vmem:[%s17139_s14 + $0x4] ss:$8 sps:$4 sm:$0xff]  }
0x2210   :  { %10352 = vmatprep.subr.bf16.mxu0 %v14387_v29  ;;  %v14414_v29 = vld [vmem:[%s17139_s14 + $0x14] ss:$8 sps:$4 sm:$0xff]   ;;  %10610 = vmatprep.subr.bf16.mxu1 %v14411_v54 }
0x2211   :  { %10611 = vmatpush1.bf16.msra.mxu1 %v14409_v46 }
0x2212   :  { %10612 = vmatprep.subr.bf16.mxu1 %v14414_v29 }
0x2213   :  { %10353 = vmatpush1.bf16.msra.mxu0 %v14385_v47  ;;  %v14417_v47 = vld [vmem:[%s17139_s14 + $0x24] ss:$8 sps:$4 sm:$0xff]  }
0x2214   :  { %10354 = vmatprep.subr.bf16.mxu0 %v14390_v43  ;;  %v14415_v43 = vld [vmem:[%s17139_s14 + $0x20] ss:$8 sps:$4 sm:$0xff]  }
0x2215   :  { %10613 = vmatpush1.bf16.msra.mxu1 %v14412_v22 }
0x2216   :  { %10614 = vmatprep.subr.bf16.mxu1 %v14417_v47 }
0x2217   :  { %v14756_v18 = vpop.eup %14755  ;;  %10355 = vmatpush1.bf16.msra.mxu0 %v14388_v33 }
0x2218   :  { %10356 = vmatprep.subr.bf16.mxu0 %v14393_v51  ;;  %v9645_v60 = vadd.f32 1.0, %v14756_v18  ;;  %v14758_v7 = vpop.eup %14757 }
0x2219   :  { %v9644_v48 = vadd.f32 1.0, %v14758_v7  ;;  %10615 = vmatpush1.bf16.msra.mxu1 %v14415_v43  ;;  %v14432_v7 = vld [vmem:[%s17139_s14 + $0x74] ss:$8 sps:$4 sm:$0xff]   ;;  %v10653_v43 = vld [vmem:[%s17140_s19] sm:$0x3] }
0x221a   :  { %v9651_v62 = vmul.f32 0.5, %v9645_v60 }
0x221b   :  { %10357 = vmatpush1.bf16.msra.mxu0 %v14391_v21  ;;  %v9650_v39 = vmul.f32 0.5, %v9644_v48  ;;  %v14433_v48 = vld [vmem:[%s17139_s14 + $0x80] ss:$8 sps:$4 sm:$0xff]  }
0x221c   :  { %10358 = vmatprep.subr.bf16.mxu0 %v14396_v52  ;;  %v9657_v37 = vmul.f32 %v9651_v62, %v9600_v2 }
0x221d   :  { %v9656_v27 = vmul.f32 %v9650_v39, %v16880_v59  ;;  %v14441_v39 = vld [vmem:[%s17139_s14 + $0xa4] ss:$8 sps:$4 sm:$0xff]  }
0x221e   :  { %v9663_v10 = vpack.c.bf16 %v9657_v37, %v9657_v37  ;;  %v14421_v37 = vld [vmem:[%s17139_s14 + $0x40] ss:$8 sps:$4 sm:$0xff]  }
0x221f   :  { %10359 = vmatpush1.bf16.msra.mxu0 %v14394_v31  ;;  %v9662_v20 = vpack.c.bf16 %v9656_v27, %v9656_v27  ;;  %v14423_v31 = vld [vmem:[%s17139_s14 + $0x44] ss:$8 sps:$4 sm:$0xff]   ;;  %v14444_v27 = vld [vmem:[%s17139_s14 + $0xb4] ss:$8 sps:$4 sm:$0xff]  }
0x2220   :  { %10368 = vmatprep.mubr.bf16.mxu0 %v9663_v10  ;;  %10360 = vmatprep.subr.bf16.mxu0 %v14399_v11  ;;  %v14426_v11 = vld [vmem:[%s17139_s14 + $0x54] ss:$8 sps:$4 sm:$0xff]   ;;  %v14424_v10 = vld [vmem:[%s17139_s14 + $0x50] ss:$8 sps:$4 sm:$0xff]  }
0x2223   :  { %10361 = vmatpush1.bf16.msra.mxu0 %v14397_v9  ;;  %v14427_v9 = vld [vmem:[%s17139_s14 + $0x60] ss:$8 sps:$4 sm:$0xff]  }
0x2224   :  { %10362 = vmatprep.subr.bf16.mxu0 %v14402_v30  ;;  %v14429_v30 = vld [vmem:[%s17139_s14 + $0x64] ss:$8 sps:$4 sm:$0xff]  }
0x2227   :  { %10363 = vmatpush1.bf16.msra.mxu0 %v14400_v57  ;;  %v14430_v57 = vld [vmem:[%s17139_s14 + $0x70] ss:$8 sps:$4 sm:$0xff]  }
0x2228   :  { %10364 = vmatprep.subr.bf16.mxu0 %v14405_v35  ;;  %v14435_v35 = vld [vmem:[%s17139_s14 + $0x84] ss:$8 sps:$4 sm:$0xff]  }
0x222b   :  { %10365 = vmatpush1.bf16.msra.mxu0 %v14403_v28  ;;  %v14438_v28 = vld [vmem:[%s17139_s14 + $0x94] ss:$8 sps:$4 sm:$0xff]  }
0x222c   :  { %10366 = vmatprep.subr.bf16.mxu0 %v14408_v3  ;;  %v14436_v3 = vld [vmem:[%s17139_s14 + $0x90] ss:$8 sps:$4 sm:$0xff]  }
0x222f   :  { %10367 = vmatpush1.bf16.msra.mxu0 %v14406_v23  ;;  %v14439_v23 = vld [vmem:[%s17139_s14 + $0xa0] ss:$8 sps:$4 sm:$0xff]  }
0x2232   :  { %10369 = vmatmul.mubr.bf16.vlgmr.msra.gmra.mrb[172].mxu0 %v9662_v20  ;;  %v14442_v20 = vld [vmem:[%s17139_s14 + $0xb0] ss:$8 sps:$4 sm:$0xff]  }
0x2233   :  { %11071 = vmatprep.mubr.bf16.mxu0 %v14820_v8 }
0x22c5   :  { %v10288_v61 = vpop.f32.mrb[168].mxu0 }
0x22c6   :  { %v10289_v56 = vadd.f32 %v10288_v61, %v9767_v19  ;;  %v10329_v58 = vpop.f32.mrb[172].mxu1  ;;  %v10290_v55 = vpop.f32.mrb[169].mxu0  ;;  %v12791_v61 = vld [vmem:[%s17137_s16 + $0x2] sm:$0x3] }
0x22c7   :  { %v10291_v16 = vadd.f32 %v10290_v55, %v9771_v17  ;;  %v10331_v5 = vpop.f32.mrb[173].mxu1  ;;  %v10292_v53 = vpop.f32.mrb[170].mxu0  ;;  %v10407_v55 = vrot.slane %v12791_v61, %v15082_v14 }
0x22c8   :  { %v10330_v2 = vadd.f32 %v10329_v58, %v10289_v56  ;;  %v10333_v59 = vpop.f32.mrb[174].mxu1  ;;  %v10293_v34 = vpop.f32.mrb[171].mxu0  ;;  %v12792_v56 = vld [vmem:[%s17138_s18 + $0x2] sm:$0x3]  ;;  %v10403_v58 = vrot.slane %v12791_v61, %v15079_v13 }
0x22c9   :  { %v10332_v26 = vadd.f32 %v10331_v5, %v10291_v16  ;;  %v10334_v41 = vpop.f32.mrb[175].mxu1  ;;  %v10418_v5 = vrot.slane %v12792_v56, %v15079_v13  ;;  %v10422_v53 = vrot.slane %v12792_v56, %v15082_v14 }
0x2305   :  { %v10370_v6 = vpop.f32.mrb[172].mxu0 }
0x2306   :  { %v10371_v36 = vadd.f32 %v10370_v6, %v10330_v2  ;;  %v10372_v49 = vpop.f32.mrb[173].mxu0 }
0x2307   :  { %v10373_v32 = vadd.f32 %v10372_v49, %v10332_v26  ;;  %v10374_v12 = vpop.f32.mrb[174].mxu0 }
0x2308   :  { %v10375_v50 = vpop.f32.mrb[175].mxu0  ;;  %v10377_v63 = vadd.f32 %v10371_v36, %v16754_v38  ;;  %v14418_v38 = vld [vmem:[%s17139_s14 + $0x30] ss:$8 sps:$4 sm:$0xff]  }
0x2309   :  { %v10378_v15 = vadd.f32 %v10373_v32, %v16752_v45  ;;  %v14420_v45 = vld [vmem:[%s17139_s14 + $0x34] ss:$8 sps:$4 sm:$0xff]  }
0x230a   :  { %10616 = vmatprep.subr.bf16.mxu1 %v14420_v45 }
0x230b   :  { %v10379_v40 = vsel %vm1136_vm5, %v10378_v15, 0.0  ;;  %10617 = vmatpush1.bf16.msra.mxu1 %v14418_v38 }
0x230c   :  { %v10380_v42 = vadd.f32 %v10379_v40, %v10377_v63  ;;  %10618 = vmatprep.subr.bf16.mxu1 %v14423_v31  ;;  %v14449_v31 = vld [vmem:[%s17143_s20] ss:$16 sps:$4 sm:$0xff]  }
0x230e   :  { %10381 = vadd.xlane.f32.xlu0 %v10380_v42 }
0x230f   :  { %10619 = vmatpush1.bf16.msra.mxu1 %v14421_v37  ;;  %v14451_v37 = vld [vmem:[%s17143_s20 + $0x4] ss:$16 sps:$4 sm:$0xff]  }
0x2310   :  { %10620 = vmatprep.subr.bf16.mxu1 %v14426_v11  ;;  %v14454_v11 = vld [vmem:[%s17143_s20 + $0xc] ss:$16 sps:$4 sm:$0xff]   ;;  %11039 = vmatprep.subr.bf16.mxu0 %v14451_v37 }
0x2311   :  { %11040 = vmatpush1.bf16.msra.mxu0 %v14449_v31  ;;  %v14508_v31 = vld [vmem:[%s17145_s23 + $0x2c] ss:$16 sps:$4 sm:$0xff]  }
0x2313   :  { %10621 = vmatpush1.bf16.msra.mxu1 %v14424_v10  ;;  %v14457_v10 = vld [vmem:[%s17143_s20 + $0x24] ss:$16 sps:$4 sm:$0xff]  }
0x2314   :  { %10622 = vmatprep.subr.bf16.mxu1 %v14429_v30  ;;  %11041 = vmatprep.subr.bf16.mxu0 %v14457_v10  ;;  %v14463_v30 = vld [vmem:[%s17143_s20 + $0x44] ss:$16 sps:$4 sm:$0xff]   ;;  %v14506_v10 = vld [vmem:[%s17145_s23 + $0x28] ss:$16 sps:$4 sm:$0xff]  }
0x2317   :  { %10623 = vmatpush1.bf16.msra.mxu1 %v14427_v9  ;;  %v14455_v9 = vld [vmem:[%s17143_s20 + $0x20] ss:$16 sps:$4 sm:$0xff]  }
0x2318   :  { %10624 = vmatprep.subr.bf16.mxu1 %v14432_v7  ;;  %11042 = vmatpush1.bf16.msra.mxu0 %v14455_v9  ;;  %v14461_v7 = vld [vmem:[%s17143_s20 + $0x40] ss:$16 sps:$4 sm:$0xff]   ;;  %v14511_v9 = vld [vmem:[%s17145_s23 + $0x44] ss:$16 sps:$4 sm:$0xff]  }
0x2319   :  { %11043 = vmatprep.subr.bf16.mxu0 %v14463_v30  ;;  %v14514_v30 = vld [vmem:[%s17145_s23 + $0x4c] ss:$16 sps:$4 sm:$0xff]  }
0x231b   :  { %10625 = vmatpush1.bf16.msra.mxu1 %v14430_v57  ;;  %v14469_v57 = vld [vmem:[%s17143_s20 + $0x64] ss:$16 sps:$4 sm:$0xff]  }
0x231c   :  { %10626 = vmatprep.subr.bf16.mxu1 %v14435_v35  ;;  %11044 = vmatpush1.bf16.msra.mxu0 %v14461_v7  ;;  %v14475_v35 = vld [vmem:[%s17143_s20 + $0x84] ss:$16 sps:$4 sm:$0xff]   ;;  %v14509_v7 = vld [vmem:[%s17145_s23 + $0x40] ss:$16 sps:$4 sm:$0xff]  }
0x231d   :  { %11045 = vmatprep.subr.bf16.mxu0 %v14469_v57  ;;  %v14512_v57 = vld [vmem:[%s17145_s23 + $0x48] ss:$16 sps:$4 sm:$0xff]  }
0x231f   :  { %10627 = vmatpush1.bf16.msra.mxu1 %v14433_v48  ;;  %v14473_v48 = vld [vmem:[%s17143_s20 + $0x80] ss:$16 sps:$4 sm:$0xff]  }
0x2320   :  { %10628 = vmatprep.subr.bf16.mxu1 %v14438_v28  ;;  %v14481_v28 = vld [vmem:[%s17143_s20 + $0xa4] ss:$16 sps:$4 sm:$0xff]  }
0x2323   :  { %10629 = vmatpush1.bf16.msra.mxu1 %v14436_v3  ;;  %v14479_v3 = vld [vmem:[%s17143_s20 + $0xa0] ss:$16 sps:$4 sm:$0xff]  }
0x2324   :  { %10630 = vmatprep.subr.bf16.mxu1 %v14441_v39  ;;  %v14487_v39 = vld [vmem:[%s17143_s20 + $0xc4] ss:$16 sps:$4 sm:$0xff]  }
0x2327   :  { %10631 = vmatpush1.bf16.msra.mxu1 %v14439_v23  ;;  %v14485_v23 = vld [vmem:[%s17143_s20 + $0xc0] ss:$16 sps:$4 sm:$0xff]  }
0x2328   :  { %10632 = vmatprep.subr.bf16.mxu1 %v14444_v27 }
0x232b   :  { %10633 = vmatpush1.bf16.msra.mxu1 %v14442_v20 }
0x232c   :  { %13526 = vmatprep.subr.bf16.mxu1 %v14822_v0 }
0x239b   :  { %v10382_v24 = vpop.xlane.xlu0 %10381 }
0x239c   :  { %v10383_v33 = vmul.f32 0.0052083335, %v10382_v24 }
0x239e   :  { %v10384_v51 = vsub.f32 %v10377_v63, %v10383_v33  ;;  %v10385_v18 = vsub.f32 %v10378_v15, %v10383_v33  ;;  %v10666_v63 = vsel %vm1646_vm8, 4294967295, %v14819_v1  ;;  %v10651_v1 = vld [vmem:[%s17141_s24] sm:$0x3] }
0x239f   :  { %v10667_v47 = vsel %vm10665_vm14, %v10666_v63, 0  ;;  %v14491_v63 = vld [vmem:[%s17143_s20 + $0xe0] ss:$16 sps:$4 sm:$0xff]  }
0x23a0   :  { %v10386_v21 = vmul.f32 %v10384_v51, %v10384_v51  ;;  %v10387_v52 = vmul.f32 %v10385_v18, %v10385_v18 }
0x23a2   :  { %v10388_v60 = vsel %vm1136_vm5, %v10387_v52, 0.0  ;;  %v14446_v52 = vld [vmem:[%s17142_s30 + $0x8] sm:$0xff]  }
0x23a3   :  { %v10389_v62 = vadd.f32 %v10388_v60, %v10386_v21  ;;  %v14445_v21 = vld [vmem:[%s17142_s30] sm:$0xff]   ;;  %v14447_v60 = vld [vmem:[%s17142_s30 + $0x10] sm:$0xff]  }
0x23a5   :  { %10390 = vadd.xlane.f32.xlu0 %v10389_v62  ;;  %v14448_v62 = vld [vmem:[%s17142_s30 + $0x18] sm:$0xff]  }
0x2432   :  { %v10391_v4 = vpop.xlane.xlu0 %10390 }
0x2433   :  { %v10392_v19 = vmul.f32 0.0052083335, %v10391_v4 }
0x2435   :  { %v10393_v17 = vadd.f32 1e-05, %v10392_v19 }
0x2437   :  { %14759 = vrsqrt.f32 %v10393_v17  ;;  %v12818_v17 = vld [vmem:[%s17144_s22] ss:$0 sm:$0xff] }
0x2441   :  { %v14760_v16 = vpop.eup %14759 }
0x2442   :  { %v10395_v2 = vmul.f32 %v14760_v16, %v10384_v51  ;;  %v10396_v59 = vmul.f32 %v14760_v16, %v10385_v18  ;;  %v10669_v51 = vand.u32 %v10667_v47, %v10653_v43  ;;  %v10652_v18 = vpack.c.bf16 %v10651_v1, %v10651_v1  ;;  %v12820_v47 = vld [vmem:[%s17147_s28] ss:$0 sm:$0xff] }
0x2444   :  { %v10410_v34 = vmul.f32 %v10403_v58, %v10395_v2  ;;  %v10411_v26 = vmul.f32 %v10407_v55, %v10396_v59  ;;  %v14460_v59 = vld [vmem:[%s17143_s20 + $0x2c] ss:$16 sps:$4 sm:$0xff]  }
0x2446   :  { %v10425_v41 = vadd.f32 %v10418_v5, %v10410_v34  ;;  %v10426_v6 = vadd.f32 %v10422_v53, %v10411_v26  ;;  %v14452_v53 = vld [vmem:[%s17143_s20 + $0x8] ss:$16 sps:$4 sm:$0xff]   ;;  %v14466_v26 = vld [vmem:[%s17143_s20 + $0x4c] ss:$16 sps:$4 sm:$0xff]  }
0x2447   :  { %v14458_v34 = vld [vmem:[%s17143_s20 + $0x28] ss:$16 sps:$4 sm:$0xff]  }
0x2448   :  { %v10430_v36 = vrot.slane %v10426_v6, 2  ;;  %v10429_v49 = vrot.slane %v10425_v41, 2  ;;  %v10436_v12 = vrot.slane %v10426_v6, 4  ;;  %v10435_v15 = vrot.slane %v10425_v41, 4 }
0x2449   :  { %v10442_v42 = vrot.slane %v10426_v6, 6  ;;  %v10441_v54 = vrot.slane %v10425_v41, 6 }
0x244a   :  { %v10434_v32 = vadd.f32 %v10430_v36, %v10426_v6  ;;  %v10433_v50 = vadd.f32 %v10429_v49, %v10425_v41  ;;  %v14464_v41 = vld [vmem:[%s17143_s20 + $0x48] ss:$16 sps:$4 sm:$0xff]   ;;  %v14472_v6 = vld [vmem:[%s17143_s20 + $0x6c] ss:$16 sps:$4 sm:$0xff]  }
0x244b   :  { %v14470_v36 = vld [vmem:[%s17143_s20 + $0x68] ss:$16 sps:$4 sm:$0xff]   ;;  %v14478_v49 = vld [vmem:[%s17143_s20 + $0x8c] ss:$16 sps:$4 sm:$0xff]  }
0x244c   :  { %v10440_v40 = vadd.f32 %v10436_v12, %v10434_v32  ;;  %v10439_v46 = vadd.f32 %v10435_v15, %v10433_v50  ;;  %v14484_v32 = vld [vmem:[%s17143_s20 + $0xac] ss:$16 sps:$4 sm:$0xff]   ;;  %v14482_v12 = vld [vmem:[%s17143_s20 + $0xa8] ss:$16 sps:$4 sm:$0xff]  }
0x244d   :  { %v14490_v50 = vld [vmem:[%s17143_s20 + $0xcc] ss:$16 sps:$4 sm:$0xff]   ;;  %v14488_v15 = vld [vmem:[%s17143_s20 + $0xc8] ss:$16 sps:$4 sm:$0xff]  }
0x244e   :  { %v10446_v29 = vadd.f32 %v10442_v42, %v10440_v40  ;;  %v10445_v22 = vadd.f32 %v10441_v54, %v10439_v46  ;;  %v14493_v40 = vld [vmem:[%s17143_s20 + $0xe4] ss:$16 sps:$4 sm:$0xff]   ;;  %v14494_v42 = vld [vmem:[%s17143_s20 + $0xe8] ss:$16 sps:$4 sm:$0xff]   ;;  %v14496_v46 = vld [vmem:[%s17143_s20 + $0xec] ss:$16 sps:$4 sm:$0xff]  }
0x244f   :  { %v14499_v54 = vld [vmem:[%s17145_s23 + $0x4] ss:$16 sps:$4 sm:$0xff]  }
0x2450   :  { %v10448_v45 = vmul.f32 0.25, %v10446_v29  ;;  %v10447_v38 = vmul.f32 0.25, %v10445_v22  ;;  %v14502_v29 = vld [vmem:[%s17145_s23 + $0xc] ss:$16 sps:$4 sm:$0xff]   ;;  %v17005_v22 = vld [vmem:[%s17146_s26] sm:$0x3] }
0x2451   :  { %v10484_v43 = vrot.slane %v17005_v22, %v15082_v14 }
0x2452   :  { %v10450_v24 = vpack.c.bf16 %v10448_v45, %v10448_v45  ;;  %v10449_v33 = vpack.c.bf16 %v10447_v38, %v10447_v38 }
0x2454   :  { %12817 = vmatprep.mubr.msk.bf16.mxu1 %vm1136_vm5, %v10450_v24 }
0x2455   :  { %10643 = vmatmul.mubr.bf16.vlgmr.msra.gmra.mrb[176].mxu1 %v10449_v33 }
0x2456   :  { %13527 = vmatpush3.bf16.msra.mxu1 %v10669_v51  ;;  %13528 = vmatprep.mubr.msk.bf16.mxu1 %vm14823_vm6, %v14822_v0 }
0x2457   :  { %13532 = vmatprep.subr.bf16.mxu1 %v14822_v0 }
0x245d   :  { %13529 = vmatmul.mubr.msk.bf16.vlgmr.msra.gmra.mrb[180].mxu1 %vm10661_vm15, %v10652_v18 }
0x245e   :  { %13540 = vmatprep.mubr.msk.bf16.mxu1 %vm14823_vm6, %v14822_v0  ;;  %13533 = vmatpush3.bf16.msra.mxu1 %v14445_v21  ;;  %v14497_v21 = vld [vmem:[%s17145_s23] ss:$16 sps:$4 sm:$0xff]  }
0x245f   :  { %13534 = vmatprep.subr.bf16.mxu1 %v14822_v0 }
0x2462   :  { %13535 = vmatpush3.bf16.msra.mxu1 %v14446_v52  ;;  %v14500_v52 = vld [vmem:[%s17145_s23 + $0x8] ss:$16 sps:$4 sm:$0xff]  }
0x2463   :  { %13536 = vmatprep.subr.bf16.mxu1 %v14822_v0 }
0x2466   :  { %13537 = vmatpush3.bf16.msra.mxu1 %v14447_v60 }
0x2467   :  { %13538 = vmatprep.subr.bf16.mxu1 %v14822_v0  ;;  %v14467_v0 = vld [vmem:[%s17143_s20 + $0x60] ss:$16 sps:$4 sm:$0xff]  }
0x2468   :  { %11046 = vmatpush1.bf16.msra.mxu0 %v14467_v0  ;;  %v14517_v0 = vld [vmem:[%s17145_s23 + $0x64] ss:$16 sps:$4 sm:$0xff]  }
0x2469   :  { %11047 = vmatprep.subr.bf16.mxu0 %v14475_v35  ;;  %v14520_v35 = vld [vmem:[%s17145_s23 + $0x6c] ss:$16 sps:$4 sm:$0xff]  }
0x246a   :  { %13539 = vmatpush3.bf16.msra.mxu1 %v14448_v62  ;;  %v14505_v62 = vld [vmem:[%s17145_s23 + $0x24] ss:$16 sps:$4 sm:$0xff]  }
0x246b   :  { %11080 = vmatprep.subr.bf16.mxu1 %v14454_v11  ;;  %v14503_v11 = vld [vmem:[%s17145_s23 + $0x20] ss:$16 sps:$4 sm:$0xff]  }
0x246c   :  { %11048 = vmatpush1.bf16.msra.mxu0 %v14473_v48  ;;  %v14515_v48 = vld [vmem:[%s17145_s23 + $0x60] ss:$16 sps:$4 sm:$0xff]  }
0x246d   :  { %11049 = vmatprep.subr.bf16.mxu0 %v14481_v28  ;;  %v14518_v28 = vld [vmem:[%s17145_s23 + $0x68] ss:$16 sps:$4 sm:$0xff]  }
0x2470   :  { %11050 = vmatpush1.bf16.msra.mxu0 %v14479_v3  ;;  %v14523_v3 = vld [vmem:[%s17145_s23 + $0x84] ss:$16 sps:$4 sm:$0xff]  }
0x2471   :  { %11051 = vmatprep.subr.bf16.mxu0 %v14487_v39  ;;  %v14526_v39 = vld [vmem:[%s17145_s23 + $0x8c] ss:$16 sps:$4 sm:$0xff]  }
0x2474   :  { %11052 = vmatpush1.bf16.msra.mxu0 %v14485_v23  ;;  %v14521_v23 = vld [vmem:[%s17145_s23 + $0x80] ss:$16 sps:$4 sm:$0xff]  }
0x2475   :  { %11053 = vmatprep.subr.bf16.mxu0 %v14493_v40  ;;  %v10480_v40 = vrot.slane %v17005_v22, %v15079_v13 }
0x2478   :  { %11054 = vmatpush1.bf16.msra.mxu0 %v14491_v63  ;;  %v14560_v63 = vld [vmem:[%s17145_s23 + $0x148] ss:$16 sps:$4 sm:$0xff]  }
0x2479   :  { %11364 = vmatprep.subr.bf16.mxu0 %v14499_v54  ;;  %v14563_v54 = vld [vmem:[%s17145_s23 + $0x160] ss:$16 sps:$4 sm:$0xff]  }
0x2528   :  { %v16980_v27 = vpop.f32.mrb[176].mxu1 }
0x2529   :  { %v10646_v20 = vpop.f32.mrb[177].mxu1 }
0x252a   :  { %v10648_v4 = vpop.f32.mrb[178].mxu1  ;;  %v10647_v51 = vadd.f32 %v10646_v20, %v10484_v43  ;;  %v14524_v20 = vld [vmem:[%s17145_s23 + $0x88] ss:$16 sps:$4 sm:$0xff]   ;;  %v14569_v43 = vld [vmem:[%s14996_s6 + $0x40] sm:$0xff]  }
0x252b   :  { %v10649_v19 = vpop.f32.mrb[179].mxu1  ;;  %v14529_v4 = vld [vmem:[%s17145_s23 + $0xa4] ss:$16 sps:$4 sm:$0xff]  }
0x252c   :  { %v10797_v37 = vpack.c.bf16 %v10647_v51, %v10647_v51  ;;  %v14532_v19 = vld [vmem:[%s17145_s23 + $0xac] ss:$16 sps:$4 sm:$0xff]  }
0x252d   :  { %v14574_v51 = vld [vmem:[%s14996_s6 + $0xc8] sm:$0xff]  }
0x2530   :  { %v10705_v61 = vpop.f32.mrb[180].mxu1 }
0x2531   :  { %v10706_v56 = vadd.f32 %v12818_v17, %v10705_v61  ;;  %v13530_v58 = vpop.f32.mrb[181].mxu1  ;;  %v14527_v17 = vld [vmem:[%s17145_s23 + $0xa0] ss:$16 sps:$4 sm:$0xff]   ;;  %v14530_v61 = vld [vmem:[%s17145_s23 + $0xa8] ss:$16 sps:$4 sm:$0xff]  }
0x2532   :  { %v10708_v55 = vpop.f32.mrb[182].mxu1  ;;  %v14538_v58 = vld [vmem:[%s17145_s23 + $0xcc] ss:$16 sps:$4 sm:$0xff]  }
0x2533   :  { %v10711_v16 = vmax.f32 %v10706_v56, 0.0  ;;  %v13531_v5 = vpop.f32.mrb[183].mxu1  ;;  %v14535_v56 = vld [vmem:[%s17145_s23 + $0xc4] ss:$16 sps:$4 sm:$0xff]   ;;  %v14533_v55 = vld [vmem:[%s17145_s23 + $0xc0] ss:$16 sps:$4 sm:$0xff]  }
0x2534   :  { %v14541_v5 = vld [vmem:[%s17145_s23 + $0xe4] ss:$16 sps:$4 sm:$0xff]  }
0x2535   :  { %v10712_v2 = vpack.c.bf16 %v10711_v16, %v10711_v16  ;;  %v14536_v16 = vld [vmem:[%s17145_s23 + $0xc8] ss:$16 sps:$4 sm:$0xff]  }
0x2537   :  { %13541 = vmatmul.mubr.msk.bf16.vlgmr.msra.gmra.mrb[184].mxu1 %vm1136_vm5, %v10712_v2  ;;  %v14539_v2 = vld [vmem:[%s17145_s23 + $0xe0] ss:$16 sps:$4 sm:$0xff]  }
0x2538   :  { %11081 = vmatpush1.bf16.msra.mxu1 %v14452_v53  ;;  %11112 = vmatprep.mubr.bf16.mxu1 %v14820_v8  ;;  %v14476_v8 = vld [vmem:[%s17143_s20 + $0x88] ss:$16 sps:$4 sm:$0xff]   ;;  %v14544_v53 = vld [vmem:[%s17145_s23 + $0xec] ss:$16 sps:$4 sm:$0xff]  }
0x2539   :  { %11082 = vmatprep.subr.bf16.mxu1 %v14460_v59  ;;  %v14542_v59 = vld [vmem:[%s17145_s23 + $0xe8] ss:$16 sps:$4 sm:$0xff]  }
0x253c   :  { %11083 = vmatpush1.bf16.msra.mxu1 %v14458_v34  ;;  %v14547_v34 = vld [vmem:[%s17145_s23 + $0x104] ss:$16 sps:$4 sm:$0xff]  }
0x253d   :  { %11084 = vmatprep.subr.bf16.mxu1 %v14466_v26  ;;  %v14550_v26 = vld [vmem:[%s17145_s23 + $0x10c] ss:$16 sps:$4 sm:$0xff]  }
0x2540   :  { %11085 = vmatpush1.bf16.msra.mxu1 %v14464_v41  ;;  %v14545_v41 = vld [vmem:[%s17145_s23 + $0x100] ss:$16 sps:$4 sm:$0xff]  }
0x2541   :  { %11086 = vmatprep.subr.bf16.mxu1 %v14472_v6  ;;  %v14548_v6 = vld [vmem:[%s17145_s23 + $0x108] ss:$16 sps:$4 sm:$0xff]  }
0x2544   :  { %11087 = vmatpush1.bf16.msra.mxu1 %v14470_v36  ;;  %v14553_v36 = vld [vmem:[%s17145_s23 + $0x124] ss:$16 sps:$4 sm:$0xff]  }
0x2545   :  { %11088 = vmatprep.subr.bf16.mxu1 %v14478_v49  ;;  %v14556_v49 = vld [vmem:[%s17145_s23 + $0x12c] ss:$16 sps:$4 sm:$0xff]  }
0x2548   :  { %11089 = vmatpush1.bf16.msra.mxu1 %v14476_v8  ;;  %v14551_v8 = vld [vmem:[%s17145_s23 + $0x120] ss:$16 sps:$4 sm:$0xff]  }
0x2549   :  { %11090 = vmatprep.subr.bf16.mxu1 %v14484_v32  ;;  %v14554_v32 = vld [vmem:[%s17145_s23 + $0x128] ss:$16 sps:$4 sm:$0xff]  }
0x254c   :  { %11091 = vmatpush1.bf16.msra.mxu1 %v14482_v12  ;;  %v14559_v12 = vld [vmem:[%s17145_s23 + $0x144] ss:$16 sps:$4 sm:$0xff]  }
0x254d   :  { %11092 = vmatprep.subr.bf16.mxu1 %v14490_v50  ;;  %v14562_v50 = vld [vmem:[%s17145_s23 + $0x14c] ss:$16 sps:$4 sm:$0xff]  }
0x2550   :  { %11093 = vmatpush1.bf16.msra.mxu1 %v14488_v15  ;;  %v14557_v15 = vld [vmem:[%s17145_s23 + $0x140] ss:$16 sps:$4 sm:$0xff]  }
0x2551   :  { %11094 = vmatprep.subr.bf16.mxu1 %v14496_v46  ;;  %v14568_v46 = vld [vmem:[%s17145_s23 + $0x16c] ss:$16 sps:$4 sm:$0xff]  }
0x2554   :  { %11095 = vmatpush1.bf16.msra.mxu1 %v14494_v42  ;;  %v14565_v42 = vld [vmem:[%s17145_s23 + $0x164] ss:$16 sps:$4 sm:$0xff]  }
0x2555   :  { %11405 = vmatprep.subr.bf16.mxu1 %v14502_v29  ;;  %v14566_v29 = vld [vmem:[%s17145_s23 + $0x168] ss:$16 sps:$4 sm:$0xff]  }
0x260a   :  { %v10789_v45 = vpop.f32.mrb[184].mxu1 }
0x260b   :  { %v10790_v38 = vadd.f32 %v12820_v47, %v10789_v45  ;;  %v13542_v24 = vpop.f32.mrb[185].mxu1  ;;  %v10645_v47 = vadd.f32 %v16980_v27, %v10480_v40  ;;  %v14570_v45 = vld [vmem:[%s14996_s6 + $0xc0] sm:$0xff]   ;;  %v14575_v27 = vld [vmem:[%s14996_s6 + $0x8] sm:$0xff]  }
0x260c   :  { %v10792_v33 = vpop.f32.mrb[186].mxu1  ;;  %v14572_v24 = vld [vmem:[%s14996_s6 + $0x80] sm:$0xff]  }
0x260d   :  { %v10795_v1 = vmax.f32 %v10790_v38, 0.0  ;;  %v13543_v18 = vpop.f32.mrb[187].mxu1  ;;  %v10796_v22 = vpack.c.bf16 %v10645_v47, %v10645_v47  ;;  %v14571_v38 = vld [vmem:[%s14996_s6] sm:$0xff]   ;;  %v14573_v33 = vld [vmem:[%s14996_s6 + $0x48] sm:$0xff]  }
0x260e   :  { %v14577_v18 = vld [vmem:[%s14996_s6 + $0x50] sm:$0xff]  }
0x260f   :  { %v10846_v60 = vpack.c.bf16 %v10795_v1, %v10795_v1  ;;  %v14576_v1 = vld [vmem:[%s14996_s6 + $0x88] sm:$0xff]  }
0x2611   :  { %11072 = vmatmul.mubr.bf16.vlgmr.msra.gmra.mrb[176].mxu0 %v10846_v60  ;;  %11113 = vmatmul.mubr.bf16.vlgmr.msra.gmra.mrb[188].mxu1 %v10846_v60  ;;  %v14580_v60 = vld [vmem:[%s14996_s6 + $0x90] sm:$0xff]  }
0x2612   :  { %11365 = vmatpush1.bf16.msra.mxu0 %v14497_v21  ;;  %11406 = vmatpush1.bf16.msra.mxu1 %v14500_v52  ;;  %v14578_v21 = vld [vmem:[%s14996_s6 + $0xd0] sm:$0xff]  }
0x2613   :  { %12906 = vmatprep.mubr.msk.bf16.mxu0 %vm1136_vm5, %v10797_v37  ;;  %12907 = vmatprep.mubr.msk.bf16.mxu1 %vm1136_vm5, %v10797_v37  ;;  %v14579_v52 = vld [vmem:[%s14996_s6 + $0x10] sm:$0xff]   ;;  %v14583_v37 = vld [vmem:[%s14996_s6 + $0x18] sm:$0xff]  }
0x2614   :  { %11366 = vmatprep.subr.bf16.mxu0 %v14505_v62  ;;  %11407 = vmatprep.subr.bf16.mxu1 %v14508_v31  ;;  %v14581_v62 = vld [vmem:[%s14996_s6 + $0x58] sm:$0xff]  }
0x2615   :  { %v14582_v31 = vld [vmem:[%s14996_s6 + $0xd8] sm:$0xff]  }
0x2616   :  { %11367 = vmatpush1.bf16.msra.mxu0 %v14503_v11  ;;  %11408 = vmatpush1.bf16.msra.mxu1 %v14506_v10  ;;  %v14584_v11 = vld [vmem:[%s14996_s6 + $0x98] sm:$0xff]   ;;  %v14585_v10 = vld [vmem:[%s14996_s6 + $0x60] sm:$0xff]  }
0x2617   :  { %11368 = vmatprep.subr.bf16.mxu0 %v14511_v9  ;;  %11409 = vmatprep.subr.bf16.mxu1 %v14514_v30  ;;  %v14586_v9 = vld [vmem:[%s14996_s6 + $0xe0] sm:$0xff]  }
0x2618   :  { %v14587_v30 = vld [vmem:[%s14996_s6 + $0x20] sm:$0xff]  }
0x261a   :  { %11369 = vmatpush1.bf16.msra.mxu0 %v14509_v7  ;;  %11410 = vmatpush1.bf16.msra.mxu1 %v14512_v57  ;;  %v14588_v7 = vld [vmem:[%s14996_s6 + $0xa0] sm:$0xff]   ;;  %v14589_v57 = vld [vmem:[%s14996_s6 + $0x68] sm:$0xff]  }
0x261b   :  { %11370 = vmatprep.subr.bf16.mxu0 %v14517_v0  ;;  %11411 = vmatprep.subr.bf16.mxu1 %v14520_v35  ;;  %v14590_v0 = vld [vmem:[%s14996_s6 + $0xe8] sm:$0xff]  }
0x261c   :  { %v14591_v35 = vld [vmem:[%s14996_s6 + $0x28] sm:$0xff]  }
0x261e   :  { %11371 = vmatpush1.bf16.msra.mxu0 %v14515_v48  ;;  %11412 = vmatpush1.bf16.msra.mxu1 %v14518_v28  ;;  %v14592_v48 = vld [vmem:[%s14996_s6 + $0xa8] sm:$0xff]   ;;  %v14593_v28 = vld [vmem:[%s14996_s6 + $0x70] sm:$0xff]  }
0x261f   :  { %11372 = vmatprep.subr.bf16.mxu0 %v14523_v3  ;;  %11413 = vmatprep.subr.bf16.mxu1 %v14526_v39  ;;  %v14594_v3 = vld [vmem:[%s14996_s6 + $0xf0] sm:$0xff]  }
0x2620   :  { %v14595_v39 = vld [vmem:[%s14996_s6 + $0x30] sm:$0xff]  }
0x2622   :  { %11373 = vmatpush1.bf16.msra.mxu0 %v14521_v23  ;;  %11414 = vmatpush1.bf16.msra.mxu1 %v14524_v20  ;;  %v14596_v23 = vld [vmem:[%s14996_s6 + $0xb0] sm:$0xff]   ;;  %v14597_v20 = vld [vmem:[%s14996_s6 + $0x78] sm:$0xff]  }
0x2623   :  { %11374 = vmatprep.subr.bf16.mxu0 %v14529_v4  ;;  %11415 = vmatprep.subr.bf16.mxu1 %v14532_v19  ;;  %v14598_v4 = vld [vmem:[%s14996_s6 + $0xf8] sm:$0xff]  }
0x2624   :  { %v14599_v19 = vld [vmem:[%s14996_s6 + $0x38] sm:$0xff]  }
0x2626   :  { %11375 = vmatpush1.bf16.msra.mxu0 %v14527_v17  ;;  %11416 = vmatpush1.bf16.msra.mxu1 %v14530_v61  ;;  %v14600_v17 = vld [vmem:[%s14996_s6 + $0xb8] sm:$0xff]   ;;  %s14832_s6 = smov [#allocation2]  }
0x2627   :  { %11376 = vmatprep.subr.bf16.mxu0 %v14535_v56  ;;  %11417 = vmatprep.subr.bf16.mxu1 %v14538_v58  ;;  %s11832_s2 = sshll.u32 %s14832_s6, 4  ;;  %s11833_s2 = int_to_ptr.vmem [resolvable:$true] %s11832_s2 }
0x2628   :  { %s14761_s7 = scalar_lea.vmem %s11833_s2, 32  ;;  %p14766_p1 = scmp.lt.s32.totalorder %s11833_s2, %s11833_s2 }
0x2629   :  { %p14762_p0 = scmp.ne.s32.totalorder %s11833_s2, %s14761_s7  ;;  %p14767_p2 = scmp.lt.s32.totalorder %s14761_s7, %s14761_s7 }
0x262a   :  { %11377 = vmatpush1.bf16.msra.mxu0 %v14533_v55  ;;  %11418 = vmatpush1.bf16.msra.mxu1 %v14536_v16 }
0x262b   :  { %11378 = vmatprep.subr.bf16.mxu0 %v14541_v5  ;;  %11419 = vmatprep.subr.bf16.mxu1 %v14544_v53  ;;  %p14768_p3 = por %p14767_p2, %p14766_p1 }
0x262d   :  { %p14769_p4 = pnand %p14768_p3, %p14762_p0 }
0x262e   :  { %11379 = vmatpush1.bf16.msra.mxu0 %v14539_v2  ;;  %11420 = vmatpush1.bf16.msra.mxu1 %v14542_v59  ;;  %v11446_v59 = vld [vmem:[%s17148_s1] sm:$0xf] }
0x262f   :  { %11380 = vmatprep.subr.bf16.mxu0 %v14547_v34  ;;  %11421 = vmatprep.subr.bf16.mxu1 %v14550_v26  ;;  %v11451_v34 = vrot.slane %v11446_v59, %v15079_v13  ;;  %v11459_v26 = vrot.slane %v11446_v59, %v15173_v44 }
0x2632   :  { %11381 = vmatpush1.bf16.msra.mxu0 %v14545_v41  ;;  %11422 = vmatpush1.bf16.msra.mxu1 %v14548_v6 }
0x2633   :  { %11382 = vmatprep.subr.bf16.mxu0 %v14553_v36  ;;  %11423 = vmatprep.subr.bf16.mxu1 %v14556_v49  ;;  %v11455_v36 = vrot.slane %v11446_v59, %v15082_v14  ;;  %v11463_v49 = vrot.slane %v11446_v59, %v15228_v25 }
0x2636   :  { %11383 = vmatpush1.bf16.msra.mxu0 %v14551_v8  ;;  %11424 = vmatpush1.bf16.msra.mxu1 %v14554_v32 }
0x2637   :  { %11384 = vmatprep.subr.bf16.mxu0 %v14559_v12  ;;  %11425 = vmatprep.subr.bf16.mxu1 %v14562_v50 }
0x263a   :  { %11385 = vmatpush1.bf16.msra.mxu0 %v14557_v15  ;;  %11426 = vmatpush1.bf16.msra.mxu1 %v14560_v63 }
0x263b   :  { %11386 = vmatprep.subr.bf16.mxu0 %v14565_v42  ;;  %11427 = vmatprep.subr.bf16.mxu1 %v14568_v46 }
0x263e   :  { %11387 = vmatpush1.bf16.msra.mxu0 %v14563_v54  ;;  %11428 = vmatpush1.bf16.msra.mxu1 %v14566_v29 }
0x263f   :  { %13098 = vmatprep.subr.bf16.mxu0 %v14569_v43  ;;  %13120 = vmatprep.subr.bf16.mxu1 %v14570_v45 }
0x2641   :  { %11397 = vmatmul.mubr.bf16.vlgmr.msra.gmra.mrb[180].mxu0 %v10796_v22  ;;  %11438 = vmatmul.mubr.bf16.vlgmr.msra.gmra.mrb[192].mxu1 %v10796_v22 }
0x2642   :  { %13099 = vmatpush3.bf16.msra.mxu0 %v14571_v38  ;;  %13121 = vmatpush3.bf16.msra.mxu1 %v14572_v24 }
0x2643   :  { %13100 = vmatprep.subr.bf16.mxu0 %v14573_v33  ;;  %13122 = vmatprep.subr.bf16.mxu1 %v14574_v51 }
0x2646   :  { %13101 = vmatpush3.bf16.msra.mxu0 %v14575_v27  ;;  %13123 = vmatpush3.bf16.msra.mxu1 %v14576_v1  ;;  %v12908_v1 = vld [vmem:[%s15001_s27] ss:$0 sm:$0xff] }
0x2647   :  { %13102 = vmatprep.subr.bf16.mxu0 %v14577_v18  ;;  %13124 = vmatprep.subr.bf16.mxu1 %v14578_v21 }
0x264a   :  { %13103 = vmatpush3.bf16.msra.mxu0 %v14579_v52  ;;  %13125 = vmatpush3.bf16.msra.mxu1 %v14580_v60 }
0x264b   :  { %13104 = vmatprep.subr.bf16.mxu0 %v14581_v62  ;;  %13126 = vmatprep.subr.bf16.mxu1 %v14582_v31 }
0x264e   :  { %13105 = vmatpush3.bf16.msra.mxu0 %v14583_v37  ;;  %13127 = vmatpush3.bf16.msra.mxu1 %v14584_v11 }
0x264f   :  { %13106 = vmatprep.subr.bf16.mxu0 %v14585_v10  ;;  %13128 = vmatprep.subr.bf16.mxu1 %v14586_v9 }
0x2652   :  { %13107 = vmatpush3.bf16.msra.mxu0 %v14587_v30  ;;  %13129 = vmatpush3.bf16.msra.mxu1 %v14588_v7 }
0x2653   :  { %13108 = vmatprep.subr.bf16.mxu0 %v14589_v57  ;;  %13130 = vmatprep.subr.bf16.mxu1 %v14590_v0 }
0x2656   :  { %13109 = vmatpush3.bf16.msra.mxu0 %v14591_v35  ;;  %13131 = vmatpush3.bf16.msra.mxu1 %v14592_v48 }
0x2657   :  { %13110 = vmatprep.subr.bf16.mxu0 %v14593_v28  ;;  %13132 = vmatprep.subr.bf16.mxu1 %v14594_v3 }
0x265a   :  { %13111 = vmatpush3.bf16.msra.mxu0 %v14595_v39  ;;  %13133 = vmatpush3.bf16.msra.mxu1 %v14596_v23 }
0x265b   :  { %13112 = vmatprep.subr.bf16.mxu0 %v14597_v20  ;;  %13134 = vmatprep.subr.bf16.mxu1 %v14598_v4 }
0x265e   :  { %13113 = vmatpush3.bf16.msra.mxu0 %v14599_v19  ;;  %13135 = vmatpush3.bf16.msra.mxu1 %v14600_v17 }
0x26e4   :  { %v11073_v61 = vpop.f32.mrb[176].mxu0  ;;  %v11114_v56 = vpop.f32.mrb[188].mxu1 }
0x26e5   :  { %v11075_v58 = vpop.f32.mrb[177].mxu0  ;;  %v11116_v55 = vpop.f32.mrb[189].mxu1 }
0x26e6   :  { %v11077_v16 = vpop.f32.mrb[178].mxu0  ;;  %v11118_v5 = vpop.f32.mrb[190].mxu1 }
0x26e7   :  { %v11078_v53 = vpop.f32.mrb[179].mxu0  ;;  %v11119_v2 = vpop.f32.mrb[191].mxu1 }
0x2714   :  { %v11398_v41 = vpop.f32.mrb[180].mxu0  ;;  %v11439_v6 = vpop.f32.mrb[192].mxu1 }
0x2715   :  { %v11399_v8 = vadd.f32 %v11398_v41, %v11073_v61  ;;  %v11440_v32 = vadd.f32 %v11439_v6, %v11114_v56  ;;  %v11400_v12 = vpop.f32.mrb[181].mxu0  ;;  %v11441_v50 = vpop.f32.mrb[193].mxu1 }
0x2716   :  { %v11401_v15 = vadd.f32 %v11400_v12, %v11075_v58  ;;  %v11442_v63 = vadd.f32 %v11441_v50, %v11116_v55  ;;  %v11402_v40 = vpop.f32.mrb[182].mxu0  ;;  %v11443_v42 = vpop.f32.mrb[194].mxu1 }
0x2717   :  { %v11468_v46 = vadd.f32 %v11451_v34, %v11399_v8  ;;  %v11470_v54 = vadd.f32 %v11459_v26, %v11440_v32  ;;  %v11403_v29 = vpop.f32.mrb[183].mxu0  ;;  %v11444_v13 = vpop.f32.mrb[195].mxu1 }
0x2718   :  { %v11469_v47 = vadd.f32 %v11455_v36, %v11401_v15  ;;  %v11471_v44 = vadd.f32 %v11463_v49, %v11442_v63 }
0x2719   :  { %v11472_v22 = vmax.f32 %v11468_v46, 0.0  ;;  %v11474_v43 = vmax.f32 %v11470_v54, 0.0 }
0x271a   :  { %v11473_v14 = vmax.f32 %v11469_v47, 0.0  ;;  %v11475_v45 = vmax.f32 %v11471_v44, 0.0 }
0x271b   :  { %v11476_v24 = vpack.c.bf16 %v11472_v22, %v11472_v22  ;;  %v11478_v33 = vpack.c.bf16 %v11474_v43, %v11474_v43 }
0x271c   :  { %v11477_v25 = vpack.c.bf16 %v11473_v14, %v11473_v14  ;;  %v11479_v38 = vpack.c.bf16 %v11475_v45, %v11475_v45 }
0x271e   :  { %11775 = vmatprep.mubr.bf16.mxu0 %v11477_v25  ;;  %11815 = vmatprep.mubr.bf16.mxu1 %v11479_v38 }
0x271f   :  { %11776 = vmatmul.mubr.bf16.vlgmr.msra.gmra.mrb[184].mxu0 %v11476_v24  ;;  %11816 = vmatmul.mubr.bf16.vlgmr.msra.gmra.mrb[196].mxu1 %v11478_v33 }
0x27f2   :  { %v13114_v51 = vpop.f32.mrb[184].mxu0  ;;  %v13136_v27 = vpop.f32.mrb[196].mxu1 }
0x27f3   :  { %v13115_v18 = vpop.f32.mrb[185].mxu0  ;;  %v13137_v21 = vpop.f32.mrb[197].mxu1 }
0x27f4   :  { %v13116_v52 = vadd.f32 %v13115_v18, %v13114_v51  ;;  %v13138_v60 = vadd.f32 %v13137_v21, %v13136_v27  ;;  %v13117_v62 = vpop.f32.mrb[186].mxu0  ;;  %v13139_v31 = vpop.f32.mrb[198].mxu1 }
0x27f5   :  { %v13118_v37 = vpop.f32.mrb[187].mxu0  ;;  %v13140_v11 = vpop.f32.mrb[199].mxu1 }
0x27f6   :  { %v11778_v10 = vadd.f32 %v13116_v52, %v12908_v1 }
0x27f8   :  { %v11818_v9 = vadd.f32 %v13138_v60, %v11778_v10 }
0x27fa   :  { %11823 = vst [vmem:[#allocation2] sm:$0x3] %v11818_v9 }
0x27fb   :  { %14772 = shalt.err (!%p14769_p4)
}
0x27fc   :  { %s14773_s27 = scalar_lea.hbm %s15011_s12, 32 }
0x27fd   :  { %p14774_p5 = scmp.ne.s32.totalorder %s15011_s12, %s14773_s27  ;;  %p14777_p6 = scmp.lt.u32.totalorder %s14773_s27, %s15011_s12 }
0x27ff   :  { %p14779_p7 = pnand %p14777_p6, %p14774_p5 }
0x2801   :  { %14782 = shalt.err (!%p14779_p7)
}
0x2802   :  { %11835 = dma.vmem_to_hbm [thread:$0]  %s11833_s2, 32, %s15011_s12, [#allocation3]  }
0x2803   :  { %14783 = dma.done.wait [#allocation3], 32  }
0x2804   :  { %14784 = vsyncadd [#allocation3], 4294967264 }
0x2805   :  { %11841 = vsyncpa [#allocation3], 1 }

</bundles_post_ra>
